<compile_context>
chip_gen: v5e
topology: v5e:2x2
jax: 0.10.0
libtpu: 0.0.40
codegen_flags: <defaults>
</compile_context>

<pallas_src>
import jax
import jax.numpy as jnp
from jax import lax
from jax.experimental import pallas as pl
from jax.experimental.pallas import tpu as pltpu


_HEAD_PAD = 128          # lane-dense head width: 2 label + 4 offset + zero pad
_CPARAMS = pltpu.CompilerParams(
    dimension_semantics=("parallel",),          # batch images -> both TCs (v7x)
    vmem_limit_bytes=48 * 1024 * 1024,          # safe on v7x (64 MiB physical)
)


# ------------------------------ fused kernel -------------------------------- #

def _conv3x3(feat, w, cin):
    """3x3 VALID conv of an (H, W, Cin) value as one MXU dot.

    Nine shifted static slices are flattened to (Ho*Wo, Cin) row matrices and
    concatenated along the lane dim into a (Ho*Wo, 9*Cin) patch matrix whose
    column order matches the (kh, kw, cin)-flattened weight rows."""
    h, w_sp, _ = feat.shape
    ho, wo = h - 2, w_sp - 2
    cols = jnp.concatenate(
        [feat[di:di + ho, dj:dj + wo, :].reshape(ho * wo, cin)
         for di in range(3) for dj in range(3)], axis=-1)
    acc = jnp.dot(cols, w, preferred_element_type=jnp.float32)
    return acc, ho, wo


def _bias_prelu(acc, b, a):
    z = acc + b
    return jnp.where(z > 0.0, z, a * z)


def _pnet_kernel(x_ref, w1_ref, b1_ref, a1_ref, w2_ref, b2_ref, a2_ref,
                 w3_ref, b3_ref, a3_ref, wh_ref, bh_ref, o_ref):
    cdt = jnp.bfloat16
    x = x_ref[0]                                        # (H, W, 3) bf16

    # ---- conv1 (pre-activation accumulator) --------------------------------
    acc1, h1, w1 = _conv3x3(x, w1_ref[...], 3)          # (h1*w1, 10) f32
    c1 = acc1.reshape(h1, w1, 10)

    # ---- 2x2 / stride-2 ceil-mode max-pool on the pre-activation -----------
    # max first, then bias + PReLU once (exact: bias is per-channel constant,
    # PReLU with slope >= 0 is monotone; slopes are the default 0.25 here).
    # Ceil-mode edge: replicate the last valid row/col (max over a duplicate
    # equals max over the valid-only window, matching PyTorch ceil_mode).
    hp, wp = -(-h1 // 2), -(-w1 // 2)
    if h1 % 2:
        c1 = jnp.concatenate([c1, c1[h1 - 1:h1]], axis=0)
    if w1 % 2:
        c1 = jnp.concatenate([c1, c1[:, w1 - 1:w1]], axis=1)
    c1 = c1.reshape(hp, 2, 2 * wp, 10)
    c1 = jnp.maximum(c1[:, 0], c1[:, 1])                # (hp, 2*wp, 10)
    c1 = c1.reshape(hp, wp, 2, 10)
    c1 = jnp.maximum(c1[:, :, 0], c1[:, :, 1])          # (hp, wp, 10)

    f1 = _bias_prelu(c1, b1_ref[...], a1_ref[...]).astype(cdt)   # (hp, wp, 10)

    # ---- conv2 + PReLU ------------------------------------------------------
    acc2, h2, w2 = _conv3x3(f1, w2_ref[...], 10)
    f2 = _bias_prelu(acc2, b2_ref[...], a2_ref[...]).astype(cdt)
    f2 = f2.reshape(h2, w2, 16)

    # ---- conv3 + PReLU ------------------------------------------------------
    acc3, h3, w3 = _conv3x3(f2, w3_ref[...], 16)
    f3 = _bias_prelu(acc3, b3_ref[...], a3_ref[...]).astype(cdt)  # (h3*w3, 32)

    # ---- fused 1x1 heads (conv4_1 | conv4_2 | zero-pad to 128 lanes) --------
    hd = jnp.dot(f3, wh_ref[...], preferred_element_type=jnp.float32) + bh_ref[...]
    sig = 1.0 / (1.0 + jnp.exp(-hd))                    # exact sigmoid
    col = lax.broadcasted_iota(jnp.int32, hd.shape, 1)
    o_ref[0] = jnp.where(col < 2, sig, hd).astype(o_ref.dtype)   # sigmoid on conv4_1 only


# --------------------------------- params ----------------------------------- #

def init_params(key):
    """Deterministic synthetic init (weight_init is not defined in the source;
    PReLU slopes use PyTorch's default 0.25).  Conv weights are stored
    HWIO-flattened as (k*k*Cin, Cout), row order (kh, kw, cin).  Masters f32."""
    def conv(k_, ksize, cin, cout, scale=0.1):
        kw_, kb = jax.random.split(k_)
        w = scale * jax.random.normal(kw_, (ksize, ksize, cin, cout), jnp.float32)
        b = 0.01 * jax.random.normal(kb, (1, cout), jnp.float32)
        return w.reshape(ksize * ksize * cin, cout), b

    keys = jax.random.split(key, 5)
    p = {}
    p["w1"], p["b1"] = conv(keys[0], 3, 3, 10)
    p["a1"] = jnp.full((1, 10), 0.25, jnp.float32)
    p["w2"], p["b2"] = conv(keys[1], 3, 10, 16)
    p["a2"] = jnp.full((1, 16), 0.25, jnp.float32)
    p["w3"], p["b3"] = conv(keys[2], 3, 16, 32)
    p["a3"] = jnp.full((1, 32), 0.25, jnp.float32)
    p["w41"], p["b41"] = conv(keys[3], 1, 32, 2)
    p["w42"], p["b42"] = conv(keys[4], 1, 32, 4)
    # conv4_3 exists in the PyTorch module but is never used in forward().
    return p


# -------------------------------- forward ----------------------------------- #

def pnet_forward(params, x_nchw):
    """PNet.forward: returns (label, offset) exactly like the PyTorch module."""
    cdt = jnp.bfloat16
    x = jnp.transpose(x_nchw, (0, 2, 3, 1)).astype(cdt)          # NCHW -> NHWC bf16
    n, h, w, _ = x.shape
    h1, w1 = h - 2, w - 2
    hp, wp = -(-h1 // 2), -(-w1 // 2)
    h3, w3 = hp - 4, wp - 4
    r3 = h3 * w3

    w1m = params["w1"].astype(cdt)
    w2m = params["w2"].astype(cdt)
    w3m = params["w3"].astype(cdt)
    # heads zero-padded to 128 output lanes -> kernel store is lane-dense
    wh = jnp.zeros((32, _HEAD_PAD), jnp.float32)
    wh = wh.at[:, :2].set(params["w41"]).at[:, 2:6].set(params["w42"]).astype(cdt)
    bh = jnp.zeros((1, _HEAD_PAD), jnp.float32)
    bh = bh.at[:, :2].set(params["b41"]).at[:, 2:6].set(params["b42"])

    resident = [w1m, params["b1"], params["a1"],
                w2m, params["b2"], params["a2"],
                w3m, params["b3"], params["a3"],
                wh, bh]

    # TODO(synk): for large pyramid levels (whole image too big for VMEM) add a
    # second grid axis over row super-tiles with a small row halo in the x
    # BlockSpec; the fused body stays identical.
    out = pl.pallas_call(
        _pnet_kernel,
        out_shape=jax.ShapeDtypeStruct((n, r3, _HEAD_PAD), jnp.float32),
        grid=(n,),
        in_specs=[pl.BlockSpec((1, h, w, 3), lambda b: (b, 0, 0, 0))]
                 + [pl.BlockSpec(r.shape, lambda b: (0, 0)) for r in resident],
        out_specs=pl.BlockSpec((1, r3, _HEAD_PAD), lambda b: (b, 0, 0)),
        compiler_params=_CPARAMS,
    )(x, *resident)

    head = out[:, :, :6].reshape(n, h3, w3, 6)
    label = jnp.transpose(head[..., :2], (0, 3, 1, 2))            # NCHW
    offset = jnp.transpose(head[..., 2:6], (0, 3, 1, 2))          # NCHW
    return label, offset


# ------------------------- plain-JAX reference check ------------------------ #

def pnet_reference(params, x_nchw):
    x = jnp.transpose(x_nchw, (0, 2, 3, 1)).astype(jnp.float32)

    def conv(hm, wmat, b, k, cin, cout):
        w = wmat.reshape(k, k, cin, cout)
        dn = lax.conv_dimension_numbers(hm.shape, w.shape, ("NHWC", "HWIO", "NHWC"))
        return lax.conv_general_dilated(hm, w, (1, 1), "VALID", dimension_numbers=dn,
                                        precision=lax.Precision.HIGHEST) + b.reshape(1, 1, 1, cout)

    def prelu(hm, a):
        return jnp.where(hm > 0, hm, a.reshape(1, 1, 1, -1) * hm)

    def maxpool_ceil(hm):
        _, hh, ww, _ = hm.shape
        hp, wp = -(-hh // 2), -(-ww // 2)
        return lax.reduce_window(hm, jnp.array(-jnp.inf, hm.dtype), lax.max,
                                 (1, 2, 2, 1), (1, 2, 2, 1),
                                 ((0, 0), (0, 2 * hp - hh), (0, 2 * wp - ww), (0, 0)))

    hm = prelu(conv(x, params["w1"], params["b1"], 3, 3, 10), params["a1"])
    hm = maxpool_ceil(hm)
    hm = prelu(conv(hm, params["w2"], params["b2"], 3, 10, 16), params["a2"])
    hm = prelu(conv(hm, params["w3"], params["b3"], 3, 16, 32), params["a3"])
    lab = jax.nn.sigmoid(conv(hm, params["w41"], params["b41"], 1, 32, 2))
    off = conv(hm, params["w42"], params["b42"], 1, 32, 4)
    return jnp.transpose(lab, (0, 3, 1, 2)), jnp.transpose(off, (0, 3, 1, 2))


if __name__ == "__main__":
    key = jax.random.PRNGKey(0)
    kx, kp, kx2 = jax.random.split(key, 3)
    params = init_params(kp)
    fwd = jax.jit(pnet_forward)

    # Test 1: even post-conv spatial size (no ceil-mode clamping needed).
    x = jax.random.normal(kx, (2, 3, 16, 16), jnp.float32)       # NCHW like PyTorch
    label, offset = fwd(params, x)
    jax.block_until_ready((label, offset))
    assert label.shape == (2, 2, 3, 3), label.shape
    assert offset.shape == (2, 4, 3, 3), offset.shape
    ref_label, ref_offset = pnet_reference(params, x)
    assert jnp.allclose(label, ref_label, atol=3e-2, rtol=3e-2)
    assert jnp.allclose(offset, ref_offset, atol=3e-2, rtol=3e-2)
    assert bool(jnp.all(jnp.isfinite(label))) and bool(jnp.all(jnp.isfinite(offset)))

    # Test 2: odd spatial size -> exercises the ceil_mode max-pool edge handling.
    x2 = jax.random.normal(kx2, (1, 3, 13, 13), jnp.float32)
    label2, offset2 = fwd(params, x2)
    jax.block_until_ready((label2, offset2))
    assert label2.shape == (1, 2, 2, 2), label2.shape
    assert offset2.shape == (1, 4, 2, 2), offset2.shape
    rl2, ro2 = pnet_reference(params, x2)
    assert jnp.allclose(label2, rl2, atol=3e-2, rtol=3e-2)
    assert jnp.allclose(offset2, ro2, atol=3e-2, rtol=3e-2)
    assert bool(jnp.all(jnp.isfinite(label2))) and bool(jnp.all(jnp.isfinite(offset2)))

    print("KERNEL_OK")
</pallas_src>

<mosaic_0001>
module attributes {stable_mosaic.version = 11 : i64} {
  func.func @_pnet_kernel(%arg0: i32, %arg1: memref<1x16x16x3xbf16, #tpu.memory_space<vmem>>, %arg2: memref<27x10xbf16, #tpu.memory_space<vmem>>, %arg3: memref<1x10xf32, #tpu.memory_space<vmem>>, %arg4: memref<1x10xf32, #tpu.memory_space<vmem>>, %arg5: memref<90x16xbf16, #tpu.memory_space<vmem>>, %arg6: memref<1x16xf32, #tpu.memory_space<vmem>>, %arg7: memref<1x16xf32, #tpu.memory_space<vmem>>, %arg8: memref<144x32xbf16, #tpu.memory_space<vmem>>, %arg9: memref<1x32xf32, #tpu.memory_space<vmem>>, %arg10: memref<1x32xf32, #tpu.memory_space<vmem>>, %arg11: memref<32x128xbf16, #tpu.memory_space<vmem>>, %arg12: memref<1x128xf32, #tpu.memory_space<vmem>>, %arg13: memref<1x9x128xf32, #tpu.memory_space<vmem>>) attributes {dimension_semantics = [#tpu.dimension_semantics<parallel>], iteration_bounds = array<i64: 2>, scalar_prefetch = 0 : i64, scratch_operands = 0 : i64, tpu.core_type = #tpu.core_type<tc>, window_params = [{transform_indices = @transform_0, window_bounds = array<i64: 1, 16, 16, 3>}, {pipeline_mode = #tpu.pipeline_mode<synchronous>, transform_indices = @transform_1, window_bounds = array<i64: 27, 10>}, {pipeline_mode = #tpu.pipeline_mode<synchronous>, transform_indices = @transform_2, window_bounds = array<i64: 1, 10>}, {pipeline_mode = #tpu.pipeline_mode<synchronous>, transform_indices = @transform_3, window_bounds = array<i64: 1, 10>}, {pipeline_mode = #tpu.pipeline_mode<synchronous>, transform_indices = @transform_4, window_bounds = array<i64: 90, 16>}, {pipeline_mode = #tpu.pipeline_mode<synchronous>, transform_indices = @transform_5, window_bounds = array<i64: 1, 16>}, {pipeline_mode = #tpu.pipeline_mode<synchronous>, transform_indices = @transform_6, window_bounds = array<i64: 1, 16>}, {pipeline_mode = #tpu.pipeline_mode<synchronous>, transform_indices = @transform_7, window_bounds = array<i64: 144, 32>}, {pipeline_mode = #tpu.pipeline_mode<synchronous>, transform_indices = @transform_8, window_bounds = array<i64: 1, 32>}, {pipeline_mode = #tpu.pipeline_mode<synchronous>, transform_indices = @transform_9, window_bounds = array<i64: 1, 32>}, {pipeline_mode = #tpu.pipeline_mode<synchronous>, transform_indices = @transform_10, window_bounds = array<i64: 32, 128>}, {pipeline_mode = #tpu.pipeline_mode<synchronous>, transform_indices = @transform_11, window_bounds = array<i64: 1, 128>}, {transform_indices = @transform_12, window_bounds = array<i64: 1, 9, 128>}]} {
    %c0 = arith.constant 0 : index
    %c0_0 = arith.constant 0 : index
    %c0_1 = arith.constant 0 : index
    %c0_2 = arith.constant 0 : index
    %0 = vector.load %arg1[%c0, %c0_0, %c0_1, %c0_2] : memref<1x16x16x3xbf16, #tpu.memory_space<vmem>>, vector<1x16x16x3xbf16>
    %1 = vector.shape_cast %0 : vector<1x16x16x3xbf16> to vector<16x16x3xbf16>
    %c0_3 = arith.constant 0 : index
    %c0_4 = arith.constant 0 : index
    %2 = vector.load %arg2[%c0_3, %c0_4] : memref<27x10xbf16, #tpu.memory_space<vmem>>, vector<27x10xbf16>
    %3 = vector.extract_strided_slice %1 {offsets = [0, 0, 0], sizes = [14, 14, 3], strides = [1, 1, 1]} : vector<16x16x3xbf16> to vector<14x14x3xbf16>
    %4 = vector.shape_cast %3 : vector<14x14x3xbf16> to vector<196x3xbf16>
    %5 = vector.extract_strided_slice %1 {offsets = [0, 1, 0], sizes = [14, 14, 3], strides = [1, 1, 1]} : vector<16x16x3xbf16> to vector<14x14x3xbf16>
    %6 = vector.shape_cast %5 : vector<14x14x3xbf16> to vector<196x3xbf16>
    %7 = vector.extract_strided_slice %1 {offsets = [0, 2, 0], sizes = [14, 14, 3], strides = [1, 1, 1]} : vector<16x16x3xbf16> to vector<14x14x3xbf16>
    %8 = vector.shape_cast %7 : vector<14x14x3xbf16> to vector<196x3xbf16>
    %9 = vector.extract_strided_slice %1 {offsets = [1, 0, 0], sizes = [14, 14, 3], strides = [1, 1, 1]} : vector<16x16x3xbf16> to vector<14x14x3xbf16>
    %10 = vector.shape_cast %9 : vector<14x14x3xbf16> to vector<196x3xbf16>
    %11 = vector.extract_strided_slice %1 {offsets = [1, 1, 0], sizes = [14, 14, 3], strides = [1, 1, 1]} : vector<16x16x3xbf16> to vector<14x14x3xbf16>
    %12 = vector.shape_cast %11 : vector<14x14x3xbf16> to vector<196x3xbf16>
    %13 = vector.extract_strided_slice %1 {offsets = [1, 2, 0], sizes = [14, 14, 3], strides = [1, 1, 1]} : vector<16x16x3xbf16> to vector<14x14x3xbf16>
    %14 = vector.shape_cast %13 : vector<14x14x3xbf16> to vector<196x3xbf16>
    %15 = vector.extract_strided_slice %1 {offsets = [2, 0, 0], sizes = [14, 14, 3], strides = [1, 1, 1]} : vector<16x16x3xbf16> to vector<14x14x3xbf16>
    %16 = vector.shape_cast %15 : vector<14x14x3xbf16> to vector<196x3xbf16>
    %17 = vector.extract_strided_slice %1 {offsets = [2, 1, 0], sizes = [14, 14, 3], strides = [1, 1, 1]} : vector<16x16x3xbf16> to vector<14x14x3xbf16>
    %18 = vector.shape_cast %17 : vector<14x14x3xbf16> to vector<196x3xbf16>
    %19 = vector.extract_strided_slice %1 {offsets = [2, 2, 0], sizes = [14, 14, 3], strides = [1, 1, 1]} : vector<16x16x3xbf16> to vector<14x14x3xbf16>
    %20 = vector.shape_cast %19 : vector<14x14x3xbf16> to vector<196x3xbf16>
    %21 = tpu.concatenate %4, %6, %8, %10, %12, %14, %16, %18, %20 in 1 : vector<196x3xbf16>, vector<196x3xbf16>, vector<196x3xbf16>, vector<196x3xbf16>, vector<196x3xbf16>, vector<196x3xbf16>, vector<196x3xbf16>, vector<196x3xbf16>, vector<196x3xbf16> -> vector<196x27xbf16>
    %cst = arith.constant dense<0.000000e+00> : vector<196x10xf32>
    %22 = tpu.matmul %21, %2, %cst {dimension_numbers = #tpu.dot_dimension_numbers<[1], [0], [0], [1], [0, 0, 1, 1], [], []>} : vector<196x27xbf16>, vector<27x10xbf16>, vector<196x10xf32> -> vector<196x10xf32>
    %23 = vector.shape_cast %22 : vector<196x10xf32> to vector<14x14x10xf32>
    %24 = vector.shape_cast %23 : vector<14x14x10xf32> to vector<7x2x14x10xf32>
    %25 = vector.extract_strided_slice %24 {offsets = [0, 0, 0, 0], sizes = [7, 1, 14, 10], strides = [1, 1, 1, 1]} : vector<7x2x14x10xf32> to vector<7x1x14x10xf32>
    %26 = vector.shape_cast %25 : vector<7x1x14x10xf32> to vector<7x14x10xf32>
    %27 = vector.extract_strided_slice %24 {offsets = [0, 1, 0, 0], sizes = [7, 1, 14, 10], strides = [1, 1, 1, 1]} : vector<7x2x14x10xf32> to vector<7x1x14x10xf32>
    %28 = vector.shape_cast %27 : vector<7x1x14x10xf32> to vector<7x14x10xf32>
    %29 = arith.maximumf %26, %28 : vector<7x14x10xf32>
    %30 = vector.shape_cast %29 : vector<7x14x10xf32> to vector<7x7x2x10xf32>
    %31 = vector.extract_strided_slice %30 {offsets = [0, 0, 0, 0], sizes = [7, 7, 1, 10], strides = [1, 1, 1, 1]} : vector<7x7x2x10xf32> to vector<7x7x1x10xf32>
    %32 = vector.shape_cast %31 : vector<7x7x1x10xf32> to vector<7x7x10xf32>
    %33 = vector.extract_strided_slice %30 {offsets = [0, 0, 1, 0], sizes = [7, 7, 1, 10], strides = [1, 1, 1, 1]} : vector<7x7x2x10xf32> to vector<7x7x1x10xf32>
    %34 = vector.shape_cast %33 : vector<7x7x1x10xf32> to vector<7x7x10xf32>
    %35 = arith.maximumf %32, %34 : vector<7x7x10xf32>
    %c0_5 = arith.constant 0 : index
    %c0_6 = arith.constant 0 : index
    %36 = vector.load %arg3[%c0_5, %c0_6] : memref<1x10xf32, #tpu.memory_space<vmem>>, vector<1x10xf32>
    %c0_7 = arith.constant 0 : index
    %c0_8 = arith.constant 0 : index
    %37 = vector.load %arg4[%c0_7, %c0_8] : memref<1x10xf32, #tpu.memory_space<vmem>>, vector<1x10xf32>
    %38 = vector.shape_cast %36 : vector<1x10xf32> to vector<1x1x10xf32>
    %39 = vector.broadcast %38 : vector<1x1x10xf32> to vector<7x7x10xf32>
    %40 = arith.addf %35, %39 : vector<7x7x10xf32>
    %cst_9 = arith.constant 0.000000e+00 : f32
    %41 = vector.broadcast %cst_9 : f32 to vector<7x7x10xf32>
    %42 = arith.cmpf ogt, %40, %41 : vector<7x7x10xf32>
    %43 = vector.shape_cast %37 : vector<1x10xf32> to vector<1x1x10xf32>
    %44 = vector.broadcast %43 : vector<1x1x10xf32> to vector<7x7x10xf32>
    %45 = arith.mulf %44, %40 : vector<7x7x10xf32>
    %46 = arith.select %42, %40, %45 : vector<7x7x10xi1>, vector<7x7x10xf32>
    %47 = arith.truncf %46 : vector<7x7x10xf32> to vector<7x7x10xbf16>
    %c0_10 = arith.constant 0 : index
    %c0_11 = arith.constant 0 : index
    %48 = vector.load %arg5[%c0_10, %c0_11] : memref<90x16xbf16, #tpu.memory_space<vmem>>, vector<90x16xbf16>
    %49 = vector.extract_strided_slice %47 {offsets = [0, 0, 0], sizes = [5, 5, 10], strides = [1, 1, 1]} : vector<7x7x10xbf16> to vector<5x5x10xbf16>
    %50 = vector.shape_cast %49 : vector<5x5x10xbf16> to vector<25x10xbf16>
    %51 = vector.extract_strided_slice %47 {offsets = [0, 1, 0], sizes = [5, 5, 10], strides = [1, 1, 1]} : vector<7x7x10xbf16> to vector<5x5x10xbf16>
    %52 = vector.shape_cast %51 : vector<5x5x10xbf16> to vector<25x10xbf16>
    %53 = vector.extract_strided_slice %47 {offsets = [0, 2, 0], sizes = [5, 5, 10], strides = [1, 1, 1]} : vector<7x7x10xbf16> to vector<5x5x10xbf16>
    %54 = vector.shape_cast %53 : vector<5x5x10xbf16> to vector<25x10xbf16>
    %55 = vector.extract_strided_slice %47 {offsets = [1, 0, 0], sizes = [5, 5, 10], strides = [1, 1, 1]} : vector<7x7x10xbf16> to vector<5x5x10xbf16>
    %56 = vector.shape_cast %55 : vector<5x5x10xbf16> to vector<25x10xbf16>
    %57 = vector.extract_strided_slice %47 {offsets = [1, 1, 0], sizes = [5, 5, 10], strides = [1, 1, 1]} : vector<7x7x10xbf16> to vector<5x5x10xbf16>
    %58 = vector.shape_cast %57 : vector<5x5x10xbf16> to vector<25x10xbf16>
    %59 = vector.extract_strided_slice %47 {offsets = [1, 2, 0], sizes = [5, 5, 10], strides = [1, 1, 1]} : vector<7x7x10xbf16> to vector<5x5x10xbf16>
    %60 = vector.shape_cast %59 : vector<5x5x10xbf16> to vector<25x10xbf16>
    %61 = vector.extract_strided_slice %47 {offsets = [2, 0, 0], sizes = [5, 5, 10], strides = [1, 1, 1]} : vector<7x7x10xbf16> to vector<5x5x10xbf16>
    %62 = vector.shape_cast %61 : vector<5x5x10xbf16> to vector<25x10xbf16>
    %63 = vector.extract_strided_slice %47 {offsets = [2, 1, 0], sizes = [5, 5, 10], strides = [1, 1, 1]} : vector<7x7x10xbf16> to vector<5x5x10xbf16>
    %64 = vector.shape_cast %63 : vector<5x5x10xbf16> to vector<25x10xbf16>
    %65 = vector.extract_strided_slice %47 {offsets = [2, 2, 0], sizes = [5, 5, 10], strides = [1, 1, 1]} : vector<7x7x10xbf16> to vector<5x5x10xbf16>
    %66 = vector.shape_cast %65 : vector<5x5x10xbf16> to vector<25x10xbf16>
    %67 = tpu.concatenate %50, %52, %54, %56, %58, %60, %62, %64, %66 in 1 : vector<25x10xbf16>, vector<25x10xbf16>, vector<25x10xbf16>, vector<25x10xbf16>, vector<25x10xbf16>, vector<25x10xbf16>, vector<25x10xbf16>, vector<25x10xbf16>, vector<25x10xbf16> -> vector<25x90xbf16>
    %cst_12 = arith.constant dense<0.000000e+00> : vector<25x16xf32>
    %68 = tpu.matmul %67, %48, %cst_12 {dimension_numbers = #tpu.dot_dimension_numbers<[1], [0], [0], [1], [0, 0, 1, 1], [], []>} : vector<25x90xbf16>, vector<90x16xbf16>, vector<25x16xf32> -> vector<25x16xf32>
    %c0_13 = arith.constant 0 : index
    %c0_14 = arith.constant 0 : index
    %69 = vector.load %arg6[%c0_13, %c0_14] : memref<1x16xf32, #tpu.memory_space<vmem>>, vector<1x16xf32>
    %c0_15 = arith.constant 0 : index
    %c0_16 = arith.constant 0 : index
    %70 = vector.load %arg7[%c0_15, %c0_16] : memref<1x16xf32, #tpu.memory_space<vmem>>, vector<1x16xf32>
    %71 = vector.broadcast %69 : vector<1x16xf32> to vector<25x16xf32>
    %72 = arith.addf %68, %71 : vector<25x16xf32>
    %cst_17 = arith.constant 0.000000e+00 : f32
    %73 = vector.broadcast %cst_17 : f32 to vector<25x16xf32>
    %74 = arith.cmpf ogt, %72, %73 : vector<25x16xf32>
    %75 = vector.broadcast %70 : vector<1x16xf32> to vector<25x16xf32>
    %76 = arith.mulf %75, %72 : vector<25x16xf32>
    %77 = arith.select %74, %72, %76 : vector<25x16xi1>, vector<25x16xf32>
    %78 = arith.truncf %77 : vector<25x16xf32> to vector<25x16xbf16>
    %79 = vector.shape_cast %78 : vector<25x16xbf16> to vector<5x5x16xbf16>
    %c0_18 = arith.constant 0 : index
    %c0_19 = arith.constant 0 : index
    %80 = vector.load %arg8[%c0_18, %c0_19] : memref<144x32xbf16, #tpu.memory_space<vmem>>, vector<144x32xbf16>
    %81 = vector.extract_strided_slice %79 {offsets = [0, 0, 0], sizes = [3, 3, 16], strides = [1, 1, 1]} : vector<5x5x16xbf16> to vector<3x3x16xbf16>
    %82 = vector.shape_cast %81 : vector<3x3x16xbf16> to vector<9x16xbf16>
    %83 = vector.extract_strided_slice %79 {offsets = [0, 1, 0], sizes = [3, 3, 16], strides = [1, 1, 1]} : vector<5x5x16xbf16> to vector<3x3x16xbf16>
    %84 = vector.shape_cast %83 : vector<3x3x16xbf16> to vector<9x16xbf16>
    %85 = vector.extract_strided_slice %79 {offsets = [0, 2, 0], sizes = [3, 3, 16], strides = [1, 1, 1]} : vector<5x5x16xbf16> to vector<3x3x16xbf16>
    %86 = vector.shape_cast %85 : vector<3x3x16xbf16> to vector<9x16xbf16>
    %87 = vector.extract_strided_slice %79 {offsets = [1, 0, 0], sizes = [3, 3, 16], strides = [1, 1, 1]} : vector<5x5x16xbf16> to vector<3x3x16xbf16>
    %88 = vector.shape_cast %87 : vector<3x3x16xbf16> to vector<9x16xbf16>
    %89 = vector.extract_strided_slice %79 {offsets = [1, 1, 0], sizes = [3, 3, 16], strides = [1, 1, 1]} : vector<5x5x16xbf16> to vector<3x3x16xbf16>
    %90 = vector.shape_cast %89 : vector<3x3x16xbf16> to vector<9x16xbf16>
    %91 = vector.extract_strided_slice %79 {offsets = [1, 2, 0], sizes = [3, 3, 16], strides = [1, 1, 1]} : vector<5x5x16xbf16> to vector<3x3x16xbf16>
    %92 = vector.shape_cast %91 : vector<3x3x16xbf16> to vector<9x16xbf16>
    %93 = vector.extract_strided_slice %79 {offsets = [2, 0, 0], sizes = [3, 3, 16], strides = [1, 1, 1]} : vector<5x5x16xbf16> to vector<3x3x16xbf16>
    %94 = vector.shape_cast %93 : vector<3x3x16xbf16> to vector<9x16xbf16>
    %95 = vector.extract_strided_slice %79 {offsets = [2, 1, 0], sizes = [3, 3, 16], strides = [1, 1, 1]} : vector<5x5x16xbf16> to vector<3x3x16xbf16>
    %96 = vector.shape_cast %95 : vector<3x3x16xbf16> to vector<9x16xbf16>
    %97 = vector.extract_strided_slice %79 {offsets = [2, 2, 0], sizes = [3, 3, 16], strides = [1, 1, 1]} : vector<5x5x16xbf16> to vector<3x3x16xbf16>
    %98 = vector.shape_cast %97 : vector<3x3x16xbf16> to vector<9x16xbf16>
    %99 = tpu.concatenate %82, %84, %86, %88, %90, %92, %94, %96, %98 in 1 : vector<9x16xbf16>, vector<9x16xbf16>, vector<9x16xbf16>, vector<9x16xbf16>, vector<9x16xbf16>, vector<9x16xbf16>, vector<9x16xbf16>, vector<9x16xbf16>, vector<9x16xbf16> -> vector<9x144xbf16>
    %cst_20 = arith.constant dense<0.000000e+00> : vector<9x32xf32>
    %100 = tpu.matmul %99, %80, %cst_20 {dimension_numbers = #tpu.dot_dimension_numbers<[1], [0], [0], [1], [0, 0, 1, 1], [], []>} : vector<9x144xbf16>, vector<144x32xbf16>, vector<9x32xf32> -> vector<9x32xf32>
    %c0_21 = arith.constant 0 : index
    %c0_22 = arith.constant 0 : index
    %101 = vector.load %arg9[%c0_21, %c0_22] : memref<1x32xf32, #tpu.memory_space<vmem>>, vector<1x32xf32>
    %c0_23 = arith.constant 0 : index
    %c0_24 = arith.constant 0 : index
    %102 = vector.load %arg10[%c0_23, %c0_24] : memref<1x32xf32, #tpu.memory_space<vmem>>, vector<1x32xf32>
    %103 = vector.broadcast %101 : vector<1x32xf32> to vector<9x32xf32>
    %104 = arith.addf %100, %103 : vector<9x32xf32>
    %cst_25 = arith.constant 0.000000e+00 : f32
    %105 = vector.broadcast %cst_25 : f32 to vector<9x32xf32>
    %106 = arith.cmpf ogt, %104, %105 : vector<9x32xf32>
    %107 = vector.broadcast %102 : vector<1x32xf32> to vector<9x32xf32>
    %108 = arith.mulf %107, %104 : vector<9x32xf32>
    %109 = arith.select %106, %104, %108 : vector<9x32xi1>, vector<9x32xf32>
    %110 = arith.truncf %109 : vector<9x32xf32> to vector<9x32xbf16>
    %c0_26 = arith.constant 0 : index
    %c0_27 = arith.constant 0 : index
    %111 = vector.load %arg11[%c0_26, %c0_27] : memref<32x128xbf16, #tpu.memory_space<vmem>>, vector<32x128xbf16>
    %cst_28 = arith.constant dense<0.000000e+00> : vector<9x128xf32>
    %112 = tpu.matmul %110, %111, %cst_28 {dimension_numbers = #tpu.dot_dimension_numbers<[1], [0], [0], [1], [0, 0, 1, 1], [], []>} : vector<9x32xbf16>, vector<32x128xbf16>, vector<9x128xf32> -> vector<9x128xf32>
    %c0_29 = arith.constant 0 : index
    %c0_30 = arith.constant 0 : index
    %113 = vector.load %arg12[%c0_29, %c0_30] : memref<1x128xf32, #tpu.memory_space<vmem>>, vector<1x128xf32>
    %114 = vector.broadcast %113 : vector<1x128xf32> to vector<9x128xf32>
    %115 = arith.addf %112, %114 : vector<9x128xf32>
    %cst_31 = arith.constant 0.000000e+00 : f32
    %116 = vector.broadcast %cst_31 : f32 to vector<9x128xf32>
    %117 = arith.subf %116, %115 : vector<9x128xf32>
    %118 = math.exp %117 : vector<9x128xf32>
    %cst_32 = arith.constant 1.000000e+00 : f32
    %119 = vector.broadcast %cst_32 : f32 to vector<9x128xf32>
    %120 = arith.addf %119, %118 : vector<9x128xf32>
    %cst_33 = arith.constant 1.000000e+00 : f32
    %121 = vector.broadcast %cst_33 : f32 to vector<9x128xf32>
    %122 = arith.divf %121, %120 : vector<9x128xf32>
    %123 = tpu.iota {dimensions = array<i32: 1>} : vector<9x128xi32>
    %c2_i32 = arith.constant 2 : i32
    %124 = vector.broadcast %c2_i32 : i32 to vector<9x128xi32>
    %125 = arith.cmpi slt, %123, %124 : vector<9x128xi32>
    %126 = arith.select %125, %122, %115 : vector<9x128xi1>, vector<9x128xf32>
    %c0_34 = arith.constant 0 : index
    %c0_35 = arith.constant 0 : index
    %c0_36 = arith.constant 0 : index
    %127 = vector.load %arg13[%c0_34, %c0_35, %c0_36] : memref<1x9x128xf32, #tpu.memory_space<vmem>>, vector<1x9x128xf32>
    %128 = vector.shape_cast %127 : vector<1x9x128xf32> to vector<9x128xf32>
    %129 = vector.shape_cast %126 : vector<9x128xf32> to vector<1x9x128xf32>
    tpu.vector_store %arg13[%c0_34, %c0_35, %c0_36], %129 {strides = array<i32>} : memref<1x9x128xf32, #tpu.memory_space<vmem>>, vector<1x9x128xf32>,
    return
  }
  func.func @transform_0(%arg0: i32) -> (i32, i32, i32, i32) {
    %c0_i32 = arith.constant 0 : i32
    %c0_i32_0 = arith.constant 0 : i32
    %c0_i32_1 = arith.constant 0 : i32
    %c0_i32_2 = arith.constant 0 : i32
    return %arg0, %c0_i32, %c0_i32_0, %c0_i32_1 : i32, i32, i32, i32
  }
  func.func @transform_1(%arg0: i32) -> (i32, i32) {
    %c0_i32 = arith.constant 0 : i32
    %c0_i32_0 = arith.constant 0 : i32
    %c0_i32_1 = arith.constant 0 : i32
    return %c0_i32, %c0_i32_0 : i32, i32
  }
  func.func @transform_2(%arg0: i32) -> (i32, i32) {
    %c0_i32 = arith.constant 0 : i32
    %c0_i32_0 = arith.constant 0 : i32
    %c0_i32_1 = arith.constant 0 : i32
    return %c0_i32, %c0_i32_0 : i32, i32
  }
  func.func @transform_3(%arg0: i32) -> (i32, i32) {
    %c0_i32 = arith.constant 0 : i32
    %c0_i32_0 = arith.constant 0 : i32
    %c0_i32_1 = arith.constant 0 : i32
    return %c0_i32, %c0_i32_0 : i32, i32
  }
  func.func @transform_4(%arg0: i32) -> (i32, i32) {
    %c0_i32 = arith.constant 0 : i32
    %c0_i32_0 = arith.constant 0 : i32
    %c0_i32_1 = arith.constant 0 : i32
    return %c0_i32, %c0_i32_0 : i32, i32
  }
  func.func @transform_5(%arg0: i32) -> (i32, i32) {
    %c0_i32 = arith.constant 0 : i32
    %c0_i32_0 = arith.constant 0 : i32
    %c0_i32_1 = arith.constant 0 : i32
    return %c0_i32, %c0_i32_0 : i32, i32
  }
  func.func @transform_6(%arg0: i32) -> (i32, i32) {
    %c0_i32 = arith.constant 0 : i32
    %c0_i32_0 = arith.constant 0 : i32
    %c0_i32_1 = arith.constant 0 : i32
    return %c0_i32, %c0_i32_0 : i32, i32
  }
  func.func @transform_7(%arg0: i32) -> (i32, i32) {
    %c0_i32 = arith.constant 0 : i32
    %c0_i32_0 = arith.constant 0 : i32
    %c0_i32_1 = arith.constant 0 : i32
    return %c0_i32, %c0_i32_0 : i32, i32
  }
  func.func @transform_8(%arg0: i32) -> (i32, i32) {
    %c0_i32 = arith.constant 0 : i32
    %c0_i32_0 = arith.constant 0 : i32
    %c0_i32_1 = arith.constant 0 : i32
    return %c0_i32, %c0_i32_0 : i32, i32
  }
  func.func @transform_9(%arg0: i32) -> (i32, i32) {
    %c0_i32 = arith.constant 0 : i32
    %c0_i32_0 = arith.constant 0 : i32
    %c0_i32_1 = arith.constant 0 : i32
    return %c0_i32, %c0_i32_0 : i32, i32
  }
  func.func @transform_10(%arg0: i32) -> (i32, i32) {
    %c0_i32 = arith.constant 0 : i32
    %c0_i32_0 = arith.constant 0 : i32
    %c0_i32_1 = arith.constant 0 : i32
    return %c0_i32, %c0_i32_0 : i32, i32
  }
  func.func @transform_11(%arg0: i32) -> (i32, i32) {
    %c0_i32 = arith.constant 0 : i32
    %c0_i32_0 = arith.constant 0 : i32
    %c0_i32_1 = arith.constant 0 : i32
    return %c0_i32, %c0_i32_0 : i32, i32
  }
  func.func @transform_12(%arg0: i32) -> (i32, i32, i32) {
    %c0_i32 = arith.constant 0 : i32
    %c0_i32_0 = arith.constant 0 : i32
    %c0_i32_1 = arith.constant 0 : i32
    return %arg0, %c0_i32, %c0_i32_0 : i32, i32, i32
  }
}

</mosaic_0001>

<bundles_post_ra>
// kernel: pnet_forward.1
= control target key start
LH: loop header
LB: loop body
LE: loop exit
PB: predicated region body
PF: predicated region fallthrough
CT: control target
= control target key end

     0   :  { %s6754_s21 = smov 0   ;;  %s11483_s0 = inlined_call_operand.vmem [shape: bf16[2,16,16,3], index: 0, kind: input, shape index: {}]   ;;  %s11484_s1 = inlined_call_operand.vmem [shape: bf16[27,10], index: 1, kind: input, shape index: {}]   ;;  %s11485_s2 = inlined_call_operand.vmem [shape: f32[1,10], index: 2, kind: input, shape index: {}]   ;;  %s11486_s3 = inlined_call_operand.vmem [shape: f32[1,10], index: 3, kind: input, shape index: {}]   ;;  %s11487_s4 = inlined_call_operand.vmem [shape: bf16[90,16], index: 4, kind: input, shape index: {}]   ;;  %s11488_s5 = inlined_call_operand.vmem [shape: f32[1,16], index: 5, kind: input, shape index: {}]   ;;  %s11489_s6 = inlined_call_operand.vmem [shape: f32[1,16], index: 6, kind: input, shape index: {}]   ;;  %s11490_s7 = inlined_call_operand.vmem [shape: bf16[144,32], index: 7, kind: input, shape index: {}]   ;;  %s11491_s8 = inlined_call_operand.vmem [shape: f32[1,32], index: 8, kind: input, shape index: {}]   ;;  %s11492_s9 = inlined_call_operand.vmem [shape: f32[1,32], index: 9, kind: input, shape index: {}]   ;;  %s11493_s10 = inlined_call_operand.vmem [shape: bf16[32,128], index: 10, kind: input, shape index: {}]   ;;  %s11494_s11 = inlined_call_operand.vmem [shape: f32[1,128], index: 11, kind: input, shape index: {}]   ;;  %s11495_s12 = inlined_call_operand.vmem [shape: f32[2,9,128], index: 12, kind: output, shape index: {}]  }
   0x1 LB: > { %s6243_s22 = sadd.s32 4294967295, %s6664_s21   ;;  %p6247_p0 = scmp.ge.s32.totalorder %s6664_s21, 1  ;;  %s6664_s21 = sphi %s6754_s21, %s22_s21  }
   0x2   : > { %p362_p1 = scmp.lt.s32.totalorder %s6664_s21, 3 }
   0x4   : > { %p363_p2 = pnand %p6247_p0, %p362_p1 }
   0x6   : > { %366 = sbr.rel (%p363_p2) target bundleno = 3427 (0xd63), region = 68 }
   0xb   : > { %p404_p3 = scmp.lt.s32.totalorder %s6243_s22, 1  ;;  %vm519_vm0 = vcmask 1043459   ;;  %vm511_vm1 = vcmask 1041409   ;;  %vm515_vm2 = vcmask 1042434   ;;  %vm11915_vm3 = vcmask 1040384   ;;  %s6666_s27 = smov 3  }
   0xc   : > { %vm847_vm4 = vsmask.f32 256  ;;  %vm848_vm5 = vsmask.f32 1284  ;;  %vm850_vm7 = vsmask.f32 2312 }
   0xd   : > { %s13157_s22 = smov (!%p404_p3, %s6243_s22), 1  ;;  %vm849_vm6 = vmor %vm847_vm4, %vm848_vm5  ;;  %vm852_vm9 = vsmask.f32 3340  ;;  %vm854_vm11 = vsmask.f32 4368  ;;  %s6667_s28 = smov 6  }
   0xe   : > { %s6583_s23 = sshll.u32 %s13157_s22, 7  ;;  %vm851_vm8 = vmor %vm849_vm6, %vm850_vm7  ;;  %vm856_vm13 = vsmask.f32 5396  ;;  %vm858_vm15 = vsmask.f32 6424  ;;  %s6668_s29 = smov 9  }
   0xf   : > { %s6768_s26 = scalar_lea.vmem %s11483_s0, %s6583_s23  ;;  %vm853_vm10 = vmor %vm851_vm8, %vm852_vm9  ;;  %vm860_vm5 = vsmask.f32 7452  ;;  %s6669_s30 = smov 12   ;;  %vm3683_vm7 = vcmask 23552   ;;  %vm3710_vm8 = vcmask 48128   ;;  %vm3737_vm9 = vcmask 72704  }
  0x10   : > { %v6771_v0 = vld [vmem:[%s6768_s26] sm:$0xf]  ;;  %v6774_v1 = vld [vmem:[%s6768_s26 + $0x4] sm:$0xf]  ;;  %v6779_v2 = vld [vmem:[%s6768_s26 + $0x8] sm:$0xf] }
  0x11   : > { %1632 = vst [vmem:[#allocation1] sm:$0xff] %v6771_v0  ;;  %v6786_v5 = vld [vmem:[%s6768_s26 + $0xc] sm:$0xf]  ;;  %v6801_v11 = vld [vmem:[%s6768_s26 + $0x10] sm:$0xf]  ;;  %v6879_v43 = vrot.slane %v6774_v1, 3  ;;  %vm855_vm12 = vmor %vm853_vm10, %vm854_vm11 }
  0x12   : > { %1633 = vst [vmem:[#allocation1 + $0x20] sm:$0xff] %v6774_v1  ;;  %v6808_v14 = vld [vmem:[%s6768_s26 + $0x14] sm:$0xf]  ;;  %v6823_v20 = vld [vmem:[%s6768_s26 + $0x18] sm:$0xf]  ;;  %vm857_vm14 = vmor %vm855_vm12, %vm856_vm13  ;;  %s6670_s13 = smov 15  }
  0x13   : > { %v6830_v23 = vld [vmem:[%s6768_s26 + $0x1c] sm:$0xf]  ;;  %v6845_v29 = vld [vmem:[%s6768_s26 + $0x20] sm:$0xf]  ;;  %v6852_v32 = vld [vmem:[%s6768_s26 + $0x24] sm:$0xf]  ;;  %v6893_v48 = vsel %vm519_vm0, %v6774_v1, %v6879_v43 }
  0x14   : > { %11939 = vst [vmem:[#allocation25_spill] sm:$0xff] %v6852_v32  ;;  %v6867_v38 = vld [vmem:[%s6768_s26 + $0x28] sm:$0xf]  ;;  %v6874_v41 = vld [vmem:[%s6768_s26 + $0x2c] sm:$0xf]  ;;  %vm859_vm4 = vmor %vm857_vm14, %vm858_vm15  ;;  %s6671_s14 = smov 18  }
  0x15   : > { %11947 = vst [vmem:[#allocation33_spill] sm:$0xff] %v6874_v41  ;;  %v6897_v49 = vld [vmem:[%s6768_s26 + $0x30] sm:$0xf]  ;;  %v6906_v53 = vld [vmem:[%s6768_s26 + $0x34] sm:$0xf]  ;;  %vm8157_vm6 = vmor %vm859_vm4, %vm860_vm5  ;;  %vm3764_vm10 = vcmask 97280  }
  0x16   : > { %11956 = vst [vmem:[#allocation42_spill] sm:$0xff] %v6906_v53  ;;  %v6919_v58 = vld [vmem:[%s6768_s26 + $0x38] sm:$0xf]  ;;  %v6928_v62 = vld [vmem:[%s6768_s26 + $0x3c] sm:$0xf]  ;;  %s6672_s15 = smov 21  }
  0x17   : > { %11964 = vst [vmem:[#allocation50_spill] sm:$0xff] %v6928_v62  ;;  %vm3791_vm11 = vcmask 121856   ;;  %vm3818_vm12 = vcmask 146432   ;;  %s6673_s16 = smov 24   ;;  %vm3937_vm13 = vcmask 1044480   ;;  %vm3938_vm14 = vcmask 1045504  }
  0x18   : > { %v6781_v3 = vld [vmem:[#allocation1 + $0x1] ss:$4 sm:$0xff]  ;;  %v6783_v4 = vld [vmem:[#allocation1 + $0x2] ss:$4 sm:$0xff]  ;;  %v6788_v6 = vld [vmem:[#allocation1 + $0x3] ss:$4 sm:$0xff] }
  0x19   : > { %11916 = vst [vmem:[#allocation2_spill] sm:$0xff] %v6781_v3  ;;  %v6790_v7 = vld [vmem:[#allocation1 + $0x20] ss:$4 sm:$0xff]  ;;  %v6792_v8 = vld [vmem:[#allocation1 + $0x21] ss:$4 sm:$0xff]  ;;  %vm3845_vm15 = vcmask 171008  }
  0x1a   : > { %11917 = vst [vmem:[#allocation3_spill] sm:$0xff] %v6783_v4  ;;  %v6794_v9 = vld [vmem:[#allocation1 + $0x22] ss:$4 sm:$0xff]  ;;  %v6796_v10 = vld [vmem:[#allocation1 + $0x23] ss:$4 sm:$0xff]  ;;  %vm3872_vm4 = vcmask 195584  }
  0x1b   : > { %11918 = vst [vmem:[#allocation4_spill] sm:$0xff] %v6788_v6  ;;  %vm3910_vm5 = vcmask 220160   ;;  %s6680_s18 = smov 60   ;;  %s6681_s19 = smov 80  }
  0x1c   : > { %11919 = vst [vmem:[#allocation5_spill] sm:$0xff] %v6790_v7  ;;  %s6682_s20 = smov 70  }
  0x1d   : > { %11920 = vst [vmem:[#allocation6_spill] sm:$0xff] %v6792_v8 }
  0x1e   : > { %11921 = vst [vmem:[#allocation7_spill] sm:$0xff] %v6794_v9 }
  0x1f   : > { %11922 = vst [vmem:[#allocation8_spill] sm:$0xff] %v6796_v10 }
  0x20   : > { %1648 = vst [vmem:[#allocation1] sm:$0xff] %v6779_v2 }
  0x21   : > { %1649 = vst [vmem:[#allocation1 + $0x20] sm:$0xff] %v6786_v5 }
  0x27   : > { %v6803_v12 = vld [vmem:[#allocation1 + $0x1] ss:$4 sm:$0xff]  ;;  %v6805_v13 = vld [vmem:[#allocation1 + $0x2] ss:$4 sm:$0xff]  ;;  %v6810_v15 = vld [vmem:[#allocation1 + $0x3] ss:$4 sm:$0xff] }
  0x28   : > { %11923 = vst [vmem:[#allocation9_spill] sm:$0xff] %v6803_v12  ;;  %v6812_v16 = vld [vmem:[#allocation1 + $0x20] ss:$4 sm:$0xff]  ;;  %v6814_v17 = vld [vmem:[#allocation1 + $0x21] ss:$4 sm:$0xff] }
  0x29   : > { %11924 = vst [vmem:[#allocation10_spill] sm:$0xff] %v6805_v13  ;;  %v6816_v18 = vld [vmem:[#allocation1 + $0x22] ss:$4 sm:$0xff]  ;;  %v6819_v19 = vld [vmem:[#allocation1 + $0x23] ss:$4 sm:$0xff] }
  0x2a   : > { %11925 = vst [vmem:[#allocation11_spill] sm:$0xff] %v6810_v15 }
  0x2b   : > { %11926 = vst [vmem:[#allocation12_spill] sm:$0xff] %v6812_v16 }
  0x2c   : > { %11927 = vst [vmem:[#allocation13_spill] sm:$0xff] %v6814_v17 }
  0x2d   : > { %11928 = vst [vmem:[#allocation14_spill] sm:$0xff] %v6816_v18 }
  0x2e   : > { %1657 = vst [vmem:[#allocation1] sm:$0xff] %v6801_v11 }
  0x2f   : > { %11929 = vst [vmem:[#allocation15_spill] sm:$0xff] %v6819_v19 }
  0x30   : > { %1658 = vst [vmem:[#allocation1 + $0x20] sm:$0xff] %v6808_v14 }
  0x35   : > { %v6825_v21 = vld [vmem:[#allocation1 + $0x1] ss:$4 sm:$0xff]  ;;  %v6827_v22 = vld [vmem:[#allocation1 + $0x2] ss:$4 sm:$0xff]  ;;  %v6832_v24 = vld [vmem:[#allocation1 + $0x3] ss:$4 sm:$0xff] }
  0x36   : > { %11930 = vst [vmem:[#allocation16_spill] sm:$0xff] %v6825_v21 }
  0x37   : > { %11931 = vst [vmem:[#allocation17_spill] sm:$0xff] %v6827_v22  ;;  %v6834_v25 = vld [vmem:[#allocation1 + $0x20] ss:$4 sm:$0xff]  ;;  %v6836_v26 = vld [vmem:[#allocation1 + $0x21] ss:$4 sm:$0xff] }
  0x38   : > { %11932 = vst [vmem:[#allocation18_spill] sm:$0xff] %v6832_v24  ;;  %v6839_v27 = vld [vmem:[#allocation1 + $0x22] ss:$4 sm:$0xff]  ;;  %v6841_v28 = vld [vmem:[#allocation1 + $0x23] ss:$4 sm:$0xff]  ;;  %v485_v24 = vrot.slane %v6823_v20, 3 }
  0x39   : > { %11933 = vst [vmem:[#allocation19_spill] sm:$0xff] %v6834_v25 }
  0x3a   : > { %11934 = vst [vmem:[#allocation20_spill] sm:$0xff] %v6836_v26  ;;  %v7677_v15 = vsel %vm11915_vm3, %v6823_v20, %v485_v24 }
  0x3b   : > { %1666 = vst [vmem:[#allocation1] sm:$0xff] %v6823_v20 }
  0x3c   : > { %11935 = vst [vmem:[#allocation21_spill] sm:$0xff] %v6839_v27 }
  0x3d   : > { %11936 = vst [vmem:[#allocation22_spill] sm:$0xff] %v6841_v28 }
  0x3e   : > { %1667 = vst [vmem:[#allocation1 + $0x20] sm:$0xff] %v6830_v23 }
  0x42   : > { %v6847_v30 = vld [vmem:[#allocation1 + $0x1] ss:$4 sm:$0xff]  ;;  %v6849_v31 = vld [vmem:[#allocation1 + $0x2] ss:$4 sm:$0xff]  ;;  %v6854_v33 = vld [vmem:[#allocation1 + $0x3] ss:$4 sm:$0xff] }
  0x43   : > { %11937 = vst [vmem:[#allocation23_spill] sm:$0xff] %v6847_v30 }
  0x44   : > { %11938 = vst [vmem:[#allocation24_spill] sm:$0xff] %v6849_v31  ;;  %v526_v31 = vsel %vm511_vm1, %v6774_v1, %v6879_v43 }
  0x45   : > { %11940 = vst [vmem:[#allocation26_spill] sm:$0xff] %v6854_v33  ;;  %v6856_v34 = vld [vmem:[#allocation1 + $0x20] ss:$4 sm:$0xff]  ;;  %v6858_v35 = vld [vmem:[#allocation1 + $0x21] ss:$4 sm:$0xff] }
  0x46   : > { %11941 = vst [vmem:[#allocation27_spill] sm:$0xff] %v6856_v34  ;;  %v6861_v36 = vld [vmem:[#allocation1 + $0x22] ss:$4 sm:$0xff]  ;;  %v6863_v37 = vld [vmem:[#allocation1 + $0x23] ss:$4 sm:$0xff] }
  0x47   : > { %11942 = vst [vmem:[#allocation28_spill] sm:$0xff] %v6858_v35 }
  0x48   : > { %1675 = vst [vmem:[#allocation1] sm:$0xff] %v6845_v29 }
  0x49   : > { %11943 = vst [vmem:[#allocation29_spill] sm:$0xff] %v6861_v36 }
  0x4a   : > { %11944 = vst [vmem:[#allocation30_spill] sm:$0xff] %v6863_v37  ;;  %v7061_v37 = vld [vmem:[%s6768_s26 + $0x6c] sm:$0xf] }
  0x4b   : > { %1676 = vst [vmem:[#allocation1 + $0x20] sm:$0xff] %v6852_v32 }
  0x4c   : > { %12010 = vst [vmem:[#allocation96_spill] sm:$0xff] %v7061_v37 }
  0x4f   : > { %v6869_v39 = vld [vmem:[#allocation1 + $0x1] ss:$4 sm:$0xff]  ;;  %v6871_v40 = vld [vmem:[#allocation1 + $0x2] ss:$4 sm:$0xff]  ;;  %v6876_v42 = vld [vmem:[#allocation1 + $0x3] ss:$4 sm:$0xff] }
  0x50   : > { %11945 = vst [vmem:[#allocation31_spill] sm:$0xff] %v6869_v39 }
  0x51   : > { %11946 = vst [vmem:[#allocation32_spill] sm:$0xff] %v6871_v40 }
  0x52   : > { %11948 = vst [vmem:[#allocation34_spill] sm:$0xff] %v6876_v42  ;;  %v6881_v44 = vld [vmem:[#allocation1 + $0x20] ss:$4 sm:$0xff]  ;;  %v6883_v45 = vld [vmem:[#allocation1 + $0x21] ss:$4 sm:$0xff] }
  0x53   : > { %11949 = vst [vmem:[#allocation35_spill] sm:$0xff] %v6881_v44  ;;  %v6886_v46 = vld [vmem:[#allocation1 + $0x22] ss:$4 sm:$0xff]  ;;  %v6888_v47 = vld [vmem:[#allocation1 + $0x23] ss:$4 sm:$0xff] }
  0x54   : > { %11950 = vst [vmem:[#allocation36_spill] sm:$0xff] %v6883_v45  ;;  %v7006_v45 = vld [vmem:[%s6768_s26 + $0x58] sm:$0xf]  ;;  %v7026_v44 = vld [vmem:[%s6768_s26 + $0x60] sm:$0xf] }
  0x55   : > { %1684 = vst [vmem:[#allocation1] sm:$0xff] %v6867_v38 }
  0x56   : > { %11951 = vst [vmem:[#allocation37_spill] sm:$0xff] %v6886_v46 }
  0x57   : > { %11952 = vst [vmem:[#allocation38_spill] sm:$0xff] %v6888_v47 }
  0x58   : > { %1685 = vst [vmem:[#allocation1 + $0x20] sm:$0xff] %v6874_v41 }
  0x5c   : > { %v6899_v50 = vld [vmem:[#allocation1 + $0x1] ss:$4 sm:$0xff]  ;;  %v6901_v51 = vld [vmem:[#allocation1 + $0x2] ss:$4 sm:$0xff]  ;;  %v6903_v52 = vld [vmem:[#allocation1 + $0x3] ss:$4 sm:$0xff] }
  0x5d   : > { %11953 = vst [vmem:[#allocation39_spill] sm:$0xff] %v6899_v50 }
  0x5e   : > { %11954 = vst [vmem:[#allocation40_spill] sm:$0xff] %v6901_v51 }
  0x5f   : > { %11955 = vst [vmem:[#allocation41_spill] sm:$0xff] %v6903_v52  ;;  %v6908_v54 = vld [vmem:[#allocation1 + $0x20] ss:$4 sm:$0xff]  ;;  %v6910_v55 = vld [vmem:[#allocation1 + $0x21] ss:$4 sm:$0xff] }
  0x60   : > { %11957 = vst [vmem:[#allocation43_spill] sm:$0xff] %v6908_v54  ;;  %v6912_v56 = vld [vmem:[#allocation1 + $0x22] ss:$4 sm:$0xff]  ;;  %v6914_v57 = vld [vmem:[#allocation1 + $0x23] ss:$4 sm:$0xff] }
  0x61   : > { %11958 = vst [vmem:[#allocation44_spill] sm:$0xff] %v6910_v55 }
  0x62   : > { %11959 = vst [vmem:[#allocation45_spill] sm:$0xff] %v6912_v56 }
  0x63   : > { %11960 = vst [vmem:[#allocation46_spill] sm:$0xff] %v6914_v57 }
  0x64   : > { %1693 = vst [vmem:[#allocation1] sm:$0xff] %v6897_v49 }
  0x65   : > { %1694 = vst [vmem:[#allocation1 + $0x20] sm:$0xff] %v6906_v53 }
  0x6b   : > { %v6921_v59 = vld [vmem:[#allocation1 + $0x1] ss:$4 sm:$0xff]  ;;  %v6923_v60 = vld [vmem:[#allocation1 + $0x2] ss:$4 sm:$0xff]  ;;  %v6925_v61 = vld [vmem:[#allocation1 + $0x3] ss:$4 sm:$0xff] }
  0x6c   : > { %11961 = vst [vmem:[#allocation47_spill] sm:$0xff] %v6921_v59  ;;  %v6930_v63 = vld [vmem:[#allocation1 + $0x20] ss:$4 sm:$0xff]  ;;  %v6933_v57 = vld [vmem:[#allocation1 + $0x21] ss:$4 sm:$0xff] }
  0x6d   : > { %11962 = vst [vmem:[#allocation48_spill] sm:$0xff] %v6923_v60  ;;  %v6935_v56 = vld [vmem:[#allocation1 + $0x22] ss:$4 sm:$0xff]  ;;  %v6937_v55 = vld [vmem:[#allocation1 + $0x23] ss:$4 sm:$0xff] }
  0x6e   : > { %11963 = vst [vmem:[#allocation49_spill] sm:$0xff] %v6925_v61  ;;  %v6941_v59 = vld [vmem:[%s6768_s26 + $0x40] sm:$0xf] }
  0x6f   : > { %11965 = vst [vmem:[#allocation51_spill] sm:$0xff] %v6930_v63  ;;  %v6951_v63 = vld [vmem:[%s6768_s26 + $0x44] sm:$0xf] }
  0x70   : > { %1702 = vst [vmem:[#allocation1] sm:$0xff] %v6919_v58 }
  0x71   : > { %11966 = vst [vmem:[#allocation52_spill] sm:$0xff] %v6933_v57 }
  0x72   : > { %11967 = vst [vmem:[#allocation53_spill] sm:$0xff] %v6935_v56 }
  0x73   : > { %11968 = vst [vmem:[#allocation54_spill] sm:$0xff] %v6937_v55 }
  0x74   : > { %1703 = vst [vmem:[#allocation1 + $0x20] sm:$0xff] %v6928_v62 }
  0x77   : > { %v6943_v60 = vld [vmem:[#allocation1 + $0x1] ss:$4 sm:$0xff]  ;;  %v6945_v61 = vld [vmem:[#allocation1 + $0x2] ss:$4 sm:$0xff]  ;;  %v6947_v54 = vld [vmem:[#allocation1 + $0x3] ss:$4 sm:$0xff] }
  0x78   : > { %11969 = vst [vmem:[#allocation55_spill] sm:$0xff] %v6943_v60  ;;  %v6963_v60 = vld [vmem:[%s6768_s26 + $0x48] sm:$0xf] }
  0x79   : > { %11970 = vst [vmem:[#allocation56_spill] sm:$0xff] %v6945_v61 }
  0x7a   : > { %11971 = vst [vmem:[#allocation57_spill] sm:$0xff] %v6947_v54 }
  0x7b   : > { %1711 = vst [vmem:[#allocation1] sm:$0xff] %v6941_v59  ;;  %v6953_v57 = vld [vmem:[#allocation1 + $0x20] ss:$4 sm:$0xff]  ;;  %v6955_v56 = vld [vmem:[#allocation1 + $0x21] ss:$4 sm:$0xff] }
  0x7c   : > { %11972 = vst [vmem:[#allocation58_spill] sm:$0xff] %v6953_v57  ;;  %v6957_v55 = vld [vmem:[#allocation1 + $0x22] ss:$4 sm:$0xff]  ;;  %v6959_v52 = vld [vmem:[#allocation1 + $0x23] ss:$4 sm:$0xff] }
  0x7d   : > { %11973 = vst [vmem:[#allocation59_spill] sm:$0xff] %v6955_v56  ;;  %v6973_v57 = vld [vmem:[%s6768_s26 + $0x4c] sm:$0xf] }
  0x7e   : > { %11974 = vst [vmem:[#allocation60_spill] sm:$0xff] %v6957_v55 }
  0x7f   : > { %11975 = vst [vmem:[#allocation61_spill] sm:$0xff] %v6959_v52 }
  0x80   : > { %1712 = vst [vmem:[#allocation1 + $0x20] sm:$0xff] %v6951_v63 }
  0x82   : > { %v6965_v61 = vld [vmem:[#allocation1 + $0x1] ss:$4 sm:$0xff]  ;;  %v6967_v54 = vld [vmem:[#allocation1 + $0x2] ss:$4 sm:$0xff]  ;;  %v6969_v51 = vld [vmem:[#allocation1 + $0x3] ss:$4 sm:$0xff] }
  0x83   : > { %11976 = vst [vmem:[#allocation62_spill] sm:$0xff] %v6965_v61  ;;  %v6985_v61 = vld [vmem:[%s6768_s26 + $0x50] sm:$0xf] }
  0x84   : > { %11977 = vst [vmem:[#allocation63_spill] sm:$0xff] %v6967_v54 }
  0x85   : > { %11978 = vst [vmem:[#allocation64_spill] sm:$0xff] %v6969_v51 }
  0x86   : > { %1720 = vst [vmem:[#allocation1] sm:$0xff] %v6963_v60 }
  0x87   : > { %v6975_v56 = vld [vmem:[#allocation1 + $0x20] ss:$4 sm:$0xff]  ;;  %v6977_v55 = vld [vmem:[#allocation1 + $0x21] ss:$4 sm:$0xff]  ;;  %v6979_v52 = vld [vmem:[#allocation1 + $0x22] ss:$4 sm:$0xff] }
  0x88   : > { %11979 = vst [vmem:[#allocation65_spill] sm:$0xff] %v6975_v56  ;;  %v6981_v50 = vld [vmem:[#allocation1 + $0x23] ss:$4 sm:$0xff] }
  0x89   : > { %11980 = vst [vmem:[#allocation66_spill] sm:$0xff] %v6977_v55  ;;  %v6995_v56 = vld [vmem:[%s6768_s26 + $0x54] sm:$0xf] }
  0x8a   : > { %11981 = vst [vmem:[#allocation67_spill] sm:$0xff] %v6979_v52 }
  0x8b   : > { %11982 = vst [vmem:[#allocation68_spill] sm:$0xff] %v6981_v50 }
  0x8c   : > { %1721 = vst [vmem:[#allocation1 + $0x20] sm:$0xff] %v6973_v57 }
  0x8d   : > { %v6987_v54 = vld [vmem:[#allocation1 + $0x1] ss:$4 sm:$0xff]  ;;  %v6989_v51 = vld [vmem:[#allocation1 + $0x2] ss:$4 sm:$0xff]  ;;  %v6991_v47 = vld [vmem:[#allocation1 + $0x3] ss:$4 sm:$0xff] }
  0x8e   : > { %11983 = vst [vmem:[#allocation69_spill] sm:$0xff] %v6987_v54 }
  0x8f   : > { %11984 = vst [vmem:[#allocation70_spill] sm:$0xff] %v6989_v51 }
  0x90   : > { %11985 = vst [vmem:[#allocation71_spill] sm:$0xff] %v6991_v47 }
  0x91   : > { %1729 = vst [vmem:[#allocation1] sm:$0xff] %v6985_v61 }
  0x92   : > { %11986 = vst [vmem:[#allocation72_spill] sm:$0xff] %v6995_v56 }
  0x93   : > { %v6997_v55 = vld [vmem:[#allocation1 + $0x20] ss:$4 sm:$0xff]  ;;  %v6999_v52 = vld [vmem:[#allocation1 + $0x21] ss:$4 sm:$0xff]  ;;  %v7001_v50 = vld [vmem:[#allocation1 + $0x22] ss:$4 sm:$0xff] }
  0x94   : > { %11987 = vst [vmem:[#allocation73_spill] sm:$0xff] %v6997_v55  ;;  %v7003_v46 = vld [vmem:[#allocation1 + $0x23] ss:$4 sm:$0xff] }
  0x95   : > { %11988 = vst [vmem:[#allocation74_spill] sm:$0xff] %v6999_v52  ;;  %v7017_v55 = vld [vmem:[%s6768_s26 + $0x5c] sm:$0xf] }
  0x96   : > { %11989 = vst [vmem:[#allocation75_spill] sm:$0xff] %v7001_v50 }
  0x97   : > { %11990 = vst [vmem:[#allocation76_spill] sm:$0xff] %v7003_v46 }
  0x98   : > { %1730 = vst [vmem:[#allocation1 + $0x20] sm:$0xff] %v6995_v56  ;;  %v7009_v51 = vld [vmem:[#allocation1 + $0x1] ss:$4 sm:$0xff]  ;;  %v7011_v47 = vld [vmem:[#allocation1 + $0x2] ss:$4 sm:$0xff] }
  0x99   : > { %11991 = vst [vmem:[#allocation77_spill] sm:$0xff] %v7009_v51  ;;  %v7013_v54 = vld [vmem:[#allocation1 + $0x3] ss:$4 sm:$0xff] }
  0x9a   : > { %11992 = vst [vmem:[#allocation78_spill] sm:$0xff] %v7011_v47 }
  0x9b   : > { %11993 = vst [vmem:[#allocation79_spill] sm:$0xff] %v7013_v54 }
  0x9c   : > { %1738 = vst [vmem:[#allocation1] sm:$0xff] %v7006_v45 }
  0x9d   : > { %11994 = vst [vmem:[#allocation80_spill] sm:$0xff] %v7017_v55 }
  0x9f   : > { %v7019_v52 = vld [vmem:[#allocation1 + $0x20] ss:$4 sm:$0xff]  ;;  %v7021_v50 = vld [vmem:[#allocation1 + $0x21] ss:$4 sm:$0xff]  ;;  %v7023_v46 = vld [vmem:[#allocation1 + $0x22] ss:$4 sm:$0xff] }
  0xa0   : > { %11995 = vst [vmem:[#allocation81_spill] sm:$0xff] %v7019_v52  ;;  %v7028_v42 = vld [vmem:[#allocation1 + $0x23] ss:$4 sm:$0xff] }
  0xa1   : > { %11996 = vst [vmem:[#allocation82_spill] sm:$0xff] %v7021_v50  ;;  %v7039_v52 = vld [vmem:[%s6768_s26 + $0x64] sm:$0xf] }
  0xa2   : > { %11997 = vst [vmem:[#allocation83_spill] sm:$0xff] %v7023_v46 }
  0xa3   : > { %11998 = vst [vmem:[#allocation84_spill] sm:$0xff] %v7028_v42  ;;  %v7031_v47 = vld [vmem:[#allocation1 + $0x1] ss:$4 sm:$0xff]  ;;  %v7033_v54 = vld [vmem:[#allocation1 + $0x2] ss:$4 sm:$0xff] }
  0xa4   : > { %1739 = vst [vmem:[#allocation1 + $0x20] sm:$0xff] %v7017_v55  ;;  %v7035_v51 = vld [vmem:[#allocation1 + $0x3] ss:$4 sm:$0xff] }
  0xa5   : > { %11999 = vst [vmem:[#allocation85_spill] sm:$0xff] %v7031_v47  ;;  %v7048_v42 = vld [vmem:[%s6768_s26 + $0x68] sm:$0xf] }
  0xa6   : > { %12000 = vst [vmem:[#allocation86_spill] sm:$0xff] %v7033_v54 }
  0xa7   : > { %12001 = vst [vmem:[#allocation87_spill] sm:$0xff] %v7035_v51 }
  0xa8   : > { %1747 = vst [vmem:[#allocation1] sm:$0xff] %v7026_v44 }
  0xa9   : > { %12002 = vst [vmem:[#allocation88_spill] sm:$0xff] %v7039_v52 }
  0xab   : > { %v7041_v50 = vld [vmem:[#allocation1 + $0x20] ss:$4 sm:$0xff]  ;;  %v7043_v46 = vld [vmem:[#allocation1 + $0x21] ss:$4 sm:$0xff]  ;;  %v7045_v40 = vld [vmem:[#allocation1 + $0x22] ss:$4 sm:$0xff] }
  0xac   : > { %12003 = vst [vmem:[#allocation89_spill] sm:$0xff] %v7041_v50  ;;  %v7050_v39 = vld [vmem:[#allocation1 + $0x23] ss:$4 sm:$0xff] }
  0xad   : > { %12004 = vst [vmem:[#allocation90_spill] sm:$0xff] %v7043_v46 }
  0xae   : > { %12005 = vst [vmem:[#allocation91_spill] sm:$0xff] %v7045_v40 }
  0xaf   : > { %12006 = vst [vmem:[#allocation92_spill] sm:$0xff] %v7050_v39  ;;  %v7053_v47 = vld [vmem:[#allocation1 + $0x1] ss:$4 sm:$0xff]  ;;  %v7055_v54 = vld [vmem:[#allocation1 + $0x2] ss:$4 sm:$0xff] }
  0xb0   : > { %1748 = vst [vmem:[#allocation1 + $0x20] sm:$0xff] %v7039_v52  ;;  %v7057_v51 = vld [vmem:[#allocation1 + $0x3] ss:$4 sm:$0xff] }
  0xb1   : > { %12007 = vst [vmem:[#allocation93_spill] sm:$0xff] %v7053_v47 }
  0xb2   : > { %12008 = vst [vmem:[#allocation94_spill] sm:$0xff] %v7055_v54 }
  0xb3   : > { %12009 = vst [vmem:[#allocation95_spill] sm:$0xff] %v7057_v51 }
  0xb4   : > { %1756 = vst [vmem:[#allocation1] sm:$0xff] %v7048_v42 }
  0xb7   : > { %v7063_v50 = vld [vmem:[#allocation1 + $0x20] ss:$4 sm:$0xff]  ;;  %v7065_v46 = vld [vmem:[#allocation1 + $0x21] ss:$4 sm:$0xff]  ;;  %v7067_v40 = vld [vmem:[#allocation1 + $0x22] ss:$4 sm:$0xff] }
  0xb8   : > { %12011 = vst [vmem:[#allocation97_spill] sm:$0xff] %v7063_v50  ;;  %v7069_v36 = vld [vmem:[#allocation1 + $0x23] ss:$4 sm:$0xff] }
  0xb9   : > { %12012 = vst [vmem:[#allocation98_spill] sm:$0xff] %v7065_v46 }
  0xba   : > { %12013 = vst [vmem:[#allocation99_spill] sm:$0xff] %v7067_v40 }
  0xbb   : > { %12014 = vst [vmem:[#allocation100_spill] sm:$0xff] %v7069_v36  ;;  %v7072_v39 = vld [vmem:[#allocation1 + $0x1] ss:$4 sm:$0xff]  ;;  %v7074_v47 = vld [vmem:[#allocation1 + $0x2] ss:$4 sm:$0xff] }
  0xbc   : > { %1757 = vst [vmem:[#allocation1 + $0x20] sm:$0xff] %v7061_v37  ;;  %v7076_v54 = vld [vmem:[#allocation1 + $0x3] ss:$4 sm:$0xff] }
  0xbd   : > { %12015 = vst [vmem:[#allocation101_spill] sm:$0xff] %v7072_v39 }
  0xbe   : > { %12016 = vst [vmem:[#allocation102_spill] sm:$0xff] %v7074_v47 }
  0xbf   : > { %12017 = vst [vmem:[#allocation103_spill] sm:$0xff] %v7076_v54 }
  0xc0   : > { %1848 = vst [vmem:[#allocation1] sm:$0xff] %v6779_v2 }
  0xc3   : > { %v7079_v51 = vld [vmem:[#allocation1 + $0x20] ss:$4 sm:$0xff]  ;;  %v7081_v35 = vld [vmem:[#allocation1 + $0x21] ss:$4 sm:$0xff]  ;;  %v7083_v50 = vld [vmem:[#allocation1 + $0x22] ss:$4 sm:$0xff] }
  0xc4   : > { %12018 = vst [vmem:[#allocation104_spill] sm:$0xff] %v7079_v51  ;;  %v7085_v46 = vld [vmem:[#allocation1 + $0x23] ss:$4 sm:$0xff] }
  0xc5   : > { %12019 = vst [vmem:[#allocation105_spill] sm:$0xff] %v7081_v35 }
  0xc6   : > { %12020 = vst [vmem:[#allocation106_spill] sm:$0xff] %v7083_v50 }
  0xc7   : > { %12021 = vst [vmem:[#allocation107_spill] sm:$0xff] %v7085_v46  ;;  %v7088_v36 = vld [vmem:[#allocation1 + $0x1] ss:$4 sm:$0xff]  ;;  %v7090_v40 = vld [vmem:[#allocation1 + $0x2] ss:$4 sm:$0xff] }
  0xc8   : > { %1849 = vst [vmem:[#allocation1 + $0x20] sm:$0xff] %v6786_v5  ;;  %v7092_v39 = vld [vmem:[#allocation1 + $0x3] ss:$4 sm:$0xff] }
  0xc9   : > { %12022 = vst [vmem:[#allocation108_spill] sm:$0xff] %v7088_v36 }
  0xca   : > { %12023 = vst [vmem:[#allocation109_spill] sm:$0xff] %v7090_v40 }
  0xcb   : > { %12024 = vst [vmem:[#allocation110_spill] sm:$0xff] %v7092_v39 }
  0xcc   : > { %1864 = vst [vmem:[#allocation1] sm:$0xff] %v6801_v11 }
  0xcf   : > { %v7095_v54 = vld [vmem:[#allocation1 + $0x20] ss:$4 sm:$0xff]  ;;  %v7097_v47 = vld [vmem:[#allocation1 + $0x21] ss:$4 sm:$0xff]  ;;  %v7099_v51 = vld [vmem:[#allocation1 + $0x22] ss:$4 sm:$0xff] }
  0xd0   : > { %12025 = vst [vmem:[#allocation111_spill] sm:$0xff] %v7095_v54  ;;  %v7101_v35 = vld [vmem:[#allocation1 + $0x23] ss:$4 sm:$0xff] }
  0xd1   : > { %12026 = vst [vmem:[#allocation112_spill] sm:$0xff] %v7097_v47 }
  0xd2   : > { %12027 = vst [vmem:[#allocation113_spill] sm:$0xff] %v7099_v51 }
  0xd3   : > { %12028 = vst [vmem:[#allocation114_spill] sm:$0xff] %v7101_v35  ;;  %v7104_v46 = vld [vmem:[#allocation1 + $0x1] ss:$4 sm:$0xff]  ;;  %v7106_v50 = vld [vmem:[#allocation1 + $0x2] ss:$4 sm:$0xff] }
  0xd4   : > { %1865 = vst [vmem:[#allocation1 + $0x20] sm:$0xff] %v6808_v14  ;;  %v7108_v36 = vld [vmem:[#allocation1 + $0x3] ss:$4 sm:$0xff] }
  0xd5   : > { %12029 = vst [vmem:[#allocation115_spill] sm:$0xff] %v7104_v46 }
  0xd6   : > { %12030 = vst [vmem:[#allocation116_spill] sm:$0xff] %v7106_v50 }
  0xd7   : > { %12031 = vst [vmem:[#allocation117_spill] sm:$0xff] %v7108_v36 }
  0xd8   : > { %1873 = vst [vmem:[#allocation1] sm:$0xff] %v6823_v20 }
  0xdb   : > { %v7111_v39 = vld [vmem:[#allocation1 + $0x20] ss:$4 sm:$0xff]  ;;  %v7113_v40 = vld [vmem:[#allocation1 + $0x21] ss:$4 sm:$0xff]  ;;  %v7115_v54 = vld [vmem:[#allocation1 + $0x22] ss:$4 sm:$0xff] }
  0xdc   : > { %12032 = vst [vmem:[#allocation118_spill] sm:$0xff] %v7111_v39  ;;  %v7117_v47 = vld [vmem:[#allocation1 + $0x23] ss:$4 sm:$0xff] }
  0xdd   : > { %12033 = vst [vmem:[#allocation119_spill] sm:$0xff] %v7113_v40 }
  0xde   : > { %12034 = vst [vmem:[#allocation120_spill] sm:$0xff] %v7115_v54 }
  0xdf   : > { %12035 = vst [vmem:[#allocation121_spill] sm:$0xff] %v7117_v47  ;;  %v7120_v35 = vld [vmem:[#allocation1 + $0x1] ss:$4 sm:$0xff]  ;;  %v7122_v51 = vld [vmem:[#allocation1 + $0x2] ss:$4 sm:$0xff] }
  0xe0   : > { %1874 = vst [vmem:[#allocation1 + $0x20] sm:$0xff] %v6830_v23  ;;  %v7124_v46 = vld [vmem:[#allocation1 + $0x3] ss:$4 sm:$0xff] }
  0xe1   : > { %12036 = vst [vmem:[#allocation122_spill] sm:$0xff] %v7120_v35 }
  0xe2   : > { %12037 = vst [vmem:[#allocation123_spill] sm:$0xff] %v7122_v51 }
  0xe3   : > { %12038 = vst [vmem:[#allocation124_spill] sm:$0xff] %v7124_v46 }
  0xe4   : > { %1882 = vst [vmem:[#allocation1] sm:$0xff] %v6845_v29 }
  0xe7   : > { %v7127_v36 = vld [vmem:[#allocation1 + $0x20] ss:$4 sm:$0xff]  ;;  %v7129_v50 = vld [vmem:[#allocation1 + $0x21] ss:$4 sm:$0xff]  ;;  %v7131_v39 = vld [vmem:[#allocation1 + $0x22] ss:$4 sm:$0xff] }
  0xe8   : > { %12039 = vst [vmem:[#allocation125_spill] sm:$0xff] %v7127_v36  ;;  %v7133_v40 = vld [vmem:[#allocation1 + $0x23] ss:$4 sm:$0xff] }
  0xe9   : > { %12040 = vst [vmem:[#allocation126_spill] sm:$0xff] %v7129_v50 }
  0xea   : > { %12041 = vst [vmem:[#allocation127_spill] sm:$0xff] %v7131_v39 }
  0xeb   : > { %12042 = vst [vmem:[#allocation128_spill] sm:$0xff] %v7133_v40  ;;  %v7136_v47 = vld [vmem:[#allocation1 + $0x1] ss:$4 sm:$0xff]  ;;  %v7138_v54 = vld [vmem:[#allocation1 + $0x2] ss:$4 sm:$0xff] }
  0xec   : > { %1883 = vst [vmem:[#allocation1 + $0x20] sm:$0xff] %v6852_v32  ;;  %v7140_v35 = vld [vmem:[#allocation1 + $0x3] ss:$4 sm:$0xff] }
  0xed   : > { %12043 = vst [vmem:[#allocation129_spill] sm:$0xff] %v7136_v47 }
  0xee   : > { %12044 = vst [vmem:[#allocation130_spill] sm:$0xff] %v7138_v54 }
  0xef   : > { %12045 = vst [vmem:[#allocation131_spill] sm:$0xff] %v7140_v35 }
  0xf0   : > { %1891 = vst [vmem:[#allocation1] sm:$0xff] %v6867_v38 }
  0xf3   : > { %v7143_v46 = vld [vmem:[#allocation1 + $0x20] ss:$4 sm:$0xff]  ;;  %v7145_v51 = vld [vmem:[#allocation1 + $0x21] ss:$4 sm:$0xff]  ;;  %v7147_v36 = vld [vmem:[#allocation1 + $0x22] ss:$4 sm:$0xff] }
  0xf4   : > { %12046 = vst [vmem:[#allocation132_spill] sm:$0xff] %v7143_v46  ;;  %v7149_v50 = vld [vmem:[#allocation1 + $0x23] ss:$4 sm:$0xff] }
  0xf5   : > { %12047 = vst [vmem:[#allocation133_spill] sm:$0xff] %v7145_v51 }
  0xf6   : > { %12048 = vst [vmem:[#allocation134_spill] sm:$0xff] %v7147_v36 }
  0xf7   : > { %12049 = vst [vmem:[#allocation135_spill] sm:$0xff] %v7149_v50  ;;  %v7152_v40 = vld [vmem:[#allocation1 + $0x1] ss:$4 sm:$0xff]  ;;  %v7154_v39 = vld [vmem:[#allocation1 + $0x2] ss:$4 sm:$0xff] }
  0xf8   : > { %1892 = vst [vmem:[#allocation1 + $0x20] sm:$0xff] %v6874_v41  ;;  %v7156_v47 = vld [vmem:[#allocation1 + $0x3] ss:$4 sm:$0xff] }
  0xf9   : > { %12050 = vst [vmem:[#allocation136_spill] sm:$0xff] %v7152_v40 }
  0xfa   : > { %12051 = vst [vmem:[#allocation137_spill] sm:$0xff] %v7154_v39 }
  0xfb   : > { %12052 = vst [vmem:[#allocation138_spill] sm:$0xff] %v7156_v47 }
  0xfc   : > { %1900 = vst [vmem:[#allocation1] sm:$0xff] %v6897_v49 }
  0xff   : > { %v7159_v35 = vld [vmem:[#allocation1 + $0x20] ss:$4 sm:$0xff]  ;;  %v7161_v54 = vld [vmem:[#allocation1 + $0x21] ss:$4 sm:$0xff]  ;;  %v7163_v46 = vld [vmem:[#allocation1 + $0x22] ss:$4 sm:$0xff] }
 0x100   : > { %12053 = vst [vmem:[#allocation139_spill] sm:$0xff] %v7159_v35  ;;  %v7165_v51 = vld [vmem:[#allocation1 + $0x23] ss:$4 sm:$0xff] }
 0x101   : > { %12054 = vst [vmem:[#allocation140_spill] sm:$0xff] %v7161_v54 }
 0x102   : > { %12055 = vst [vmem:[#allocation141_spill] sm:$0xff] %v7163_v46 }
 0x103   : > { %12056 = vst [vmem:[#allocation142_spill] sm:$0xff] %v7165_v51  ;;  %v7168_v50 = vld [vmem:[#allocation1 + $0x1] ss:$4 sm:$0xff]  ;;  %v7170_v36 = vld [vmem:[#allocation1 + $0x2] ss:$4 sm:$0xff] }
 0x104   : > { %1901 = vst [vmem:[#allocation1 + $0x20] sm:$0xff] %v6906_v53  ;;  %v7172_v40 = vld [vmem:[#allocation1 + $0x3] ss:$4 sm:$0xff] }
 0x105   : > { %12057 = vst [vmem:[#allocation143_spill] sm:$0xff] %v7168_v50 }
 0x106   : > { %12058 = vst [vmem:[#allocation144_spill] sm:$0xff] %v7170_v36 }
 0x107   : > { %12059 = vst [vmem:[#allocation145_spill] sm:$0xff] %v7172_v40 }
 0x108   : > { %1909 = vst [vmem:[#allocation1] sm:$0xff] %v6919_v58 }
 0x10b   : > { %v7175_v47 = vld [vmem:[#allocation1 + $0x20] ss:$4 sm:$0xff]  ;;  %v7177_v39 = vld [vmem:[#allocation1 + $0x21] ss:$4 sm:$0xff]  ;;  %v7179_v35 = vld [vmem:[#allocation1 + $0x22] ss:$4 sm:$0xff] }
 0x10c   : > { %12060 = vst [vmem:[#allocation146_spill] sm:$0xff] %v7175_v47  ;;  %v7181_v54 = vld [vmem:[#allocation1 + $0x23] ss:$4 sm:$0xff] }
 0x10d   : > { %12061 = vst [vmem:[#allocation147_spill] sm:$0xff] %v7177_v39 }
 0x10e   : > { %12062 = vst [vmem:[#allocation148_spill] sm:$0xff] %v7179_v35 }
 0x10f   : > { %12063 = vst [vmem:[#allocation149_spill] sm:$0xff] %v7181_v54  ;;  %v7184_v51 = vld [vmem:[#allocation1 + $0x1] ss:$4 sm:$0xff]  ;;  %v7186_v46 = vld [vmem:[#allocation1 + $0x2] ss:$4 sm:$0xff] }
 0x110   : > { %1910 = vst [vmem:[#allocation1 + $0x20] sm:$0xff] %v6928_v62  ;;  %v7188_v50 = vld [vmem:[#allocation1 + $0x3] ss:$4 sm:$0xff] }
 0x111   : > { %12064 = vst [vmem:[#allocation150_spill] sm:$0xff] %v7184_v51 }
 0x112   : > { %12065 = vst [vmem:[#allocation151_spill] sm:$0xff] %v7186_v46 }
 0x113   : > { %12066 = vst [vmem:[#allocation152_spill] sm:$0xff] %v7188_v50 }
 0x114   : > { %1918 = vst [vmem:[#allocation1] sm:$0xff] %v6941_v59 }
 0x117   : > { %v7191_v40 = vld [vmem:[#allocation1 + $0x20] ss:$4 sm:$0xff]  ;;  %v7193_v36 = vld [vmem:[#allocation1 + $0x21] ss:$4 sm:$0xff]  ;;  %v7195_v47 = vld [vmem:[#allocation1 + $0x22] ss:$4 sm:$0xff] }
 0x118   : > { %12067 = vst [vmem:[#allocation153_spill] sm:$0xff] %v7191_v40  ;;  %v7197_v39 = vld [vmem:[#allocation1 + $0x23] ss:$4 sm:$0xff] }
 0x119   : > { %12068 = vst [vmem:[#allocation154_spill] sm:$0xff] %v7193_v36 }
 0x11a   : > { %12069 = vst [vmem:[#allocation155_spill] sm:$0xff] %v7195_v47 }
 0x11b   : > { %12070 = vst [vmem:[#allocation156_spill] sm:$0xff] %v7197_v39  ;;  %v7200_v54 = vld [vmem:[#allocation1 + $0x1] ss:$4 sm:$0xff]  ;;  %v7202_v35 = vld [vmem:[#allocation1 + $0x2] ss:$4 sm:$0xff] }
 0x11c   : > { %1919 = vst [vmem:[#allocation1 + $0x20] sm:$0xff] %v6951_v63  ;;  %v7204_v51 = vld [vmem:[#allocation1 + $0x3] ss:$4 sm:$0xff] }
 0x11d   : > { %12071 = vst [vmem:[#allocation157_spill] sm:$0xff] %v7200_v54 }
 0x11e   : > { %12072 = vst [vmem:[#allocation158_spill] sm:$0xff] %v7202_v35 }
 0x11f   : > { %12073 = vst [vmem:[#allocation159_spill] sm:$0xff] %v7204_v51 }
 0x120   : > { %1927 = vst [vmem:[#allocation1] sm:$0xff] %v6963_v60 }
 0x123   : > { %v7207_v50 = vld [vmem:[#allocation1 + $0x20] ss:$4 sm:$0xff]  ;;  %v7209_v46 = vld [vmem:[#allocation1 + $0x21] ss:$4 sm:$0xff]  ;;  %v7211_v40 = vld [vmem:[#allocation1 + $0x22] ss:$4 sm:$0xff] }
 0x124   : > { %12074 = vst [vmem:[#allocation160_spill] sm:$0xff] %v7207_v50  ;;  %v7213_v36 = vld [vmem:[#allocation1 + $0x23] ss:$4 sm:$0xff] }
 0x125   : > { %12075 = vst [vmem:[#allocation161_spill] sm:$0xff] %v7209_v46 }
 0x126   : > { %12076 = vst [vmem:[#allocation162_spill] sm:$0xff] %v7211_v40 }
 0x127   : > { %12077 = vst [vmem:[#allocation163_spill] sm:$0xff] %v7213_v36  ;;  %v7216_v39 = vld [vmem:[#allocation1 + $0x1] ss:$4 sm:$0xff]  ;;  %v7218_v47 = vld [vmem:[#allocation1 + $0x2] ss:$4 sm:$0xff] }
 0x128   : > { %1928 = vst [vmem:[#allocation1 + $0x20] sm:$0xff] %v6973_v57  ;;  %v7220_v54 = vld [vmem:[#allocation1 + $0x3] ss:$4 sm:$0xff] }
 0x129   : > { %12078 = vst [vmem:[#allocation164_spill] sm:$0xff] %v7216_v39 }
 0x12a   : > { %12079 = vst [vmem:[#allocation165_spill] sm:$0xff] %v7218_v47 }
 0x12b   : > { %12080 = vst [vmem:[#allocation166_spill] sm:$0xff] %v7220_v54 }
 0x12c   : > { %1936 = vst [vmem:[#allocation1] sm:$0xff] %v6985_v61 }
 0x12f   : > { %v7223_v51 = vld [vmem:[#allocation1 + $0x20] ss:$4 sm:$0xff]  ;;  %v7225_v35 = vld [vmem:[#allocation1 + $0x21] ss:$4 sm:$0xff]  ;;  %v7227_v50 = vld [vmem:[#allocation1 + $0x22] ss:$4 sm:$0xff] }
 0x130   : > { %12081 = vst [vmem:[#allocation167_spill] sm:$0xff] %v7223_v51  ;;  %v7229_v46 = vld [vmem:[#allocation1 + $0x23] ss:$4 sm:$0xff] }
 0x131   : > { %12082 = vst [vmem:[#allocation168_spill] sm:$0xff] %v7225_v35 }
 0x132   : > { %12083 = vst [vmem:[#allocation169_spill] sm:$0xff] %v7227_v50 }
 0x133   : > { %12084 = vst [vmem:[#allocation170_spill] sm:$0xff] %v7229_v46  ;;  %v7232_v36 = vld [vmem:[#allocation1 + $0x1] ss:$4 sm:$0xff]  ;;  %v7234_v40 = vld [vmem:[#allocation1 + $0x2] ss:$4 sm:$0xff] }
 0x134   : > { %1937 = vst [vmem:[#allocation1 + $0x20] sm:$0xff] %v6995_v56  ;;  %v7236_v39 = vld [vmem:[#allocation1 + $0x3] ss:$4 sm:$0xff] }
 0x135   : > { %12085 = vst [vmem:[#allocation171_spill] sm:$0xff] %v7232_v36 }
 0x136   : > { %12086 = vst [vmem:[#allocation172_spill] sm:$0xff] %v7234_v40 }
 0x137   : > { %12087 = vst [vmem:[#allocation173_spill] sm:$0xff] %v7236_v39 }
 0x138   : > { %1945 = vst [vmem:[#allocation1] sm:$0xff] %v7006_v45 }
 0x13b   : > { %v7239_v54 = vld [vmem:[#allocation1 + $0x20] ss:$4 sm:$0xff]  ;;  %v7241_v47 = vld [vmem:[#allocation1 + $0x21] ss:$4 sm:$0xff]  ;;  %v7243_v51 = vld [vmem:[#allocation1 + $0x22] ss:$4 sm:$0xff] }
 0x13c   : > { %12088 = vst [vmem:[#allocation174_spill] sm:$0xff] %v7239_v54  ;;  %v7245_v35 = vld [vmem:[#allocation1 + $0x23] ss:$4 sm:$0xff] }
 0x13d   : > { %12089 = vst [vmem:[#allocation175_spill] sm:$0xff] %v7241_v47 }
 0x13e   : > { %12090 = vst [vmem:[#allocation176_spill] sm:$0xff] %v7243_v51 }
 0x13f   : > { %12091 = vst [vmem:[#allocation177_spill] sm:$0xff] %v7245_v35  ;;  %v7248_v46 = vld [vmem:[#allocation1 + $0x1] ss:$4 sm:$0xff]  ;;  %v7250_v36 = vld [vmem:[#allocation1 + $0x2] ss:$4 sm:$0xff] }
 0x140   : > { %1946 = vst [vmem:[#allocation1 + $0x20] sm:$0xff] %v7017_v55  ;;  %v7252_v40 = vld [vmem:[#allocation1 + $0x3] ss:$4 sm:$0xff] }
 0x141   : > { %12092 = vst [vmem:[#allocation178_spill] sm:$0xff] %v7248_v46 }
 0x142   : > { %12093 = vst [vmem:[#allocation179_spill] sm:$0xff] %v7250_v36 }
 0x143   : > { %12094 = vst [vmem:[#allocation180_spill] sm:$0xff] %v7252_v40 }
 0x144   : > { %1954 = vst [vmem:[#allocation1] sm:$0xff] %v7026_v44 }
 0x147   : > { %v7255_v39 = vld [vmem:[#allocation1 + $0x20] ss:$4 sm:$0xff]  ;;  %v7257_v54 = vld [vmem:[#allocation1 + $0x21] ss:$4 sm:$0xff]  ;;  %v7259_v47 = vld [vmem:[#allocation1 + $0x22] ss:$4 sm:$0xff] }
 0x148   : > { %12095 = vst [vmem:[#allocation181_spill] sm:$0xff] %v7255_v39  ;;  %v7261_v51 = vld [vmem:[#allocation1 + $0x23] ss:$4 sm:$0xff] }
 0x149   : > { %12096 = vst [vmem:[#allocation182_spill] sm:$0xff] %v7257_v54 }
 0x14a   : > { %12097 = vst [vmem:[#allocation183_spill] sm:$0xff] %v7259_v47  ;;  %v7278_v47 = vld [vmem:[%s6768_s26 + $0x70] sm:$0xf] }
 0x14b   : > { %12098 = vst [vmem:[#allocation184_spill] sm:$0xff] %v7261_v51  ;;  %v7264_v35 = vld [vmem:[#allocation1 + $0x1] ss:$4 sm:$0xff]  ;;  %v7266_v46 = vld [vmem:[#allocation1 + $0x2] ss:$4 sm:$0xff] }
 0x14c   : > { %1955 = vst [vmem:[#allocation1 + $0x20] sm:$0xff] %v7039_v52  ;;  %v7268_v36 = vld [vmem:[#allocation1 + $0x3] ss:$4 sm:$0xff] }
 0x14d   : > { %12099 = vst [vmem:[#allocation185_spill] sm:$0xff] %v7264_v35 }
 0x14e   : > { %12100 = vst [vmem:[#allocation186_spill] sm:$0xff] %v7266_v46 }
 0x14f   : > { %12101 = vst [vmem:[#allocation187_spill] sm:$0xff] %v7268_v36  ;;  %v7291_v36 = vld [vmem:[%s6768_s26 + $0x74] sm:$0xf] }
 0x150   : > { %1963 = vst [vmem:[#allocation1] sm:$0xff] %v7048_v42 }
 0x151   : > { %12105 = vst [vmem:[#allocation191_spill] sm:$0xff] %v7278_v47 }
 0x152   : > { %12110 = vst [vmem:[#allocation196_spill] sm:$0xff] %v7291_v36 }
 0x153   : > { %v7271_v40 = vld [vmem:[#allocation1 + $0x20] ss:$4 sm:$0xff]  ;;  %v7273_v39 = vld [vmem:[#allocation1 + $0x21] ss:$4 sm:$0xff]  ;;  %v7275_v54 = vld [vmem:[#allocation1 + $0x22] ss:$4 sm:$0xff] }
 0x154   : > { %12102 = vst [vmem:[#allocation188_spill] sm:$0xff] %v7271_v40  ;;  %v7280_v51 = vld [vmem:[#allocation1 + $0x23] ss:$4 sm:$0xff] }
 0x155   : > { %12103 = vst [vmem:[#allocation189_spill] sm:$0xff] %v7273_v39 }
 0x156   : > { %12104 = vst [vmem:[#allocation190_spill] sm:$0xff] %v7275_v54 }
 0x157   : > { %12106 = vst [vmem:[#allocation192_spill] sm:$0xff] %v7280_v51  ;;  %v7283_v50 = vld [vmem:[#allocation1 + $0x1] ss:$4 sm:$0xff]  ;;  %v7285_v35 = vld [vmem:[#allocation1 + $0x2] ss:$4 sm:$0xff] }
 0x158   : > { %1964 = vst [vmem:[#allocation1 + $0x20] sm:$0xff] %v7061_v37  ;;  %v7287_v46 = vld [vmem:[#allocation1 + $0x3] ss:$4 sm:$0xff] }
 0x159   : > { %12107 = vst [vmem:[#allocation193_spill] sm:$0xff] %v7283_v50 }
 0x15a   : > { %12108 = vst [vmem:[#allocation194_spill] sm:$0xff] %v7285_v35 }
 0x15b   : > { %12109 = vst [vmem:[#allocation195_spill] sm:$0xff] %v7287_v46 }
 0x15c   : > { %1972 = vst [vmem:[#allocation1] sm:$0xff] %v7278_v47 }
 0x15f   : > { %v7293_v40 = vld [vmem:[#allocation1 + $0x20] ss:$4 sm:$0xff]  ;;  %v7295_v39 = vld [vmem:[#allocation1 + $0x21] ss:$4 sm:$0xff]  ;;  %v7297_v54 = vld [vmem:[#allocation1 + $0x22] ss:$4 sm:$0xff] }
 0x160   : > { %12111 = vst [vmem:[#allocation197_spill] sm:$0xff] %v7293_v40  ;;  %v7299_v34 = vld [vmem:[#allocation1 + $0x23] ss:$4 sm:$0xff] }
 0x161   : > { %12112 = vst [vmem:[#allocation198_spill] sm:$0xff] %v7295_v39 }
 0x162   : > { %12113 = vst [vmem:[#allocation199_spill] sm:$0xff] %v7297_v54 }
 0x163   : > { %12114 = vst [vmem:[#allocation200_spill] sm:$0xff] %v7299_v34  ;;  %v7302_v51 = vld [vmem:[#allocation1 + $0x1] ss:$4 sm:$0xff]  ;;  %v7304_v50 = vld [vmem:[#allocation1 + $0x2] ss:$4 sm:$0xff] }
 0x164   : > { %1973 = vst [vmem:[#allocation1 + $0x20] sm:$0xff] %v7291_v36  ;;  %v7306_v35 = vld [vmem:[#allocation1 + $0x3] ss:$4 sm:$0xff] }
 0x165   : > { %12115 = vst [vmem:[#allocation201_spill] sm:$0xff] %v7302_v51 }
 0x166   : > { %12116 = vst [vmem:[#allocation202_spill] sm:$0xff] %v7304_v50 }
 0x167   : > { %12117 = vst [vmem:[#allocation203_spill] sm:$0xff] %v7306_v35 }
 0x168   : > { %2064 = vst [vmem:[#allocation1] sm:$0xff] %v6801_v11 }
 0x16b   : > { %v7309_v46 = vld [vmem:[#allocation1 + $0x20] ss:$4 sm:$0xff]  ;;  %v7311_v33 = vld [vmem:[#allocation1 + $0x21] ss:$4 sm:$0xff]  ;;  %v7313_v40 = vld [vmem:[#allocation1 + $0x22] ss:$4 sm:$0xff] }
 0x16c   : > { %12118 = vst [vmem:[#allocation204_spill] sm:$0xff] %v7309_v46  ;;  %v7315_v39 = vld [vmem:[#allocation1 + $0x23] ss:$4 sm:$0xff] }
 0x16d   : > { %12119 = vst [vmem:[#allocation205_spill] sm:$0xff] %v7311_v33 }
 0x16e   : > { %12120 = vst [vmem:[#allocation206_spill] sm:$0xff] %v7313_v40 }
 0x16f   : > { %12121 = vst [vmem:[#allocation207_spill] sm:$0xff] %v7315_v39  ;;  %v7318_v34 = vld [vmem:[#allocation1 + $0x1] ss:$4 sm:$0xff]  ;;  %v7320_v54 = vld [vmem:[#allocation1 + $0x2] ss:$4 sm:$0xff] }
 0x170   : > { %2065 = vst [vmem:[#allocation1 + $0x20] sm:$0xff] %v6808_v14  ;;  %v7322_v51 = vld [vmem:[#allocation1 + $0x3] ss:$4 sm:$0xff] }
 0x171   : > { %12122 = vst [vmem:[#allocation208_spill] sm:$0xff] %v7318_v34 }
 0x172   : > { %12123 = vst [vmem:[#allocation209_spill] sm:$0xff] %v7320_v54 }
 0x173   : > { %12124 = vst [vmem:[#allocation210_spill] sm:$0xff] %v7322_v51 }
 0x174   : > { %2080 = vst [vmem:[#allocation1] sm:$0xff] %v6823_v20 }
 0x177   : > { %v7325_v35 = vld [vmem:[#allocation1 + $0x20] ss:$4 sm:$0xff]  ;;  %v7327_v50 = vld [vmem:[#allocation1 + $0x21] ss:$4 sm:$0xff]  ;;  %v7329_v46 = vld [vmem:[#allocation1 + $0x22] ss:$4 sm:$0xff] }
 0x178   : > { %12125 = vst [vmem:[#allocation211_spill] sm:$0xff] %v7325_v35  ;;  %v7331_v33 = vld [vmem:[#allocation1 + $0x23] ss:$4 sm:$0xff] }
 0x179   : > { %12126 = vst [vmem:[#allocation212_spill] sm:$0xff] %v7327_v50 }
 0x17a   : > { %12127 = vst [vmem:[#allocation213_spill] sm:$0xff] %v7329_v46 }
 0x17b   : > { %12128 = vst [vmem:[#allocation214_spill] sm:$0xff] %v7331_v33  ;;  %v7334_v39 = vld [vmem:[#allocation1 + $0x1] ss:$4 sm:$0xff]  ;;  %v7336_v40 = vld [vmem:[#allocation1 + $0x2] ss:$4 sm:$0xff] }
 0x17c   : > { %2081 = vst [vmem:[#allocation1 + $0x20] sm:$0xff] %v6830_v23  ;;  %v7338_v34 = vld [vmem:[#allocation1 + $0x3] ss:$4 sm:$0xff] }
 0x17d   : > { %12129 = vst [vmem:[#allocation215_spill] sm:$0xff] %v7334_v39 }
 0x17e   : > { %12130 = vst [vmem:[#allocation216_spill] sm:$0xff] %v7336_v40 }
 0x17f   : > { %12131 = vst [vmem:[#allocation217_spill] sm:$0xff] %v7338_v34 }
 0x180   : > { %2089 = vst [vmem:[#allocation1] sm:$0xff] %v6845_v29 }
 0x183   : > { %v7341_v51 = vld [vmem:[#allocation1 + $0x20] ss:$4 sm:$0xff]  ;;  %v7343_v54 = vld [vmem:[#allocation1 + $0x21] ss:$4 sm:$0xff]  ;;  %v7345_v35 = vld [vmem:[#allocation1 + $0x22] ss:$4 sm:$0xff] }
 0x184   : > { %12132 = vst [vmem:[#allocation218_spill] sm:$0xff] %v7341_v51  ;;  %v7347_v50 = vld [vmem:[#allocation1 + $0x23] ss:$4 sm:$0xff] }
 0x185   : > { %12133 = vst [vmem:[#allocation219_spill] sm:$0xff] %v7343_v54 }
 0x186   : > { %12134 = vst [vmem:[#allocation220_spill] sm:$0xff] %v7345_v35 }
 0x187   : > { %12135 = vst [vmem:[#allocation221_spill] sm:$0xff] %v7347_v50  ;;  %v7350_v33 = vld [vmem:[#allocation1 + $0x1] ss:$4 sm:$0xff]  ;;  %v7352_v46 = vld [vmem:[#allocation1 + $0x2] ss:$4 sm:$0xff] }
 0x188   : > { %2090 = vst [vmem:[#allocation1 + $0x20] sm:$0xff] %v6852_v32  ;;  %v7354_v39 = vld [vmem:[#allocation1 + $0x3] ss:$4 sm:$0xff] }
 0x189   : > { %12136 = vst [vmem:[#allocation222_spill] sm:$0xff] %v7350_v33 }
 0x18a   : > { %12137 = vst [vmem:[#allocation223_spill] sm:$0xff] %v7352_v46 }
 0x18b   : > { %12138 = vst [vmem:[#allocation224_spill] sm:$0xff] %v7354_v39 }
 0x18c   : > { %2098 = vst [vmem:[#allocation1] sm:$0xff] %v6867_v38 }
 0x18f   : > { %v7357_v34 = vld [vmem:[#allocation1 + $0x20] ss:$4 sm:$0xff]  ;;  %v7359_v40 = vld [vmem:[#allocation1 + $0x21] ss:$4 sm:$0xff]  ;;  %v7361_v51 = vld [vmem:[#allocation1 + $0x22] ss:$4 sm:$0xff] }
 0x190   : > { %12139 = vst [vmem:[#allocation225_spill] sm:$0xff] %v7357_v34  ;;  %v7363_v54 = vld [vmem:[#allocation1 + $0x23] ss:$4 sm:$0xff] }
 0x191   : > { %12140 = vst [vmem:[#allocation226_spill] sm:$0xff] %v7359_v40 }
 0x192   : > { %12141 = vst [vmem:[#allocation227_spill] sm:$0xff] %v7361_v51 }
 0x193   : > { %12142 = vst [vmem:[#allocation228_spill] sm:$0xff] %v7363_v54  ;;  %v7366_v50 = vld [vmem:[#allocation1 + $0x1] ss:$4 sm:$0xff]  ;;  %v7368_v35 = vld [vmem:[#allocation1 + $0x2] ss:$4 sm:$0xff] }
 0x194   : > { %2099 = vst [vmem:[#allocation1 + $0x20] sm:$0xff] %v6874_v41  ;;  %v7370_v33 = vld [vmem:[#allocation1 + $0x3] ss:$4 sm:$0xff] }
 0x195   : > { %12143 = vst [vmem:[#allocation229_spill] sm:$0xff] %v7366_v50 }
 0x196   : > { %12144 = vst [vmem:[#allocation230_spill] sm:$0xff] %v7368_v35 }
 0x197   : > { %12145 = vst [vmem:[#allocation231_spill] sm:$0xff] %v7370_v33 }
 0x198   : > { %2107 = vst [vmem:[#allocation1] sm:$0xff] %v6897_v49 }
 0x19b   : > { %v7373_v39 = vld [vmem:[#allocation1 + $0x20] ss:$4 sm:$0xff]  ;;  %v7375_v46 = vld [vmem:[#allocation1 + $0x21] ss:$4 sm:$0xff]  ;;  %v7377_v34 = vld [vmem:[#allocation1 + $0x22] ss:$4 sm:$0xff] }
 0x19c   : > { %12146 = vst [vmem:[#allocation232_spill] sm:$0xff] %v7373_v39  ;;  %v7379_v40 = vld [vmem:[#allocation1 + $0x23] ss:$4 sm:$0xff] }
 0x19d   : > { %12147 = vst [vmem:[#allocation233_spill] sm:$0xff] %v7375_v46 }
 0x19e   : > { %12148 = vst [vmem:[#allocation234_spill] sm:$0xff] %v7377_v34 }
 0x19f   : > { %12149 = vst [vmem:[#allocation235_spill] sm:$0xff] %v7379_v40  ;;  %v7382_v54 = vld [vmem:[#allocation1 + $0x1] ss:$4 sm:$0xff]  ;;  %v7384_v51 = vld [vmem:[#allocation1 + $0x2] ss:$4 sm:$0xff] }
 0x1a0   : > { %2108 = vst [vmem:[#allocation1 + $0x20] sm:$0xff] %v6906_v53  ;;  %v7386_v50 = vld [vmem:[#allocation1 + $0x3] ss:$4 sm:$0xff] }
 0x1a1   : > { %12150 = vst [vmem:[#allocation236_spill] sm:$0xff] %v7382_v54 }
 0x1a2   : > { %12151 = vst [vmem:[#allocation237_spill] sm:$0xff] %v7384_v51 }
 0x1a3   : > { %12152 = vst [vmem:[#allocation238_spill] sm:$0xff] %v7386_v50 }
 0x1a4   : > { %2116 = vst [vmem:[#allocation1] sm:$0xff] %v6919_v58 }
 0x1a7   : > { %v7389_v33 = vld [vmem:[#allocation1 + $0x20] ss:$4 sm:$0xff]  ;;  %v7391_v35 = vld [vmem:[#allocation1 + $0x21] ss:$4 sm:$0xff]  ;;  %v7393_v39 = vld [vmem:[#allocation1 + $0x22] ss:$4 sm:$0xff] }
 0x1a8   : > { %12153 = vst [vmem:[#allocation239_spill] sm:$0xff] %v7389_v33  ;;  %v7395_v46 = vld [vmem:[#allocation1 + $0x23] ss:$4 sm:$0xff] }
 0x1a9   : > { %12154 = vst [vmem:[#allocation240_spill] sm:$0xff] %v7391_v35 }
 0x1aa   : > { %12155 = vst [vmem:[#allocation241_spill] sm:$0xff] %v7393_v39 }
 0x1ab   : > { %12156 = vst [vmem:[#allocation242_spill] sm:$0xff] %v7395_v46  ;;  %v7398_v40 = vld [vmem:[#allocation1 + $0x1] ss:$4 sm:$0xff]  ;;  %v7400_v34 = vld [vmem:[#allocation1 + $0x2] ss:$4 sm:$0xff] }
 0x1ac   : > { %2117 = vst [vmem:[#allocation1 + $0x20] sm:$0xff] %v6928_v62  ;;  %v7402_v54 = vld [vmem:[#allocation1 + $0x3] ss:$4 sm:$0xff] }
 0x1ad   : > { %12157 = vst [vmem:[#allocation243_spill] sm:$0xff] %v7398_v40 }
 0x1ae   : > { %12158 = vst [vmem:[#allocation244_spill] sm:$0xff] %v7400_v34 }
 0x1af   : > { %12159 = vst [vmem:[#allocation245_spill] sm:$0xff] %v7402_v54 }
 0x1b0   : > { %2125 = vst [vmem:[#allocation1] sm:$0xff] %v6941_v59 }
 0x1b3   : > { %v7405_v50 = vld [vmem:[#allocation1 + $0x20] ss:$4 sm:$0xff]  ;;  %v7407_v51 = vld [vmem:[#allocation1 + $0x21] ss:$4 sm:$0xff]  ;;  %v7409_v33 = vld [vmem:[#allocation1 + $0x22] ss:$4 sm:$0xff] }
 0x1b4   : > { %12160 = vst [vmem:[#allocation246_spill] sm:$0xff] %v7405_v50  ;;  %v7411_v35 = vld [vmem:[#allocation1 + $0x23] ss:$4 sm:$0xff] }
 0x1b5   : > { %12161 = vst [vmem:[#allocation247_spill] sm:$0xff] %v7407_v51 }
 0x1b6   : > { %12162 = vst [vmem:[#allocation248_spill] sm:$0xff] %v7409_v33 }
 0x1b7   : > { %12163 = vst [vmem:[#allocation249_spill] sm:$0xff] %v7411_v35  ;;  %v7414_v46 = vld [vmem:[#allocation1 + $0x1] ss:$4 sm:$0xff]  ;;  %v7416_v39 = vld [vmem:[#allocation1 + $0x2] ss:$4 sm:$0xff] }
 0x1b8   : > { %2126 = vst [vmem:[#allocation1 + $0x20] sm:$0xff] %v6951_v63  ;;  %v7418_v40 = vld [vmem:[#allocation1 + $0x3] ss:$4 sm:$0xff] }
 0x1b9   : > { %12164 = vst [vmem:[#allocation250_spill] sm:$0xff] %v7414_v46 }
 0x1ba   : > { %12165 = vst [vmem:[#allocation251_spill] sm:$0xff] %v7416_v39 }
 0x1bb   : > { %12166 = vst [vmem:[#allocation252_spill] sm:$0xff] %v7418_v40 }
 0x1bc   : > { %2134 = vst [vmem:[#allocation1] sm:$0xff] %v6963_v60 }
 0x1bf   : > { %v7421_v54 = vld [vmem:[#allocation1 + $0x20] ss:$4 sm:$0xff]  ;;  %v7423_v34 = vld [vmem:[#allocation1 + $0x21] ss:$4 sm:$0xff]  ;;  %v7425_v50 = vld [vmem:[#allocation1 + $0x22] ss:$4 sm:$0xff] }
 0x1c0   : > { %12167 = vst [vmem:[#allocation253_spill] sm:$0xff] %v7421_v54  ;;  %v7427_v51 = vld [vmem:[#allocation1 + $0x23] ss:$4 sm:$0xff] }
 0x1c1   : > { %12168 = vst [vmem:[#allocation254_spill] sm:$0xff] %v7423_v34 }
 0x1c2   : > { %12169 = vst [vmem:[#allocation255_spill] sm:$0xff] %v7425_v50 }
 0x1c3   : > { %12170 = vst [vmem:[#allocation256_spill] sm:$0xff] %v7427_v51  ;;  %v7430_v35 = vld [vmem:[#allocation1 + $0x1] ss:$4 sm:$0xff]  ;;  %v7432_v33 = vld [vmem:[#allocation1 + $0x2] ss:$4 sm:$0xff] }
 0x1c4   : > { %2135 = vst [vmem:[#allocation1 + $0x20] sm:$0xff] %v6973_v57  ;;  %v7434_v46 = vld [vmem:[#allocation1 + $0x3] ss:$4 sm:$0xff] }
 0x1c5   : > { %12171 = vst [vmem:[#allocation257_spill] sm:$0xff] %v7430_v35 }
 0x1c6   : > { %12172 = vst [vmem:[#allocation258_spill] sm:$0xff] %v7432_v33 }
 0x1c7   : > { %12173 = vst [vmem:[#allocation259_spill] sm:$0xff] %v7434_v46 }
 0x1c8   : > { %2143 = vst [vmem:[#allocation1] sm:$0xff] %v6985_v61 }
 0x1cb   : > { %v7437_v40 = vld [vmem:[#allocation1 + $0x20] ss:$4 sm:$0xff]  ;;  %v7439_v39 = vld [vmem:[#allocation1 + $0x21] ss:$4 sm:$0xff]  ;;  %v7441_v54 = vld [vmem:[#allocation1 + $0x22] ss:$4 sm:$0xff] }
 0x1cc   : > { %12174 = vst [vmem:[#allocation260_spill] sm:$0xff] %v7437_v40  ;;  %v7443_v34 = vld [vmem:[#allocation1 + $0x23] ss:$4 sm:$0xff] }
 0x1cd   : > { %12175 = vst [vmem:[#allocation261_spill] sm:$0xff] %v7439_v39 }
 0x1ce   : > { %12176 = vst [vmem:[#allocation262_spill] sm:$0xff] %v7441_v54 }
 0x1cf   : > { %12177 = vst [vmem:[#allocation263_spill] sm:$0xff] %v7443_v34  ;;  %v7446_v51 = vld [vmem:[#allocation1 + $0x1] ss:$4 sm:$0xff]  ;;  %v7448_v50 = vld [vmem:[#allocation1 + $0x2] ss:$4 sm:$0xff] }
 0x1d0   : > { %2144 = vst [vmem:[#allocation1 + $0x20] sm:$0xff] %v6995_v56  ;;  %v7450_v35 = vld [vmem:[#allocation1 + $0x3] ss:$4 sm:$0xff] }
 0x1d1   : > { %12178 = vst [vmem:[#allocation264_spill] sm:$0xff] %v7446_v51 }
 0x1d2   : > { %12179 = vst [vmem:[#allocation265_spill] sm:$0xff] %v7448_v50 }
 0x1d3   : > { %12180 = vst [vmem:[#allocation266_spill] sm:$0xff] %v7450_v35 }
 0x1d4   : > { %2152 = vst [vmem:[#allocation1] sm:$0xff] %v7006_v45 }
 0x1d7   : > { %v7453_v46 = vld [vmem:[#allocation1 + $0x20] ss:$4 sm:$0xff]  ;;  %v7455_v33 = vld [vmem:[#allocation1 + $0x21] ss:$4 sm:$0xff]  ;;  %v7457_v40 = vld [vmem:[#allocation1 + $0x22] ss:$4 sm:$0xff] }
 0x1d8   : > { %12181 = vst [vmem:[#allocation267_spill] sm:$0xff] %v7453_v46  ;;  %v7459_v39 = vld [vmem:[#allocation1 + $0x23] ss:$4 sm:$0xff] }
 0x1d9   : > { %12182 = vst [vmem:[#allocation268_spill] sm:$0xff] %v7455_v33 }
 0x1da   : > { %12183 = vst [vmem:[#allocation269_spill] sm:$0xff] %v7457_v40 }
 0x1db   : > { %12184 = vst [vmem:[#allocation270_spill] sm:$0xff] %v7459_v39  ;;  %v7462_v34 = vld [vmem:[#allocation1 + $0x1] ss:$4 sm:$0xff]  ;;  %v7464_v54 = vld [vmem:[#allocation1 + $0x2] ss:$4 sm:$0xff] }
 0x1dc   : > { %2153 = vst [vmem:[#allocation1 + $0x20] sm:$0xff] %v7017_v55  ;;  %v7466_v51 = vld [vmem:[#allocation1 + $0x3] ss:$4 sm:$0xff] }
 0x1dd   : > { %12185 = vst [vmem:[#allocation271_spill] sm:$0xff] %v7462_v34 }
 0x1de   : > { %12186 = vst [vmem:[#allocation272_spill] sm:$0xff] %v7464_v54 }
 0x1df   : > { %12187 = vst [vmem:[#allocation273_spill] sm:$0xff] %v7466_v51 }
 0x1e0   : > { %2161 = vst [vmem:[#allocation1] sm:$0xff] %v7026_v44 }
 0x1e3   : > { %v7469_v35 = vld [vmem:[#allocation1 + $0x20] ss:$4 sm:$0xff]  ;;  %v7471_v50 = vld [vmem:[#allocation1 + $0x21] ss:$4 sm:$0xff]  ;;  %v7473_v46 = vld [vmem:[#allocation1 + $0x22] ss:$4 sm:$0xff] }
 0x1e4   : > { %12188 = vst [vmem:[#allocation274_spill] sm:$0xff] %v7469_v35  ;;  %v7475_v33 = vld [vmem:[#allocation1 + $0x23] ss:$4 sm:$0xff] }
 0x1e5   : > { %12189 = vst [vmem:[#allocation275_spill] sm:$0xff] %v7471_v50 }
 0x1e6   : > { %12190 = vst [vmem:[#allocation276_spill] sm:$0xff] %v7473_v46 }
 0x1e7   : > { %12191 = vst [vmem:[#allocation277_spill] sm:$0xff] %v7475_v33  ;;  %v7478_v39 = vld [vmem:[#allocation1 + $0x1] ss:$4 sm:$0xff]  ;;  %v7480_v34 = vld [vmem:[#allocation1 + $0x2] ss:$4 sm:$0xff] }
 0x1e8   : > { %2162 = vst [vmem:[#allocation1 + $0x20] sm:$0xff] %v7039_v52  ;;  %v7482_v54 = vld [vmem:[#allocation1 + $0x3] ss:$4 sm:$0xff] }
 0x1e9   : > { %12192 = vst [vmem:[#allocation278_spill] sm:$0xff] %v7478_v39 }
 0x1ea   : > { %12193 = vst [vmem:[#allocation279_spill] sm:$0xff] %v7480_v34 }
 0x1eb   : > { %12194 = vst [vmem:[#allocation280_spill] sm:$0xff] %v7482_v54 }
 0x1ec   : > { %2170 = vst [vmem:[#allocation1] sm:$0xff] %v7048_v42 }
 0x1ef   : > { %v7485_v51 = vld [vmem:[#allocation1 + $0x20] ss:$4 sm:$0xff]  ;;  %v7487_v35 = vld [vmem:[#allocation1 + $0x21] ss:$4 sm:$0xff]  ;;  %v7489_v50 = vld [vmem:[#allocation1 + $0x22] ss:$4 sm:$0xff] }
 0x1f0   : > { %12195 = vst [vmem:[#allocation281_spill] sm:$0xff] %v7485_v51  ;;  %v7491_v46 = vld [vmem:[#allocation1 + $0x23] ss:$4 sm:$0xff] }
 0x1f1   : > { %12196 = vst [vmem:[#allocation282_spill] sm:$0xff] %v7487_v35 }
 0x1f2   : > { %12197 = vst [vmem:[#allocation283_spill] sm:$0xff] %v7489_v50  ;;  %v7508_v50 = vld [vmem:[%s6768_s26 + $0x78] sm:$0xf] }
 0x1f3   : > { %12198 = vst [vmem:[#allocation284_spill] sm:$0xff] %v7491_v46  ;;  %v7494_v33 = vld [vmem:[#allocation1 + $0x1] ss:$4 sm:$0xff]  ;;  %v7496_v39 = vld [vmem:[#allocation1 + $0x2] ss:$4 sm:$0xff] }
 0x1f4   : > { %2171 = vst [vmem:[#allocation1 + $0x20] sm:$0xff] %v7061_v37  ;;  %v7498_v34 = vld [vmem:[#allocation1 + $0x3] ss:$4 sm:$0xff] }
 0x1f5   : > { %12199 = vst [vmem:[#allocation285_spill] sm:$0xff] %v7494_v33 }
 0x1f6   : > { %12200 = vst [vmem:[#allocation286_spill] sm:$0xff] %v7496_v39 }
 0x1f7   : > { %12201 = vst [vmem:[#allocation287_spill] sm:$0xff] %v7498_v34  ;;  %v7521_v34 = vld [vmem:[%s6768_s26 + $0x7c] sm:$0xf] }
 0x1f8   : > { %2179 = vst [vmem:[#allocation1] sm:$0xff] %v7278_v47 }
 0x1f9   : > { %12205 = vst [vmem:[#allocation291_spill] sm:$0xff] %v7508_v50 }
 0x1fa   : > { %12210 = vst [vmem:[#allocation296_spill] sm:$0xff] %v7521_v34 }
 0x1fb   : > { %v7501_v54 = vld [vmem:[#allocation1 + $0x20] ss:$4 sm:$0xff]  ;;  %v7503_v51 = vld [vmem:[#allocation1 + $0x21] ss:$4 sm:$0xff]  ;;  %v7505_v35 = vld [vmem:[#allocation1 + $0x22] ss:$4 sm:$0xff] }
 0x1fc   : > { %12202 = vst [vmem:[#allocation288_spill] sm:$0xff] %v7501_v54  ;;  %v7510_v46 = vld [vmem:[#allocation1 + $0x23] ss:$4 sm:$0xff] }
 0x1fd   : > { %12203 = vst [vmem:[#allocation289_spill] sm:$0xff] %v7503_v51 }
 0x1fe   : > { %12204 = vst [vmem:[#allocation290_spill] sm:$0xff] %v7505_v35 }
 0x1ff   : > { %12206 = vst [vmem:[#allocation292_spill] sm:$0xff] %v7510_v46  ;;  %v7513_v40 = vld [vmem:[#allocation1 + $0x1] ss:$4 sm:$0xff]  ;;  %v7515_v33 = vld [vmem:[#allocation1 + $0x2] ss:$4 sm:$0xff]  ;;  %v479_v46 = vrot.slane %v6771_v0, 3 }
 0x200   : > { %2180 = vst [vmem:[#allocation1 + $0x20] sm:$0xff] %v7291_v36  ;;  %v7517_v39 = vld [vmem:[#allocation1 + $0x3] ss:$4 sm:$0xff] }
 0x201   : > { %12207 = vst [vmem:[#allocation293_spill] sm:$0xff] %v7513_v40 }
 0x202   : > { %12208 = vst [vmem:[#allocation294_spill] sm:$0xff] %v7515_v33  ;;  %v516_v33 = vsel %vm515_vm2, %v6771_v0, %v479_v46 }
 0x203   : > { %12209 = vst [vmem:[#allocation295_spill] sm:$0xff] %v7517_v39  ;;  %v512_v39 = vsel %vm511_vm1, %v6771_v0, %v479_v46  ;;  %v7556_v36 = vrot.slane %v516_v33, 2 }
 0x204   : > { %2188 = vst [vmem:[#allocation1] sm:$0xff] %v7508_v50  ;;  %v7554_v50 = vrot.slane %v512_v39, 1 }
 0x207   : > { %v7523_v54 = vld [vmem:[#allocation1 + $0x20] ss:$4 sm:$0xff]  ;;  %v7525_v51 = vld [vmem:[#allocation1 + $0x21] ss:$4 sm:$0xff]  ;;  %v7527_v35 = vld [vmem:[#allocation1 + $0x22] ss:$4 sm:$0xff] }
 0x208   : > { %12211 = vst [vmem:[#allocation297_spill] sm:$0xff] %v7523_v54  ;;  %v7530_v47 = vld [vmem:[#allocation1 + $0x23] ss:$4 sm:$0xff] }
 0x209   : > { %12212 = vst [vmem:[#allocation298_spill] sm:$0xff] %v7525_v51  ;;  %v520_v51 = vsel %vm519_vm0, %v6771_v0, %v479_v46 }
 0x20a   : > { %12213 = vst [vmem:[#allocation299_spill] sm:$0xff] %v7527_v35  ;;  %v7542_v35 = vsel %vm11915_vm3, %v6774_v1, %v6879_v43  ;;  %v7571_v39 = vrot.slane %v520_v51, 3 }
 0x20b   : > { %12214 = vst [vmem:[#allocation300_spill] sm:$0xff] %v7530_v47  ;;  %v7544_v47 = vld [vmem:[#allocation1 + $0x1] ss:$4 sm:$0xff]  ;;  %v7546_v54 = vld [vmem:[#allocation1 + $0x2] ss:$4 sm:$0xff] }
 0x20c   : > { %2189 = vst [vmem:[#allocation1 + $0x20] sm:$0xff] %v7521_v34  ;;  %v7548_v40 = vld [vmem:[#allocation1 + $0x3] ss:$4 sm:$0xff]  ;;  %v7552_v34 = vsel %vm11915_vm3, %v6771_v0, %v479_v46  ;;  %v481_v0 = vrot.slane %v6779_v2, 3  ;;  %v7576_v46 = vrot.slane %v526_v31, 1  ;;  %v7592_v31 = vrot.slane %v6786_v5, 3 }
 0x20d   : > { %12215 = vst [vmem:[#allocation301_spill] sm:$0xff] %v7544_v47  ;;  %v529_v47 = vsel %vm515_vm2, %v6774_v1, %v6879_v43 }
 0x20e   : > { %12216 = vst [vmem:[#allocation302_spill] sm:$0xff] %v7546_v54  ;;  %v7579_v28 = vrot.slane %v529_v47, 2  ;;  %v7585_v1 = vsel %vm11915_vm3, %v6779_v2, %v481_v0  ;;  %v535_v43 = vsel %vm511_vm1, %v6779_v2, %v481_v0  ;;  %v538_v47 = vsel %vm515_vm2, %v6779_v2, %v481_v0 }
 0x20f   : > { %12217 = vst [vmem:[#allocation303_spill] sm:$0xff] %v7548_v40  ;;  %v541_v51 = vsel %vm519_vm0, %v6779_v2, %v481_v0  ;;  %v550_v26 = vsel %vm515_vm2, %v6786_v5, %v7592_v31  ;;  %v7618_v2 = vsel %vm11915_vm3, %v6786_v5, %v7592_v31 }
 0x210   : > { %v7608_v27 = vrot.slane %v541_v51, 3 }
 0x213   : > { %v7564_v30 = vld [vmem:[#allocation1 + $0x20] ss:$4 sm:$0xff]  ;;  %v7566_v54 = vld [vmem:[#allocation1 + $0x21] ss:$4 sm:$0xff]  ;;  %v7568_v40 = vld [vmem:[#allocation1 + $0x22] ss:$4 sm:$0xff] }
 0x214   : > { %12218 = vst [vmem:[#allocation304_spill] sm:$0xff] %v7564_v30  ;;  %v7573_v33 = vld [vmem:[#allocation1 + $0x23] ss:$4 sm:$0xff]  ;;  %v547_v30 = vsel %vm511_vm1, %v6786_v5, %v7592_v31 }
 0x215   : > { %12219 = vst [vmem:[#allocation305_spill] sm:$0xff] %v7566_v54  ;;  %v7603_v54 = vrot.slane %v538_v47, 2  ;;  %v7620_v0 = vrot.slane %v547_v30, 1  ;;  %v7625_v47 = vrot.slane %v550_v26, 2  ;;  %v7640_v26 = vrot.slane %v6808_v14, 3 }
 0x216   : > { %12220 = vst [vmem:[#allocation306_spill] sm:$0xff] %v7568_v40  ;;  %v7601_v40 = vrot.slane %v535_v43, 1 }
 0x217   : > { %12221 = vst [vmem:[#allocation307_spill] sm:$0xff] %v7573_v33  ;;  %v483_v33 = vrot.slane %v6801_v11, 3  ;;  %v568_v21 = vsel %vm511_vm1, %v6808_v14, %v7640_v26  ;;  %v571_v18 = vsel %vm515_vm2, %v6808_v14, %v7640_v26  ;;  %v7661_v17 = vsel %vm11915_vm3, %v6808_v14, %v7640_v26 }
 0x218   : > { %2205 = vst [vmem:[#allocation1 + $0x4] ss:$9 sm:$0xff] %v7542_v35  ;;  %v7669_v16 = vrot.slane %v571_v18, 2  ;;  %v7688_v18 = vrot.slane %v6830_v23, 3 }
 0x219   : > { %2197 = vst [vmem:[#allocation1] ss:$9 sm:$0xff] %v7552_v34  ;;  %v556_v43 = vsel %vm511_vm1, %v6801_v11, %v483_v33  ;;  %v7631_v51 = vsel %vm11915_vm3, %v6801_v11, %v483_v33  ;;  %v559_v30 = vsel %vm515_vm2, %v6801_v11, %v483_v33 }
 0x21a   : > { %2199 = vst [vmem:[#allocation1 + $0x1] ss:$9 sm:$0xff] %v7554_v50  ;;  %v7648_v22 = vrot.slane %v559_v30, 2  ;;  %v592_v10 = vsel %vm515_vm2, %v6830_v23, %v7688_v18  ;;  %v7706_v9 = vsel %vm11915_vm3, %v6830_v23, %v7688_v18 }
 0x21b   : > { %2201 = vst [vmem:[#allocation1 + $0x2] ss:$9 sm:$0xff] %v7556_v36 }
 0x21c   : > { %2203 = vst [vmem:[#allocation1 + $0x3] ss:$9 sm:$0xff] %v7571_v39 }
 0x21d   : > { %2207 = vst [vmem:[#allocation1 + $0x5] ss:$9 sm:$0xff] %v7576_v46 }
 0x21e   : > { %2209 = vst [vmem:[#allocation1 + $0x6] ss:$9 sm:$0xff] %v7579_v28 }
 0x21f   : > { %2211 = vst [vmem:[#allocation1 + $0x7] ss:$9 sm:$0xff] %v7585_v1 }
 0x226   : > { %v7613_v25 = vld [vmem:[#allocation1] sm:$0xff] }
 0x227   : > { %12222 = vst [vmem:[#allocation308_spill] sm:$0xff] %v7613_v25  ;;  %v7633_v25 = vrot.slane %v556_v43, 1  ;;  %v562_v43 = vsel %vm519_vm0, %v6801_v11, %v483_v33  ;;  %v7663_v11 = vrot.slane %v568_v21, 1  ;;  %v577_v33 = vsel %vm511_vm1, %v6823_v20, %v485_v24 }
 0x228   : > { %2213 = vst [vmem:[#allocation1] ss:$9 sm:$0xff] %v7601_v40  ;;  %v7653_v19 = vrot.slane %v562_v43, 3  ;;  %v580_v43 = vsel %vm515_vm2, %v6823_v20, %v485_v24  ;;  %v7679_v21 = vrot.slane %v577_v33, 1  ;;  %v583_v33 = vsel %vm519_vm0, %v6823_v20, %v485_v24 }
 0x229   : > { %2214 = vst [vmem:[#allocation1 + $0x1] ss:$9 sm:$0xff] %v7603_v54  ;;  %v7682_v13 = vrot.slane %v580_v43, 2  ;;  %v589_v43 = vsel %vm511_vm1, %v6830_v23, %v7688_v18  ;;  %v7698_v12 = vrot.slane %v583_v33, 3  ;;  %v7712_v24 = vrot.slane %v592_v10, 2 }
 0x22a   : > { %2215 = vst [vmem:[#allocation1 + $0x2] ss:$9 sm:$0xff] %v7608_v27  ;;  %v7708_v8 = vrot.slane %v589_v43, 1 }
 0x22b   : > { %2216 = vst [vmem:[#allocation1 + $0x3] ss:$9 sm:$0xff] %v7618_v2 }
 0x22c   : > { %2217 = vst [vmem:[#allocation1 + $0x4] ss:$9 sm:$0xff] %v7620_v0 }
 0x22d   : > { %2218 = vst [vmem:[#allocation1 + $0x5] ss:$9 sm:$0xff] %v7625_v47 }
 0x22e   : > { %2219 = vst [vmem:[#allocation1 + $0x6] ss:$9 sm:$0xff] %v7631_v51 }
 0x22f   : > { %2220 = vst [vmem:[#allocation1 + $0x7] ss:$9 sm:$0xff] %v7633_v25 }
 0x230   : > { %12224 = vst [vmem:[#allocation310_spill] sm:$0xff] %v7708_v8 }
 0x231   : > { %12225 = vst [vmem:[#allocation311_spill] sm:$0xff] %v7712_v24 }
 0x236   : > { %v7667_v30 = vld [vmem:[#allocation1] sm:$0xff] }
 0x237   : > { %12223 = vst [vmem:[#allocation309_spill] sm:$0xff] %v7667_v30  ;;  %v487_v30 = vrot.slane %v6845_v29, 3 }
 0x238   : > { %2222 = vst [vmem:[#allocation1] ss:$9 sm:$0xff] %v7648_v22 }
 0x239   : > { %2223 = vst [vmem:[#allocation1 + $0x1] ss:$9 sm:$0xff] %v7653_v19  ;;  %v598_v20 = vsel %vm511_vm1, %v6845_v29, %v487_v30  ;;  %v601_v33 = vsel %vm515_vm2, %v6845_v29, %v487_v30  ;;  %v604_v6 = vsel %vm519_vm0, %v6845_v29, %v487_v30  ;;  %v7723_v4 = vsel %vm11915_vm3, %v6845_v29, %v487_v30 }
 0x23a   : > { %2224 = vst [vmem:[#allocation1 + $0x2] ss:$9 sm:$0xff] %v7661_v17  ;;  %v7725_v43 = vrot.slane %v598_v20, 1  ;;  %v7728_v10 = vrot.slane %v601_v33, 2  ;;  %v7731_v3 = vrot.slane %v604_v6, 3  ;;  %v489_v29 = vrot.slane %v6867_v38, 3 }
 0x23b   : > { %2225 = vst [vmem:[#allocation1 + $0x3] ss:$9 sm:$0xff] %v7663_v11 }
 0x23c   : > { %2226 = vst [vmem:[#allocation1 + $0x4] ss:$9 sm:$0xff] %v7669_v16 }
 0x23d   : > { %2227 = vst [vmem:[#allocation1 + $0x5] ss:$9 sm:$0xff] %v7677_v15 }
 0x23e   : > { %2228 = vst [vmem:[#allocation1 + $0x6] ss:$9 sm:$0xff] %v7679_v21 }
 0x23f   : > { %2229 = vst [vmem:[#allocation1 + $0x7] ss:$9 sm:$0xff] %v7682_v13 }
 0x240   : > { %12227 = vst [vmem:[#allocation313_spill] sm:$0xff] %v7723_v4 }
 0x241   : > { %12228 = vst [vmem:[#allocation314_spill] sm:$0xff] %v7725_v43 }
 0x242   : > { %12229 = vst [vmem:[#allocation315_spill] sm:$0xff] %v7728_v10 }
 0x243   : > { %12230 = vst [vmem:[#allocation316_spill] sm:$0xff] %v7731_v3 }
 0x246   : > { %v7716_v7 = vld [vmem:[#allocation1] sm:$0xff] }
 0x247   : > { %12226 = vst [vmem:[#allocation312_spill] sm:$0xff] %v7716_v7  ;;  %v7736_v7 = vrot.slane %v6852_v32, 3 }
 0x248   : > { %2231 = vst [vmem:[#allocation1] ss:$9 sm:$0xff] %v7698_v12 }
 0x249   : > { %2232 = vst [vmem:[#allocation1 + $0x1] ss:$9 sm:$0xff] %v7706_v9  ;;  %v610_v6 = vsel %vm511_vm1, %v6852_v32, %v7736_v7  ;;  %v613_v30 = vsel %vm515_vm2, %v6852_v32, %v7736_v7  ;;  %v7751_v20 = vsel %vm11915_vm3, %v6852_v32, %v7736_v7 }
 0x24a   : > { %2233 = vst [vmem:[#allocation1 + $0x2] ss:$9 sm:$0xff] %v7708_v8  ;;  %v7753_v33 = vrot.slane %v610_v6, 1  ;;  %v7766_v8 = vrot.slane %v6874_v41, 3  ;;  %v7770_v6 = vsel %vm11915_vm3, %v6867_v38, %v489_v29 }
 0x24b   : > { %2234 = vst [vmem:[#allocation1 + $0x3] ss:$9 sm:$0xff] %v7712_v24 }
 0x24c   : > { %2235 = vst [vmem:[#allocation1 + $0x4] ss:$9 sm:$0xff] %v7723_v4  ;;  %v625_v4 = vsel %vm519_vm0, %v6867_v38, %v489_v29 }
 0x24d   : > { %12231 = vst [vmem:[#allocation317_spill] sm:$0xff] %v7736_v7  ;;  %v7778_v7 = vrot.slane %v625_v4, 3  ;;  %v631_v4 = vsel %vm511_vm1, %v6874_v41, %v7766_v8 }
 0x24e   : > { %2236 = vst [vmem:[#allocation1 + $0x5] ss:$9 sm:$0xff] %v7725_v43  ;;  %v622_v43 = vsel %vm515_vm2, %v6867_v38, %v489_v29 }
 0x24f   : > { %2237 = vst [vmem:[#allocation1 + $0x6] ss:$9 sm:$0xff] %v7728_v10  ;;  %v7757_v10 = vrot.slane %v613_v30, 2  ;;  %v7775_v30 = vrot.slane %v622_v43, 2  ;;  %v7799_v43 = vrot.slane %v6906_v53, 3 }
 0x250   : > { %2238 = vst [vmem:[#allocation1 + $0x7] ss:$9 sm:$0xff] %v7731_v3  ;;  %v619_v3 = vsel %vm511_vm1, %v6867_v38, %v489_v29  ;;  %v634_v38 = vsel %vm515_vm2, %v6874_v41, %v7766_v8  ;;  %v7801_v29 = vrot.slane %v631_v4, 1 }
 0x251   : > { %12232 = vst [vmem:[#allocation318_spill] sm:$0xff] %v7757_v10  ;;  %v7772_v32 = vrot.slane %v619_v3, 1  ;;  %v491_v3 = vrot.slane %v6897_v49, 3 }
 0x252   : > { %12234 = vst [vmem:[#allocation320_spill] sm:$0xff] %v7766_v8 }
 0x253   : > { %12235 = vst [vmem:[#allocation321_spill] sm:$0xff] %v7770_v6 }
 0x254   : > { %12236 = vst [vmem:[#allocation322_spill] sm:$0xff] %v7772_v32 }
 0x255   : > { %12237 = vst [vmem:[#allocation323_spill] sm:$0xff] %v7775_v30 }
 0x256   : > { %12238 = vst [vmem:[#allocation324_spill] sm:$0xff] %v7778_v7 }
 0x257   : > { %v7763_v24 = vld [vmem:[#allocation1] sm:$0xff]  ;;  %12240 = vst [vmem:[#allocation326_spill] sm:$0xff] %v7799_v43 }
 0x258   : > { %12233 = vst [vmem:[#allocation319_spill] sm:$0xff] %v7763_v24  ;;  %v7785_v24 = vsel %vm11915_vm3, %v6874_v41, %v7766_v8 }
 0x259   : > { %2240 = vst [vmem:[#allocation1] ss:$9 sm:$0xff] %v7751_v20 }
 0x25a   : > { %2241 = vst [vmem:[#allocation1 + $0x1] ss:$9 sm:$0xff] %v7753_v33 }
 0x25b   : > { %2242 = vst [vmem:[#allocation1 + $0x2] ss:$9 sm:$0xff] %v7757_v10 }
 0x25c   : > { %2243 = vst [vmem:[#allocation1 + $0x3] ss:$9 sm:$0xff] %v7770_v6  ;;  %v7813_v6 = vsel %vm11915_vm3, %v6897_v49, %v491_v3 }
 0x25d   : > { %12239 = vst [vmem:[#allocation325_spill] sm:$0xff] %v7785_v24 }
 0x25e   : > { %2244 = vst [vmem:[#allocation1 + $0x4] ss:$9 sm:$0xff] %v7772_v32  ;;  %v646_v32 = vsel %vm519_vm0, %v6897_v49, %v491_v3 }
 0x25f   : > { %2245 = vst [vmem:[#allocation1 + $0x5] ss:$9 sm:$0xff] %v7775_v30  ;;  %v7805_v30 = vrot.slane %v634_v38, 2  ;;  %v652_v38 = vsel %vm511_vm1, %v6906_v53, %v7799_v43  ;;  %v7825_v10 = vrot.slane %v646_v32, 3  ;;  %v493_v32 = vrot.slane %v6919_v58, 3 }
 0x260   : > { %2246 = vst [vmem:[#allocation1 + $0x6] ss:$9 sm:$0xff] %v7778_v7  ;;  %v640_v7 = vsel %vm511_vm1, %v6897_v49, %v491_v3 }
 0x261   : > { %2247 = vst [vmem:[#allocation1 + $0x7] ss:$9 sm:$0xff] %v7785_v24  ;;  %v643_v24 = vsel %vm515_vm2, %v6897_v49, %v491_v3  ;;  %v7815_v41 = vrot.slane %v640_v7, 1  ;;  %v7832_v7 = vsel %vm11915_vm3, %v6906_v53, %v7799_v43  ;;  %v7834_v49 = vrot.slane %v652_v38, 1 }
 0x262   : > { %12241 = vst [vmem:[#allocation327_spill] sm:$0xff] %v7805_v30  ;;  %v7819_v4 = vrot.slane %v643_v24, 2  ;;  %v655_v24 = vsel %vm515_vm2, %v6906_v53, %v7799_v43  ;;  %v7846_v3 = vrot.slane %v6928_v62, 3  ;;  %v661_v38 = vsel %vm511_vm1, %v6919_v58, %v493_v32 }
 0x263   : > { %12242 = vst [vmem:[#allocation328_spill] sm:$0xff] %v7813_v6 }
 0x264   : > { %12243 = vst [vmem:[#allocation329_spill] sm:$0xff] %v7815_v41  ;;  %v673_v43 = vsel %vm511_vm1, %v6928_v62, %v7846_v3 }
 0x265   : > { %12245 = vst [vmem:[#allocation331_spill] sm:$0xff] %v7819_v4 }
 0x266   : > { %12246 = vst [vmem:[#allocation332_spill] sm:$0xff] %v7825_v10 }
 0x267   : > { %12247 = vst [vmem:[#allocation333_spill] sm:$0xff] %v7832_v7 }
 0x268   : > { %v7817_v8 = vld [vmem:[#allocation1] sm:$0xff]  ;;  %12248 = vst [vmem:[#allocation334_spill] sm:$0xff] %v7834_v49 }
 0x269   : > { %12244 = vst [vmem:[#allocation330_spill] sm:$0xff] %v7817_v8  ;;  %v7850_v8 = vrot.slane %v655_v24, 2 }
 0x26a   : > { %2249 = vst [vmem:[#allocation1] ss:$9 sm:$0xff] %v7801_v29 }
 0x26b   : > { %2250 = vst [vmem:[#allocation1 + $0x1] ss:$9 sm:$0xff] %v7805_v30 }
 0x26c   : > { %2251 = vst [vmem:[#allocation1 + $0x2] ss:$9 sm:$0xff] %v7813_v6  ;;  %v676_v6 = vsel %vm515_vm2, %v6928_v62, %v7846_v3 }
 0x26d   : > { %2252 = vst [vmem:[#allocation1 + $0x3] ss:$9 sm:$0xff] %v7815_v41 }
 0x26e   : > { %2253 = vst [vmem:[#allocation1 + $0x4] ss:$9 sm:$0xff] %v7819_v4  ;;  %v7860_v4 = vrot.slane %v661_v38, 1  ;;  %v7893_v38 = vrot.slane %v6951_v63, 3 }
 0x26f   : > { %2254 = vst [vmem:[#allocation1 + $0x5] ss:$9 sm:$0xff] %v7825_v10  ;;  %v664_v10 = vsel %vm515_vm2, %v6919_v58, %v493_v32 }
 0x270   : > { %2255 = vst [vmem:[#allocation1 + $0x6] ss:$9 sm:$0xff] %v7832_v7  ;;  %v667_v7 = vsel %vm519_vm0, %v6919_v58, %v493_v32  ;;  %v7862_v53 = vrot.slane %v664_v10, 2  ;;  %v7881_v10 = vrot.slane %v673_v43, 1 }
 0x271   : > { %2256 = vst [vmem:[#allocation1 + $0x7] ss:$9 sm:$0xff] %v7834_v49  ;;  %v7858_v49 = vsel %vm11915_vm3, %v6919_v58, %v493_v32  ;;  %v7869_v41 = vrot.slane %v667_v7, 3  ;;  %v7879_v58 = vsel %vm11915_vm3, %v6928_v62, %v7846_v3  ;;  %v7884_v32 = vrot.slane %v676_v6, 2 }
 0x272   : > { %12249 = vst [vmem:[#allocation335_spill] sm:$0xff] %v7850_v8  ;;  %v495_v7 = vrot.slane %v6941_v59, 3  ;;  %v497_v62 = vrot.slane %v6963_v60, 3 }
 0x273   : > { %12250 = vst [vmem:[#allocation336_spill] sm:$0xff] %v7858_v49 }
 0x274   : > { %12251 = vst [vmem:[#allocation337_spill] sm:$0xff] %v7860_v4  ;;  %v682_v43 = vsel %vm511_vm1, %v6941_v59, %v495_v7  ;;  %v685_v6 = vsel %vm515_vm2, %v6941_v59, %v495_v7 }
 0x275   : > { %12252 = vst [vmem:[#allocation338_spill] sm:$0xff] %v7862_v53 }
 0x276   : > { %12254 = vst [vmem:[#allocation340_spill] sm:$0xff] %v7869_v41 }
 0x277   : > { %12255 = vst [vmem:[#allocation341_spill] sm:$0xff] %v7879_v58 }
 0x278   : > { %v7867_v24 = vld [vmem:[#allocation1] sm:$0xff]  ;;  %12256 = vst [vmem:[#allocation342_spill] sm:$0xff] %v7881_v10 }
 0x279   : > { %12253 = vst [vmem:[#allocation339_spill] sm:$0xff] %v7867_v24  ;;  %v688_v24 = vsel %vm519_vm0, %v6941_v59, %v495_v7 }
 0x27a   : > { %2258 = vst [vmem:[#allocation1] ss:$9 sm:$0xff] %v7850_v8 }
 0x27b   : > { %2259 = vst [vmem:[#allocation1 + $0x1] ss:$9 sm:$0xff] %v7858_v49 }
 0x27c   : > { %2260 = vst [vmem:[#allocation1 + $0x2] ss:$9 sm:$0xff] %v7860_v4  ;;  %v697_v4 = vsel %vm515_vm2, %v6951_v63, %v7893_v38 }
 0x27d   : > { %12257 = vst [vmem:[#allocation343_spill] sm:$0xff] %v7884_v32 }
 0x27e   : > { %2261 = vst [vmem:[#allocation1 + $0x3] ss:$9 sm:$0xff] %v7862_v53  ;;  %v7912_v53 = vrot.slane %v688_v24, 3  ;;  %v7929_v24 = vrot.slane %v697_v4, 2  ;;  %v703_v4 = vsel %vm511_vm1, %v6963_v60, %v497_v62 }
 0x27f   : > { %2262 = vst [vmem:[#allocation1 + $0x4] ss:$9 sm:$0xff] %v7869_v41  ;;  %v7903_v41 = vsel %vm11915_vm3, %v6941_v59, %v495_v7  ;;  %v7924_v59 = vsel %vm11915_vm3, %v6951_v63, %v7893_v38 }
 0x280   : > { %2263 = vst [vmem:[#allocation1 + $0x5] ss:$9 sm:$0xff] %v7879_v58  ;;  %v7905_v58 = vrot.slane %v682_v43, 1  ;;  %v7935_v43 = vsel %vm11915_vm3, %v6963_v60, %v497_v62 }
 0x281   : > { %2264 = vst [vmem:[#allocation1 + $0x6] ss:$9 sm:$0xff] %v7881_v10  ;;  %v7907_v10 = vrot.slane %v685_v6, 2  ;;  %v706_v6 = vsel %vm515_vm2, %v6963_v60, %v497_v62 }
 0x282   : > { %2265 = vst [vmem:[#allocation1 + $0x7] ss:$9 sm:$0xff] %v7884_v32  ;;  %v694_v32 = vsel %vm511_vm1, %v6951_v63, %v7893_v38 }
 0x283   : > { %12258 = vst [vmem:[#allocation344_spill] sm:$0xff] %v7903_v41  ;;  %v7926_v7 = vrot.slane %v694_v32, 1  ;;  %v7942_v32 = vrot.slane %v6973_v57, 3 }
 0x284   : > { %12259 = vst [vmem:[#allocation345_spill] sm:$0xff] %v7905_v58 }
 0x285   : > { %12260 = vst [vmem:[#allocation346_spill] sm:$0xff] %v7907_v10 }
 0x286   : > { %12261 = vst [vmem:[#allocation347_spill] sm:$0xff] %v7912_v53 }
 0x287   : > { %12263 = vst [vmem:[#allocation349_spill] sm:$0xff] %v7924_v59 }
 0x288   : > { %12264 = vst [vmem:[#allocation350_spill] sm:$0xff] %v7926_v7 }
 0x289   : > { %v7917_v49 = vld [vmem:[#allocation1] sm:$0xff]  ;;  %12265 = vst [vmem:[#allocation351_spill] sm:$0xff] %v7929_v24 }
 0x28a   : > { %12262 = vst [vmem:[#allocation348_spill] sm:$0xff] %v7917_v49  ;;  %v709_v49 = vsel %vm519_vm0, %v6963_v60, %v497_v62  ;;  %v7968_v60 = vsel %vm11915_vm3, %v6973_v57, %v7942_v32 }
 0x28b   : > { %2267 = vst [vmem:[#allocation1] ss:$9 sm:$0xff] %v7903_v41 }
 0x28c   : > { %2268 = vst [vmem:[#allocation1 + $0x1] ss:$9 sm:$0xff] %v7905_v58 }
 0x28d   : > { %2269 = vst [vmem:[#allocation1 + $0x2] ss:$9 sm:$0xff] %v7907_v10  ;;  %v718_v10 = vsel %vm515_vm2, %v6973_v57, %v7942_v32 }
 0x28e   : > { %2270 = vst [vmem:[#allocation1 + $0x3] ss:$9 sm:$0xff] %v7912_v53  ;;  %v7951_v53 = vrot.slane %v703_v4, 1 }
 0x28f   : > { %12266 = vst [vmem:[#allocation352_spill] sm:$0xff] %v7935_v43 }
 0x290   : > { %2271 = vst [vmem:[#allocation1 + $0x4] ss:$9 sm:$0xff] %v7924_v59  ;;  %v499_v59 = vrot.slane %v6985_v61, 3 }
 0x291   : > { %2272 = vst [vmem:[#allocation1 + $0x5] ss:$9 sm:$0xff] %v7926_v7  ;;  %v7953_v7 = vrot.slane %v706_v6, 2 }
 0x292   : > { %2273 = vst [vmem:[#allocation1 + $0x6] ss:$9 sm:$0xff] %v7929_v24  ;;  %v7958_v24 = vrot.slane %v709_v49, 3  ;;  %v724_v4 = vsel %vm511_vm1, %v6985_v61, %v499_v59  ;;  %v7975_v49 = vrot.slane %v718_v10, 2  ;;  %v7981_v6 = vsel %vm11915_vm3, %v6985_v61, %v499_v59 }
 0x293   : > { %2274 = vst [vmem:[#allocation1 + $0x7] ss:$9 sm:$0xff] %v7935_v43  ;;  %v715_v43 = vsel %vm511_vm1, %v6973_v57, %v7942_v32  ;;  %v7990_v10 = vrot.slane %v6995_v56, 3 }
 0x294   : > { %12267 = vst [vmem:[#allocation353_spill] sm:$0xff] %v7951_v53  ;;  %v7970_v62 = vrot.slane %v715_v43, 1  ;;  %v727_v43 = vsel %vm515_vm2, %v6985_v61, %v499_v59 }
 0x295   : > { %12268 = vst [vmem:[#allocation354_spill] sm:$0xff] %v7953_v7 }
 0x296   : > { %12269 = vst [vmem:[#allocation355_spill] sm:$0xff] %v7958_v24 }
 0x297   : > { %12271 = vst [vmem:[#allocation357_spill] sm:$0xff] %v7968_v60 }
 0x298   : > { %12272 = vst [vmem:[#allocation358_spill] sm:$0xff] %v7970_v62 }
 0x299   : > { %12273 = vst [vmem:[#allocation359_spill] sm:$0xff] %v7975_v49 }
 0x29a   : > { %v7963_v58 = vld [vmem:[#allocation1] sm:$0xff]  ;;  %12274 = vst [vmem:[#allocation360_spill] sm:$0xff] %v7981_v6 }
 0x29b   : > { %12270 = vst [vmem:[#allocation356_spill] sm:$0xff] %v7963_v58  ;;  %v7983_v58 = vrot.slane %v724_v4, 1  ;;  %v730_v4 = vsel %vm519_vm0, %v6985_v61, %v499_v59 }
 0x29c   : > { %2276 = vst [vmem:[#allocation1] ss:$9 sm:$0xff] %v7951_v53 }
 0x29d   : > { %2277 = vst [vmem:[#allocation1 + $0x1] ss:$9 sm:$0xff] %v7953_v7 }
 0x29e   : > { %2278 = vst [vmem:[#allocation1 + $0x2] ss:$9 sm:$0xff] %v7958_v24  ;;  %v501_v24 = vrot.slane %v7006_v45, 3 }
 0x29f   : > { %12275 = vst [vmem:[#allocation361_spill] sm:$0xff] %v7983_v58 }
 0x2a0   : > { %2279 = vst [vmem:[#allocation1 + $0x3] ss:$9 sm:$0xff] %v7968_v60  ;;  %v7998_v60 = vrot.slane %v727_v43, 2  ;;  %v745_v59 = vsel %vm511_vm1, %v7006_v45, %v501_v24 }
 0x2a1   : > { %2280 = vst [vmem:[#allocation1 + $0x4] ss:$9 sm:$0xff] %v7970_v62  ;;  %v8011_v62 = vsel %vm11915_vm3, %v6995_v56, %v7990_v10 }
 0x2a2   : > { %2281 = vst [vmem:[#allocation1 + $0x5] ss:$9 sm:$0xff] %v7975_v49  ;;  %v736_v49 = vsel %vm511_vm1, %v6995_v56, %v7990_v10 }
 0x2a3   : > { %2282 = vst [vmem:[#allocation1 + $0x6] ss:$9 sm:$0xff] %v7981_v6  ;;  %v8003_v6 = vrot.slane %v730_v4, 3  ;;  %v8013_v61 = vrot.slane %v736_v49, 1  ;;  %v748_v4 = vsel %vm515_vm2, %v7006_v45, %v501_v24  ;;  %v8029_v49 = vrot.slane %v745_v59, 1 }
 0x2a4   : > { %12276 = vst [vmem:[#allocation362_spill] sm:$0xff] %v7990_v10  ;;  %v751_v59 = vsel %vm519_vm0, %v7006_v45, %v501_v24 }
 0x2a5   : > { %2283 = vst [vmem:[#allocation1 + $0x7] ss:$9 sm:$0xff] %v7983_v58  ;;  %v739_v58 = vsel %vm515_vm2, %v6995_v56, %v7990_v10  ;;  %v8027_v56 = vsel %vm11915_vm3, %v7006_v45, %v501_v24  ;;  %v8032_v10 = vrot.slane %v748_v4, 2 }
 0x2a6   : > { %12277 = vst [vmem:[#allocation363_spill] sm:$0xff] %v7998_v60  ;;  %v8019_v7 = vrot.slane %v739_v58, 2  ;;  %v8038_v58 = vrot.slane %v7017_v55, 3 }
 0x2a7   : > { %12278 = vst [vmem:[#allocation364_spill] sm:$0xff] %v8003_v6 }
 0x2a8   : > { %12279 = vst [vmem:[#allocation365_spill] sm:$0xff] %v8011_v62  ;;  %v757_v4 = vsel %vm511_vm1, %v7017_v55, %v8038_v58 }
 0x2a9   : > { %12280 = vst [vmem:[#allocation366_spill] sm:$0xff] %v8013_v61 }
 0x2aa   : > { %12282 = vst [vmem:[#allocation368_spill] sm:$0xff] %v8019_v7 }
 0x2ab   : > { %12283 = vst [vmem:[#allocation369_spill] sm:$0xff] %v8027_v56 }
 0x2ac   : > { %v8017_v43 = vld [vmem:[#allocation1] sm:$0xff]  ;;  %12284 = vst [vmem:[#allocation370_spill] sm:$0xff] %v8029_v49 }
 0x2ad   : > { %12281 = vst [vmem:[#allocation367_spill] sm:$0xff] %v8017_v43  ;;  %v503_v43 = vrot.slane %v7026_v44, 3 }
 0x2ae   : > { %2285 = vst [vmem:[#allocation1] ss:$9 sm:$0xff] %v7998_v60 }
 0x2af   : > { %2286 = vst [vmem:[#allocation1 + $0x1] ss:$9 sm:$0xff] %v8003_v6  ;;  %v766_v45 = vsel %vm511_vm1, %v7026_v44, %v503_v43 }
 0x2b0   : > { %2287 = vst [vmem:[#allocation1 + $0x2] ss:$9 sm:$0xff] %v8011_v62  ;;  %v772_v62 = vsel %vm519_vm0, %v7026_v44, %v503_v43 }
 0x2b1   : > { %12285 = vst [vmem:[#allocation371_spill] sm:$0xff] %v8032_v10 }
 0x2b2   : > { %2288 = vst [vmem:[#allocation1 + $0x3] ss:$9 sm:$0xff] %v8013_v61  ;;  %v8048_v61 = vrot.slane %v751_v59, 3  ;;  %v769_v59 = vsel %vm515_vm2, %v7026_v44, %v503_v43 }
 0x2b3   : > { %2289 = vst [vmem:[#allocation1 + $0x4] ss:$9 sm:$0xff] %v8019_v7 }
 0x2b4   : > { %2290 = vst [vmem:[#allocation1 + $0x5] ss:$9 sm:$0xff] %v8027_v56  ;;  %v760_v56 = vsel %vm515_vm2, %v7017_v55, %v8038_v58 }
 0x2b5   : > { %12286 = vst [vmem:[#allocation372_spill] sm:$0xff] %v8038_v58  ;;  %v8062_v24 = vrot.slane %v760_v56, 2  ;;  %v8078_v56 = vrot.slane %v769_v59, 2 }
 0x2b6   : > { %2291 = vst [vmem:[#allocation1 + $0x6] ss:$9 sm:$0xff] %v8029_v49  ;;  %v8056_v49 = vsel %vm11915_vm3, %v7017_v55, %v8038_v58  ;;  %v8073_v55 = vsel %vm11915_vm3, %v7026_v44, %v503_v43  ;;  %v8081_v58 = vrot.slane %v772_v62, 3  ;;  %v505_v44 = vrot.slane %v7048_v42, 3 }
 0x2b7   : > { %2292 = vst [vmem:[#allocation1 + $0x7] ss:$9 sm:$0xff] %v8032_v10  ;;  %v8058_v10 = vrot.slane %v757_v4, 1  ;;  %v8075_v4 = vrot.slane %v766_v45, 1 }
 0x2b8   : > { %12287 = vst [vmem:[#allocation373_spill] sm:$0xff] %v8048_v61 }
 0x2b9   : > { %12288 = vst [vmem:[#allocation374_spill] sm:$0xff] %v8056_v49 }
 0x2ba   : > { %12289 = vst [vmem:[#allocation375_spill] sm:$0xff] %v8058_v10 }
 0x2bb   : > { %12290 = vst [vmem:[#allocation376_spill] sm:$0xff] %v8062_v24 }
 0x2bc   : > { %12292 = vst [vmem:[#allocation378_spill] sm:$0xff] %v8073_v55 }
 0x2bd   : > { %12293 = vst [vmem:[#allocation379_spill] sm:$0xff] %v8075_v4 }
 0x2be   : > { %v8066_v7 = vld [vmem:[#allocation1] sm:$0xff]  ;;  %12294 = vst [vmem:[#allocation380_spill] sm:$0xff] %v8078_v56 }
 0x2bf   : > { %12291 = vst [vmem:[#allocation377_spill] sm:$0xff] %v8066_v7  ;;  %v8086_v7 = vrot.slane %v7039_v52, 3 }
 0x2c0   : > { %2294 = vst [vmem:[#allocation1] ss:$9 sm:$0xff] %v8048_v61 }
 0x2c1   : > { %2295 = vst [vmem:[#allocation1 + $0x1] ss:$9 sm:$0xff] %v8056_v49  ;;  %v778_v62 = vsel %vm511_vm1, %v7039_v52, %v8086_v7  ;;  %v781_v43 = vsel %vm515_vm2, %v7039_v52, %v8086_v7  ;;  %v8101_v45 = vsel %vm11915_vm3, %v7039_v52, %v8086_v7  ;;  %v8116_v52 = vrot.slane %v7061_v37, 3 }
 0x2c2   : > { %2296 = vst [vmem:[#allocation1 + $0x2] ss:$9 sm:$0xff] %v8058_v10  ;;  %v8103_v59 = vrot.slane %v778_v62, 1  ;;  %v8120_v62 = vsel %vm11915_vm3, %v7048_v42, %v505_v44 }
 0x2c3   : > { %12295 = vst [vmem:[#allocation381_spill] sm:$0xff] %v8081_v58 }
 0x2c4   : > { %2297 = vst [vmem:[#allocation1 + $0x3] ss:$9 sm:$0xff] %v8062_v24 }
 0x2c5   : > { %2298 = vst [vmem:[#allocation1 + $0x4] ss:$9 sm:$0xff] %v8073_v55  ;;  %v793_v55 = vsel %vm519_vm0, %v7048_v42, %v505_v44 }
 0x2c6   : > { %12296 = vst [vmem:[#allocation382_spill] sm:$0xff] %v8086_v7  ;;  %v8128_v10 = vrot.slane %v793_v55, 3  ;;  %v799_v55 = vsel %vm511_vm1, %v7061_v37, %v8116_v52 }
 0x2c7   : > { %2299 = vst [vmem:[#allocation1 + $0x5] ss:$9 sm:$0xff] %v8075_v4  ;;  %v790_v4 = vsel %vm515_vm2, %v7048_v42, %v505_v44 }
 0x2c8   : > { %2300 = vst [vmem:[#allocation1 + $0x6] ss:$9 sm:$0xff] %v8078_v56  ;;  %v8107_v56 = vrot.slane %v781_v43, 2  ;;  %v8125_v43 = vrot.slane %v790_v4, 2  ;;  %v8147_v4 = vrot.slane %v799_v55, 1  ;;  %v870_v55 = vshrl.u32 %v7554_v50, 16 }
 0x2c9   : > { %2301 = vst [vmem:[#allocation1 + $0x7] ss:$9 sm:$0xff] %v8081_v58  ;;  %v787_v58 = vsel %vm511_vm1, %v7048_v42, %v505_v44  ;;  %v8135_v42 = vsel %vm11915_vm3, %v7061_v37, %v8116_v52 }
 0x2ca   : > { %12297 = vst [vmem:[#allocation383_spill] sm:$0xff] %v8101_v45  ;;  %v8122_v7 = vrot.slane %v787_v58, 1  ;;  %v802_v58 = vsel %vm515_vm2, %v7061_v37, %v8116_v52  ;;  %v867_v37 = vshll.u32 %v7554_v50, 16 }
 0x2cb   : > { %12298 = vst [vmem:[#allocation384_spill] sm:$0xff] %v8103_v59  ;;  %v8149_v44 = vrot.slane %v802_v58, 2  ;;  %v875_v58 = vshll.u32 %v7556_v36, 16 }
 0x2cc   : > { %12299 = vst [vmem:[#allocation385_spill] sm:$0xff] %v8107_v56 }
 0x2cd   : > { %12301 = vst [vmem:[#allocation387_spill] sm:$0xff] %v8116_v52  ;;  %v877_v50 = vsel %vm8157_vm6, %v870_v55, %v875_v58  ;;  %v945_v55 = vshll.u32 %v7618_v2, 16  ;;  %v948_v58 = vshrl.u32 %v7618_v2, 16  ;;  %v12974_v52 = vld [vmem:[#allocation212_spill] sm:$0xff] }
 0x2ce   : > { %12302 = vst [vmem:[#allocation388_spill] sm:$0xff] %v8120_v62 }
 0x2cf   : > { %12303 = vst [vmem:[#allocation389_spill] sm:$0xff] %v8122_v7 }
 0x2d0   : > { %v8113_v24 = vld [vmem:[#allocation1] sm:$0xff]  ;;  %12304 = vst [vmem:[#allocation390_spill] sm:$0xff] %v8125_v43 }
 0x2d1   : > { %12300 = vst [vmem:[#allocation386_spill] sm:$0xff] %v8113_v24 }
 0x2d2   : > { %2303 = vst [vmem:[#allocation1] ss:$9 sm:$0xff] %v8101_v45 }
 0x2d3   : > { %2304 = vst [vmem:[#allocation1 + $0x1] ss:$9 sm:$0xff] %v8103_v59 }
 0x2d4   : > { %12305 = vst [vmem:[#allocation391_spill] sm:$0xff] %v8128_v10 }
 0x2d5   : > { %2305 = vst [vmem:[#allocation1 + $0x2] ss:$9 sm:$0xff] %v8107_v56 }
 0x2d6   : > { %2306 = vst [vmem:[#allocation1 + $0x3] ss:$9 sm:$0xff] %v8120_v62  ;;  %v898_v62 = vshll.u32 %v7576_v46, 16 }
 0x2d7   : > { %12306 = vst [vmem:[#allocation392_spill] sm:$0xff] %v8135_v42 }
 0x2d8   : > { %2307 = vst [vmem:[#allocation1 + $0x4] ss:$9 sm:$0xff] %v8122_v7  ;;  %v893_v7 = vshrl.u32 %v7542_v35, 16 }
 0x2d9   : > { %2308 = vst [vmem:[#allocation1 + $0x5] ss:$9 sm:$0xff] %v8125_v43 }
 0x2da   : > { %2309 = vst [vmem:[#allocation1 + $0x6] ss:$9 sm:$0xff] %v8128_v10  ;;  %v878_v10 = vshrl.u32 %v7556_v36, 16  ;;  %v906_v36 = vshll.u32 %v7579_v28, 16 }
 0x2db   : > { %2310 = vst [vmem:[#allocation1 + $0x7] ss:$9 sm:$0xff] %v8135_v42  ;;  %v862_v42 = vshrl.u32 %v7552_v34, 16  ;;  %v890_v34 = vshll.u32 %v7542_v35, 16 }
 0x2dc   : > { %12307 = vst [vmem:[#allocation393_spill] sm:$0xff] %v8147_v4 }
 0x2dd   : > { %12308 = vst [vmem:[#allocation394_spill] sm:$0xff] %v8149_v44  ;;  %v869_v43 = vsel %vm8157_vm6, %v862_v42, %v867_v37  ;;  %v917_v37 = vshrl.u32 %v7585_v1, 16  ;;  %v922_v42 = vshll.u32 %v7601_v40, 16 }
 0x2e2   : > { %v8151_v24 = vld [vmem:[#allocation1] sm:$0xff] }
 0x2e3   : > { %12309 = vst [vmem:[#allocation395_spill] sm:$0xff] %v8151_v24  ;;  %v807_v24 = vrot.slane %v6893_v48, 3  ;;  %v901_v48 = vshrl.u32 %v7576_v46, 16  ;;  %v900_v46 = vsel %vm8157_vm6, %v893_v7, %v898_v62  ;;  %v925_v7 = vshrl.u32 %v7601_v40, 16 }
 0x2e4   : > { %2312 = vst [vmem:[#allocation1] ss:$9 sm:$0xff] %v8147_v4  ;;  %v883_v4 = vshll.u32 %v7571_v39, 16 }
 0x2e5   : > { %2313 = vst [vmem:[#allocation1 + $0x1] ss:$9 sm:$0xff] %v8149_v44  ;;  %v886_v44 = vshrl.u32 %v7571_v39, 16  ;;  %v909_v39 = vshrl.u32 %v7579_v28, 16  ;;  %v914_v59 = vshll.u32 %v807_v24, 16  ;;  %v8193_v24 = vsel %vm8157_vm6, %v917_v37, %v922_v42 }
 0x2e6   : > { %v885_v56 = vsel %vm8157_vm6, %v878_v10, %v883_v4  ;;  %v908_v10 = vsel %vm8157_vm6, %v901_v48, %v906_v36  ;;  %12313 = vst [vmem:[#allocation397_spill] sm:$0xff] %v8193_v24  ;;  %v938_v4 = vshll.u32 %v7608_v27, 16  ;;  %v964_v36 = vshrl.u32 %v7625_v47, 16 }
 0x2e7   : > { %v892_v35 = vsel %vm8157_vm6, %v886_v44, %v890_v34  ;;  %v916_v28 = vsel %vm8157_vm6, %v909_v39, %v914_v59  ;;  %v933_v59 = vshrl.u32 %v7603_v54, 16  ;;  %v941_v44 = vshrl.u32 %v7608_v27, 16 }
 0x2e8   : > { %v956_v34 = vshrl.u32 %v7620_v0, 16  ;;  %v972_v37 = vshrl.u32 %v7631_v51, 16  ;;  %v977_v42 = vshll.u32 %v7633_v25, 16 }
 0x2e9   : > { %v8215_v48 = vsel %vm8157_vm6, %v933_v59, %v938_v4  ;;  %v811_v4 = vsel %vm519_vm0, %v6808_v14, %v7640_v26  ;;  %v1011_v14 = vshrl.u32 %v7663_v11, 16  ;;  %v1016_v26 = vshll.u32 %v7669_v16, 16 }
 0x2ea   : > { %12315 = vst [vmem:[#allocation399_spill] sm:$0xff] %v8215_v48 }
 0x2ec   : > { %v8179_v45 = vld [vmem:[#allocation1] sm:$0xff] }
 0x2ed   : > { %12312 = vst [vmem:[#allocation396_spill] sm:$0xff] %v8179_v45  ;;  %v1035_v45 = vshrl.u32 %v7679_v21, 16 }
 0x2ee   : > { %2316 = vst [vmem:[#allocation1] ss:$9 sm:$0xff] %v869_v43  ;;  %v808_v43 = vsel %vm519_vm0, %v6786_v5, %v7592_v31  ;;  %v953_v5 = vshll.u32 %v7620_v0, 16 }
 0x2ef   : > { %2319 = vst [vmem:[#allocation1 + $0x1] ss:$9 sm:$0xff] %v877_v50  ;;  %v810_v62 = vrot.slane %v808_v43, 3  ;;  %v961_v50 = vshll.u32 %v7625_v47, 16  ;;  %v985_v43 = vshll.u32 %v7648_v22, 16 }
 0x2f0   : > { %2322 = vst [vmem:[#allocation1 + $0x2] ss:$9 sm:$0xff] %v885_v56  ;;  %v930_v56 = vshll.u32 %v7603_v54, 16 }
 0x2f1   : > { %2325 = vst [vmem:[#allocation1 + $0x3] ss:$9 sm:$0xff] %v892_v35  ;;  %v969_v39 = vshll.u32 %v810_v62, 16  ;;  %v8220_v35 = vsel %vm8157_vm6, %v941_v44, %v945_v55  ;;  %v8244_v62 = vsel %vm8157_vm6, %v972_v37, %v977_v42  ;;  %v813_v44 = vrot.slane %v811_v4, 3 }
 0x2f2   : > { %2328 = vst [vmem:[#allocation1 + $0x4] ss:$9 sm:$0xff] %v900_v46  ;;  %v8209_v31 = vsel %vm8157_vm6, %v925_v7, %v930_v56  ;;  %v8234_v7 = vsel %vm8157_vm6, %v956_v34, %v961_v50  ;;  %v988_v55 = vshrl.u32 %v7648_v22, 16  ;;  %v1000_v34 = vshll.u32 %v7661_v17, 16 }
 0x2f3   : > { %2331 = vst [vmem:[#allocation1 + $0x5] ss:$9 sm:$0xff] %v908_v10  ;;  %v8226_v10 = vsel %vm8157_vm6, %v948_v58, %v953_v5  ;;  %v8239_v56 = vsel %vm8157_vm6, %v964_v36, %v969_v39  ;;  %v993_v58 = vshll.u32 %v7653_v19, 16  ;;  %v996_v5 = vshrl.u32 %v7653_v19, 16 }
 0x2f4   : > { %2334 = vst [vmem:[#allocation1 + $0x6] ss:$9 sm:$0xff] %v916_v28  ;;  %v980_v28 = vshrl.u32 %v7633_v25, 16  ;;  %v1003_v50 = vshrl.u32 %v7661_v17, 16  ;;  %v1008_v36 = vshll.u32 %v7663_v11, 16  ;;  %v1019_v37 = vshrl.u32 %v7669_v16, 16 }
 0x2f5   : > { %2337 = vst [vmem:[#allocation1 + $0x7] ss:$9 sm:$0xff] %v8193_v24  ;;  %v8268_v39 = vsel %vm8157_vm6, %v988_v55, %v993_v58  ;;  %v1024_v42 = vshll.u32 %v813_v44, 16  ;;  %v1040_v55 = vshll.u32 %v7682_v13, 16  ;;  %v8285_v44 = vsel %vm8157_vm6, %v1011_v14, %v1016_v26 }
 0x2f6   : > { %12314 = vst [vmem:[#allocation398_spill] sm:$0xff] %v8209_v31  ;;  %v8249_v59 = vsel %vm8157_vm6, %v980_v28, %v985_v43  ;;  %v1027_v28 = vshrl.u32 %v7677_v15, 16  ;;  %v1032_v43 = vshll.u32 %v7679_v21, 16  ;;  %v8279_v4 = vsel %vm8157_vm6, %v1003_v50, %v1008_v36 }
 0x2f7   : > { %12316 = vst [vmem:[#allocation400_spill] sm:$0xff] %v8220_v35  ;;  %v8293_v50 = vsel %vm8157_vm6, %v1019_v37, %v1024_v42  ;;  %v8303_v14 = vsel %vm8157_vm6, %v1035_v45, %v1040_v55  ;;  %v814_v26 = vsel %vm519_vm0, %v6830_v23, %v7688_v18  ;;  %v1051_v45 = vshrl.u32 %v7698_v12, 16  ;;  %v12330_v23 = vld [vmem:[#allocation310_spill] sm:$0xff] }
 0x2f8   : > { %12317 = vst [vmem:[#allocation401_spill] sm:$0xff] %v8226_v10  ;;  %v8298_v36 = vsel %vm8157_vm6, %v1027_v28, %v1032_v43  ;;  %v816_v42 = vrot.slane %v814_v26, 3  ;;  %v1055_v28 = vshll.u32 %v7706_v9, 16  ;;  %v1058_v43 = vshrl.u32 %v7706_v9, 16 }
 0x2f9   : > { %12318 = vst [vmem:[#allocation402_spill] sm:$0xff] %v8234_v7  ;;  %v1063_v18 = vshll.u32 %v12330_v23, 16  ;;  %v1066_v55 = vshrl.u32 %v12330_v23, 16 }
 0x2fa   : > { %12319 = vst [vmem:[#allocation403_spill] sm:$0xff] %v8239_v56  ;;  %v8326_v26 = vsel %vm8157_vm6, %v1051_v45, %v1055_v28  ;;  %v12338_v45 = vld [vmem:[#allocation316_spill] sm:$0xff] }
 0x2fb   : > { %12320 = vst [vmem:[#allocation404_spill] sm:$0xff] %v8244_v62  ;;  %v1103_v28 = vshll.u32 %v12338_v45, 16 }
 0x2fc   : > { %v2338_v46 = vld [vmem:[#allocation1] sm:$0xff]  ;;  %12321 = vst [vmem:[#allocation405_spill] sm:$0xff] %v8249_v59 }
 0x2fd   : > { %2341 = vst [vmem:[#allocation1] ss:$9 sm:$0xff] %v8209_v31  ;;  %2544 = vrot.lane.b32.xlu0 %v2338_v46, %s6666_s27  ;;  %v8273_v46 = vsel %vm8157_vm6, %v996_v5, %v1000_v34  ;;  %v1043_v5 = vshrl.u32 %v7682_v13, 16  ;;  %v1048_v34 = vshll.u32 %v7698_v12, 16 }
 0x2fe   : > { %2343 = vst [vmem:[#allocation1 + $0x1] ss:$9 sm:$0xff] %v8215_v48 }
 0x2ff   : > { %2345 = vst [vmem:[#allocation1 + $0x2] ss:$9 sm:$0xff] %v8220_v35  ;;  %v8311_v37 = vsel %vm8157_vm6, %v1043_v5, %v1048_v34  ;;  %v12352_v35 = vld [vmem:[#allocation324_spill] sm:$0xff] }
 0x300   : > { %2347 = vst [vmem:[#allocation1 + $0x3] ss:$9 sm:$0xff] %v8226_v10  ;;  %v1161_v31 = vshrl.u32 %v12352_v35, 16 }
 0x301   : > { %2349 = vst [vmem:[#allocation1 + $0x4] ss:$9 sm:$0xff] %v8234_v7 }
 0x302   : > { %2351 = vst [vmem:[#allocation1 + $0x5] ss:$9 sm:$0xff] %v8239_v56 }
 0x303   : > { %2353 = vst [vmem:[#allocation1 + $0x6] ss:$9 sm:$0xff] %v8244_v62 }
 0x304   : > { %2355 = vst [vmem:[#allocation1 + $0x7] ss:$9 sm:$0xff] %v8249_v59 }
 0x305   : > { %12322 = vst [vmem:[#allocation406_spill] sm:$0xff] %v8268_v39 }
 0x306   : > { %12323 = vst [vmem:[#allocation407_spill] sm:$0xff] %v8273_v46 }
 0x307   : > { %12324 = vst [vmem:[#allocation408_spill] sm:$0xff] %v8279_v4 }
 0x308   : > { %12325 = vst [vmem:[#allocation409_spill] sm:$0xff] %v8285_v44 }
 0x309   : > { %12326 = vst [vmem:[#allocation410_spill] sm:$0xff] %v8293_v50 }
 0x30a   : > { %12327 = vst [vmem:[#allocation411_spill] sm:$0xff] %v8298_v36 }
 0x30b   : > { %v2356_v58 = vld [vmem:[#allocation1] sm:$0xff]  ;;  %12328 = vst [vmem:[#allocation412_spill] sm:$0xff] %v8303_v14 }
 0x30c   : > { %2359 = vst [vmem:[#allocation1] ss:$9 sm:$0xff] %v8268_v39  ;;  %2546 = vrot.lane.b32.xlu2 %v2356_v58, %s6666_s27  ;;  %v12331_v58 = vld [vmem:[#allocation311_spill] sm:$0xff] }
 0x30d   : > { %2361 = vst [vmem:[#allocation1 + $0x1] ss:$9 sm:$0xff] %v8273_v46  ;;  %v1071_v5 = vshll.u32 %v12331_v58, 16  ;;  %v1074_v34 = vshrl.u32 %v12331_v58, 16  ;;  %v12336_v39 = vld [vmem:[#allocation315_spill] sm:$0xff] }
 0x30e   : > { %2363 = vst [vmem:[#allocation1 + $0x2] ss:$9 sm:$0xff] %v8279_v4  ;;  %v8332_v4 = vsel %vm8157_vm6, %v1058_v43, %v1063_v18  ;;  %v1095_v59 = vshll.u32 %v12336_v39, 16  ;;  %v1106_v43 = vshrl.u32 %v12338_v45, 16  ;;  %v1110_v18 = vshll.u32 %v7751_v20, 16 }
 0x30f   : > { %2365 = vst [vmem:[#allocation1 + $0x3] ss:$9 sm:$0xff] %v8285_v44  ;;  %v8338_v62 = vsel %vm8157_vm6, %v1066_v55, %v1071_v5 }
 0x310   : > { %12329 = vst [vmem:[#allocation413_spill] sm:$0xff] %v8311_v37 }
 0x311   : > { %2367 = vst [vmem:[#allocation1 + $0x4] ss:$9 sm:$0xff] %v8293_v50  ;;  %v12334_v50 = vld [vmem:[#allocation314_spill] sm:$0xff] }
 0x312   : > { %2369 = vst [vmem:[#allocation1 + $0x5] ss:$9 sm:$0xff] %v8298_v36  ;;  %v1079_v36 = vshll.u32 %v816_v42, 16  ;;  %v1087_v44 = vshll.u32 %v12334_v50, 16  ;;  %v1090_v46 = vshrl.u32 %v12334_v50, 16  ;;  %v1098_v42 = vshrl.u32 %v12336_v39, 16 }
 0x313   : > { %2371 = vst [vmem:[#allocation1 + $0x6] ss:$9 sm:$0xff] %v8303_v14 }
 0x314   : > { %2373 = vst [vmem:[#allocation1 + $0x7] ss:$9 sm:$0xff] %v8311_v37  ;;  %v12333_v37 = vld [vmem:[#allocation313_spill] sm:$0xff]  ;;  %v8344_v7 = vsel %vm8157_vm6, %v1074_v34, %v1079_v36  ;;  %v8357_v5 = vsel %vm8157_vm6, %v1090_v46, %v1095_v59  ;;  %v1113_v46 = vshrl.u32 %v7751_v20, 16 }
 0x315   : > { %12332 = vst [vmem:[#allocation310_spill] sm:$0xff] %v8326_v26  ;;  %v1082_v14 = vshrl.u32 %v12333_v37, 16  ;;  %v12342_v36 = vld [vmem:[#allocation317_spill] sm:$0xff] }
 0x316   : > { %12335 = vst [vmem:[#allocation311_spill] sm:$0xff] %v8332_v4  ;;  %v12343_v34 = vld [vmem:[#allocation25_spill] sm:$0xff] }
 0x317   : > { %12337 = vst [vmem:[#allocation313_spill] sm:$0xff] %v8338_v62  ;;  %v8352_v55 = vsel %vm8157_vm6, %v1082_v14, %v1087_v44  ;;  %v817_v10 = vsel %vm519_vm0, %v12343_v34, %v12342_v36  ;;  %v1118_v44 = vshll.u32 %v7753_v33, 16  ;;  %v1121_v14 = vshrl.u32 %v7753_v33, 16  ;;  %v12347_v36 = vld [vmem:[#allocation321_spill] sm:$0xff] }
 0x318   : > { %12339 = vst [vmem:[#allocation314_spill] sm:$0xff] %v8344_v7  ;;  %v819_v59 = vrot.slane %v817_v10, 3  ;;  %v1137_v34 = vshrl.u32 %v12347_v36, 16 }
 0x319   : > { %12340 = vst [vmem:[#allocation315_spill] sm:$0xff] %v8352_v55  ;;  %v8385_v10 = vsel %vm8157_vm6, %v1113_v46, %v1118_v44  ;;  %v12354_v46 = vld [vmem:[#allocation325_spill] sm:$0xff] }
 0x31a   : > { %12341 = vst [vmem:[#allocation316_spill] sm:$0xff] %v8357_v5  ;;  %v1165_v44 = vshll.u32 %v12354_v46, 16 }
 0x31b   : > { %v2374_v56 = vld [vmem:[#allocation1] sm:$0xff] }
 0x31c   : > { %2377 = vst [vmem:[#allocation1] ss:$9 sm:$0xff] %v8326_v26  ;;  %2548 = vrot.lane.b32.xlu0 %v2374_v56, %s6666_s27  ;;  %v8365_v26 = vsel %vm8157_vm6, %v1098_v42, %v1103_v28  ;;  %v8370_v56 = vsel %vm8157_vm6, %v1106_v43, %v1110_v18  ;;  %v12346_v42 = vld [vmem:[#allocation318_spill] sm:$0xff]  ;;  %v1134_v18 = vshll.u32 %v819_v59, 16  ;;  %v1158_v59 = vshll.u32 %v12352_v35, 16  ;;  %v12358_v35 = vld [vmem:[#allocation33_spill] sm:$0xff] }
 0x31d   : > { %2379 = vst [vmem:[#allocation1 + $0x1] ss:$9 sm:$0xff] %v8332_v4  ;;  %v1126_v28 = vshll.u32 %v12346_v42, 16  ;;  %v1129_v43 = vshrl.u32 %v12346_v42, 16 }
 0x31e   : > { %2381 = vst [vmem:[#allocation1 + $0x2] ss:$9 sm:$0xff] %v8338_v62 }
 0x31f   : > { %12344 = vst [vmem:[#allocation317_spill] sm:$0xff] %v8365_v26  ;;  %v8391_v62 = vsel %vm8157_vm6, %v1121_v14, %v1126_v28  ;;  %v8397_v48 = vsel %vm8157_vm6, %v1129_v43, %v1134_v18  ;;  %v1168_v14 = vshrl.u32 %v12354_v46, 16  ;;  %v1173_v28 = vshll.u32 %v7801_v29, 16  ;;  %v12357_v18 = vld [vmem:[#allocation320_spill] sm:$0xff] }
 0x320   : > { %2383 = vst [vmem:[#allocation1 + $0x3] ss:$9 sm:$0xff] %v8344_v7 }
 0x321   : > { %12345 = vst [vmem:[#allocation25_spill] sm:$0xff] %v8370_v56 }
 0x322   : > { %2385 = vst [vmem:[#allocation1 + $0x4] ss:$9 sm:$0xff] %v8352_v55  ;;  %v12348_v55 = vld [vmem:[#allocation322_spill] sm:$0xff] }
 0x323   : > { %2387 = vst [vmem:[#allocation1 + $0x5] ss:$9 sm:$0xff] %v8357_v5  ;;  %v1142_v5 = vshll.u32 %v12348_v55, 16 }
 0x324   : > { %2389 = vst [vmem:[#allocation1 + $0x6] ss:$9 sm:$0xff] %v8365_v26  ;;  %v12350_v26 = vld [vmem:[#allocation323_spill] sm:$0xff] }
 0x325   : > { %2391 = vst [vmem:[#allocation1 + $0x7] ss:$9 sm:$0xff] %v8370_v56  ;;  %v1145_v56 = vshrl.u32 %v12348_v55, 16  ;;  %v1150_v7 = vshll.u32 %v12350_v26, 16  ;;  %v1153_v4 = vshrl.u32 %v12350_v26, 16  ;;  %v8403_v55 = vsel %vm8157_vm6, %v1137_v34, %v1142_v5 }
 0x326   : > { %12349 = vst [vmem:[#allocation318_spill] sm:$0xff] %v8385_v10  ;;  %v820_v26 = vsel %vm519_vm0, %v12358_v35, %v12357_v18  ;;  %v1176_v35 = vshrl.u32 %v7801_v29, 16 }
 0x327   : > { %12351 = vst [vmem:[#allocation321_spill] sm:$0xff] %v8391_v62  ;;  %v8411_v43 = vsel %vm8157_vm6, %v1145_v56, %v1150_v7  ;;  %v8419_v5 = vsel %vm8157_vm6, %v1153_v4, %v1158_v59  ;;  %v8429_v7 = vsel %vm8157_vm6, %v1168_v14, %v1173_v28  ;;  %v822_v56 = vrot.slane %v820_v26, 3  ;;  %v12362_v59 = vld [vmem:[#allocation328_spill] sm:$0xff]  ;;  %v12363_v14 = vld [vmem:[#allocation329_spill] sm:$0xff]  ;;  %v12364_v26 = vld [vmem:[#allocation331_spill] sm:$0xff] }
 0x328   : > { %12353 = vst [vmem:[#allocation414_spill] sm:$0xff] %v8397_v48  ;;  %v1184_v4 = vshrl.u32 %v7805_v30, 16  ;;  %v1197_v28 = vshll.u32 %v12363_v14, 16  ;;  %v1200_v18 = vshrl.u32 %v12363_v14, 16 }
 0x329   : > { %12355 = vst [vmem:[#allocation325_spill] sm:$0xff] %v8403_v55  ;;  %v1189_v34 = vshll.u32 %v822_v56, 16 }
 0x32a   : > { %12356 = vst [vmem:[#allocation415_spill] sm:$0xff] %v8411_v43 }
 0x32b   : > { %12359 = vst [vmem:[#allocation320_spill] sm:$0xff] %v8419_v5 }
 0x32c   : > { %v2392_v24 = vld [vmem:[#allocation1] sm:$0xff]  ;;  %12361 = vst [vmem:[#allocation416_spill] sm:$0xff] %v8429_v7 }
 0x32d   : > { %2550 = vrot.lane.b32.xlu1 %v2392_v24, %s6666_s27  ;;  %2395 = vst [vmem:[#allocation1] ss:$9 sm:$0xff] %v8385_v10  ;;  %v8424_v24 = vsel %vm8157_vm6, %v1161_v31, %v1165_v44  ;;  %v1181_v31 = vshll.u32 %v7805_v30, 16  ;;  %v1192_v44 = vshrl.u32 %v12362_v59, 16 }
 0x32e   : > { %2397 = vst [vmem:[#allocation1 + $0x1] ss:$9 sm:$0xff] %v8391_v62  ;;  %v12368_v62 = vld [vmem:[#allocation333_spill] sm:$0xff] }
 0x32f   : > { %2399 = vst [vmem:[#allocation1 + $0x2] ss:$9 sm:$0xff] %v8397_v48  ;;  %v8450_v48 = vsel %vm8157_vm6, %v1184_v4, %v1189_v34  ;;  %v1220_v10 = vshll.u32 %v12368_v62, 16  ;;  %v8456_v14 = vsel %vm8157_vm6, %v1192_v44, %v1197_v28  ;;  %v1223_v59 = vshrl.u32 %v12368_v62, 16  ;;  %v12373_v44 = vld [vmem:[#allocation42_spill] sm:$0xff] }
 0x330   : > { %12360 = vst [vmem:[#allocation33_spill] sm:$0xff] %v8424_v24  ;;  %v1236_v34 = vshll.u32 %v7850_v8, 16 }
 0x331   : > { %2401 = vst [vmem:[#allocation1 + $0x3] ss:$9 sm:$0xff] %v8403_v55 }
 0x332   : > { %2403 = vst [vmem:[#allocation1 + $0x4] ss:$9 sm:$0xff] %v8411_v43  ;;  %v1205_v43 = vshll.u32 %v12364_v26, 16 }
 0x333   : > { %2405 = vst [vmem:[#allocation1 + $0x5] ss:$9 sm:$0xff] %v8419_v5  ;;  %v12366_v5 = vld [vmem:[#allocation332_spill] sm:$0xff] }
 0x334   : > { %2407 = vst [vmem:[#allocation1 + $0x6] ss:$9 sm:$0xff] %v8424_v24  ;;  %v8444_v24 = vsel %vm8157_vm6, %v1176_v35, %v1181_v31  ;;  %v1213_v55 = vshll.u32 %v12366_v5, 16  ;;  %v1216_v56 = vshrl.u32 %v12366_v5, 16  ;;  %v12370_v35 = vld [vmem:[#allocation334_spill] sm:$0xff] }
 0x335   : > { %2409 = vst [vmem:[#allocation1 + $0x7] ss:$9 sm:$0xff] %v8429_v7  ;;  %v1208_v7 = vshrl.u32 %v12364_v26, 16  ;;  %v1228_v31 = vshll.u32 %v12370_v35, 16  ;;  %v8462_v26 = vsel %vm8157_vm6, %v1200_v18, %v1205_v43  ;;  %v1231_v4 = vshrl.u32 %v12370_v35, 16  ;;  %v12372_v5 = vld [vmem:[#allocation326_spill] sm:$0xff] }
 0x336   : > { %12365 = vst [vmem:[#allocation417_spill] sm:$0xff] %v8444_v24  ;;  %v823_v28 = vsel %vm519_vm0, %v12373_v44, %v12372_v5  ;;  %v8478_v43 = vsel %vm8157_vm6, %v1216_v56, %v1220_v10  ;;  %v12379_v56 = vld [vmem:[#allocation336_spill] sm:$0xff]  ;;  %v12380_v44 = vld [vmem:[#allocation337_spill] sm:$0xff] }
 0x337   : > { %12367 = vst [vmem:[#allocation418_spill] sm:$0xff] %v8450_v48  ;;  %v8473_v62 = vsel %vm8157_vm6, %v1208_v7, %v1213_v55  ;;  %v8483_v18 = vsel %vm8157_vm6, %v1223_v59, %v1228_v31  ;;  %v8488_v5 = vsel %vm8157_vm6, %v1231_v4, %v1236_v34  ;;  %v12378_v55 = vld [vmem:[#allocation50_spill] sm:$0xff]  ;;  %v1239_v7 = vshrl.u32 %v7850_v8, 16 }
 0x338   : > { %12369 = vst [vmem:[#allocation419_spill] sm:$0xff] %v8456_v14  ;;  %v826_v10 = vsel %vm519_vm0, %v12378_v55, %v7846_v3  ;;  %v1247_v31 = vshrl.u32 %v12379_v56, 16  ;;  %v1252_v4 = vshll.u32 %v12380_v44, 16  ;;  %v1255_v34 = vshrl.u32 %v12380_v44, 16  ;;  %v12386_v44 = vld [vmem:[#allocation342_spill] sm:$0xff] }
 0x339   : > { %12371 = vst [vmem:[#allocation334_spill] sm:$0xff] %v8462_v26  ;;  %v1286_v56 = vshrl.u32 %v12386_v44, 16 }
 0x33a   : > { %12374 = vst [vmem:[#allocation326_spill] sm:$0xff] %v8473_v62 }
 0x33b   : > { %12375 = vst [vmem:[#allocation42_spill] sm:$0xff] %v8478_v43 }
 0x33c   : > { %v2410_v30 = vld [vmem:[#allocation1] sm:$0xff]  ;;  %12376 = vst [vmem:[#allocation420_spill] sm:$0xff] %v8483_v18 }
 0x33d   : > { %2413 = vst [vmem:[#allocation1] ss:$9 sm:$0xff] %v8444_v24  ;;  %2552 = vrot.lane.b32.xlu2 %v2410_v30, %s6666_s27  ;;  %v825_v30 = vrot.slane %v823_v28, 3  ;;  %v12381_v28 = vld [vmem:[#allocation338_spill] sm:$0xff] }
 0x33e   : > { %2415 = vst [vmem:[#allocation1 + $0x1] ss:$9 sm:$0xff] %v8450_v48  ;;  %v8512_v48 = vsel %vm8157_vm6, %v1247_v31, %v1252_v4 }
 0x33f   : > { %2417 = vst [vmem:[#allocation1 + $0x2] ss:$9 sm:$0xff] %v8456_v14  ;;  %v1244_v59 = vshll.u32 %v825_v30, 16  ;;  %v12384_v30 = vld [vmem:[#allocation341_spill] sm:$0xff] }
 0x340   : > { %2419 = vst [vmem:[#allocation1 + $0x3] ss:$9 sm:$0xff] %v8462_v26  ;;  %v12382_v26 = vld [vmem:[#allocation340_spill] sm:$0xff]  ;;  %v1275_v55 = vshll.u32 %v12384_v30, 16  ;;  %v1278_v24 = vshrl.u32 %v12384_v30, 16 }
 0x341   : > { %12377 = vst [vmem:[#allocation421_spill] sm:$0xff] %v8488_v5  ;;  %v8506_v14 = vsel %vm8157_vm6, %v1239_v7, %v1244_v59  ;;  %v1271_v3 = vshrl.u32 %v12382_v26, 16  ;;  %v12388_v7 = vld [vmem:[#allocation343_spill] sm:$0xff] }
 0x342   : > { %2421 = vst [vmem:[#allocation1 + $0x4] ss:$9 sm:$0xff] %v8473_v62  ;;  %v1260_v62 = vshll.u32 %v12381_v28, 16  ;;  %v1291_v59 = vshll.u32 %v12388_v7, 16  ;;  %v1294_v31 = vshrl.u32 %v12388_v7, 16 }
 0x343   : > { %2423 = vst [vmem:[#allocation1 + $0x5] ss:$9 sm:$0xff] %v8478_v43  ;;  %v828_v43 = vrot.slane %v826_v10, 3  ;;  %v1283_v10 = vshll.u32 %v12386_v44, 16 }
 0x344   : > { %2425 = vst [vmem:[#allocation1 + $0x6] ss:$9 sm:$0xff] %v8483_v18  ;;  %v1263_v18 = vshrl.u32 %v12381_v28, 16  ;;  %v8518_v28 = vsel %vm8157_vm6, %v1255_v34, %v1260_v62  ;;  %v8531_v62 = vsel %vm8157_vm6, %v1271_v3, %v1275_v55  ;;  %v12395_v55 = vld [vmem:[#allocation346_spill] sm:$0xff] }
 0x345   : > { %2427 = vst [vmem:[#allocation1 + $0x7] ss:$9 sm:$0xff] %v8488_v5  ;;  %v1268_v5 = vshll.u32 %v12382_v26, 16  ;;  %v1299_v4 = vshll.u32 %v828_v43, 16  ;;  %v8536_v34 = vsel %vm8157_vm6, %v1278_v24, %v1283_v10  ;;  %v829_v24 = vsel %vm519_vm0, %v6951_v63, %v7893_v38 }
 0x346   : > { %12383 = vst [vmem:[#allocation50_spill] sm:$0xff] %v8506_v14  ;;  %v1302_v43 = vshrl.u32 %v7903_v41, 16  ;;  %v1315_v10 = vshll.u32 %v12395_v55, 16  ;;  %v12404_v41 = vld [vmem:[#allocation352_spill] sm:$0xff] }
 0x347   : > { %12385 = vst [vmem:[#allocation341_spill] sm:$0xff] %v8512_v48  ;;  %v8524_v26 = vsel %vm8157_vm6, %v1263_v18, %v1268_v5  ;;  %v8541_v18 = vsel %vm8157_vm6, %v1286_v56, %v1291_v59  ;;  %v12394_v5 = vld [vmem:[#allocation345_spill] sm:$0xff]  ;;  %v831_v59 = vrot.slane %v829_v24, 3  ;;  %v1357_v7 = vshrl.u32 %v12404_v41, 16 }
 0x348   : > { %12387 = vst [vmem:[#allocation422_spill] sm:$0xff] %v8518_v28  ;;  %v1307_v56 = vshll.u32 %v12394_v5, 16  ;;  %v1310_v3 = vshrl.u32 %v12394_v5, 16 }
 0x349   : > { %12389 = vst [vmem:[#allocation423_spill] sm:$0xff] %v8524_v26 }
 0x34a   : > { %12390 = vst [vmem:[#allocation424_spill] sm:$0xff] %v8531_v62  ;;  %v8565_v63 = vsel %vm8157_vm6, %v1302_v43, %v1307_v56  ;;  %v1354_v43 = vshll.u32 %v831_v59, 16 }
 0x34b   : > { %12391 = vst [vmem:[#allocation425_spill] sm:$0xff] %v8536_v34 }
 0x34c   : > { %v2428_v8 = vld [vmem:[#allocation1] sm:$0xff]  ;;  %12392 = vst [vmem:[#allocation426_spill] sm:$0xff] %v8541_v18 }
 0x34d   : > { %2431 = vst [vmem:[#allocation1] ss:$9 sm:$0xff] %v8506_v14  ;;  %2554 = vrot.lane.b32.xlu0 %v2428_v8, %s6666_s27  ;;  %v8546_v8 = vsel %vm8157_vm6, %v1294_v31, %v1299_v4  ;;  %v1318_v31 = vshrl.u32 %v12395_v55, 16  ;;  %v12396_v4 = vld [vmem:[#allocation347_spill] sm:$0xff] }
 0x34e   : > { %2433 = vst [vmem:[#allocation1 + $0x1] ss:$9 sm:$0xff] %v8512_v48  ;;  %v8571_v48 = vsel %vm8157_vm6, %v1310_v3, %v1315_v10  ;;  %v12401_v14 = vld [vmem:[#allocation351_spill] sm:$0xff]  ;;  %v1362_v3 = vshll.u32 %v7951_v53, 16 }
 0x34f   : > { %2435 = vst [vmem:[#allocation1 + $0x2] ss:$9 sm:$0xff] %v8518_v28  ;;  %v1346_v55 = vshll.u32 %v12401_v14, 16  ;;  %v1349_v5 = vshrl.u32 %v12401_v14, 16 }
 0x350   : > { %2437 = vst [vmem:[#allocation1 + $0x3] ss:$9 sm:$0xff] %v8524_v26 }
 0x351   : > { %12393 = vst [vmem:[#allocation427_spill] sm:$0xff] %v8546_v8 }
 0x352   : > { %2439 = vst [vmem:[#allocation1 + $0x4] ss:$9 sm:$0xff] %v8531_v62  ;;  %v12397_v62 = vld [vmem:[#allocation349_spill] sm:$0xff] }
 0x353   : > { %2441 = vst [vmem:[#allocation1 + $0x5] ss:$9 sm:$0xff] %v8536_v34  ;;  %v1323_v34 = vshll.u32 %v12396_v4, 16  ;;  %v1330_v26 = vshll.u32 %v12397_v62, 16  ;;  %v1333_v38 = vshrl.u32 %v12397_v62, 16 }
 0x354   : > { %2443 = vst [vmem:[#allocation1 + $0x6] ss:$9 sm:$0xff] %v8541_v18  ;;  %v1326_v18 = vshrl.u32 %v12396_v4, 16 }
 0x355   : > { %2445 = vst [vmem:[#allocation1 + $0x7] ss:$9 sm:$0xff] %v8546_v8  ;;  %v12399_v8 = vld [vmem:[#allocation350_spill] sm:$0xff]  ;;  %v8577_v4 = vsel %vm8157_vm6, %v1318_v31, %v1323_v34 }
 0x356   : > { %12398 = vst [vmem:[#allocation428_spill] sm:$0xff] %v8565_v63  ;;  %v1338_v28 = vshll.u32 %v12399_v8, 16  ;;  %v1341_v24 = vshrl.u32 %v12399_v8, 16  ;;  %v8582_v62 = vsel %vm8157_vm6, %v1326_v18, %v1330_v26  ;;  %v8600_v26 = vsel %vm8157_vm6, %v1349_v5, %v1354_v43 }
 0x357   : > { %12400 = vst [vmem:[#allocation429_spill] sm:$0xff] %v8571_v48  ;;  %v8605_v18 = vsel %vm8157_vm6, %v1357_v7, %v1362_v3  ;;  %v1365_v5 = vshrl.u32 %v7951_v53, 16 }
 0x358   : > { %12402 = vst [vmem:[#allocation430_spill] sm:$0xff] %v8577_v4  ;;  %v8590_v34 = vsel %vm8157_vm6, %v1333_v38, %v1338_v28  ;;  %v8595_v10 = vsel %vm8157_vm6, %v1341_v24, %v1346_v55  ;;  %v832_v28 = vsel %vm519_vm0, %v6973_v57, %v7942_v32  ;;  %v12409_v55 = vld [vmem:[#allocation354_spill] sm:$0xff]  ;;  %v12410_v38 = vld [vmem:[#allocation355_spill] sm:$0xff] }
 0x359   : > { %12403 = vst [vmem:[#allocation431_spill] sm:$0xff] %v8582_v62  ;;  %v1370_v59 = vshll.u32 %v12409_v55, 16  ;;  %v834_v31 = vrot.slane %v832_v28, 3  ;;  %v1373_v7 = vshrl.u32 %v12409_v55, 16  ;;  %v1378_v24 = vshll.u32 %v12410_v38, 16  ;;  %v12412_v57 = vld [vmem:[#allocation358_spill] sm:$0xff] }
 0x35a   : > { %12405 = vst [vmem:[#allocation432_spill] sm:$0xff] %v8590_v34  ;;  %v1381_v43 = vshrl.u32 %v12410_v38, 16  ;;  %v1393_v32 = vshll.u32 %v12412_v57, 16  ;;  %v12417_v38 = vld [vmem:[#allocation360_spill] sm:$0xff] }
 0x35b   : > { %12406 = vst [vmem:[#allocation433_spill] sm:$0xff] %v8595_v10  ;;  %v1412_v55 = vshrl.u32 %v12417_v38, 16 }
 0x35c   : > { %v2446_v56 = vld [vmem:[#allocation1] sm:$0xff]  ;;  %12407 = vst [vmem:[#allocation434_spill] sm:$0xff] %v8600_v26 }
 0x35d   : > { %2449 = vst [vmem:[#allocation1] ss:$9 sm:$0xff] %v8565_v63  ;;  %2556 = vrot.lane.b32.xlu0 %v2446_v56, %s6666_s27  ;;  %v12411_v56 = vld [vmem:[#allocation357_spill] sm:$0xff] }
 0x35e   : > { %2451 = vst [vmem:[#allocation1 + $0x1] ss:$9 sm:$0xff] %v8571_v48  ;;  %v1385_v3 = vshll.u32 %v12411_v56, 16  ;;  %v1409_v48 = vshll.u32 %v834_v31, 16  ;;  %v1425_v31 = vshll.u32 %v7998_v60, 16 }
 0x35f   : > { %2453 = vst [vmem:[#allocation1 + $0x2] ss:$9 sm:$0xff] %v8577_v4 }
 0x360   : > { %2455 = vst [vmem:[#allocation1 + $0x3] ss:$9 sm:$0xff] %v8582_v62  ;;  %v8630_v62 = vsel %vm8157_vm6, %v1373_v7, %v1378_v24  ;;  %v8635_v63 = vsel %vm8157_vm6, %v1381_v43, %v1385_v3  ;;  %v12425_v3 = vld [vmem:[#allocation72_spill] sm:$0xff] }
 0x361   : > { %12408 = vst [vmem:[#allocation435_spill] sm:$0xff] %v8605_v18 }
 0x362   : > { %2457 = vst [vmem:[#allocation1 + $0x4] ss:$9 sm:$0xff] %v8590_v34  ;;  %v12414_v34 = vld [vmem:[#allocation359_spill] sm:$0xff] }
 0x363   : > { %2459 = vst [vmem:[#allocation1 + $0x5] ss:$9 sm:$0xff] %v8595_v10  ;;  %v1388_v10 = vshrl.u32 %v12411_v56, 16  ;;  %v1401_v28 = vshll.u32 %v12414_v34, 16  ;;  %v1404_v4 = vshrl.u32 %v12414_v34, 16 }
 0x364   : > { %2461 = vst [vmem:[#allocation1 + $0x6] ss:$9 sm:$0xff] %v8600_v26  ;;  %v1396_v26 = vshrl.u32 %v12412_v57, 16 }
 0x365   : > { %2463 = vst [vmem:[#allocation1 + $0x7] ss:$9 sm:$0xff] %v8605_v18  ;;  %v8624_v18 = vsel %vm8157_vm6, %v1365_v5, %v1370_v59  ;;  %v12418_v5 = vld [vmem:[#allocation361_spill] sm:$0xff]  ;;  %v8641_v57 = vsel %vm8157_vm6, %v1388_v10, %v1393_v32  ;;  %v8654_v43 = vsel %vm8157_vm6, %v1404_v4, %v1409_v48  ;;  %v1433_v32 = vshll.u32 %v8003_v6, 16 }
 0x366   : > { %12413 = vst [vmem:[#allocation436_spill] sm:$0xff] %v8624_v18  ;;  %v1417_v59 = vshll.u32 %v12418_v5, 16  ;;  %v1420_v7 = vshrl.u32 %v12418_v5, 16  ;;  %v8649_v24 = vsel %vm8157_vm6, %v1396_v26, %v1401_v28  ;;  %v1436_v28 = vshrl.u32 %v8003_v6, 16  ;;  %v12434_v5 = vld [vmem:[#allocation371_spill] sm:$0xff] }
 0x367   : > { %12415 = vst [vmem:[#allocation437_spill] sm:$0xff] %v8630_v62 }
 0x368   : > { %12416 = vst [vmem:[#allocation438_spill] sm:$0xff] %v8635_v63  ;;  %v8660_v10 = vsel %vm8157_vm6, %v1412_v55, %v1417_v59  ;;  %v8665_v26 = vsel %vm8157_vm6, %v1420_v7, %v1425_v31  ;;  %v1428_v55 = vshrl.u32 %v7998_v60, 16  ;;  %v12426_v59 = vld [vmem:[#allocation365_spill] sm:$0xff] }
 0x369   : > { %12419 = vst [vmem:[#allocation439_spill] sm:$0xff] %v8641_v57  ;;  %v1440_v7 = vshll.u32 %v12426_v59, 16  ;;  %v1443_v31 = vshrl.u32 %v12426_v59, 16  ;;  %v12432_v59 = vld [vmem:[#allocation370_spill] sm:$0xff] }
 0x36a   : > { %12420 = vst [vmem:[#allocation440_spill] sm:$0xff] %v8649_v24  ;;  %v1472_v6 = vshll.u32 %v12432_v59, 16  ;;  %v1475_v60 = vshrl.u32 %v12432_v59, 16 }
 0x36b   : > { %12421 = vst [vmem:[#allocation441_spill] sm:$0xff] %v8654_v43 }
 0x36c   : > { %v2464_v56 = vld [vmem:[#allocation1] sm:$0xff]  ;;  %12422 = vst [vmem:[#allocation442_spill] sm:$0xff] %v8660_v10 }
 0x36d   : > { %2558 = vrot.lane.b32.xlu1 %v2464_v56, %s6666_s27  ;;  %2467 = vst [vmem:[#allocation1] ss:$9 sm:$0xff] %v8624_v18  ;;  %v12424_v56 = vld [vmem:[#allocation362_spill] sm:$0xff] }
 0x36e   : > { %2469 = vst [vmem:[#allocation1 + $0x1] ss:$9 sm:$0xff] %v8630_v62  ;;  %v835_v48 = vsel %vm519_vm0, %v12425_v3, %v12424_v56  ;;  %v12428_v56 = vld [vmem:[#allocation368_spill] sm:$0xff]  ;;  %v12431_v62 = vld [vmem:[#allocation369_spill] sm:$0xff] }
 0x36f   : > { %2471 = vst [vmem:[#allocation1 + $0x2] ss:$9 sm:$0xff] %v8635_v63  ;;  %v837_v4 = vrot.slane %v835_v48, 3  ;;  %v1456_v3 = vshll.u32 %v12428_v56, 16  ;;  %v1459_v48 = vshrl.u32 %v12428_v56, 16  ;;  %v8688_v63 = vsel %vm8157_vm6, %v1436_v28, %v1440_v7 }
 0x370   : > { %2473 = vst [vmem:[#allocation1 + $0x3] ss:$9 sm:$0xff] %v8641_v57  ;;  %v1467_v18 = vshrl.u32 %v12431_v62, 16  ;;  %v1483_v28 = vshrl.u32 %v12434_v5, 16  ;;  %v1488_v7 = vshll.u32 %v8048_v61, 16 }
 0x371   : > { %2475 = vst [vmem:[#allocation1 + $0x4] ss:$9 sm:$0xff] %v8649_v24 }
 0x372   : > { %12423 = vst [vmem:[#allocation443_spill] sm:$0xff] %v8665_v26 }
 0x373   : > { %2477 = vst [vmem:[#allocation1 + $0x5] ss:$9 sm:$0xff] %v8654_v43  ;;  %v12427_v43 = vld [vmem:[#allocation366_spill] sm:$0xff] }
 0x374   : > { %2479 = vst [vmem:[#allocation1 + $0x6] ss:$9 sm:$0xff] %v8660_v10  ;;  %v1448_v24 = vshll.u32 %v12427_v43, 16  ;;  %v1451_v57 = vshrl.u32 %v12427_v43, 16  ;;  %v1464_v10 = vshll.u32 %v837_v4, 16 }
 0x375   : > { %2481 = vst [vmem:[#allocation1 + $0x7] ss:$9 sm:$0xff] %v8665_v26  ;;  %v8683_v26 = vsel %vm8157_vm6, %v1428_v55, %v1433_v32  ;;  %v1480_v55 = vshll.u32 %v12434_v5, 16 }
 0x376   : > { %12429 = vst [vmem:[#allocation362_spill] sm:$0xff] %v8683_v26  ;;  %v8694_v43 = vsel %vm8157_vm6, %v1443_v31, %v1448_v24  ;;  %v8700_v4 = vsel %vm8157_vm6, %v1451_v57, %v1456_v3  ;;  %v8708_v24 = vsel %vm8157_vm6, %v1459_v48, %v1464_v10  ;;  %v8713_v31 = vsel %vm8157_vm6, %v1467_v18, %v1472_v6  ;;  %v12439_v3 = vld [vmem:[#allocation372_spill] sm:$0xff] }
 0x377   : > { %12430 = vst [vmem:[#allocation72_spill] sm:$0xff] %v8688_v63  ;;  %v8718_v57 = vsel %vm8157_vm6, %v1475_v60, %v1480_v55  ;;  %v8726_v10 = vsel %vm8157_vm6, %v1483_v28, %v1488_v7  ;;  %v1491_v60 = vshrl.u32 %v8048_v61, 16  ;;  %v1495_v18 = vshll.u32 %v8056_v49, 16  ;;  %v12442_v55 = vld [vmem:[#allocation375_spill] sm:$0xff]  ;;  %v12443_v7 = vld [vmem:[#allocation376_spill] sm:$0xff] }
 0x378   : > { %12433 = vst [vmem:[#allocation444_spill] sm:$0xff] %v8694_v43  ;;  %v1498_v48 = vshrl.u32 %v8056_v49, 16  ;;  %v1506_v28 = vshrl.u32 %v12442_v55, 16 }
 0x379   : > { %12435 = vst [vmem:[#allocation445_spill] sm:$0xff] %v8700_v4 }
 0x37a   : > { %12436 = vst [vmem:[#allocation446_spill] sm:$0xff] %v8708_v24 }
 0x37b   : > { %12437 = vst [vmem:[#allocation447_spill] sm:$0xff] %v8713_v31 }
 0x37c   : > { %v2482_v32 = vld [vmem:[#allocation1] sm:$0xff]  ;;  %12438 = vst [vmem:[#allocation448_spill] sm:$0xff] %v8718_v57 }
 0x37d   : > { %2485 = vst [vmem:[#allocation1] ss:$9 sm:$0xff] %v8683_v26  ;;  %2560 = vrot.lane.b32.xlu2 %v2482_v32, %s6666_s27  ;;  %v12440_v32 = vld [vmem:[#allocation80_spill] sm:$0xff] }
 0x37e   : > { %2487 = vst [vmem:[#allocation1 + $0x1] ss:$9 sm:$0xff] %v8688_v63  ;;  %v838_v26 = vsel %vm519_vm0, %v12440_v32, %v12439_v3  ;;  %v1503_v3 = vshll.u32 %v12442_v55, 16  ;;  %v1511_v32 = vshll.u32 %v12443_v7, 16  ;;  %v12448_v55 = vld [vmem:[#allocation380_spill] sm:$0xff] }
 0x37f   : > { %2489 = vst [vmem:[#allocation1 + $0x2] ss:$9 sm:$0xff] %v8694_v43  ;;  %v840_v6 = vrot.slane %v838_v26, 3  ;;  %v8741_v26 = vsel %vm8157_vm6, %v1491_v60, %v1495_v18  ;;  %v1535_v61 = vshll.u32 %v12448_v55, 16  ;;  %v12450_v60 = vld [vmem:[#allocation381_spill] sm:$0xff] }
 0x380   : > { %2491 = vst [vmem:[#allocation1 + $0x3] ss:$9 sm:$0xff] %v8700_v4  ;;  %v12446_v4 = vld [vmem:[#allocation379_spill] sm:$0xff]  ;;  %v8747_v63 = vsel %vm8157_vm6, %v1498_v48, %v1503_v3  ;;  %v1543_v18 = vshll.u32 %v12450_v60, 16  ;;  %v1546_v48 = vshrl.u32 %v12450_v60, 16 }
 0x381   : > { %12441 = vst [vmem:[#allocation372_spill] sm:$0xff] %v8726_v10  ;;  %v1527_v43 = vshll.u32 %v12446_v4, 16  ;;  %v1530_v49 = vshrl.u32 %v12446_v4, 16  ;;  %v12452_v3 = vld [vmem:[#allocation383_spill] sm:$0xff] }
 0x382   : > { %2493 = vst [vmem:[#allocation1 + $0x4] ss:$9 sm:$0xff] %v8708_v24  ;;  %v1514_v24 = vshrl.u32 %v12443_v7, 16  ;;  %v8753_v7 = vsel %vm8157_vm6, %v1506_v28, %v1511_v32  ;;  %v1550_v59 = vshll.u32 %v12452_v3, 16 }
 0x383   : > { %2495 = vst [vmem:[#allocation1 + $0x5] ss:$9 sm:$0xff] %v8713_v31  ;;  %v1519_v31 = vshll.u32 %v840_v6, 16  ;;  %v1538_v6 = vshrl.u32 %v12448_v55, 16  ;;  %v8772_v32 = vsel %vm8157_vm6, %v1530_v49, %v1535_v61  ;;  %v1553_v49 = vshrl.u32 %v12452_v3, 16 }
 0x384   : > { %2497 = vst [vmem:[#allocation1 + $0x6] ss:$9 sm:$0xff] %v8718_v57 }
 0x385   : > { %2499 = vst [vmem:[#allocation1 + $0x7] ss:$9 sm:$0xff] %v8726_v10  ;;  %v12445_v10 = vld [vmem:[#allocation378_spill] sm:$0xff] }
 0x386   : > { %12444 = vst [vmem:[#allocation80_spill] sm:$0xff] %v8741_v26  ;;  %v1522_v57 = vshrl.u32 %v12445_v10, 16  ;;  %v8759_v10 = vsel %vm8157_vm6, %v1514_v24, %v1519_v31  ;;  %v12455_v24 = vld [vmem:[#allocation382_spill] sm:$0xff]  ;;  %v12456_v31 = vld [vmem:[#allocation88_spill] sm:$0xff] }
 0x387   : > { %12447 = vst [vmem:[#allocation449_spill] sm:$0xff] %v8747_v63  ;;  %v841_v60 = vsel %vm519_vm0, %v12456_v31, %v12455_v24  ;;  %v12460_v24 = vld [vmem:[#allocation385_spill] sm:$0xff] }
 0x388   : > { %12449 = vst [vmem:[#allocation450_spill] sm:$0xff] %v8753_v7  ;;  %v8767_v28 = vsel %vm8157_vm6, %v1522_v57, %v1527_v43  ;;  %v8785_v43 = vsel %vm8157_vm6, %v1546_v48, %v1550_v59  ;;  %v843_v61 = vrot.slane %v841_v60, 3  ;;  %v12459_v57 = vld [vmem:[#allocation384_spill] sm:$0xff]  ;;  %v1566_v31 = vshll.u32 %v12460_v24, 16 }
 0x389   : > { %12451 = vst [vmem:[#allocation451_spill] sm:$0xff] %v8759_v10  ;;  %v1569_v59 = vshrl.u32 %v12460_v24, 16  ;;  %v12466_v24 = vld [vmem:[#allocation391_spill] sm:$0xff] }
 0x38a   : > { %12453 = vst [vmem:[#allocation452_spill] sm:$0xff] %v8767_v28  ;;  %v1574_v48 = vshll.u32 %v843_v61, 16  ;;  %v1598_v61 = vshll.u32 %v12466_v24, 16  ;;  %v1601_v3 = vshrl.u32 %v12466_v24, 16  ;;  %v12474_v24 = vld [vmem:[#allocation96_spill] sm:$0xff] }
 0x38b   : > { %12454 = vst [vmem:[#allocation453_spill] sm:$0xff] %v8772_v32 }
 0x38c   : > { %v2500_v5 = vld [vmem:[#allocation1] sm:$0xff]  ;;  %12458 = vst [vmem:[#allocation88_spill] sm:$0xff] %v8785_v43 }
 0x38d   : > { %2562 = vrot.lane.b32.xlu1 %v2500_v5, %s6666_s27  ;;  %2503 = vst [vmem:[#allocation1] ss:$9 sm:$0xff] %v8741_v26  ;;  %v8780_v5 = vsel %vm8157_vm6, %v1538_v6, %v1543_v18  ;;  %v1558_v6 = vshll.u32 %v12459_v57, 16  ;;  %v1561_v18 = vshrl.u32 %v12459_v57, 16 }
 0x38e   : > { %2505 = vst [vmem:[#allocation1 + $0x1] ss:$9 sm:$0xff] %v8747_v63 }
 0x38f   : > { %2507 = vst [vmem:[#allocation1 + $0x2] ss:$9 sm:$0xff] %v8753_v7  ;;  %v12462_v7 = vld [vmem:[#allocation389_spill] sm:$0xff]  ;;  %v8800_v60 = vsel %vm8157_vm6, %v1553_v49, %v1558_v6  ;;  %v8806_v26 = vsel %vm8157_vm6, %v1561_v18, %v1566_v31  ;;  %v12468_v49 = vld [vmem:[#allocation392_spill] sm:$0xff] }
 0x390   : > { %12457 = vst [vmem:[#allocation382_spill] sm:$0xff] %v8780_v5  ;;  %v1605_v6 = vshll.u32 %v12468_v49, 16  ;;  %v1608_v18 = vshrl.u32 %v12468_v49, 16  ;;  %v12471_v31 = vld [vmem:[#allocation393_spill] sm:$0xff] }
 0x391   : > { %2509 = vst [vmem:[#allocation1 + $0x3] ss:$9 sm:$0xff] %v8759_v10  ;;  %v12461_v10 = vld [vmem:[#allocation388_spill] sm:$0xff] }
 0x392   : > { %2511 = vst [vmem:[#allocation1 + $0x4] ss:$9 sm:$0xff] %v8767_v28  ;;  %v1577_v28 = vshrl.u32 %v12461_v10, 16  ;;  %v8812_v10 = vsel %vm8157_vm6, %v1569_v59, %v1574_v48  ;;  %v12473_v48 = vld [vmem:[#allocation387_spill] sm:$0xff] }
 0x393   : > { %2513 = vst [vmem:[#allocation1 + $0x5] ss:$9 sm:$0xff] %v8772_v32  ;;  %v1582_v32 = vshll.u32 %v12462_v7, 16 }
 0x394   : > { %2515 = vst [vmem:[#allocation1 + $0x6] ss:$9 sm:$0xff] %v8780_v5  ;;  %v12464_v5 = vld [vmem:[#allocation390_spill] sm:$0xff] }
 0x395   : > { %2517 = vst [vmem:[#allocation1 + $0x7] ss:$9 sm:$0xff] %v8785_v43  ;;  %v1585_v43 = vshrl.u32 %v12462_v7, 16  ;;  %v1590_v63 = vshll.u32 %v12464_v5, 16  ;;  %v1593_v57 = vshrl.u32 %v12464_v5, 16  ;;  %v8820_v7 = vsel %vm8157_vm6, %v1577_v28, %v1582_v32 }
 0x396   : > { %12463 = vst [vmem:[#allocation454_spill] sm:$0xff] %v8800_v60  ;;  %v1613_v5 = vshll.u32 %v12471_v31, 16  ;;  %v8840_v32 = vsel %vm8157_vm6, %v1601_v3, %v1605_v6 }
 0x397   : > { %12465 = vst [vmem:[#allocation455_spill] sm:$0xff] %v8806_v26  ;;  %v8827_v59 = vsel %vm8157_vm6, %v1585_v43, %v1590_v63  ;;  %v8835_v28 = vsel %vm8157_vm6, %v1593_v57, %v1598_v61  ;;  %v1616_v57 = vshrl.u32 %v12471_v31, 16 }
 0x398   : > { %12467 = vst [vmem:[#allocation456_spill] sm:$0xff] %v8812_v10  ;;  %v8845_v63 = vsel %vm8157_vm6, %v1608_v18, %v1613_v5 }
 0x399   : > { %12470 = vst [vmem:[#allocation458_spill] sm:$0xff] %v8820_v7 }
 0x39a   : > { %12472 = vst [vmem:[#allocation459_spill] sm:$0xff] %v8827_v59 }
 0x39b   : > { %12475 = vst [vmem:[#allocation387_spill] sm:$0xff] %v8835_v28 }
 0x39c   : > { %v8816_v55 = vld [vmem:[#allocation1] sm:$0xff]  ;;  %12476 = vst [vmem:[#allocation96_spill] sm:$0xff] %v8840_v32 }
 0x39d   : > { %12469 = vst [vmem:[#allocation457_spill] sm:$0xff] %v8816_v55  ;;  %v844_v55 = vsel %vm519_vm0, %v12474_v24, %v12473_v48  ;;  %v12478_v24 = vld [vmem:[#allocation394_spill] sm:$0xff] }
 0x39e   : > { %2521 = vst [vmem:[#allocation1] ss:$9 sm:$0xff] %v8800_v60  ;;  %v846_v43 = vrot.slane %v844_v55, 3  ;;  %v1621_v3 = vshll.u32 %v12478_v24, 16  ;;  %v1624_v61 = vshrl.u32 %v12478_v24, 16 }
 0x39f   : > { %2523 = vst [vmem:[#allocation1 + $0x1] ss:$9 sm:$0xff] %v8806_v26 }
 0x3a0   : > { %2525 = vst [vmem:[#allocation1 + $0x2] ss:$9 sm:$0xff] %v8812_v10  ;;  %v1629_v6 = vshll.u32 %v846_v43, 16  ;;  %v8856_v5 = vsel %vm8157_vm6, %v1616_v57, %v1621_v3  ;;  %v12485_v43 = vld [vmem:[#allocation4_spill] sm:$0xff]  ;;  %v12486_v57 = vld [vmem:[#allocation5_spill] sm:$0xff]  ;;  %v12487_v3 = vld [vmem:[#allocation6_spill] sm:$0xff] }
 0x3a1   : > { %2527 = vst [vmem:[#allocation1 + $0x3] ss:$9 sm:$0xff] %v8820_v7 }
 0x3a2   : > { %12477 = vst [vmem:[#allocation460_spill] sm:$0xff] %v8845_v63  ;;  %v8860_v55 = vsel %vm8157_vm6, %v1624_v61, %v1629_v6  ;;  %v12488_v61 = vld [vmem:[#allocation7_spill] sm:$0xff]  ;;  %v12489_v6 = vld [vmem:[#allocation8_spill] sm:$0xff] }
 0x3a3   : > { %2529 = vst [vmem:[#allocation1 + $0x4] ss:$9 sm:$0xff] %v8827_v59 }
 0x3a4   : > { %2531 = vst [vmem:[#allocation1 + $0x5] ss:$9 sm:$0xff] %v8835_v28 }
 0x3a5   : > { %2533 = vst [vmem:[#allocation1 + $0x6] ss:$9 sm:$0xff] %v8840_v32  ;;  %v12484_v32 = vld [vmem:[#allocation3_spill] sm:$0xff] }
 0x3a6   : > { %2535 = vst [vmem:[#allocation1 + $0x7] ss:$9 sm:$0xff] %v8845_v63  ;;  %v12483_v63 = vld [vmem:[#allocation2_spill] sm:$0xff] }
 0x3a7   : > { %12479 = vst [vmem:[#allocation461_spill] sm:$0xff] %v8856_v5 }
 0x3a8   : > { %12480 = vst [vmem:[#allocation462_spill] sm:$0xff] %v8860_v55 }
 0x3ad   : > { %v8862_v18 = vld [vmem:[#allocation1] sm:$0xff] }
 0x3ae   : > { %12481 = vst [vmem:[#allocation463_spill] sm:$0xff] %v8862_v18  ;;  %v12490_v18 = vld [vmem:[#allocation9_spill] sm:$0xff] }
 0x3af   : > { %2539 = vst [vmem:[#allocation1] ss:$9 sm:$0xff] %v8856_v5 }
 0x3b0   : > { %2541 = vst [vmem:[#allocation1 + $0x1] ss:$9 sm:$0xff] %v8860_v55  ;;  %v12491_v55 = vld [vmem:[#allocation10_spill] sm:$0xff] }
 0x3b7   : > { %v8866_v48 = vld [vmem:[#allocation1] sm:$0xff] }
 0x3b8   : > { %12482 = vst [vmem:[#allocation464_spill] sm:$0xff] %v8866_v48  ;;  %v12499_v48 = vld [vmem:[#allocation18_spill] sm:$0xff] }
 0x3b9   : > { %2570 = vst [vmem:[#allocation1] ss:$9 sm:$0xff] %v12483_v63  ;;  %v12492_v63 = vld [vmem:[#allocation11_spill] sm:$0xff] }
 0x3ba   : > { %2572 = vst [vmem:[#allocation1 + $0x1] ss:$9 sm:$0xff] %v12484_v32  ;;  %v12493_v32 = vld [vmem:[#allocation12_spill] sm:$0xff] }
 0x3bb   : > { %2574 = vst [vmem:[#allocation1 + $0x2] ss:$9 sm:$0xff] %v12485_v43  ;;  %v12494_v43 = vld [vmem:[#allocation13_spill] sm:$0xff] }
 0x3bc   : > { %2576 = vst [vmem:[#allocation1 + $0x3] ss:$9 sm:$0xff] %v12486_v57  ;;  %v12495_v57 = vld [vmem:[#allocation14_spill] sm:$0xff] }
 0x3bd   : > { %2578 = vst [vmem:[#allocation1 + $0x4] ss:$9 sm:$0xff] %v12487_v3  ;;  %v12496_v3 = vld [vmem:[#allocation15_spill] sm:$0xff] }
 0x3be   : > { %2580 = vst [vmem:[#allocation1 + $0x5] ss:$9 sm:$0xff] %v12488_v61  ;;  %v12497_v61 = vld [vmem:[#allocation16_spill] sm:$0xff] }
 0x3bf   : > { %2582 = vst [vmem:[#allocation1 + $0x6] ss:$9 sm:$0xff] %v12489_v6  ;;  %v12498_v6 = vld [vmem:[#allocation17_spill] sm:$0xff] }
 0x3c0   : > { %2584 = vst [vmem:[#allocation1 + $0x7] ss:$9 sm:$0xff] %v12490_v18 }
 0x3c7   : > { %v2585_v5 = vld [vmem:[#allocation1] sm:$0xff] }
 0x3c8   : > { %2587 = vst [vmem:[#allocation1] ss:$9 sm:$0xff] %v12491_v55  ;;  %2701 = vrot.lane.b32.xlu0 %v2585_v5, %s6667_s28  ;;  %v12500_v5 = vld [vmem:[#allocation19_spill] sm:$0xff]  ;;  %v12501_v55 = vld [vmem:[#allocation20_spill] sm:$0xff] }
 0x3c9   : > { %2588 = vst [vmem:[#allocation1 + $0x1] ss:$9 sm:$0xff] %v12492_v63  ;;  %v12502_v63 = vld [vmem:[#allocation21_spill] sm:$0xff] }
 0x3ca   : > { %2589 = vst [vmem:[#allocation1 + $0x2] ss:$9 sm:$0xff] %v12493_v32  ;;  %v12503_v32 = vld [vmem:[#allocation22_spill] sm:$0xff] }
 0x3cb   : > { %2590 = vst [vmem:[#allocation1 + $0x3] ss:$9 sm:$0xff] %v12494_v43  ;;  %v12504_v43 = vld [vmem:[#allocation23_spill] sm:$0xff] }
 0x3cc   : > { %2591 = vst [vmem:[#allocation1 + $0x4] ss:$9 sm:$0xff] %v12495_v57  ;;  %v12505_v57 = vld [vmem:[#allocation24_spill] sm:$0xff] }
 0x3cd   : > { %2592 = vst [vmem:[#allocation1 + $0x5] ss:$9 sm:$0xff] %v12496_v3  ;;  %v12506_v3 = vld [vmem:[#allocation26_spill] sm:$0xff] }
 0x3ce   : > { %2593 = vst [vmem:[#allocation1 + $0x6] ss:$9 sm:$0xff] %v12497_v61 }
 0x3cf   : > { %2594 = vst [vmem:[#allocation1 + $0x7] ss:$9 sm:$0xff] %v12498_v6  ;;  %v12508_v6 = vld [vmem:[#allocation28_spill] sm:$0xff] }
 0x3d6   : > { %v2595_v18 = vld [vmem:[#allocation1] sm:$0xff] }
 0x3d7   : > { %2597 = vst [vmem:[#allocation1] ss:$9 sm:$0xff] %v12499_v48  ;;  %2703 = vrot.lane.b32.xlu0 %v2595_v18, %s6667_s28  ;;  %v12507_v48 = vld [vmem:[#allocation27_spill] sm:$0xff]  ;;  %v12509_v18 = vld [vmem:[#allocation29_spill] sm:$0xff] }
 0x3d8   : > { %2598 = vst [vmem:[#allocation1 + $0x1] ss:$9 sm:$0xff] %v12500_v5  ;;  %v12510_v5 = vld [vmem:[#allocation30_spill] sm:$0xff] }
 0x3d9   : > { %2599 = vst [vmem:[#allocation1 + $0x2] ss:$9 sm:$0xff] %v12501_v55  ;;  %v12511_v55 = vld [vmem:[#allocation31_spill] sm:$0xff] }
 0x3da   : > { %2600 = vst [vmem:[#allocation1 + $0x3] ss:$9 sm:$0xff] %v12502_v63  ;;  %v12512_v63 = vld [vmem:[#allocation32_spill] sm:$0xff] }
 0x3db   : > { %2601 = vst [vmem:[#allocation1 + $0x4] ss:$9 sm:$0xff] %v12503_v32  ;;  %v12513_v32 = vld [vmem:[#allocation34_spill] sm:$0xff] }
 0x3dc   : > { %2602 = vst [vmem:[#allocation1 + $0x5] ss:$9 sm:$0xff] %v12504_v43  ;;  %v12514_v43 = vld [vmem:[#allocation35_spill] sm:$0xff] }
 0x3dd   : > { %2603 = vst [vmem:[#allocation1 + $0x6] ss:$9 sm:$0xff] %v12505_v57 }
 0x3de   : > { %2604 = vst [vmem:[#allocation1 + $0x7] ss:$9 sm:$0xff] %v12506_v3  ;;  %v12515_v3 = vld [vmem:[#allocation36_spill] sm:$0xff] }
 0x3e5   : > { %v2605_v61 = vld [vmem:[#allocation1] sm:$0xff] }
 0x3e6   : > { %2705 = vrot.lane.b32.xlu1 %v2605_v61, %s6667_s28  ;;  %2607 = vst [vmem:[#allocation1] ss:$9 sm:$0xff] %v12507_v48  ;;  %v12516_v61 = vld [vmem:[#allocation37_spill] sm:$0xff]  ;;  %v12517_v48 = vld [vmem:[#allocation38_spill] sm:$0xff] }
 0x3e7   : > { %2608 = vst [vmem:[#allocation1 + $0x1] ss:$9 sm:$0xff] %v12508_v6  ;;  %v12518_v6 = vld [vmem:[#allocation39_spill] sm:$0xff] }
 0x3e8   : > { %2609 = vst [vmem:[#allocation1 + $0x2] ss:$9 sm:$0xff] %v12509_v18  ;;  %v12519_v18 = vld [vmem:[#allocation40_spill] sm:$0xff] }
 0x3e9   : > { %2610 = vst [vmem:[#allocation1 + $0x3] ss:$9 sm:$0xff] %v12510_v5  ;;  %v12520_v5 = vld [vmem:[#allocation41_spill] sm:$0xff] }
 0x3ea   : > { %2611 = vst [vmem:[#allocation1 + $0x4] ss:$9 sm:$0xff] %v12511_v55  ;;  %v12521_v55 = vld [vmem:[#allocation43_spill] sm:$0xff] }
 0x3eb   : > { %2612 = vst [vmem:[#allocation1 + $0x5] ss:$9 sm:$0xff] %v12512_v63  ;;  %v12522_v63 = vld [vmem:[#allocation44_spill] sm:$0xff] }
 0x3ec   : > { %2613 = vst [vmem:[#allocation1 + $0x6] ss:$9 sm:$0xff] %v12513_v32 }
 0x3ed   : > { %2614 = vst [vmem:[#allocation1 + $0x7] ss:$9 sm:$0xff] %v12514_v43  ;;  %v12523_v43 = vld [vmem:[#allocation45_spill] sm:$0xff] }
 0x3f4   : > { %v2615_v57 = vld [vmem:[#allocation1] sm:$0xff] }
 0x3f5   : > { %2617 = vst [vmem:[#allocation1] ss:$9 sm:$0xff] %v12515_v3  ;;  %2707 = vrot.lane.b32.xlu2 %v2615_v57, %s6667_s28  ;;  %v12524_v57 = vld [vmem:[#allocation46_spill] sm:$0xff]  ;;  %v12525_v3 = vld [vmem:[#allocation47_spill] sm:$0xff] }
 0x3f6   : > { %2618 = vst [vmem:[#allocation1 + $0x1] ss:$9 sm:$0xff] %v12516_v61  ;;  %v12526_v61 = vld [vmem:[#allocation48_spill] sm:$0xff] }
 0x3f7   : > { %2619 = vst [vmem:[#allocation1 + $0x2] ss:$9 sm:$0xff] %v12517_v48  ;;  %v12527_v48 = vld [vmem:[#allocation49_spill] sm:$0xff] }
 0x3f8   : > { %2620 = vst [vmem:[#allocation1 + $0x3] ss:$9 sm:$0xff] %v12518_v6  ;;  %v12528_v6 = vld [vmem:[#allocation51_spill] sm:$0xff] }
 0x3f9   : > { %2621 = vst [vmem:[#allocation1 + $0x4] ss:$9 sm:$0xff] %v12519_v18  ;;  %v12529_v18 = vld [vmem:[#allocation52_spill] sm:$0xff] }
 0x3fa   : > { %2622 = vst [vmem:[#allocation1 + $0x5] ss:$9 sm:$0xff] %v12520_v5  ;;  %v12530_v5 = vld [vmem:[#allocation53_spill] sm:$0xff] }
 0x3fb   : > { %2623 = vst [vmem:[#allocation1 + $0x6] ss:$9 sm:$0xff] %v12521_v55 }
 0x3fc   : > { %2624 = vst [vmem:[#allocation1 + $0x7] ss:$9 sm:$0xff] %v12522_v63  ;;  %v12531_v63 = vld [vmem:[#allocation54_spill] sm:$0xff] }
 0x403   : > { %v2625_v32 = vld [vmem:[#allocation1] sm:$0xff] }
 0x404   : > { %2627 = vst [vmem:[#allocation1] ss:$9 sm:$0xff] %v12523_v43  ;;  %2709 = vrot.lane.b32.xlu0 %v2625_v32, %s6667_s28  ;;  %v12532_v32 = vld [vmem:[#allocation55_spill] sm:$0xff]  ;;  %v12533_v43 = vld [vmem:[#allocation56_spill] sm:$0xff] }
 0x405   : > { %2628 = vst [vmem:[#allocation1 + $0x1] ss:$9 sm:$0xff] %v12524_v57  ;;  %v12534_v57 = vld [vmem:[#allocation57_spill] sm:$0xff] }
 0x406   : > { %2629 = vst [vmem:[#allocation1 + $0x2] ss:$9 sm:$0xff] %v12525_v3  ;;  %v12535_v3 = vld [vmem:[#allocation58_spill] sm:$0xff] }
 0x407   : > { %2630 = vst [vmem:[#allocation1 + $0x3] ss:$9 sm:$0xff] %v12526_v61  ;;  %v12536_v61 = vld [vmem:[#allocation59_spill] sm:$0xff] }
 0x408   : > { %2631 = vst [vmem:[#allocation1 + $0x4] ss:$9 sm:$0xff] %v12527_v48  ;;  %v12537_v48 = vld [vmem:[#allocation60_spill] sm:$0xff] }
 0x409   : > { %2632 = vst [vmem:[#allocation1 + $0x5] ss:$9 sm:$0xff] %v12528_v6  ;;  %v12538_v6 = vld [vmem:[#allocation61_spill] sm:$0xff] }
 0x40a   : > { %2633 = vst [vmem:[#allocation1 + $0x6] ss:$9 sm:$0xff] %v12529_v18 }
 0x40b   : > { %2634 = vst [vmem:[#allocation1 + $0x7] ss:$9 sm:$0xff] %v12530_v5  ;;  %v12539_v5 = vld [vmem:[#allocation62_spill] sm:$0xff] }
 0x412   : > { %v2635_v55 = vld [vmem:[#allocation1] sm:$0xff] }
 0x413   : > { %2637 = vst [vmem:[#allocation1] ss:$9 sm:$0xff] %v12531_v63  ;;  %2711 = vrot.lane.b32.xlu0 %v2635_v55, %s6667_s28  ;;  %v12540_v55 = vld [vmem:[#allocation63_spill] sm:$0xff]  ;;  %v12541_v63 = vld [vmem:[#allocation64_spill] sm:$0xff] }
 0x414   : > { %2638 = vst [vmem:[#allocation1 + $0x1] ss:$9 sm:$0xff] %v12532_v32  ;;  %v12542_v32 = vld [vmem:[#allocation65_spill] sm:$0xff] }
 0x415   : > { %2639 = vst [vmem:[#allocation1 + $0x2] ss:$9 sm:$0xff] %v12533_v43  ;;  %v12543_v43 = vld [vmem:[#allocation66_spill] sm:$0xff] }
 0x416   : > { %2640 = vst [vmem:[#allocation1 + $0x3] ss:$9 sm:$0xff] %v12534_v57  ;;  %v12544_v57 = vld [vmem:[#allocation67_spill] sm:$0xff] }
 0x417   : > { %2641 = vst [vmem:[#allocation1 + $0x4] ss:$9 sm:$0xff] %v12535_v3  ;;  %v12545_v3 = vld [vmem:[#allocation68_spill] sm:$0xff] }
 0x418   : > { %2642 = vst [vmem:[#allocation1 + $0x5] ss:$9 sm:$0xff] %v12536_v61  ;;  %v12546_v61 = vld [vmem:[#allocation69_spill] sm:$0xff] }
 0x419   : > { %2643 = vst [vmem:[#allocation1 + $0x6] ss:$9 sm:$0xff] %v12537_v48 }
 0x41a   : > { %2644 = vst [vmem:[#allocation1 + $0x7] ss:$9 sm:$0xff] %v12538_v6  ;;  %v12547_v6 = vld [vmem:[#allocation70_spill] sm:$0xff] }
 0x421   : > { %v2645_v18 = vld [vmem:[#allocation1] sm:$0xff] }
 0x422   : > { %2647 = vst [vmem:[#allocation1] ss:$9 sm:$0xff] %v12539_v5  ;;  %2713 = vrot.lane.b32.xlu2 %v2645_v18, %s6667_s28  ;;  %v12548_v18 = vld [vmem:[#allocation71_spill] sm:$0xff]  ;;  %v12549_v5 = vld [vmem:[#allocation73_spill] sm:$0xff] }
 0x423   : > { %2648 = vst [vmem:[#allocation1 + $0x1] ss:$9 sm:$0xff] %v12540_v55  ;;  %v12550_v55 = vld [vmem:[#allocation74_spill] sm:$0xff] }
 0x424   : > { %2649 = vst [vmem:[#allocation1 + $0x2] ss:$9 sm:$0xff] %v12541_v63  ;;  %v12551_v63 = vld [vmem:[#allocation75_spill] sm:$0xff] }
 0x425   : > { %2650 = vst [vmem:[#allocation1 + $0x3] ss:$9 sm:$0xff] %v12542_v32  ;;  %v12552_v32 = vld [vmem:[#allocation76_spill] sm:$0xff] }
 0x426   : > { %2651 = vst [vmem:[#allocation1 + $0x4] ss:$9 sm:$0xff] %v12543_v43  ;;  %v12553_v43 = vld [vmem:[#allocation77_spill] sm:$0xff] }
 0x427   : > { %2652 = vst [vmem:[#allocation1 + $0x5] ss:$9 sm:$0xff] %v12544_v57  ;;  %v12554_v57 = vld [vmem:[#allocation78_spill] sm:$0xff] }
 0x428   : > { %2653 = vst [vmem:[#allocation1 + $0x6] ss:$9 sm:$0xff] %v12545_v3 }
 0x429   : > { %2654 = vst [vmem:[#allocation1 + $0x7] ss:$9 sm:$0xff] %v12546_v61  ;;  %v12555_v61 = vld [vmem:[#allocation79_spill] sm:$0xff] }
 0x430   : > { %v2655_v48 = vld [vmem:[#allocation1] sm:$0xff] }
 0x431   : > { %2657 = vst [vmem:[#allocation1] ss:$9 sm:$0xff] %v12547_v6  ;;  %2715 = vrot.lane.b32.xlu0 %v2655_v48, %s6667_s28  ;;  %v12556_v48 = vld [vmem:[#allocation81_spill] sm:$0xff]  ;;  %v12557_v6 = vld [vmem:[#allocation82_spill] sm:$0xff] }
 0x432   : > { %2658 = vst [vmem:[#allocation1 + $0x1] ss:$9 sm:$0xff] %v12548_v18  ;;  %v12558_v18 = vld [vmem:[#allocation83_spill] sm:$0xff] }
 0x433   : > { %2659 = vst [vmem:[#allocation1 + $0x2] ss:$9 sm:$0xff] %v12549_v5  ;;  %v12559_v5 = vld [vmem:[#allocation84_spill] sm:$0xff] }
 0x434   : > { %2660 = vst [vmem:[#allocation1 + $0x3] ss:$9 sm:$0xff] %v12550_v55  ;;  %v12560_v55 = vld [vmem:[#allocation85_spill] sm:$0xff] }
 0x435   : > { %2661 = vst [vmem:[#allocation1 + $0x4] ss:$9 sm:$0xff] %v12551_v63  ;;  %v12561_v63 = vld [vmem:[#allocation86_spill] sm:$0xff] }
 0x436   : > { %2662 = vst [vmem:[#allocation1 + $0x5] ss:$9 sm:$0xff] %v12552_v32  ;;  %v12562_v32 = vld [vmem:[#allocation87_spill] sm:$0xff] }
 0x437   : > { %2663 = vst [vmem:[#allocation1 + $0x6] ss:$9 sm:$0xff] %v12553_v43 }
 0x438   : > { %2664 = vst [vmem:[#allocation1 + $0x7] ss:$9 sm:$0xff] %v12554_v57  ;;  %v12563_v57 = vld [vmem:[#allocation89_spill] sm:$0xff] }
 0x43f   : > { %v2665_v3 = vld [vmem:[#allocation1] sm:$0xff] }
 0x440   : > { %2717 = vrot.lane.b32.xlu1 %v2665_v3, %s6667_s28  ;;  %2667 = vst [vmem:[#allocation1] ss:$9 sm:$0xff] %v12555_v61  ;;  %v12564_v3 = vld [vmem:[#allocation90_spill] sm:$0xff]  ;;  %v12565_v61 = vld [vmem:[#allocation91_spill] sm:$0xff] }
 0x441   : > { %2668 = vst [vmem:[#allocation1 + $0x1] ss:$9 sm:$0xff] %v12556_v48  ;;  %v12566_v48 = vld [vmem:[#allocation92_spill] sm:$0xff] }
 0x442   : > { %2669 = vst [vmem:[#allocation1 + $0x2] ss:$9 sm:$0xff] %v12557_v6  ;;  %v12567_v6 = vld [vmem:[#allocation93_spill] sm:$0xff] }
 0x443   : > { %2670 = vst [vmem:[#allocation1 + $0x3] ss:$9 sm:$0xff] %v12558_v18  ;;  %v12568_v18 = vld [vmem:[#allocation94_spill] sm:$0xff] }
 0x444   : > { %2671 = vst [vmem:[#allocation1 + $0x4] ss:$9 sm:$0xff] %v12559_v5  ;;  %v12569_v5 = vld [vmem:[#allocation95_spill] sm:$0xff] }
 0x445   : > { %2672 = vst [vmem:[#allocation1 + $0x5] ss:$9 sm:$0xff] %v12560_v55  ;;  %v12570_v55 = vld [vmem:[#allocation97_spill] sm:$0xff] }
 0x446   : > { %2673 = vst [vmem:[#allocation1 + $0x6] ss:$9 sm:$0xff] %v12561_v63 }
 0x447   : > { %2674 = vst [vmem:[#allocation1 + $0x7] ss:$9 sm:$0xff] %v12562_v32  ;;  %v12572_v32 = vld [vmem:[#allocation98_spill] sm:$0xff] }
 0x44e   : > { %v2675_v43 = vld [vmem:[#allocation1] sm:$0xff] }
 0x44f   : > { %2719 = vrot.lane.b32.xlu1 %v2675_v43, %s6667_s28  ;;  %2677 = vst [vmem:[#allocation1] ss:$9 sm:$0xff] %v12563_v57  ;;  %v12573_v43 = vld [vmem:[#allocation99_spill] sm:$0xff]  ;;  %v12574_v57 = vld [vmem:[#allocation100_spill] sm:$0xff] }
 0x450   : > { %2678 = vst [vmem:[#allocation1 + $0x1] ss:$9 sm:$0xff] %v12564_v3  ;;  %v12575_v3 = vld [vmem:[#allocation101_spill] sm:$0xff] }
 0x451   : > { %2679 = vst [vmem:[#allocation1 + $0x2] ss:$9 sm:$0xff] %v12565_v61  ;;  %v12576_v61 = vld [vmem:[#allocation102_spill] sm:$0xff] }
 0x452   : > { %2680 = vst [vmem:[#allocation1 + $0x3] ss:$9 sm:$0xff] %v12566_v48  ;;  %v12577_v48 = vld [vmem:[#allocation103_spill] sm:$0xff] }
 0x453   : > { %2681 = vst [vmem:[#allocation1 + $0x4] ss:$9 sm:$0xff] %v12567_v6  ;;  %v12578_v6 = vld [vmem:[#allocation104_spill] sm:$0xff] }
 0x454   : > { %2682 = vst [vmem:[#allocation1 + $0x5] ss:$9 sm:$0xff] %v12568_v18  ;;  %v12579_v18 = vld [vmem:[#allocation105_spill] sm:$0xff] }
 0x455   : > { %2683 = vst [vmem:[#allocation1 + $0x6] ss:$9 sm:$0xff] %v12569_v5 }
 0x456   : > { %2684 = vst [vmem:[#allocation1 + $0x7] ss:$9 sm:$0xff] %v12570_v55  ;;  %v12581_v55 = vld [vmem:[#allocation106_spill] sm:$0xff] }
 0x45d   : > { %v8966_v63 = vld [vmem:[#allocation1] sm:$0xff] }
 0x45e   : > { %12571 = vst [vmem:[#allocation2_spill] sm:$0xff] %v8966_v63  ;;  %v12582_v63 = vld [vmem:[#allocation107_spill] sm:$0xff] }
 0x45f   : > { %2687 = vst [vmem:[#allocation1] ss:$9 sm:$0xff] %v12572_v32 }
 0x460   : > { %2688 = vst [vmem:[#allocation1 + $0x1] ss:$9 sm:$0xff] %v12573_v43 }
 0x461   : > { %2689 = vst [vmem:[#allocation1 + $0x2] ss:$9 sm:$0xff] %v12574_v57  ;;  %v12589_v57 = vld [vmem:[#allocation329_spill] sm:$0xff] }
 0x462   : > { %2690 = vst [vmem:[#allocation1 + $0x3] ss:$9 sm:$0xff] %v12575_v3  ;;  %v12590_v3 = vld [vmem:[#allocation331_spill] sm:$0xff] }
 0x463   : > { %2691 = vst [vmem:[#allocation1 + $0x4] ss:$9 sm:$0xff] %v12576_v61  ;;  %v12591_v61 = vld [vmem:[#allocation332_spill] sm:$0xff] }
 0x464   : > { %2692 = vst [vmem:[#allocation1 + $0x5] ss:$9 sm:$0xff] %v12577_v48  ;;  %v12592_v48 = vld [vmem:[#allocation333_spill] sm:$0xff] }
 0x465   : > { %2693 = vst [vmem:[#allocation1 + $0x6] ss:$9 sm:$0xff] %v12578_v6 }
 0x466   : > { %2694 = vst [vmem:[#allocation1 + $0x7] ss:$9 sm:$0xff] %v12579_v18  ;;  %v12593_v18 = vld [vmem:[#allocation335_spill] sm:$0xff] }
 0x46d   : > { %v8976_v5 = vld [vmem:[#allocation1] sm:$0xff] }
 0x46e   : > { %12580 = vst [vmem:[#allocation3_spill] sm:$0xff] %v8976_v5  ;;  %v12600_v5 = vld [vmem:[#allocation345_spill] sm:$0xff] }
 0x46f   : > { %2697 = vst [vmem:[#allocation1] ss:$9 sm:$0xff] %v12581_v55  ;;  %v12594_v55 = vld [vmem:[#allocation336_spill] sm:$0xff] }
 0x470   : > { %2698 = vst [vmem:[#allocation1 + $0x1] ss:$9 sm:$0xff] %v12582_v63  ;;  %v12588_v63 = vld [vmem:[#allocation328_spill] sm:$0xff] }
 0x477   : > { %v8980_v32 = vld [vmem:[#allocation1] sm:$0xff] }
 0x478   : > { %12583 = vst [vmem:[#allocation4_spill] sm:$0xff] %v8980_v32  ;;  %v12598_v32 = vld [vmem:[#allocation343_spill] sm:$0xff] }
 0x479   : > { %2727 = vst [vmem:[#allocation1] ss:$9 sm:$0xff] %v7585_v1  ;;  %v12585_v1 = vld [vmem:[#allocation323_spill] sm:$0xff] }
 0x47a   : > { %2729 = vst [vmem:[#allocation1 + $0x1] ss:$9 sm:$0xff] %v7601_v40 }
 0x47b   : > { %2731 = vst [vmem:[#allocation1 + $0x2] ss:$9 sm:$0xff] %v7603_v54  ;;  %v12584_v54 = vld [vmem:[#allocation322_spill] sm:$0xff] }
 0x47c   : > { %2733 = vst [vmem:[#allocation1 + $0x3] ss:$9 sm:$0xff] %v7608_v27 }
 0x47d   : > { %2735 = vst [vmem:[#allocation1 + $0x4] ss:$9 sm:$0xff] %v7618_v2  ;;  %v12586_v2 = vld [vmem:[#allocation324_spill] sm:$0xff] }
 0x47e   : > { %2737 = vst [vmem:[#allocation1 + $0x5] ss:$9 sm:$0xff] %v7620_v0 }
 0x47f   : > { %2739 = vst [vmem:[#allocation1 + $0x6] ss:$9 sm:$0xff] %v7625_v47  ;;  %v12587_v47 = vld [vmem:[#allocation327_spill] sm:$0xff] }
 0x480   : > { %2741 = vst [vmem:[#allocation1 + $0x7] ss:$9 sm:$0xff] %v7631_v51 }
 0x487   : > { %v2742_v43 = vld [vmem:[#allocation1] sm:$0xff] }
 0x488   : > { %2858 = vrot.lane.b32.xlu1 %v2742_v43, %s6668_s29  ;;  %2744 = vst [vmem:[#allocation1] ss:$9 sm:$0xff] %v7633_v25  ;;  %v12595_v43 = vld [vmem:[#allocation337_spill] sm:$0xff] }
 0x489   : > { %2745 = vst [vmem:[#allocation1 + $0x1] ss:$9 sm:$0xff] %v7648_v22 }
 0x48a   : > { %2746 = vst [vmem:[#allocation1 + $0x2] ss:$9 sm:$0xff] %v7653_v19 }
 0x48b   : > { %2747 = vst [vmem:[#allocation1 + $0x3] ss:$9 sm:$0xff] %v7661_v17 }
 0x48c   : > { %2748 = vst [vmem:[#allocation1 + $0x4] ss:$9 sm:$0xff] %v7663_v11 }
 0x48d   : > { %2749 = vst [vmem:[#allocation1 + $0x5] ss:$9 sm:$0xff] %v7669_v16 }
 0x48e   : > { %2750 = vst [vmem:[#allocation1 + $0x6] ss:$9 sm:$0xff] %v7677_v15 }
 0x48f   : > { %2751 = vst [vmem:[#allocation1 + $0x7] ss:$9 sm:$0xff] %v7679_v21 }
 0x496   : > { %v2752_v27 = vld [vmem:[#allocation1] sm:$0xff] }
 0x497   : > { %2860 = vrot.lane.b32.xlu1 %v2752_v27, %s6668_s29  ;;  %2754 = vst [vmem:[#allocation1] ss:$9 sm:$0xff] %v7682_v13  ;;  %v12596_v27 = vld [vmem:[#allocation338_spill] sm:$0xff] }
 0x498   : > { %2755 = vst [vmem:[#allocation1 + $0x1] ss:$9 sm:$0xff] %v7698_v12 }
 0x499   : > { %2756 = vst [vmem:[#allocation1 + $0x2] ss:$9 sm:$0xff] %v7706_v9 }
 0x49a   : > { %2757 = vst [vmem:[#allocation1 + $0x3] ss:$9 sm:$0xff] %v12330_v23 }
 0x49b   : > { %2758 = vst [vmem:[#allocation1 + $0x4] ss:$9 sm:$0xff] %v12331_v58 }
 0x49c   : > { %2759 = vst [vmem:[#allocation1 + $0x5] ss:$9 sm:$0xff] %v12333_v37 }
 0x49d   : > { %2760 = vst [vmem:[#allocation1 + $0x6] ss:$9 sm:$0xff] %v12334_v50 }
 0x49e   : > { %2761 = vst [vmem:[#allocation1 + $0x7] ss:$9 sm:$0xff] %v12336_v39 }
 0x4a5   : > { %v2762_v40 = vld [vmem:[#allocation1] sm:$0xff] }
 0x4a6   : > { %2764 = vst [vmem:[#allocation1] ss:$9 sm:$0xff] %v12338_v45  ;;  %2862 = vrot.lane.b32.xlu2 %v2762_v40, %s6668_s29  ;;  %v12597_v40 = vld [vmem:[#allocation340_spill] sm:$0xff] }
 0x4a7   : > { %2765 = vst [vmem:[#allocation1 + $0x1] ss:$9 sm:$0xff] %v7751_v20 }
 0x4a8   : > { %2766 = vst [vmem:[#allocation1 + $0x2] ss:$9 sm:$0xff] %v7753_v33 }
 0x4a9   : > { %2767 = vst [vmem:[#allocation1 + $0x3] ss:$9 sm:$0xff] %v12346_v42 }
 0x4aa   : > { %2768 = vst [vmem:[#allocation1 + $0x4] ss:$9 sm:$0xff] %v12347_v36 }
 0x4ab   : > { %2769 = vst [vmem:[#allocation1 + $0x5] ss:$9 sm:$0xff] %v12584_v54 }
 0x4ac   : > { %2770 = vst [vmem:[#allocation1 + $0x6] ss:$9 sm:$0xff] %v12585_v1 }
 0x4ad   : > { %2771 = vst [vmem:[#allocation1 + $0x7] ss:$9 sm:$0xff] %v12586_v2 }
 0x4b4   : > { %v2772_v0 = vld [vmem:[#allocation1] sm:$0xff] }
 0x4b5   : > { %2774 = vst [vmem:[#allocation1] ss:$9 sm:$0xff] %v12354_v46  ;;  %2864 = vrot.lane.b32.xlu0 %v2772_v0, %s6668_s29 }
 0x4b6   : > { %2775 = vst [vmem:[#allocation1 + $0x1] ss:$9 sm:$0xff] %v7801_v29 }
 0x4b7   : > { %2776 = vst [vmem:[#allocation1 + $0x2] ss:$9 sm:$0xff] %v12587_v47 }
 0x4b8   : > { %2777 = vst [vmem:[#allocation1 + $0x3] ss:$9 sm:$0xff] %v12588_v63 }
 0x4b9   : > { %2778 = vst [vmem:[#allocation1 + $0x4] ss:$9 sm:$0xff] %v12589_v57 }
 0x4ba   : > { %2779 = vst [vmem:[#allocation1 + $0x5] ss:$9 sm:$0xff] %v12590_v3 }
 0x4bb   : > { %2780 = vst [vmem:[#allocation1 + $0x6] ss:$9 sm:$0xff] %v12591_v61 }
 0x4bc   : > { %2781 = vst [vmem:[#allocation1 + $0x7] ss:$9 sm:$0xff] %v12592_v48 }
 0x4c3   : > { %v2782_v6 = vld [vmem:[#allocation1] sm:$0xff] }
 0x4c4   : > { %2866 = vrot.lane.b32.xlu1 %v2782_v6, %s6668_s29  ;;  %2784 = vst [vmem:[#allocation1] ss:$9 sm:$0xff] %v12370_v35  ;;  %v12599_v6 = vld [vmem:[#allocation344_spill] sm:$0xff] }
 0x4c5   : > { %2785 = vst [vmem:[#allocation1 + $0x1] ss:$9 sm:$0xff] %v12593_v18 }
 0x4c6   : > { %2786 = vst [vmem:[#allocation1 + $0x2] ss:$9 sm:$0xff] %v12594_v55  ;;  %v12601_v55 = vld [vmem:[#allocation346_spill] sm:$0xff] }
 0x4c7   : > { %2787 = vst [vmem:[#allocation1 + $0x3] ss:$9 sm:$0xff] %v12595_v43  ;;  %v12602_v43 = vld [vmem:[#allocation347_spill] sm:$0xff] }
 0x4c8   : > { %2788 = vst [vmem:[#allocation1 + $0x4] ss:$9 sm:$0xff] %v12596_v27  ;;  %v12603_v27 = vld [vmem:[#allocation349_spill] sm:$0xff] }
 0x4c9   : > { %2789 = vst [vmem:[#allocation1 + $0x5] ss:$9 sm:$0xff] %v12597_v40 }
 0x4ca   : > { %2790 = vst [vmem:[#allocation1 + $0x6] ss:$9 sm:$0xff] %v12384_v30 }
 0x4cb   : > { %2791 = vst [vmem:[#allocation1 + $0x7] ss:$9 sm:$0xff] %v12386_v44 }
 0x4d2   : > { %v2792_v0 = vld [vmem:[#allocation1] sm:$0xff] }
 0x4d3   : > { %2794 = vst [vmem:[#allocation1] ss:$9 sm:$0xff] %v12598_v32  ;;  %2868 = vrot.lane.b32.xlu0 %v2792_v0, %s6668_s29  ;;  %v12604_v0 = vld [vmem:[#allocation354_spill] sm:$0xff]  ;;  %v12642_v32 = vld [vmem:[#allocation405_spill] sm:$0xff] }
 0x4d4   : > { %2795 = vst [vmem:[#allocation1 + $0x1] ss:$9 sm:$0xff] %v12599_v6 }
 0x4d5   : > { %2796 = vst [vmem:[#allocation1 + $0x2] ss:$9 sm:$0xff] %v12600_v5  ;;  %v12605_v5 = vld [vmem:[#allocation355_spill] sm:$0xff] }
 0x4d6   : > { %2797 = vst [vmem:[#allocation1 + $0x3] ss:$9 sm:$0xff] %v12601_v55  ;;  %v12606_v55 = vld [vmem:[#allocation357_spill] sm:$0xff] }
 0x4d7   : > { %2798 = vst [vmem:[#allocation1 + $0x4] ss:$9 sm:$0xff] %v12602_v43  ;;  %v12607_v43 = vld [vmem:[#allocation358_spill] sm:$0xff] }
 0x4d8   : > { %2799 = vst [vmem:[#allocation1 + $0x5] ss:$9 sm:$0xff] %v12603_v27  ;;  %v12640_v27 = vld [vmem:[#allocation403_spill] sm:$0xff] }
 0x4d9   : > { %2800 = vst [vmem:[#allocation1 + $0x6] ss:$9 sm:$0xff] %v12399_v8  ;;  %v12637_v8 = vld [vmem:[#allocation400_spill] sm:$0xff] }
 0x4da   : > { %2801 = vst [vmem:[#allocation1 + $0x7] ss:$9 sm:$0xff] %v12401_v14 }
 0x4e1   : > { %v2802_v44 = vld [vmem:[#allocation1] sm:$0xff] }
 0x4e2   : > { %2870 = vrot.lane.b32.xlu1 %v2802_v44, %s6668_s29  ;;  %2804 = vst [vmem:[#allocation1] ss:$9 sm:$0xff] %v12404_v41  ;;  %v12608_v44 = vld [vmem:[#allocation361_spill] sm:$0xff]  ;;  %v12609_v41 = vld [vmem:[#allocation363_spill] sm:$0xff] }
 0x4e3   : > { %2805 = vst [vmem:[#allocation1 + $0x1] ss:$9 sm:$0xff] %v7951_v53  ;;  %v12610_v53 = vld [vmem:[#allocation364_spill] sm:$0xff] }
 0x4e4   : > { %2806 = vst [vmem:[#allocation1 + $0x2] ss:$9 sm:$0xff] %v12604_v0  ;;  %v12611_v0 = vld [vmem:[#allocation365_spill] sm:$0xff] }
 0x4e5   : > { %2807 = vst [vmem:[#allocation1 + $0x3] ss:$9 sm:$0xff] %v12605_v5  ;;  %v12612_v5 = vld [vmem:[#allocation366_spill] sm:$0xff] }
 0x4e6   : > { %2808 = vst [vmem:[#allocation1 + $0x4] ss:$9 sm:$0xff] %v12606_v55  ;;  %v12636_v55 = vld [vmem:[#allocation399_spill] sm:$0xff] }
 0x4e7   : > { %2809 = vst [vmem:[#allocation1 + $0x5] ss:$9 sm:$0xff] %v12607_v43  ;;  %v12614_v43 = vld [vmem:[#allocation371_spill] sm:$0xff] }
 0x4e8   : > { %2810 = vst [vmem:[#allocation1 + $0x6] ss:$9 sm:$0xff] %v12414_v34  ;;  %v12613_v34 = vld [vmem:[#allocation370_spill] sm:$0xff] }
 0x4e9   : > { %2811 = vst [vmem:[#allocation1 + $0x7] ss:$9 sm:$0xff] %v12417_v38 }
 0x4f0   : > { %v2812_v14 = vld [vmem:[#allocation1] sm:$0xff] }
 0x4f1   : > { %2872 = vrot.lane.b32.xlu2 %v2812_v14, %s6668_s29  ;;  %2814 = vst [vmem:[#allocation1] ss:$9 sm:$0xff] %v12608_v44  ;;  %v12615_v14 = vld [vmem:[#allocation373_spill] sm:$0xff]  ;;  %v12635_v44 = vld [vmem:[#allocation398_spill] sm:$0xff] }
 0x4f2   : > { %2815 = vst [vmem:[#allocation1 + $0x1] ss:$9 sm:$0xff] %v12609_v41  ;;  %v12616_v41 = vld [vmem:[#allocation374_spill] sm:$0xff] }
 0x4f3   : > { %2816 = vst [vmem:[#allocation1 + $0x2] ss:$9 sm:$0xff] %v12610_v53  ;;  %v12617_v53 = vld [vmem:[#allocation375_spill] sm:$0xff] }
 0x4f4   : > { %2817 = vst [vmem:[#allocation1 + $0x3] ss:$9 sm:$0xff] %v12611_v0  ;;  %v12618_v0 = vld [vmem:[#allocation376_spill] sm:$0xff] }
 0x4f5   : > { %2818 = vst [vmem:[#allocation1 + $0x4] ss:$9 sm:$0xff] %v12612_v5  ;;  %v12619_v5 = vld [vmem:[#allocation378_spill] sm:$0xff] }
 0x4f6   : > { %2819 = vst [vmem:[#allocation1 + $0x5] ss:$9 sm:$0xff] %v12428_v56 }
 0x4f7   : > { %2820 = vst [vmem:[#allocation1 + $0x6] ss:$9 sm:$0xff] %v12431_v62  ;;  %v12620_v62 = vld [vmem:[#allocation380_spill] sm:$0xff] }
 0x4f8   : > { %2821 = vst [vmem:[#allocation1 + $0x7] ss:$9 sm:$0xff] %v12613_v34 }
 0x4ff   : > { %v2822_v38 = vld [vmem:[#allocation1] sm:$0xff] }
 0x500   : > { %2824 = vst [vmem:[#allocation1] ss:$9 sm:$0xff] %v12614_v43  ;;  %2874 = vrot.lane.b32.xlu0 %v2822_v38, %s6668_s29  ;;  %v12621_v43 = vld [vmem:[#allocation381_spill] sm:$0xff]  ;;  %v12622_v38 = vld [vmem:[#allocation383_spill] sm:$0xff] }
 0x501   : > { %2825 = vst [vmem:[#allocation1 + $0x1] ss:$9 sm:$0xff] %v12615_v14  ;;  %v12623_v14 = vld [vmem:[#allocation384_spill] sm:$0xff] }
 0x502   : > { %2826 = vst [vmem:[#allocation1 + $0x2] ss:$9 sm:$0xff] %v12616_v41  ;;  %v12624_v41 = vld [vmem:[#allocation385_spill] sm:$0xff] }
 0x503   : > { %2827 = vst [vmem:[#allocation1 + $0x3] ss:$9 sm:$0xff] %v12617_v53  ;;  %v12625_v53 = vld [vmem:[#allocation388_spill] sm:$0xff] }
 0x504   : > { %2828 = vst [vmem:[#allocation1 + $0x4] ss:$9 sm:$0xff] %v12618_v0  ;;  %v12626_v0 = vld [vmem:[#allocation389_spill] sm:$0xff] }
 0x505   : > { %2829 = vst [vmem:[#allocation1 + $0x5] ss:$9 sm:$0xff] %v12619_v5  ;;  %v12627_v5 = vld [vmem:[#allocation390_spill] sm:$0xff] }
 0x506   : > { %2830 = vst [vmem:[#allocation1 + $0x6] ss:$9 sm:$0xff] %v12446_v4  ;;  %v12628_v4 = vld [vmem:[#allocation391_spill] sm:$0xff] }
 0x507   : > { %2831 = vst [vmem:[#allocation1 + $0x7] ss:$9 sm:$0xff] %v12620_v62  ;;  %v12629_v62 = vld [vmem:[#allocation191_spill] sm:$0xff] }
 0x508   : > { %v1767_v56 = vrot.slane %v12629_v62, 3 }
 0x50e   : > { %v2832_v34 = vld [vmem:[#allocation1] sm:$0xff] }
 0x50f   : > { %2876 = vrot.lane.b32.xlu1 %v2832_v34, %s6668_s29  ;;  %2834 = vst [vmem:[#allocation1] ss:$9 sm:$0xff] %v12621_v43  ;;  %v1772_v34 = vsel %vm511_vm1, %v12629_v62, %v1767_v56 }
 0x510   : > { %2835 = vst [vmem:[#allocation1 + $0x1] ss:$9 sm:$0xff] %v12622_v38  ;;  %v1775_v38 = vsel %vm515_vm2, %v12629_v62, %v1767_v56 }
 0x511   : > { %2836 = vst [vmem:[#allocation1 + $0x2] ss:$9 sm:$0xff] %v12623_v14  ;;  %v9100_v14 = vrot.slane %v1775_v38, 2 }
 0x512   : > { %2837 = vst [vmem:[#allocation1 + $0x3] ss:$9 sm:$0xff] %v12624_v41  ;;  %v1778_v41 = vsel %vm519_vm0, %v12629_v62, %v1767_v56 }
 0x513   : > { %2838 = vst [vmem:[#allocation1 + $0x4] ss:$9 sm:$0xff] %v12625_v53 }
 0x514   : > { %2839 = vst [vmem:[#allocation1 + $0x5] ss:$9 sm:$0xff] %v12626_v0  ;;  %v12631_v0 = vld [vmem:[#allocation196_spill] sm:$0xff] }
 0x515   : > { %2840 = vst [vmem:[#allocation1 + $0x6] ss:$9 sm:$0xff] %v12627_v5  ;;  %v9091_v53 = vrot.slane %v12631_v0, 3  ;;  %v9097_v5 = vrot.slane %v1772_v34, 1 }
 0x516   : > { %2841 = vst [vmem:[#allocation1 + $0x7] ss:$9 sm:$0xff] %v12628_v4  ;;  %v9095_v4 = vsel %vm11915_vm3, %v12629_v62, %v1767_v56 }
 0x517   : > { %v1787_v62 = vsel %vm515_vm2, %v12631_v0, %v9091_v53 }
 0x518   : > { %v9123_v38 = vrot.slane %v1787_v62, 2  ;;  %v12639_v62 = vld [vmem:[#allocation402_spill] sm:$0xff] }
 0x51d   : > { %v9085_v43 = vld [vmem:[#allocation1] sm:$0xff] }
 0x51e   : > { %12630 = vst [vmem:[#allocation5_spill] sm:$0xff] %v9085_v43  ;;  %v9103_v43 = vrot.slane %v1778_v41, 3  ;;  %v1784_v41 = vsel %vm511_vm1, %v12631_v0, %v9091_v53 }
 0x51f   : > { %2844 = vst [vmem:[#allocation1] ss:$9 sm:$0xff] %v12468_v49  ;;  %v9109_v49 = vsel %vm11915_vm3, %v12631_v0, %v9091_v53  ;;  %v9121_v56 = vrot.slane %v1784_v41, 1  ;;  %v12638_v41 = vld [vmem:[#allocation401_spill] sm:$0xff] }
 0x520   : > { %2845 = vst [vmem:[#allocation1 + $0x1] ss:$9 sm:$0xff] %v12471_v31  ;;  %v12634_v31 = vld [vmem:[#allocation397_spill] sm:$0xff] }
 0x521   : > { %2846 = vst [vmem:[#allocation1 + $0x2] ss:$9 sm:$0xff] %v12478_v24 }
 0x522   : > { %2847 = vst [vmem:[#allocation1 + $0x3] ss:$9 sm:$0xff] %v9095_v4 }
 0x523   : > { %2848 = vst [vmem:[#allocation1 + $0x4] ss:$9 sm:$0xff] %v9097_v5 }
 0x524   : > { %2849 = vst [vmem:[#allocation1 + $0x5] ss:$9 sm:$0xff] %v9100_v14 }
 0x525   : > { %2850 = vst [vmem:[#allocation1 + $0x6] ss:$9 sm:$0xff] %v9103_v43 }
 0x526   : > { %2851 = vst [vmem:[#allocation1 + $0x7] ss:$9 sm:$0xff] %v9109_v49 }
 0x52d   : > { %v9125_v34 = vld [vmem:[#allocation1] sm:$0xff] }
 0x52e   : > { %12632 = vst [vmem:[#allocation6_spill] sm:$0xff] %v9125_v34  ;;  %v12641_v34 = vld [vmem:[#allocation404_spill] sm:$0xff] }
 0x52f   : > { %2854 = vst [vmem:[#allocation1] ss:$9 sm:$0xff] %v9121_v56 }
 0x530   : > { %2855 = vst [vmem:[#allocation1 + $0x1] ss:$9 sm:$0xff] %v9123_v38 }
 0x537   : > { %v9129_v24 = vld [vmem:[#allocation1] sm:$0xff] }
 0x538   : > { %12633 = vst [vmem:[#allocation7_spill] sm:$0xff] %v9129_v24 }
 0x539   : > { %2884 = vst [vmem:[#allocation1] ss:$9 sm:$0xff] %v12634_v31  ;;  %v12643_v31 = vld [vmem:[#allocation406_spill] sm:$0xff] }
 0x53a   : > { %2886 = vst [vmem:[#allocation1 + $0x1] ss:$9 sm:$0xff] %v12635_v44  ;;  %v12644_v44 = vld [vmem:[#allocation407_spill] sm:$0xff] }
 0x53b   : > { %2888 = vst [vmem:[#allocation1 + $0x2] ss:$9 sm:$0xff] %v12636_v55  ;;  %v12645_v55 = vld [vmem:[#allocation408_spill] sm:$0xff] }
 0x53c   : > { %2890 = vst [vmem:[#allocation1 + $0x3] ss:$9 sm:$0xff] %v12637_v8  ;;  %v12646_v8 = vld [vmem:[#allocation409_spill] sm:$0xff] }
 0x53d   : > { %2892 = vst [vmem:[#allocation1 + $0x4] ss:$9 sm:$0xff] %v12638_v41  ;;  %v12647_v41 = vld [vmem:[#allocation410_spill] sm:$0xff] }
 0x53e   : > { %2894 = vst [vmem:[#allocation1 + $0x5] ss:$9 sm:$0xff] %v12639_v62  ;;  %v12648_v62 = vld [vmem:[#allocation411_spill] sm:$0xff] }
 0x53f   : > { %2896 = vst [vmem:[#allocation1 + $0x6] ss:$9 sm:$0xff] %v12640_v27  ;;  %v12649_v27 = vld [vmem:[#allocation412_spill] sm:$0xff] }
 0x540   : > { %2898 = vst [vmem:[#allocation1 + $0x7] ss:$9 sm:$0xff] %v12641_v34  ;;  %v12658_v34 = vld [vmem:[#allocation25_spill] sm:$0xff] }
 0x547   : > { %v2899_v6 = vld [vmem:[#allocation1] sm:$0xff] }
 0x548   : > { %2901 = vst [vmem:[#allocation1] ss:$9 sm:$0xff] %v12642_v32  ;;  %3022 = vrot.lane.b32.xlu1 %v2899_v6, %s6669_s30  ;;  %v12650_v32 = vld [vmem:[#allocation413_spill] sm:$0xff]  ;;  %v12651_v6 = vld [vmem:[#allocation310_spill] sm:$0xff] }
 0x549   : > { %2902 = vst [vmem:[#allocation1 + $0x1] ss:$9 sm:$0xff] %v12643_v31  ;;  %v12652_v31 = vld [vmem:[#allocation311_spill] sm:$0xff] }
 0x54a   : > { %2903 = vst [vmem:[#allocation1 + $0x2] ss:$9 sm:$0xff] %v12644_v44  ;;  %v12653_v44 = vld [vmem:[#allocation313_spill] sm:$0xff] }
 0x54b   : > { %2904 = vst [vmem:[#allocation1 + $0x3] ss:$9 sm:$0xff] %v12645_v55  ;;  %v12654_v55 = vld [vmem:[#allocation314_spill] sm:$0xff] }
 0x54c   : > { %2905 = vst [vmem:[#allocation1 + $0x4] ss:$9 sm:$0xff] %v12646_v8  ;;  %v12655_v8 = vld [vmem:[#allocation315_spill] sm:$0xff] }
 0x54d   : > { %2906 = vst [vmem:[#allocation1 + $0x5] ss:$9 sm:$0xff] %v12647_v41  ;;  %v12656_v41 = vld [vmem:[#allocation316_spill] sm:$0xff] }
 0x54e   : > { %2907 = vst [vmem:[#allocation1 + $0x6] ss:$9 sm:$0xff] %v12648_v62  ;;  %v12657_v62 = vld [vmem:[#allocation317_spill] sm:$0xff] }
 0x54f   : > { %2908 = vst [vmem:[#allocation1 + $0x7] ss:$9 sm:$0xff] %v12649_v27 }
 0x556   : > { %v2909_v24 = vld [vmem:[#allocation1] sm:$0xff] }
 0x557   : > { %3024 = vrot.lane.b32.xlu2 %v2909_v24, %s6669_s30  ;;  %2911 = vst [vmem:[#allocation1] ss:$9 sm:$0xff] %v12650_v32  ;;  %v12659_v24 = vld [vmem:[#allocation318_spill] sm:$0xff]  ;;  %v12666_v32 = vld [vmem:[#allocation416_spill] sm:$0xff] }
 0x558   : > { %2912 = vst [vmem:[#allocation1 + $0x1] ss:$9 sm:$0xff] %v12651_v6  ;;  %v12660_v6 = vld [vmem:[#allocation321_spill] sm:$0xff] }
 0x559   : > { %2913 = vst [vmem:[#allocation1 + $0x2] ss:$9 sm:$0xff] %v12652_v31  ;;  %v12661_v31 = vld [vmem:[#allocation414_spill] sm:$0xff] }
 0x55a   : > { %2914 = vst [vmem:[#allocation1 + $0x3] ss:$9 sm:$0xff] %v12653_v44  ;;  %v12662_v44 = vld [vmem:[#allocation325_spill] sm:$0xff] }
 0x55b   : > { %2915 = vst [vmem:[#allocation1 + $0x4] ss:$9 sm:$0xff] %v12654_v55  ;;  %v12663_v55 = vld [vmem:[#allocation415_spill] sm:$0xff] }
 0x55c   : > { %2916 = vst [vmem:[#allocation1 + $0x5] ss:$9 sm:$0xff] %v12655_v8  ;;  %v12664_v8 = vld [vmem:[#allocation320_spill] sm:$0xff] }
 0x55d   : > { %2917 = vst [vmem:[#allocation1 + $0x6] ss:$9 sm:$0xff] %v12656_v41  ;;  %v12665_v41 = vld [vmem:[#allocation33_spill] sm:$0xff] }
 0x55e   : > { %2918 = vst [vmem:[#allocation1 + $0x7] ss:$9 sm:$0xff] %v12657_v62 }
 0x565   : > { %v2919_v27 = vld [vmem:[#allocation1] sm:$0xff] }
 0x566   : > { %2921 = vst [vmem:[#allocation1] ss:$9 sm:$0xff] %v12658_v34  ;;  %3026 = vrot.lane.b32.xlu0 %v2919_v27, %s6669_s30  ;;  %v12667_v27 = vld [vmem:[#allocation417_spill] sm:$0xff]  ;;  %v12683_v34 = vld [vmem:[#allocation427_spill] sm:$0xff] }
 0x567   : > { %2922 = vst [vmem:[#allocation1 + $0x1] ss:$9 sm:$0xff] %v12659_v24  ;;  %v12668_v24 = vld [vmem:[#allocation418_spill] sm:$0xff] }
 0x568   : > { %2923 = vst [vmem:[#allocation1 + $0x2] ss:$9 sm:$0xff] %v12660_v6  ;;  %v12669_v6 = vld [vmem:[#allocation419_spill] sm:$0xff] }
 0x569   : > { %2924 = vst [vmem:[#allocation1 + $0x3] ss:$9 sm:$0xff] %v12661_v31  ;;  %v12670_v31 = vld [vmem:[#allocation334_spill] sm:$0xff] }
 0x56a   : > { %2925 = vst [vmem:[#allocation1 + $0x4] ss:$9 sm:$0xff] %v12662_v44  ;;  %v12671_v44 = vld [vmem:[#allocation326_spill] sm:$0xff] }
 0x56b   : > { %2926 = vst [vmem:[#allocation1 + $0x5] ss:$9 sm:$0xff] %v12663_v55  ;;  %v12672_v55 = vld [vmem:[#allocation42_spill] sm:$0xff] }
 0x56c   : > { %2927 = vst [vmem:[#allocation1 + $0x6] ss:$9 sm:$0xff] %v12664_v8  ;;  %v12673_v8 = vld [vmem:[#allocation420_spill] sm:$0xff] }
 0x56d   : > { %2928 = vst [vmem:[#allocation1 + $0x7] ss:$9 sm:$0xff] %v12665_v41 }
 0x574   : > { %v2929_v62 = vld [vmem:[#allocation1] sm:$0xff] }
 0x575   : > { %2931 = vst [vmem:[#allocation1] ss:$9 sm:$0xff] %v12666_v32  ;;  %3028 = vrot.lane.b32.xlu1 %v2929_v62, %s6669_s30  ;;  %v12674_v32 = vld [vmem:[#allocation421_spill] sm:$0xff]  ;;  %v12675_v62 = vld [vmem:[#allocation50_spill] sm:$0xff] }
 0x576   : > { %2932 = vst [vmem:[#allocation1 + $0x1] ss:$9 sm:$0xff] %v12667_v27  ;;  %v12676_v27 = vld [vmem:[#allocation341_spill] sm:$0xff] }
 0x577   : > { %2933 = vst [vmem:[#allocation1 + $0x2] ss:$9 sm:$0xff] %v12668_v24  ;;  %v12677_v24 = vld [vmem:[#allocation422_spill] sm:$0xff] }
 0x578   : > { %2934 = vst [vmem:[#allocation1 + $0x3] ss:$9 sm:$0xff] %v12669_v6  ;;  %v12678_v6 = vld [vmem:[#allocation423_spill] sm:$0xff] }
 0x579   : > { %2935 = vst [vmem:[#allocation1 + $0x4] ss:$9 sm:$0xff] %v12670_v31  ;;  %v12679_v31 = vld [vmem:[#allocation424_spill] sm:$0xff] }
 0x57a   : > { %2936 = vst [vmem:[#allocation1 + $0x5] ss:$9 sm:$0xff] %v12671_v44  ;;  %v12680_v44 = vld [vmem:[#allocation425_spill] sm:$0xff] }
 0x57b   : > { %2937 = vst [vmem:[#allocation1 + $0x6] ss:$9 sm:$0xff] %v12672_v55  ;;  %v12681_v55 = vld [vmem:[#allocation426_spill] sm:$0xff] }
 0x57c   : > { %2938 = vst [vmem:[#allocation1 + $0x7] ss:$9 sm:$0xff] %v12673_v8 }
 0x583   : > { %v2939_v41 = vld [vmem:[#allocation1] sm:$0xff] }
 0x584   : > { %3030 = vrot.lane.b32.xlu2 %v2939_v41, %s6669_s30  ;;  %2941 = vst [vmem:[#allocation1] ss:$9 sm:$0xff] %v12674_v32  ;;  %v12684_v41 = vld [vmem:[#allocation428_spill] sm:$0xff]  ;;  %v12685_v32 = vld [vmem:[#allocation429_spill] sm:$0xff] }
 0x585   : > { %2942 = vst [vmem:[#allocation1 + $0x1] ss:$9 sm:$0xff] %v12675_v62  ;;  %v12686_v62 = vld [vmem:[#allocation430_spill] sm:$0xff] }
 0x586   : > { %2943 = vst [vmem:[#allocation1 + $0x2] ss:$9 sm:$0xff] %v12676_v27  ;;  %v12687_v27 = vld [vmem:[#allocation431_spill] sm:$0xff] }
 0x587   : > { %2944 = vst [vmem:[#allocation1 + $0x3] ss:$9 sm:$0xff] %v12677_v24  ;;  %v12688_v24 = vld [vmem:[#allocation432_spill] sm:$0xff] }
 0x588   : > { %2945 = vst [vmem:[#allocation1 + $0x4] ss:$9 sm:$0xff] %v12678_v6  ;;  %v12689_v6 = vld [vmem:[#allocation433_spill] sm:$0xff] }
 0x589   : > { %2946 = vst [vmem:[#allocation1 + $0x5] ss:$9 sm:$0xff] %v12679_v31  ;;  %v12690_v31 = vld [vmem:[#allocation434_spill] sm:$0xff] }
 0x58a   : > { %2947 = vst [vmem:[#allocation1 + $0x6] ss:$9 sm:$0xff] %v12680_v44 }
 0x58b   : > { %2948 = vst [vmem:[#allocation1 + $0x7] ss:$9 sm:$0xff] %v12681_v55  ;;  %v12691_v55 = vld [vmem:[#allocation435_spill] sm:$0xff] }
 0x592   : > { %v9184_v8 = vld [vmem:[#allocation1] sm:$0xff] }
 0x593   : > { %12682 = vst [vmem:[#allocation8_spill] sm:$0xff] %v9184_v8  ;;  %v12692_v8 = vld [vmem:[#allocation436_spill] sm:$0xff] }
 0x594   : > { %2951 = vst [vmem:[#allocation1] ss:$9 sm:$0xff] %v12683_v34  ;;  %v12699_v34 = vld [vmem:[#allocation443_spill] sm:$0xff] }
 0x595   : > { %2952 = vst [vmem:[#allocation1 + $0x1] ss:$9 sm:$0xff] %v12684_v41  ;;  %v12693_v41 = vld [vmem:[#allocation437_spill] sm:$0xff] }
 0x596   : > { %2953 = vst [vmem:[#allocation1 + $0x2] ss:$9 sm:$0xff] %v12685_v32  ;;  %v12694_v32 = vld [vmem:[#allocation438_spill] sm:$0xff] }
 0x597   : > { %2954 = vst [vmem:[#allocation1 + $0x3] ss:$9 sm:$0xff] %v12686_v62  ;;  %v12695_v62 = vld [vmem:[#allocation439_spill] sm:$0xff] }
 0x598   : > { %2955 = vst [vmem:[#allocation1 + $0x4] ss:$9 sm:$0xff] %v12687_v27  ;;  %v12696_v27 = vld [vmem:[#allocation440_spill] sm:$0xff] }
 0x599   : > { %2956 = vst [vmem:[#allocation1 + $0x5] ss:$9 sm:$0xff] %v12688_v24  ;;  %v12697_v24 = vld [vmem:[#allocation441_spill] sm:$0xff] }
 0x59a   : > { %2957 = vst [vmem:[#allocation1 + $0x6] ss:$9 sm:$0xff] %v12689_v6  ;;  %v12698_v6 = vld [vmem:[#allocation442_spill] sm:$0xff] }
 0x59b   : > { %2958 = vst [vmem:[#allocation1 + $0x7] ss:$9 sm:$0xff] %v12690_v31 }
 0x5a2   : > { %v2959_v44 = vld [vmem:[#allocation1] sm:$0xff] }
 0x5a3   : > { %2961 = vst [vmem:[#allocation1] ss:$9 sm:$0xff] %v12691_v55  ;;  %3034 = vrot.lane.b32.xlu0 %v2959_v44, %s6669_s30  ;;  %v12700_v44 = vld [vmem:[#allocation362_spill] sm:$0xff]  ;;  %v12716_v55 = vld [vmem:[#allocation88_spill] sm:$0xff] }
 0x5a4   : > { %2962 = vst [vmem:[#allocation1 + $0x1] ss:$9 sm:$0xff] %v12692_v8  ;;  %v12701_v8 = vld [vmem:[#allocation72_spill] sm:$0xff] }
 0x5a5   : > { %2963 = vst [vmem:[#allocation1 + $0x2] ss:$9 sm:$0xff] %v12693_v41  ;;  %v12702_v41 = vld [vmem:[#allocation444_spill] sm:$0xff] }
 0x5a6   : > { %2964 = vst [vmem:[#allocation1 + $0x3] ss:$9 sm:$0xff] %v12694_v32  ;;  %v12703_v32 = vld [vmem:[#allocation445_spill] sm:$0xff] }
 0x5a7   : > { %2965 = vst [vmem:[#allocation1 + $0x4] ss:$9 sm:$0xff] %v12695_v62  ;;  %v12704_v62 = vld [vmem:[#allocation446_spill] sm:$0xff] }
 0x5a8   : > { %2966 = vst [vmem:[#allocation1 + $0x5] ss:$9 sm:$0xff] %v12696_v27  ;;  %v12705_v27 = vld [vmem:[#allocation447_spill] sm:$0xff] }
 0x5a9   : > { %2967 = vst [vmem:[#allocation1 + $0x6] ss:$9 sm:$0xff] %v12697_v24  ;;  %v12706_v24 = vld [vmem:[#allocation448_spill] sm:$0xff] }
 0x5aa   : > { %2968 = vst [vmem:[#allocation1 + $0x7] ss:$9 sm:$0xff] %v12698_v6 }
 0x5b1   : > { %v2969_v31 = vld [vmem:[#allocation1] sm:$0xff] }
 0x5b2   : > { %2971 = vst [vmem:[#allocation1] ss:$9 sm:$0xff] %v12699_v34  ;;  %3036 = vrot.lane.b32.xlu1 %v2969_v31, %s6669_s30  ;;  %v12707_v34 = vld [vmem:[#allocation372_spill] sm:$0xff] }
 0x5b3   : > { %2972 = vst [vmem:[#allocation1 + $0x1] ss:$9 sm:$0xff] %v12700_v44  ;;  %v12708_v31 = vld [vmem:[#allocation80_spill] sm:$0xff]  ;;  %v12709_v44 = vld [vmem:[#allocation449_spill] sm:$0xff] }
 0x5b4   : > { %2973 = vst [vmem:[#allocation1 + $0x2] ss:$9 sm:$0xff] %v12701_v8  ;;  %v12710_v8 = vld [vmem:[#allocation450_spill] sm:$0xff] }
 0x5b5   : > { %2974 = vst [vmem:[#allocation1 + $0x3] ss:$9 sm:$0xff] %v12702_v41  ;;  %v12711_v41 = vld [vmem:[#allocation451_spill] sm:$0xff] }
 0x5b6   : > { %2975 = vst [vmem:[#allocation1 + $0x4] ss:$9 sm:$0xff] %v12703_v32  ;;  %v12712_v32 = vld [vmem:[#allocation452_spill] sm:$0xff] }
 0x5b7   : > { %2976 = vst [vmem:[#allocation1 + $0x5] ss:$9 sm:$0xff] %v12704_v62  ;;  %v12713_v62 = vld [vmem:[#allocation453_spill] sm:$0xff] }
 0x5b8   : > { %2977 = vst [vmem:[#allocation1 + $0x6] ss:$9 sm:$0xff] %v12705_v27  ;;  %v12714_v27 = vld [vmem:[#allocation382_spill] sm:$0xff] }
 0x5b9   : > { %2978 = vst [vmem:[#allocation1 + $0x7] ss:$9 sm:$0xff] %v12706_v24 }
 0x5c0   : > { %v2979_v6 = vld [vmem:[#allocation1] sm:$0xff] }
 0x5c1   : > { %3038 = vrot.lane.b32.xlu2 %v2979_v6, %s6669_s30  ;;  %2981 = vst [vmem:[#allocation1] ss:$9 sm:$0xff] %v12707_v34  ;;  %v12717_v6 = vld [vmem:[#allocation96_spill] sm:$0xff] }
 0x5c2   : > { %2982 = vst [vmem:[#allocation1 + $0x1] ss:$9 sm:$0xff] %v12708_v31 }
 0x5c3   : > { %2983 = vst [vmem:[#allocation1 + $0x2] ss:$9 sm:$0xff] %v12709_v44  ;;  %v12720_v44 = vld [vmem:[#allocation461_spill] sm:$0xff] }
 0x5c4   : > { %2984 = vst [vmem:[#allocation1 + $0x3] ss:$9 sm:$0xff] %v12710_v8 }
 0x5c5   : > { %2985 = vst [vmem:[#allocation1 + $0x4] ss:$9 sm:$0xff] %v12711_v41  ;;  %v12719_v41 = vld [vmem:[#allocation460_spill] sm:$0xff] }
 0x5c6   : > { %2986 = vst [vmem:[#allocation1 + $0x5] ss:$9 sm:$0xff] %v12712_v32  ;;  %v1829_v32 = vshll.u32 %v9121_v56, 16 }
 0x5c7   : > { %2987 = vst [vmem:[#allocation1 + $0x6] ss:$9 sm:$0xff] %v12713_v62 }
 0x5c8   : > { %2988 = vst [vmem:[#allocation1 + $0x7] ss:$9 sm:$0xff] %v12714_v27  ;;  %v1793_v27 = vshrl.u32 %v9095_v4, 16 }
 0x5cf   : > { %v9221_v24 = vld [vmem:[#allocation1] sm:$0xff] }
 0x5d0   : > { %12715 = vst [vmem:[#allocation9_spill] sm:$0xff] %v9221_v24  ;;  %v1798_v24 = vshll.u32 %v9097_v5, 16 }
 0x5d1   : > { %2991 = vst [vmem:[#allocation1] ss:$9 sm:$0xff] %v12716_v55  ;;  %v1801_v55 = vshrl.u32 %v9097_v5, 16 }
 0x5d2   : > { %2992 = vst [vmem:[#allocation1 + $0x1] ss:$9 sm:$0xff] %v8800_v60  ;;  %v1806_v60 = vshll.u32 %v9100_v14, 16 }
 0x5d3   : > { %2993 = vst [vmem:[#allocation1 + $0x2] ss:$9 sm:$0xff] %v8806_v26  ;;  %v1809_v26 = vshrl.u32 %v9100_v14, 16 }
 0x5d4   : > { %2994 = vst [vmem:[#allocation1 + $0x3] ss:$9 sm:$0xff] %v8812_v10  ;;  %v1814_v10 = vshll.u32 %v9103_v43, 16  ;;  %v9250_v8 = vsel %vm8157_vm6, %v1801_v55, %v1806_v60 }
 0x5d5   : > { %2995 = vst [vmem:[#allocation1 + $0x4] ss:$9 sm:$0xff] %v8820_v7  ;;  %v1817_v7 = vshrl.u32 %v9103_v43, 16 }
 0x5d6   : > { %2996 = vst [vmem:[#allocation1 + $0x5] ss:$9 sm:$0xff] %v8827_v59  ;;  %v1821_v59 = vshll.u32 %v9109_v49, 16 }
 0x5d7   : > { %2997 = vst [vmem:[#allocation1 + $0x6] ss:$9 sm:$0xff] %v8835_v28  ;;  %v1824_v28 = vshrl.u32 %v9109_v49, 16 }
 0x5d8   : > { %2998 = vst [vmem:[#allocation1 + $0x7] ss:$9 sm:$0xff] %v12717_v6  ;;  %v9243_v6 = vsel %vm8157_vm6, %v1793_v27, %v1798_v24  ;;  %v9258_v24 = vsel %vm8157_vm6, %v1809_v26, %v1814_v10  ;;  %v12721_v27 = vld [vmem:[#allocation462_spill] sm:$0xff]  ;;  %v9263_v31 = vsel %vm8157_vm6, %v1817_v7, %v1821_v59  ;;  %v1837_v10 = vshll.u32 %v9123_v38, 16 }
 0x5d9   : > { %v9268_v60 = vsel %vm8157_vm6, %v1824_v28, %v1829_v32  ;;  %v1840_v7 = vshrl.u32 %v9123_v38, 16 }
 0x5da   : > { %12722 = vst [vmem:[#allocation11_spill] sm:$0xff] %v9268_v60 }
 0x5df   : > { %v9239_v62 = vld [vmem:[#allocation1] sm:$0xff] }
 0x5e0   : > { %12718 = vst [vmem:[#allocation10_spill] sm:$0xff] %v9239_v62  ;;  %v1790_v62 = vsel %vm519_vm0, %v12631_v0, %v9091_v53  ;;  %v1832_v53 = vshrl.u32 %v9121_v56, 16 }
 0x5e1   : > { %3001 = vst [vmem:[#allocation1] ss:$9 sm:$0xff] %v12719_v41  ;;  %v1792_v55 = vrot.slane %v1790_v62, 3  ;;  %v12727_v62 = vld [vmem:[#allocation108_spill] sm:$0xff] }
 0x5e2   : > { %3002 = vst [vmem:[#allocation1 + $0x1] ss:$9 sm:$0xff] %v12720_v44  ;;  %v9279_v59 = vsel %vm8157_vm6, %v1832_v53, %v1837_v10  ;;  %v12730_v53 = vld [vmem:[#allocation111_spill] sm:$0xff]  ;;  %v12731_v10 = vld [vmem:[#allocation112_spill] sm:$0xff] }
 0x5e3   : > { %3003 = vst [vmem:[#allocation1 + $0x2] ss:$9 sm:$0xff] %v12721_v27  ;;  %v1845_v26 = vshll.u32 %v1792_v55, 16  ;;  %v12729_v55 = vld [vmem:[#allocation110_spill] sm:$0xff] }
 0x5e4   : > { %3005 = vst [vmem:[#allocation1 + $0x3] ss:$9 sm:$0xff] %v9243_v6 }
 0x5e5   : > { %3007 = vst [vmem:[#allocation1 + $0x4] ss:$9 sm:$0xff] %v9250_v8  ;;  %v9283_v28 = vsel %vm8157_vm6, %v1840_v7, %v1845_v26  ;;  %v12732_v7 = vld [vmem:[#allocation113_spill] sm:$0xff]  ;;  %v12733_v26 = vld [vmem:[#allocation114_spill] sm:$0xff] }
 0x5e6   : > { %3009 = vst [vmem:[#allocation1 + $0x5] ss:$9 sm:$0xff] %v9258_v24 }
 0x5e7   : > { %3011 = vst [vmem:[#allocation1 + $0x6] ss:$9 sm:$0xff] %v9263_v31 }
 0x5e8   : > { %3013 = vst [vmem:[#allocation1 + $0x7] ss:$9 sm:$0xff] %v9268_v60  ;;  %v12728_v60 = vld [vmem:[#allocation109_spill] sm:$0xff] }
 0x5e9   : > { %12723 = vst [vmem:[#allocation12_spill] sm:$0xff] %v9279_v59 }
 0x5ea   : > { %12724 = vst [vmem:[#allocation13_spill] sm:$0xff] %v9283_v28 }
 0x5ef   : > { %v9285_v32 = vld [vmem:[#allocation1] sm:$0xff] }
 0x5f0   : > { %12725 = vst [vmem:[#allocation14_spill] sm:$0xff] %v9285_v32  ;;  %v12734_v32 = vld [vmem:[#allocation115_spill] sm:$0xff] }
 0x5f1   : > { %3017 = vst [vmem:[#allocation1] ss:$9 sm:$0xff] %v9279_v59 }
 0x5f2   : > { %3019 = vst [vmem:[#allocation1 + $0x1] ss:$9 sm:$0xff] %v9283_v28  ;;  %v12759_v28 = vld [vmem:[#allocation140_spill] sm:$0xff] }
 0x5f9   : > { %v9289_v0 = vld [vmem:[#allocation1] sm:$0xff] }
 0x5fa   : > { %12726 = vst [vmem:[#allocation15_spill] sm:$0xff] %v9289_v0  ;;  %v12735_v0 = vld [vmem:[#allocation116_spill] sm:$0xff] }
 0x5fb   : > { %3048 = vst [vmem:[#allocation1] ss:$9 sm:$0xff] %v12727_v62  ;;  %v12736_v62 = vld [vmem:[#allocation117_spill] sm:$0xff] }
 0x5fc   : > { %3050 = vst [vmem:[#allocation1 + $0x1] ss:$9 sm:$0xff] %v12728_v60  ;;  %v12737_v60 = vld [vmem:[#allocation118_spill] sm:$0xff] }
 0x5fd   : > { %3052 = vst [vmem:[#allocation1 + $0x2] ss:$9 sm:$0xff] %v12729_v55  ;;  %v12738_v55 = vld [vmem:[#allocation119_spill] sm:$0xff] }
 0x5fe   : > { %3054 = vst [vmem:[#allocation1 + $0x3] ss:$9 sm:$0xff] %v12730_v53  ;;  %v12739_v53 = vld [vmem:[#allocation120_spill] sm:$0xff] }
 0x5ff   : > { %3056 = vst [vmem:[#allocation1 + $0x4] ss:$9 sm:$0xff] %v12731_v10  ;;  %v12740_v10 = vld [vmem:[#allocation121_spill] sm:$0xff] }
 0x600   : > { %3058 = vst [vmem:[#allocation1 + $0x5] ss:$9 sm:$0xff] %v12732_v7  ;;  %v12741_v7 = vld [vmem:[#allocation122_spill] sm:$0xff] }
 0x601   : > { %3060 = vst [vmem:[#allocation1 + $0x6] ss:$9 sm:$0xff] %v12733_v26  ;;  %v12742_v26 = vld [vmem:[#allocation123_spill] sm:$0xff] }
 0x602   : > { %3062 = vst [vmem:[#allocation1 + $0x7] ss:$9 sm:$0xff] %v12734_v32 }
 0x609   : > { %v3063_v59 = vld [vmem:[#allocation1] sm:$0xff] }
 0x60a   : > { %3179 = vrot.lane.b32.xlu2 %v3063_v59, %s6670_s13  ;;  %3065 = vst [vmem:[#allocation1] ss:$9 sm:$0xff] %v12735_v0  ;;  %v12743_v59 = vld [vmem:[#allocation124_spill] sm:$0xff]  ;;  %v12744_v0 = vld [vmem:[#allocation125_spill] sm:$0xff] }
 0x60b   : > { %3066 = vst [vmem:[#allocation1 + $0x1] ss:$9 sm:$0xff] %v12736_v62  ;;  %v12745_v62 = vld [vmem:[#allocation126_spill] sm:$0xff] }
 0x60c   : > { %3067 = vst [vmem:[#allocation1 + $0x2] ss:$9 sm:$0xff] %v12737_v60  ;;  %v12746_v60 = vld [vmem:[#allocation127_spill] sm:$0xff] }
 0x60d   : > { %3068 = vst [vmem:[#allocation1 + $0x3] ss:$9 sm:$0xff] %v12738_v55  ;;  %v12747_v55 = vld [vmem:[#allocation128_spill] sm:$0xff] }
 0x60e   : > { %3069 = vst [vmem:[#allocation1 + $0x4] ss:$9 sm:$0xff] %v12739_v53  ;;  %v12748_v53 = vld [vmem:[#allocation129_spill] sm:$0xff] }
 0x60f   : > { %3070 = vst [vmem:[#allocation1 + $0x5] ss:$9 sm:$0xff] %v12740_v10  ;;  %v12749_v10 = vld [vmem:[#allocation130_spill] sm:$0xff] }
 0x610   : > { %3071 = vst [vmem:[#allocation1 + $0x6] ss:$9 sm:$0xff] %v12741_v7  ;;  %v12750_v7 = vld [vmem:[#allocation131_spill] sm:$0xff] }
 0x611   : > { %3072 = vst [vmem:[#allocation1 + $0x7] ss:$9 sm:$0xff] %v12742_v26 }
 0x618   : > { %v3073_v32 = vld [vmem:[#allocation1] sm:$0xff] }
 0x619   : > { %3181 = vrot.lane.b32.xlu1 %v3073_v32, %s6670_s13  ;;  %3075 = vst [vmem:[#allocation1] ss:$9 sm:$0xff] %v12743_v59  ;;  %v12751_v32 = vld [vmem:[#allocation132_spill] sm:$0xff]  ;;  %v12752_v59 = vld [vmem:[#allocation133_spill] sm:$0xff] }
 0x61a   : > { %3076 = vst [vmem:[#allocation1 + $0x1] ss:$9 sm:$0xff] %v12744_v0  ;;  %v12753_v0 = vld [vmem:[#allocation134_spill] sm:$0xff] }
 0x61b   : > { %3077 = vst [vmem:[#allocation1 + $0x2] ss:$9 sm:$0xff] %v12745_v62  ;;  %v12754_v62 = vld [vmem:[#allocation135_spill] sm:$0xff] }
 0x61c   : > { %3078 = vst [vmem:[#allocation1 + $0x3] ss:$9 sm:$0xff] %v12746_v60  ;;  %v12755_v60 = vld [vmem:[#allocation136_spill] sm:$0xff] }
 0x61d   : > { %3079 = vst [vmem:[#allocation1 + $0x4] ss:$9 sm:$0xff] %v12747_v55  ;;  %v12756_v55 = vld [vmem:[#allocation137_spill] sm:$0xff] }
 0x61e   : > { %3080 = vst [vmem:[#allocation1 + $0x5] ss:$9 sm:$0xff] %v12748_v53  ;;  %v12757_v53 = vld [vmem:[#allocation138_spill] sm:$0xff] }
 0x61f   : > { %3081 = vst [vmem:[#allocation1 + $0x6] ss:$9 sm:$0xff] %v12749_v10  ;;  %v12758_v10 = vld [vmem:[#allocation139_spill] sm:$0xff] }
 0x620   : > { %3082 = vst [vmem:[#allocation1 + $0x7] ss:$9 sm:$0xff] %v12750_v7 }
 0x627   : > { %v3083_v26 = vld [vmem:[#allocation1] sm:$0xff] }
 0x628   : > { %3183 = vrot.lane.b32.xlu2 %v3083_v26, %s6670_s13  ;;  %3085 = vst [vmem:[#allocation1] ss:$9 sm:$0xff] %v12751_v32  ;;  %v12760_v26 = vld [vmem:[#allocation141_spill] sm:$0xff]  ;;  %v12761_v32 = vld [vmem:[#allocation142_spill] sm:$0xff] }
 0x629   : > { %3086 = vst [vmem:[#allocation1 + $0x1] ss:$9 sm:$0xff] %v12752_v59  ;;  %v12762_v59 = vld [vmem:[#allocation143_spill] sm:$0xff] }
 0x62a   : > { %3087 = vst [vmem:[#allocation1 + $0x2] ss:$9 sm:$0xff] %v12753_v0  ;;  %v12763_v0 = vld [vmem:[#allocation144_spill] sm:$0xff] }
 0x62b   : > { %3088 = vst [vmem:[#allocation1 + $0x3] ss:$9 sm:$0xff] %v12754_v62  ;;  %v12764_v62 = vld [vmem:[#allocation145_spill] sm:$0xff] }
 0x62c   : > { %3089 = vst [vmem:[#allocation1 + $0x4] ss:$9 sm:$0xff] %v12755_v60  ;;  %v12765_v60 = vld [vmem:[#allocation146_spill] sm:$0xff] }
 0x62d   : > { %3090 = vst [vmem:[#allocation1 + $0x5] ss:$9 sm:$0xff] %v12756_v55  ;;  %v12766_v55 = vld [vmem:[#allocation147_spill] sm:$0xff] }
 0x62e   : > { %3091 = vst [vmem:[#allocation1 + $0x6] ss:$9 sm:$0xff] %v12757_v53 }
 0x62f   : > { %3092 = vst [vmem:[#allocation1 + $0x7] ss:$9 sm:$0xff] %v12758_v10  ;;  %v12767_v10 = vld [vmem:[#allocation148_spill] sm:$0xff] }
 0x636   : > { %v3093_v7 = vld [vmem:[#allocation1] sm:$0xff] }
 0x637   : > { %3095 = vst [vmem:[#allocation1] ss:$9 sm:$0xff] %v12759_v28  ;;  %3185 = vrot.lane.b32.xlu0 %v3093_v7, %s6670_s13  ;;  %v12768_v28 = vld [vmem:[#allocation149_spill] sm:$0xff]  ;;  %v12769_v7 = vld [vmem:[#allocation150_spill] sm:$0xff] }
 0x638   : > { %3096 = vst [vmem:[#allocation1 + $0x1] ss:$9 sm:$0xff] %v12760_v26  ;;  %v12770_v26 = vld [vmem:[#allocation151_spill] sm:$0xff] }
 0x639   : > { %3097 = vst [vmem:[#allocation1 + $0x2] ss:$9 sm:$0xff] %v12761_v32  ;;  %v12771_v32 = vld [vmem:[#allocation152_spill] sm:$0xff] }
 0x63a   : > { %3098 = vst [vmem:[#allocation1 + $0x3] ss:$9 sm:$0xff] %v12762_v59  ;;  %v12772_v59 = vld [vmem:[#allocation153_spill] sm:$0xff] }
 0x63b   : > { %3099 = vst [vmem:[#allocation1 + $0x4] ss:$9 sm:$0xff] %v12763_v0  ;;  %v12773_v0 = vld [vmem:[#allocation154_spill] sm:$0xff] }
 0x63c   : > { %3100 = vst [vmem:[#allocation1 + $0x5] ss:$9 sm:$0xff] %v12764_v62  ;;  %v12774_v62 = vld [vmem:[#allocation155_spill] sm:$0xff] }
 0x63d   : > { %3101 = vst [vmem:[#allocation1 + $0x6] ss:$9 sm:$0xff] %v12765_v60 }
 0x63e   : > { %3102 = vst [vmem:[#allocation1 + $0x7] ss:$9 sm:$0xff] %v12766_v55  ;;  %v12776_v55 = vld [vmem:[#allocation156_spill] sm:$0xff] }
 0x645   : > { %v3103_v53 = vld [vmem:[#allocation1] sm:$0xff] }
 0x646   : > { %3105 = vst [vmem:[#allocation1] ss:$9 sm:$0xff] %v12767_v10  ;;  %3187 = vrot.lane.b32.xlu2 %v3103_v53, %s6670_s13  ;;  %v12777_v10 = vld [vmem:[#allocation157_spill] sm:$0xff]  ;;  %v12778_v53 = vld [vmem:[#allocation158_spill] sm:$0xff] }
 0x647   : > { %3106 = vst [vmem:[#allocation1 + $0x1] ss:$9 sm:$0xff] %v12768_v28  ;;  %v12779_v28 = vld [vmem:[#allocation159_spill] sm:$0xff] }
 0x648   : > { %3107 = vst [vmem:[#allocation1 + $0x2] ss:$9 sm:$0xff] %v12769_v7  ;;  %v12780_v7 = vld [vmem:[#allocation160_spill] sm:$0xff] }
 0x649   : > { %3108 = vst [vmem:[#allocation1 + $0x3] ss:$9 sm:$0xff] %v12770_v26  ;;  %v12781_v26 = vld [vmem:[#allocation161_spill] sm:$0xff] }
 0x64a   : > { %3109 = vst [vmem:[#allocation1 + $0x4] ss:$9 sm:$0xff] %v12771_v32  ;;  %v12782_v32 = vld [vmem:[#allocation162_spill] sm:$0xff] }
 0x64b   : > { %3110 = vst [vmem:[#allocation1 + $0x5] ss:$9 sm:$0xff] %v12772_v59  ;;  %v12783_v59 = vld [vmem:[#allocation163_spill] sm:$0xff] }
 0x64c   : > { %3111 = vst [vmem:[#allocation1 + $0x6] ss:$9 sm:$0xff] %v12773_v0 }
 0x64d   : > { %3112 = vst [vmem:[#allocation1 + $0x7] ss:$9 sm:$0xff] %v12774_v62  ;;  %v12784_v62 = vld [vmem:[#allocation164_spill] sm:$0xff] }
 0x654   : > { %v9344_v60 = vld [vmem:[#allocation1] sm:$0xff] }
 0x655   : > { %12775 = vst [vmem:[#allocation16_spill] sm:$0xff] %v9344_v60  ;;  %v12792_v60 = vld [vmem:[#allocation172_spill] sm:$0xff] }
 0x656   : > { %3115 = vst [vmem:[#allocation1] ss:$9 sm:$0xff] %v12776_v55  ;;  %v12785_v55 = vld [vmem:[#allocation165_spill] sm:$0xff] }
 0x657   : > { %3116 = vst [vmem:[#allocation1 + $0x1] ss:$9 sm:$0xff] %v12777_v10  ;;  %v12786_v10 = vld [vmem:[#allocation166_spill] sm:$0xff] }
 0x658   : > { %3117 = vst [vmem:[#allocation1 + $0x2] ss:$9 sm:$0xff] %v12778_v53  ;;  %v12787_v53 = vld [vmem:[#allocation167_spill] sm:$0xff] }
 0x659   : > { %3118 = vst [vmem:[#allocation1 + $0x3] ss:$9 sm:$0xff] %v12779_v28  ;;  %v12788_v28 = vld [vmem:[#allocation168_spill] sm:$0xff] }
 0x65a   : > { %3119 = vst [vmem:[#allocation1 + $0x4] ss:$9 sm:$0xff] %v12780_v7  ;;  %v12789_v7 = vld [vmem:[#allocation169_spill] sm:$0xff] }
 0x65b   : > { %3120 = vst [vmem:[#allocation1 + $0x5] ss:$9 sm:$0xff] %v12781_v26  ;;  %v12790_v26 = vld [vmem:[#allocation170_spill] sm:$0xff] }
 0x65c   : > { %3121 = vst [vmem:[#allocation1 + $0x6] ss:$9 sm:$0xff] %v12782_v32  ;;  %v12791_v32 = vld [vmem:[#allocation171_spill] sm:$0xff] }
 0x65d   : > { %3122 = vst [vmem:[#allocation1 + $0x7] ss:$9 sm:$0xff] %v12783_v59 }
 0x664   : > { %v3123_v0 = vld [vmem:[#allocation1] sm:$0xff] }
 0x665   : > { %3125 = vst [vmem:[#allocation1] ss:$9 sm:$0xff] %v12784_v62  ;;  %3191 = vrot.lane.b32.xlu2 %v3123_v0, %s6670_s13  ;;  %v12793_v0 = vld [vmem:[#allocation173_spill] sm:$0xff]  ;;  %v12794_v62 = vld [vmem:[#allocation174_spill] sm:$0xff] }
 0x666   : > { %3126 = vst [vmem:[#allocation1 + $0x1] ss:$9 sm:$0xff] %v12785_v55  ;;  %v12795_v55 = vld [vmem:[#allocation175_spill] sm:$0xff] }
 0x667   : > { %3127 = vst [vmem:[#allocation1 + $0x2] ss:$9 sm:$0xff] %v12786_v10  ;;  %v12796_v10 = vld [vmem:[#allocation176_spill] sm:$0xff] }
 0x668   : > { %3128 = vst [vmem:[#allocation1 + $0x3] ss:$9 sm:$0xff] %v12787_v53  ;;  %v12797_v53 = vld [vmem:[#allocation177_spill] sm:$0xff] }
 0x669   : > { %3129 = vst [vmem:[#allocation1 + $0x4] ss:$9 sm:$0xff] %v12788_v28  ;;  %v12798_v28 = vld [vmem:[#allocation178_spill] sm:$0xff] }
 0x66a   : > { %3130 = vst [vmem:[#allocation1 + $0x5] ss:$9 sm:$0xff] %v12789_v7  ;;  %v12799_v7 = vld [vmem:[#allocation179_spill] sm:$0xff] }
 0x66b   : > { %3131 = vst [vmem:[#allocation1 + $0x6] ss:$9 sm:$0xff] %v12790_v26 }
 0x66c   : > { %3132 = vst [vmem:[#allocation1 + $0x7] ss:$9 sm:$0xff] %v12791_v32  ;;  %v12801_v32 = vld [vmem:[#allocation181_spill] sm:$0xff] }
 0x673   : > { %v3133_v59 = vld [vmem:[#allocation1] sm:$0xff] }
 0x674   : > { %3135 = vst [vmem:[#allocation1] ss:$9 sm:$0xff] %v12792_v60  ;;  %3193 = vrot.lane.b32.xlu0 %v3133_v59, %s6670_s13  ;;  %v12800_v60 = vld [vmem:[#allocation180_spill] sm:$0xff]  ;;  %v12802_v59 = vld [vmem:[#allocation182_spill] sm:$0xff] }
 0x675   : > { %3136 = vst [vmem:[#allocation1 + $0x1] ss:$9 sm:$0xff] %v12793_v0  ;;  %v12803_v0 = vld [vmem:[#allocation183_spill] sm:$0xff] }
 0x676   : > { %3137 = vst [vmem:[#allocation1 + $0x2] ss:$9 sm:$0xff] %v12794_v62  ;;  %v12804_v62 = vld [vmem:[#allocation184_spill] sm:$0xff] }
 0x677   : > { %3138 = vst [vmem:[#allocation1 + $0x3] ss:$9 sm:$0xff] %v12795_v55  ;;  %v12805_v55 = vld [vmem:[#allocation185_spill] sm:$0xff] }
 0x678   : > { %3139 = vst [vmem:[#allocation1 + $0x4] ss:$9 sm:$0xff] %v12796_v10  ;;  %v12806_v10 = vld [vmem:[#allocation186_spill] sm:$0xff] }
 0x679   : > { %3140 = vst [vmem:[#allocation1 + $0x5] ss:$9 sm:$0xff] %v12797_v53  ;;  %v12807_v53 = vld [vmem:[#allocation187_spill] sm:$0xff] }
 0x67a   : > { %3141 = vst [vmem:[#allocation1 + $0x6] ss:$9 sm:$0xff] %v12798_v28 }
 0x67b   : > { %3142 = vst [vmem:[#allocation1 + $0x7] ss:$9 sm:$0xff] %v12799_v7  ;;  %v12809_v7 = vld [vmem:[#allocation188_spill] sm:$0xff] }
 0x682   : > { %v3143_v26 = vld [vmem:[#allocation1] sm:$0xff] }
 0x683   : > { %3195 = vrot.lane.b32.xlu1 %v3143_v26, %s6670_s13  ;;  %3145 = vst [vmem:[#allocation1] ss:$9 sm:$0xff] %v12800_v60  ;;  %v12810_v26 = vld [vmem:[#allocation189_spill] sm:$0xff]  ;;  %v12811_v60 = vld [vmem:[#allocation190_spill] sm:$0xff] }
 0x684   : > { %3146 = vst [vmem:[#allocation1 + $0x1] ss:$9 sm:$0xff] %v12801_v32  ;;  %v12812_v32 = vld [vmem:[#allocation192_spill] sm:$0xff] }
 0x685   : > { %3147 = vst [vmem:[#allocation1 + $0x2] ss:$9 sm:$0xff] %v12802_v59  ;;  %v12813_v59 = vld [vmem:[#allocation193_spill] sm:$0xff] }
 0x686   : > { %3148 = vst [vmem:[#allocation1 + $0x3] ss:$9 sm:$0xff] %v12803_v0  ;;  %v12814_v0 = vld [vmem:[#allocation194_spill] sm:$0xff] }
 0x687   : > { %3149 = vst [vmem:[#allocation1 + $0x4] ss:$9 sm:$0xff] %v12804_v62  ;;  %v12815_v62 = vld [vmem:[#allocation195_spill] sm:$0xff] }
 0x688   : > { %3150 = vst [vmem:[#allocation1 + $0x5] ss:$9 sm:$0xff] %v12805_v55  ;;  %v12816_v55 = vld [vmem:[#allocation197_spill] sm:$0xff] }
 0x689   : > { %3151 = vst [vmem:[#allocation1 + $0x6] ss:$9 sm:$0xff] %v12806_v10 }
 0x68a   : > { %3152 = vst [vmem:[#allocation1 + $0x7] ss:$9 sm:$0xff] %v12807_v53  ;;  %v12818_v53 = vld [vmem:[#allocation198_spill] sm:$0xff] }
 0x691   : > { %v9381_v28 = vld [vmem:[#allocation1] sm:$0xff] }
 0x692   : > { %12808 = vst [vmem:[#allocation17_spill] sm:$0xff] %v9381_v28  ;;  %v12819_v28 = vld [vmem:[#allocation199_spill] sm:$0xff] }
 0x693   : > { %3155 = vst [vmem:[#allocation1] ss:$9 sm:$0xff] %v12809_v7  ;;  %v12820_v7 = vld [vmem:[#allocation200_spill] sm:$0xff] }
 0x694   : > { %3156 = vst [vmem:[#allocation1 + $0x1] ss:$9 sm:$0xff] %v12810_v26  ;;  %v12821_v26 = vld [vmem:[#allocation201_spill] sm:$0xff] }
 0x695   : > { %3157 = vst [vmem:[#allocation1 + $0x2] ss:$9 sm:$0xff] %v12811_v60  ;;  %v12822_v60 = vld [vmem:[#allocation202_spill] sm:$0xff] }
 0x696   : > { %3158 = vst [vmem:[#allocation1 + $0x3] ss:$9 sm:$0xff] %v12812_v32  ;;  %v12823_v32 = vld [vmem:[#allocation203_spill] sm:$0xff] }
 0x697   : > { %3159 = vst [vmem:[#allocation1 + $0x4] ss:$9 sm:$0xff] %v12813_v59  ;;  %v12824_v59 = vld [vmem:[#allocation204_spill] sm:$0xff] }
 0x698   : > { %3160 = vst [vmem:[#allocation1 + $0x5] ss:$9 sm:$0xff] %v12814_v0  ;;  %v12825_v0 = vld [vmem:[#allocation205_spill] sm:$0xff] }
 0x699   : > { %3161 = vst [vmem:[#allocation1 + $0x6] ss:$9 sm:$0xff] %v12815_v62 }
 0x69a   : > { %3162 = vst [vmem:[#allocation1 + $0x7] ss:$9 sm:$0xff] %v12816_v55  ;;  %v12826_v55 = vld [vmem:[#allocation206_spill] sm:$0xff] }
 0x6a1   : > { %v9391_v10 = vld [vmem:[#allocation1] sm:$0xff] }
 0x6a2   : > { %12817 = vst [vmem:[#allocation18_spill] sm:$0xff] %v9391_v10  ;;  %v12827_v10 = vld [vmem:[#allocation207_spill] sm:$0xff] }
 0x6a3   : > { %3165 = vst [vmem:[#allocation1] ss:$9 sm:$0xff] %v12818_v53 }
 0x6a4   : > { %3166 = vst [vmem:[#allocation1 + $0x1] ss:$9 sm:$0xff] %v12819_v28 }
 0x6a5   : > { %3167 = vst [vmem:[#allocation1 + $0x2] ss:$9 sm:$0xff] %v12820_v7  ;;  %v12850_v7 = vld [vmem:[#allocation363_spill] sm:$0xff] }
 0x6a6   : > { %3168 = vst [vmem:[#allocation1 + $0x3] ss:$9 sm:$0xff] %v12821_v26  ;;  %v12851_v26 = vld [vmem:[#allocation364_spill] sm:$0xff] }
 0x6a7   : > { %3169 = vst [vmem:[#allocation1 + $0x4] ss:$9 sm:$0xff] %v12822_v60  ;;  %v12852_v60 = vld [vmem:[#allocation365_spill] sm:$0xff] }
 0x6a8   : > { %3170 = vst [vmem:[#allocation1 + $0x5] ss:$9 sm:$0xff] %v12823_v32  ;;  %v12853_v32 = vld [vmem:[#allocation366_spill] sm:$0xff] }
 0x6a9   : > { %3171 = vst [vmem:[#allocation1 + $0x6] ss:$9 sm:$0xff] %v12824_v59  ;;  %v12854_v59 = vld [vmem:[#allocation368_spill] sm:$0xff] }
 0x6aa   : > { %3172 = vst [vmem:[#allocation1 + $0x7] ss:$9 sm:$0xff] %v12825_v0 }
 0x6b1   : > { %v9401_v62 = vld [vmem:[#allocation1] sm:$0xff] }
 0x6b2   : > { %3175 = vst [vmem:[#allocation1] ss:$9 sm:$0xff] %v12826_v55 }
 0x6b3   : > { %3176 = vst [vmem:[#allocation1 + $0x1] ss:$9 sm:$0xff] %v12827_v10  ;;  %v12849_v10 = vld [vmem:[#allocation361_spill] sm:$0xff] }
 0x6ba   : > { %v9405_v53 = vld [vmem:[#allocation1] sm:$0xff] }
 0x6bb   : > { %3205 = vst [vmem:[#allocation1] ss:$9 sm:$0xff] %v7631_v51  ;;  %v12831_v51 = vld [vmem:[#allocation342_spill] sm:$0xff] }
 0x6bc   : > { %3207 = vst [vmem:[#allocation1 + $0x1] ss:$9 sm:$0xff] %v7633_v25 }
 0x6bd   : > { %3209 = vst [vmem:[#allocation1 + $0x2] ss:$9 sm:$0xff] %v7648_v22 }
 0x6be   : > { %3211 = vst [vmem:[#allocation1 + $0x3] ss:$9 sm:$0xff] %v7653_v19  ;;  %v12830_v19 = vld [vmem:[#allocation338_spill] sm:$0xff] }
 0x6bf   : > { %3213 = vst [vmem:[#allocation1 + $0x4] ss:$9 sm:$0xff] %v7661_v17  ;;  %v9448_v17 = vpop.permute.xlu1 %2550 }
 0x6c0   : > { %3215 = vst [vmem:[#allocation1 + $0x5] ss:$9 sm:$0xff] %v7663_v11  ;;  %v12832_v11 = vld [vmem:[#allocation343_spill] sm:$0xff] }
 0x6c1   : > { %3217 = vst [vmem:[#allocation1 + $0x6] ss:$9 sm:$0xff] %v7669_v16  ;;  %v12829_v16 = vld [vmem:[#allocation337_spill] sm:$0xff] }
 0x6c2   : > { %3219 = vst [vmem:[#allocation1 + $0x7] ss:$9 sm:$0xff] %v7677_v15 }
 0x6c7   : > { %v9453_v25 = vpop.permute.xlu1 %2558 }
 0x6c9   : > { %v3220_v28 = vld [vmem:[#allocation1] sm:$0xff] }
 0x6ca   : > { %3222 = vst [vmem:[#allocation1] ss:$9 sm:$0xff] %v7679_v21  ;;  %3336 = vrot.lane.b32.xlu2 %v3220_v28, %s6671_s14  ;;  %v12833_v21 = vld [vmem:[#allocation344_spill] sm:$0xff]  ;;  %v12855_v28 = vld [vmem:[#allocation369_spill] sm:$0xff] }
 0x6cb   : > { %3223 = vst [vmem:[#allocation1 + $0x1] ss:$9 sm:$0xff] %v7682_v13  ;;  %v12828_v13 = vld [vmem:[#allocation336_spill] sm:$0xff] }
 0x6cc   : > { %3224 = vst [vmem:[#allocation1 + $0x2] ss:$9 sm:$0xff] %v7698_v12 }
 0x6cd   : > { %3225 = vst [vmem:[#allocation1 + $0x3] ss:$9 sm:$0xff] %v7706_v9 }
 0x6ce   : > { %3226 = vst [vmem:[#allocation1 + $0x4] ss:$9 sm:$0xff] %v12330_v23 }
 0x6cf   : > { %3227 = vst [vmem:[#allocation1 + $0x5] ss:$9 sm:$0xff] %v12331_v58  ;;  %v9464_v23 = vpop.permute.xlu1 %2562 }
 0x6d0   : > { %3228 = vst [vmem:[#allocation1 + $0x6] ss:$9 sm:$0xff] %v12333_v37  ;;  %v2545_v37 = vpop.permute.xlu0 %2544 }
 0x6d1   : > { %3229 = vst [vmem:[#allocation1 + $0x7] ss:$9 sm:$0xff] %v12334_v50  ;;  %v12838_v50 = vld [vmem:[#allocation350_spill] sm:$0xff] }
 0x6d8   : > { %v3230_v15 = vld [vmem:[#allocation1] sm:$0xff] }
 0x6d9   : > { %3232 = vst [vmem:[#allocation1] ss:$9 sm:$0xff] %v12336_v39  ;;  %3338 = vrot.lane.b32.xlu0 %v3230_v15, %s6671_s14  ;;  %v12837_v39 = vld [vmem:[#allocation349_spill] sm:$0xff]  ;;  %v12856_v15 = vld [vmem:[#allocation308_spill] sm:$0xff] }
 0x6da   : > { %3233 = vst [vmem:[#allocation1 + $0x1] ss:$9 sm:$0xff] %v12338_v45  ;;  %v12839_v45 = vld [vmem:[#allocation351_spill] sm:$0xff] }
 0x6db   : > { %3234 = vst [vmem:[#allocation1 + $0x2] ss:$9 sm:$0xff] %v7751_v20  ;;  %v12834_v20 = vld [vmem:[#allocation345_spill] sm:$0xff] }
 0x6dc   : > { %3235 = vst [vmem:[#allocation1 + $0x3] ss:$9 sm:$0xff] %v7753_v33  ;;  %v12835_v33 = vld [vmem:[#allocation346_spill] sm:$0xff] }
 0x6dd   : > { %3236 = vst [vmem:[#allocation1 + $0x4] ss:$9 sm:$0xff] %v12346_v42  ;;  %v12840_v42 = vld [vmem:[#allocation352_spill] sm:$0xff] }
 0x6de   : > { %3237 = vst [vmem:[#allocation1 + $0x5] ss:$9 sm:$0xff] %v12347_v36  ;;  %v12841_v36 = vld [vmem:[#allocation353_spill] sm:$0xff] }
 0x6df   : > { %3238 = vst [vmem:[#allocation1 + $0x6] ss:$9 sm:$0xff] %v12584_v54  ;;  %v2549_v54 = vpop.permute.xlu0 %2548 }
 0x6e0   : > { %3239 = vst [vmem:[#allocation1 + $0x7] ss:$9 sm:$0xff] %v12585_v1  ;;  %v2706_v1 = vpop.permute.xlu1 %2705 }
 0x6e7   : > { %v3240_v9 = vld [vmem:[#allocation1] sm:$0xff] }
 0x6e8   : > { %3340 = vrot.lane.b32.xlu1 %v3240_v9, %s6671_s14  ;;  %3242 = vst [vmem:[#allocation1] ss:$9 sm:$0xff] %v12586_v2  ;;  %v12845_v2 = vld [vmem:[#allocation358_spill] sm:$0xff]  ;;  %v3685_v9 = vsel %vm3683_vm7, %v12856_v15, %v2545_v37  ;;  %v12864_v37 = vld [vmem:[#allocation379_spill] sm:$0xff] }
 0x6e9   : > { %3243 = vst [vmem:[#allocation1 + $0x1] ss:$9 sm:$0xff] %v12354_v46  ;;  %v12842_v46 = vld [vmem:[#allocation354_spill] sm:$0xff] }
 0x6ea   : > { %3244 = vst [vmem:[#allocation1 + $0x2] ss:$9 sm:$0xff] %v7801_v29  ;;  %v12836_v29 = vld [vmem:[#allocation347_spill] sm:$0xff] }
 0x6eb   : > { %3245 = vst [vmem:[#allocation1 + $0x3] ss:$9 sm:$0xff] %v12587_v47  ;;  %v12846_v47 = vld [vmem:[#allocation312_spill] sm:$0xff] }
 0x6ec   : > { %3246 = vst [vmem:[#allocation1 + $0x4] ss:$9 sm:$0xff] %v12588_v63  ;;  %v3689_v63 = vsel %vm3683_vm7, %v12846_v47, %v2549_v54  ;;  %v12869_v54 = vld [vmem:[#allocation385_spill] sm:$0xff]  ;;  %v12872_v47 = vld [vmem:[#allocation390_spill] sm:$0xff] }
 0x6ed   : > { %3247 = vst [vmem:[#allocation1 + $0x5] ss:$9 sm:$0xff] %v12589_v57  ;;  %v12847_v57 = vld [vmem:[#allocation359_spill] sm:$0xff] }
 0x6ee   : > { %3248 = vst [vmem:[#allocation1 + $0x6] ss:$9 sm:$0xff] %v12590_v3  ;;  %v9479_v3 = vsel %vm3710_vm8, %v3689_v63, %v2706_v1  ;;  %v12870_v1 = vld [vmem:[#allocation388_spill] sm:$0xff] }
 0x6ef   : > { %3249 = vst [vmem:[#allocation1 + $0x7] ss:$9 sm:$0xff] %v12591_v61  ;;  %v9481_v61 = vpop.permute.xlu0 %2554 }
 0x6f6   : > { %v3250_v12 = vld [vmem:[#allocation1] sm:$0xff] }
 0x6f7   : > { %3252 = vst [vmem:[#allocation1] ss:$9 sm:$0xff] %v12592_v48  ;;  %3342 = vrot.lane.b32.xlu2 %v3250_v12, %s6671_s14  ;;  %v9483_v48 = vpop.permute.xlu1 %2717  ;;  %v9493_v0 = vpop.permute.xlu0 %2556 }
 0x6f8   : > { %3253 = vst [vmem:[#allocation1 + $0x1] ss:$9 sm:$0xff] %v12370_v35  ;;  %v12843_v35 = vld [vmem:[#allocation355_spill] sm:$0xff] }
 0x6f9   : > { %3254 = vst [vmem:[#allocation1 + $0x2] ss:$9 sm:$0xff] %v12593_v18 }
 0x6fa   : > { %3255 = vst [vmem:[#allocation1 + $0x3] ss:$9 sm:$0xff] %v12828_v13 }
 0x6fb   : > { %3256 = vst [vmem:[#allocation1 + $0x4] ss:$9 sm:$0xff] %v12829_v16  ;;  %v12857_v16 = vld [vmem:[#allocation370_spill] sm:$0xff] }
 0x6fc   : > { %3257 = vst [vmem:[#allocation1 + $0x5] ss:$9 sm:$0xff] %v12830_v19 }
 0x6fd   : > { %3258 = vst [vmem:[#allocation1 + $0x6] ss:$9 sm:$0xff] %v12597_v40  ;;  %v12848_v40 = vld [vmem:[#allocation360_spill] sm:$0xff] }
 0x6fe   : > { %3259 = vst [vmem:[#allocation1 + $0x7] ss:$9 sm:$0xff] %v12384_v30  ;;  %v12844_v30 = vld [vmem:[#allocation357_spill] sm:$0xff] }
 0x6ff   : > { %v9495_v55 = vpop.permute.xlu1 %2719  ;;  %v2702_v13 = vpop.permute.xlu0 %2701 }
 0x700   : > { %v3712_v19 = vsel %vm3710_vm8, %v3685_v9, %v2702_v13 }
 0x705   : > { %v3260_v22 = vld [vmem:[#allocation1] sm:$0xff] }
 0x706   : > { %3262 = vst [vmem:[#allocation1] ss:$9 sm:$0xff] %v12831_v51  ;;  %3344 = vrot.lane.b32.xlu2 %v3260_v22, %s6671_s14  ;;  %v12858_v51 = vld [vmem:[#allocation371_spill] sm:$0xff] }
 0x707   : > { %3263 = vst [vmem:[#allocation1 + $0x1] ss:$9 sm:$0xff] %v12832_v11  ;;  %v2859_v22 = vpop.permute.xlu1 %2858 }
 0x708   : > { %3264 = vst [vmem:[#allocation1 + $0x2] ss:$9 sm:$0xff] %v12833_v21  ;;  %v9505_v11 = vsel %vm3737_vm9, %v3712_v19, %v2859_v22  ;;  %v12859_v21 = vld [vmem:[#allocation373_spill] sm:$0xff] }
 0x709   : > { %3265 = vst [vmem:[#allocation1 + $0x3] ss:$9 sm:$0xff] %v12834_v20  ;;  %v12860_v20 = vld [vmem:[#allocation374_spill] sm:$0xff] }
 0x70a   : > { %3266 = vst [vmem:[#allocation1 + $0x4] ss:$9 sm:$0xff] %v12835_v33  ;;  %v2547_v33 = vpop.permute.xlu2 %2546 }
 0x70b   : > { %3267 = vst [vmem:[#allocation1 + $0x5] ss:$9 sm:$0xff] %v12836_v29  ;;  %v12861_v29 = vld [vmem:[#allocation375_spill] sm:$0xff] }
 0x70c   : > { %3268 = vst [vmem:[#allocation1 + $0x6] ss:$9 sm:$0xff] %v12837_v39  ;;  %v12862_v39 = vld [vmem:[#allocation376_spill] sm:$0xff] }
 0x70d   : > { %3269 = vst [vmem:[#allocation1 + $0x7] ss:$9 sm:$0xff] %v12838_v50  ;;  %v12863_v50 = vld [vmem:[#allocation378_spill] sm:$0xff] }
 0x714   : > { %v9466_v58 = vld [vmem:[#allocation1] sm:$0xff] }
 0x715   : > { %3272 = vst [vmem:[#allocation1] ss:$9 sm:$0xff] %v12839_v45  ;;  %v2553_v45 = vpop.permute.xlu2 %2552 }
 0x716   : > { %3273 = vst [vmem:[#allocation1 + $0x1] ss:$9 sm:$0xff] %v12840_v42 }
 0x717   : > { %3274 = vst [vmem:[#allocation1 + $0x2] ss:$9 sm:$0xff] %v12841_v36  ;;  %v12865_v36 = vld [vmem:[#allocation380_spill] sm:$0xff] }
 0x718   : > { %3275 = vst [vmem:[#allocation1 + $0x3] ss:$9 sm:$0xff] %v12842_v46  ;;  %v12866_v46 = vld [vmem:[#allocation381_spill] sm:$0xff] }
 0x719   : > { %3276 = vst [vmem:[#allocation1 + $0x4] ss:$9 sm:$0xff] %v12843_v35  ;;  %v12867_v35 = vld [vmem:[#allocation383_spill] sm:$0xff] }
 0x71a   : > { %3277 = vst [vmem:[#allocation1 + $0x5] ss:$9 sm:$0xff] %v12844_v30  ;;  %v12868_v30 = vld [vmem:[#allocation384_spill] sm:$0xff] }
 0x71b   : > { %3278 = vst [vmem:[#allocation1 + $0x6] ss:$9 sm:$0xff] %v12845_v2  ;;  %v12871_v2 = vld [vmem:[#allocation389_spill] sm:$0xff] }
 0x71c   : > { %3279 = vst [vmem:[#allocation1 + $0x7] ss:$9 sm:$0xff] %v12847_v57 }
 0x71d   : > { %v9522_v63 = vpop.permute.xlu2 %2560 }
 0x723   : > { %v3280_v18 = vld [vmem:[#allocation1] sm:$0xff] }
 0x724   : > { %3282 = vst [vmem:[#allocation1] ss:$9 sm:$0xff] %v12848_v40  ;;  %3348 = vrot.lane.b32.xlu0 %v3280_v18, %s6671_s14  ;;  %v12873_v18 = vld [vmem:[#allocation391_spill] sm:$0xff]  ;;  %v12874_v40 = vld [vmem:[#allocation392_spill] sm:$0xff] }
 0x725   : > { %3283 = vst [vmem:[#allocation1 + $0x1] ss:$9 sm:$0xff] %v12849_v10  ;;  %v12875_v10 = vld [vmem:[#allocation393_spill] sm:$0xff] }
 0x726   : > { %3284 = vst [vmem:[#allocation1 + $0x2] ss:$9 sm:$0xff] %v12850_v7  ;;  %v12876_v7 = vld [vmem:[#allocation394_spill] sm:$0xff] }
 0x727   : > { %3285 = vst [vmem:[#allocation1 + $0x3] ss:$9 sm:$0xff] %v12851_v26  ;;  %v9530_v26 = vpop.permute.xlu2 %2707 }
 0x728   : > { %3286 = vst [vmem:[#allocation1 + $0x4] ss:$9 sm:$0xff] %v12852_v60  ;;  %v12877_v60 = vld [vmem:[#allocation291_spill] sm:$0xff] }
 0x729   : > { %3287 = vst [vmem:[#allocation1 + $0x5] ss:$9 sm:$0xff] %v12853_v32  ;;  %v1983_v32 = vrot.slane %v12877_v60, 3 }
 0x72a   : > { %3288 = vst [vmem:[#allocation1 + $0x6] ss:$9 sm:$0xff] %v12854_v59 }
 0x72b   : > { %3289 = vst [vmem:[#allocation1 + $0x7] ss:$9 sm:$0xff] %v12855_v28  ;;  %v1988_v59 = vsel %vm511_vm1, %v12877_v60, %v1983_v32  ;;  %v1991_v28 = vsel %vm515_vm2, %v12877_v60, %v1983_v32  ;;  %v1994_v9 = vsel %vm519_vm0, %v12877_v60, %v1983_v32 }
 0x72c   : > { %v9555_v13 = vrot.slane %v1991_v28, 2  ;;  %v12888_v28 = vld [vmem:[#allocation411_spill] sm:$0xff] }
 0x72f   : > { %v2714_v15 = vpop.permute.xlu2 %2713 }
 0x732   : > { %v3290_v12 = vld [vmem:[#allocation1] sm:$0xff] }
 0x733   : > { %3350 = vrot.lane.b32.xlu1 %v3290_v12, %s6671_s14  ;;  %3292 = vst [vmem:[#allocation1] ss:$9 sm:$0xff] %v12857_v16  ;;  %v9558_v16 = vrot.slane %v1994_v9, 3 }
 0x734   : > { %3293 = vst [vmem:[#allocation1 + $0x1] ss:$9 sm:$0xff] %v12858_v51  ;;  %v12879_v51 = vld [vmem:[#allocation309_spill] sm:$0xff] }
 0x735   : > { %3294 = vst [vmem:[#allocation1 + $0x2] ss:$9 sm:$0xff] %v12859_v21  ;;  %v3687_v21 = vsel %vm3683_vm7, %v12879_v51, %v2547_v33  ;;  %v12881_v33 = vld [vmem:[#allocation405_spill] sm:$0xff]  ;;  %v12891_v51 = vld [vmem:[#allocation348_spill] sm:$0xff] }
 0x736   : > { %3295 = vst [vmem:[#allocation1 + $0x3] ss:$9 sm:$0xff] %v12860_v20 }
 0x737   : > { %3296 = vst [vmem:[#allocation1 + $0x4] ss:$9 sm:$0xff] %v12861_v29 }
 0x738   : > { %3297 = vst [vmem:[#allocation1 + $0x5] ss:$9 sm:$0xff] %v12862_v39  ;;  %v2704_v39 = vpop.permute.xlu0 %2703 }
 0x739   : > { %3298 = vst [vmem:[#allocation1 + $0x6] ss:$9 sm:$0xff] %v12863_v50  ;;  %v3714_v50 = vsel %vm3710_vm8, %v3687_v21, %v2704_v39  ;;  %v3697_v21 = vsel %vm3683_vm7, %v12891_v51, %v9493_v0  ;;  %v12892_v39 = vld [vmem:[#allocation310_spill] sm:$0xff] }
 0x73a   : > { %3299 = vst [vmem:[#allocation1 + $0x7] ss:$9 sm:$0xff] %v12864_v37  ;;  %v2861_v37 = vpop.permute.xlu1 %2860 }
 0x741   : > { %v3300_v42 = vld [vmem:[#allocation1] sm:$0xff] }
 0x742   : > { %3352 = vrot.lane.b32.xlu2 %v3300_v42, %s6671_s14  ;;  %3302 = vst [vmem:[#allocation1] ss:$9 sm:$0xff] %v12865_v36  ;;  %v3741_v42 = vsel %vm3737_vm9, %v3714_v50, %v2861_v37  ;;  %v12893_v50 = vld [vmem:[#allocation339_spill] sm:$0xff] }
 0x743   : > { %3303 = vst [vmem:[#allocation1 + $0x1] ss:$9 sm:$0xff] %v12866_v46  ;;  %v3695_v37 = vsel %vm3683_vm7, %v12893_v50, %v9481_v61  ;;  %v12907_v50 = vld [vmem:[#allocation320_spill] sm:$0xff] }
 0x744   : > { %3304 = vst [vmem:[#allocation1 + $0x2] ss:$9 sm:$0xff] %v12867_v35  ;;  %v12880_v35 = vld [vmem:[#allocation404_spill] sm:$0xff] }
 0x745   : > { %3305 = vst [vmem:[#allocation1 + $0x3] ss:$9 sm:$0xff] %v12868_v30  ;;  %v12882_v30 = vld [vmem:[#allocation406_spill] sm:$0xff] }
 0x746   : > { %3306 = vst [vmem:[#allocation1 + $0x4] ss:$9 sm:$0xff] %v12869_v54  ;;  %v12883_v54 = vld [vmem:[#allocation330_spill] sm:$0xff] }
 0x747   : > { %3307 = vst [vmem:[#allocation1 + $0x5] ss:$9 sm:$0xff] %v12870_v1  ;;  %v3693_v1 = vsel %vm3683_vm7, %v12883_v54, %v2553_v45 }
 0x748   : > { %3308 = vst [vmem:[#allocation1 + $0x6] ss:$9 sm:$0xff] %v12871_v2  ;;  %v12884_v2 = vld [vmem:[#allocation407_spill] sm:$0xff] }
 0x749   : > { %3309 = vst [vmem:[#allocation1 + $0x7] ss:$9 sm:$0xff] %v12872_v47  ;;  %v12885_v47 = vld [vmem:[#allocation408_spill] sm:$0xff] }
 0x750   : > { %v9524_v57 = vld [vmem:[#allocation1] sm:$0xff] }
 0x751   : > { %3312 = vst [vmem:[#allocation1] ss:$9 sm:$0xff] %v12873_v18  ;;  %v12886_v18 = vld [vmem:[#allocation409_spill] sm:$0xff] }
 0x752   : > { %3313 = vst [vmem:[#allocation1 + $0x1] ss:$9 sm:$0xff] %v12874_v40 }
 0x753   : > { %3314 = vst [vmem:[#allocation1 + $0x2] ss:$9 sm:$0xff] %v12875_v10  ;;  %v2710_v10 = vpop.permute.xlu0 %2709 }
 0x754   : > { %3315 = vst [vmem:[#allocation1 + $0x3] ss:$9 sm:$0xff] %v12876_v7  ;;  %v12887_v7 = vld [vmem:[#allocation410_spill] sm:$0xff] }
 0x755   : > { %3316 = vst [vmem:[#allocation1 + $0x4] ss:$9 sm:$0xff] %v9095_v4  ;;  %v12878_v4 = vld [vmem:[#allocation296_spill] sm:$0xff] }
 0x756   : > { %3317 = vst [vmem:[#allocation1 + $0x5] ss:$9 sm:$0xff] %v9097_v5  ;;  %v9546_v5 = vrot.slane %v12878_v4, 3 }
 0x757   : > { %3318 = vst [vmem:[#allocation1 + $0x6] ss:$9 sm:$0xff] %v9100_v14  ;;  %v9552_v14 = vrot.slane %v1988_v59, 1  ;;  %v2867_v59 = vpop.permute.xlu1 %2866 }
 0x758   : > { %3319 = vst [vmem:[#allocation1 + $0x7] ss:$9 sm:$0xff] %v9103_v43  ;;  %v9550_v43 = vsel %vm11915_vm3, %v12877_v60, %v1983_v32  ;;  %v9565_v19 = vsel %vm11915_vm3, %v12878_v4, %v9546_v5  ;;  %v3720_v32 = vsel %vm3710_vm8, %v3693_v1, %v2710_v10  ;;  %v3724_v1 = vsel %vm3710_vm8, %v3697_v21, %v2714_v15  ;;  %v12900_v15 = vld [vmem:[#allocation377_spill] sm:$0xff]  ;;  %v12906_v21 = vld [vmem:[#allocation415_spill] sm:$0xff] }
 0x759   : > { %v3747_v45 = vsel %vm3737_vm9, %v3720_v32, %v2867_v59  ;;  %v3703_v32 = vsel %vm3683_vm7, %v12900_v15, %v9464_v23  ;;  %v12901_v59 = vld [vmem:[#allocation25_spill] sm:$0xff]  ;;  %v12915_v15 = vld [vmem:[#allocation326_spill] sm:$0xff]  ;;  %vm5663_vm3 = vcmask 736256  }
 0x75b   : > { %v2712_v54 = vpop.permute.xlu0 %2711 }
 0x75f   : > { %v9543_v12 = vld [vmem:[#allocation1] sm:$0xff] }
 0x760   : > { %3322 = vst [vmem:[#allocation1] ss:$9 sm:$0xff] %v9109_v49  ;;  %v2000_v49 = vsel %vm511_vm1, %v12878_v4, %v9546_v5 }
 0x761   : > { %3323 = vst [vmem:[#allocation1 + $0x1] ss:$9 sm:$0xff] %v9121_v56  ;;  %v9574_v56 = vpop.permute.xlu2 %2862  ;;  %v9579_v22 = vrot.slane %v2000_v49, 1  ;;  %v12889_v49 = vld [vmem:[#allocation412_spill] sm:$0xff] }
 0x762   : > { %3324 = vst [vmem:[#allocation1 + $0x2] ss:$9 sm:$0xff] %v9123_v38  ;;  %v2003_v38 = vsel %vm515_vm2, %v12878_v4, %v9546_v5 }
 0x763   : > { %3325 = vst [vmem:[#allocation1 + $0x3] ss:$9 sm:$0xff] %v9550_v43  ;;  %v9583_v20 = vrot.slane %v2003_v38, 2  ;;  %v12890_v38 = vld [vmem:[#allocation413_spill] sm:$0xff]  ;;  %v2716_v51 = vpop.permute.xlu0 %2715 }
 0x764   : > { %3326 = vst [vmem:[#allocation1 + $0x4] ss:$9 sm:$0xff] %v9552_v14 }
 0x765   : > { %3327 = vst [vmem:[#allocation1 + $0x5] ss:$9 sm:$0xff] %v9555_v13 }
 0x766   : > { %3328 = vst [vmem:[#allocation1 + $0x6] ss:$9 sm:$0xff] %v9558_v16 }
 0x767   : > { %3329 = vst [vmem:[#allocation1 + $0x7] ss:$9 sm:$0xff] %v9565_v19 }
 0x769   : > { %v9591_v36 = vpop.permute.xlu2 %2872 }
 0x76e   : > { %v9585_v29 = vld [vmem:[#allocation1] sm:$0xff] }
 0x76f   : > { %3332 = vst [vmem:[#allocation1] ss:$9 sm:$0xff] %v9579_v22 }
 0x770   : > { %3333 = vst [vmem:[#allocation1 + $0x1] ss:$9 sm:$0xff] %v9583_v20 }
 0x771   : > { %v3025_v40 = vpop.permute.xlu2 %3024 }
 0x772   : > { %v9605_v60 = vsel %vm3764_vm10, %v3741_v42, %v3025_v40  ;;  %v12894_v42 = vld [vmem:[#allocation311_spill] sm:$0xff]  ;;  %v12898_v40 = vld [vmem:[#allocation316_spill] sm:$0xff] }
 0x777   : > { %v9593_v46 = vld [vmem:[#allocation1] sm:$0xff] }
 0x778   : > { %3362 = vst [vmem:[#allocation1] ss:$9 sm:$0xff] %v12880_v35  ;;  %v12895_v35 = vld [vmem:[#allocation313_spill] sm:$0xff] }
 0x779   : > { %3364 = vst [vmem:[#allocation1 + $0x1] ss:$9 sm:$0xff] %v12881_v33  ;;  %v12896_v33 = vld [vmem:[#allocation314_spill] sm:$0xff] }
 0x77a   : > { %3366 = vst [vmem:[#allocation1 + $0x2] ss:$9 sm:$0xff] %v12882_v30  ;;  %v3031_v30 = vpop.permute.xlu2 %3030 }
 0x77b   : > { %3368 = vst [vmem:[#allocation1 + $0x3] ss:$9 sm:$0xff] %v12884_v2  ;;  %v12897_v2 = vld [vmem:[#allocation315_spill] sm:$0xff]  ;;  %v9626_v0 = vsel %vm3764_vm10, %v3747_v45, %v3031_v30  ;;  %v12903_v45 = vld [vmem:[#allocation321_spill] sm:$0xff] }
 0x77c   : > { %3370 = vst [vmem:[#allocation1 + $0x4] ss:$9 sm:$0xff] %v12885_v47  ;;  %v3722_v47 = vsel %vm3710_vm8, %v3695_v37, %v2712_v54  ;;  %v12908_v37 = vld [vmem:[#allocation319_spill] sm:$0xff] }
 0x77d   : > { %3372 = vst [vmem:[#allocation1 + $0x5] ss:$9 sm:$0xff] %v12886_v18  ;;  %v2871_v18 = vpop.permute.xlu1 %2870 }
 0x77e   : > { %3374 = vst [vmem:[#allocation1 + $0x6] ss:$9 sm:$0xff] %v12887_v7  ;;  %v9631_v61 = vsel %vm3737_vm9, %v3724_v1, %v2871_v18  ;;  %v12899_v7 = vld [vmem:[#allocation317_spill] sm:$0xff]  ;;  %v12910_v18 = vld [vmem:[#allocation416_spill] sm:$0xff] }
 0x77f   : > { %3376 = vst [vmem:[#allocation1 + $0x7] ss:$9 sm:$0xff] %v12888_v28  ;;  %v12902_v28 = vld [vmem:[#allocation318_spill] sm:$0xff]  ;;  %v12909_v1 = vld [vmem:[#allocation33_spill] sm:$0xff] }
 0x786   : > { %v3377_v9 = vld [vmem:[#allocation1] sm:$0xff] }
 0x787   : > { %3500 = vrot.lane.b32.xlu0 %v3377_v9, %s6672_s15  ;;  %3379 = vst [vmem:[#allocation1] ss:$9 sm:$0xff] %v12889_v49  ;;  %v3730_v9 = vsel %vm3710_vm8, %v3703_v32, %v9495_v55  ;;  %v12904_v49 = vld [vmem:[#allocation414_spill] sm:$0xff] }
 0x788   : > { %3380 = vst [vmem:[#allocation1 + $0x1] ss:$9 sm:$0xff] %v12890_v38  ;;  %v12905_v38 = vld [vmem:[#allocation325_spill] sm:$0xff] }
 0x789   : > { %3381 = vst [vmem:[#allocation1 + $0x2] ss:$9 sm:$0xff] %v12892_v39  ;;  %v2877_v39 = vpop.permute.xlu1 %2876 }
 0x78a   : > { %3382 = vst [vmem:[#allocation1 + $0x3] ss:$9 sm:$0xff] %v12894_v42  ;;  %v9648_v23 = vsel %vm3737_vm9, %v3730_v9, %v2877_v39  ;;  %v3691_v42 = vsel %vm3683_vm7, %v12908_v37, %v9448_v17  ;;  %v12912_v17 = vld [vmem:[#allocation418_spill] sm:$0xff] }
 0x78b   : > { %3383 = vst [vmem:[#allocation1 + $0x4] ss:$9 sm:$0xff] %v12895_v35  ;;  %v3718_v55 = vsel %vm3710_vm8, %v3691_v42, %v9530_v26  ;;  %v2865_v35 = vpop.permute.xlu0 %2864  ;;  %v12913_v26 = vld [vmem:[#allocation419_spill] sm:$0xff]  ;;  %v12919_v39 = vld [vmem:[#allocation50_spill] sm:$0xff]  ;;  %v12923_v42 = vld [vmem:[#allocation424_spill] sm:$0xff] }
 0x78c   : > { %3384 = vst [vmem:[#allocation1 + $0x5] ss:$9 sm:$0xff] %v12896_v33  ;;  %v3745_v30 = vsel %vm3737_vm9, %v3718_v55, %v2865_v35  ;;  %v12921_v37 = vld [vmem:[#allocation422_spill] sm:$0xff]  ;;  %v12924_v55 = vld [vmem:[#allocation425_spill] sm:$0xff] }
 0x78d   : > { %3385 = vst [vmem:[#allocation1 + $0x6] ss:$9 sm:$0xff] %v12897_v2 }
 0x78e   : > { %3386 = vst [vmem:[#allocation1 + $0x7] ss:$9 sm:$0xff] %v12898_v40  ;;  %v12911_v40 = vld [vmem:[#allocation417_spill] sm:$0xff] }
 0x791   : > { %v3023_v54 = vpop.permute.xlu1 %3022 }
 0x792   : > { %v9660_v2 = vsel %vm3764_vm10, %v9505_v11, %v3023_v54 }
 0x793   : > { %v2869_v32 = vpop.permute.xlu0 %2868 }
 0x794   : > { %v9672_v11 = vsel %vm3737_vm9, %v3722_v47, %v2869_v32  ;;  %v12922_v47 = vld [vmem:[#allocation423_spill] sm:$0xff]  ;;  %v12930_v32 = vld [vmem:[#allocation429_spill] sm:$0xff] }
 0x795   : > { %v3387_v10 = vld [vmem:[#allocation1] sm:$0xff] }
 0x796   : > { %3502 = vrot.lane.b32.xlu2 %v3387_v10, %s6672_s15  ;;  %3389 = vst [vmem:[#allocation1] ss:$9 sm:$0xff] %v12899_v7  ;;  %v12914_v10 = vld [vmem:[#allocation334_spill] sm:$0xff]  ;;  %v9667_v7 = vpop.permute.xlu2 %3038 }
 0x797   : > { %3390 = vst [vmem:[#allocation1 + $0x1] ss:$9 sm:$0xff] %v12901_v59  ;;  %v12916_v59 = vld [vmem:[#allocation42_spill] sm:$0xff] }
 0x798   : > { %3391 = vst [vmem:[#allocation1 + $0x2] ss:$9 sm:$0xff] %v12902_v28 }
 0x799   : > { %3392 = vst [vmem:[#allocation1 + $0x3] ss:$9 sm:$0xff] %v12903_v45  ;;  %v3029_v28 = vpop.permute.xlu1 %3028 }
 0x79a   : > { %3393 = vst [vmem:[#allocation1 + $0x4] ss:$9 sm:$0xff] %v12904_v49  ;;  %v9675_v45 = vsel %vm3764_vm10, %v3745_v30, %v3029_v28  ;;  %v12917_v49 = vld [vmem:[#allocation420_spill] sm:$0xff] }
 0x79b   : > { %3394 = vst [vmem:[#allocation1 + $0x5] ss:$9 sm:$0xff] %v12905_v38 }
 0x79c   : > { %3395 = vst [vmem:[#allocation1 + $0x6] ss:$9 sm:$0xff] %v12906_v21  ;;  %v12918_v21 = vld [vmem:[#allocation421_spill] sm:$0xff] }
 0x79d   : > { %3396 = vst [vmem:[#allocation1 + $0x7] ss:$9 sm:$0xff] %v12907_v50  ;;  %v12920_v50 = vld [vmem:[#allocation341_spill] sm:$0xff] }
 0x79e   : > { %v9679_v38 = vpop.permute.xlu2 %3179 }
 0x7a4   : > { %v3397_v33 = vld [vmem:[#allocation1] sm:$0xff] }
 0x7a5   : > { %3504 = vrot.lane.b32.xlu0 %v3397_v33, %s6672_s15  ;;  %3399 = vst [vmem:[#allocation1] ss:$9 sm:$0xff] %v12909_v1  ;;  %v12925_v33 = vld [vmem:[#allocation356_spill] sm:$0xff]  ;;  %v12926_v1 = vld [vmem:[#allocation367_spill] sm:$0xff] }
 0x7a6   : > { %3400 = vst [vmem:[#allocation1 + $0x1] ss:$9 sm:$0xff] %v12910_v18  ;;  %v3184_v35 = vpop.permute.xlu2 %3183  ;;  %v3699_v30 = vsel %vm3683_vm7, %v12925_v33, %v9453_v25  ;;  %v3701_v18 = vsel %vm3683_vm7, %v12926_v1, %v9522_v63  ;;  %v12931_v25 = vld [vmem:[#allocation430_spill] sm:$0xff]  ;;  %v2875_v63 = vpop.permute.xlu0 %2874 }
 0x7a7   : > { %3401 = vst [vmem:[#allocation1 + $0x2] ss:$9 sm:$0xff] %v12911_v40  ;;  %v12927_v40 = vld [vmem:[#allocation426_spill] sm:$0xff] }
 0x7a8   : > { %3402 = vst [vmem:[#allocation1 + $0x3] ss:$9 sm:$0xff] %v12912_v17  ;;  %v12928_v17 = vld [vmem:[#allocation427_spill] sm:$0xff]  ;;  %v12939_v33 = vld [vmem:[#allocation438_spill] sm:$0xff] }
 0x7a9   : > { %3403 = vst [vmem:[#allocation1 + $0x4] ss:$9 sm:$0xff] %v12913_v26  ;;  %v3726_v26 = vsel %vm3710_vm8, %v3699_v30, %v2716_v51  ;;  %v12940_v30 = vld [vmem:[#allocation439_spill] sm:$0xff] }
 0x7aa   : > { %3404 = vst [vmem:[#allocation1 + $0x5] ss:$9 sm:$0xff] %v12914_v10  ;;  %v12929_v10 = vld [vmem:[#allocation428_spill] sm:$0xff] }
 0x7ab   : > { %3405 = vst [vmem:[#allocation1 + $0x6] ss:$9 sm:$0xff] %v12915_v15  ;;  %v3728_v15 = vsel %vm3710_vm8, %v3701_v18, %v9483_v48  ;;  %v12941_v18 = vld [vmem:[#allocation440_spill] sm:$0xff] }
 0x7ac   : > { %3406 = vst [vmem:[#allocation1 + $0x7] ss:$9 sm:$0xff] %v12916_v59  ;;  %v12932_v59 = vld [vmem:[#allocation431_spill] sm:$0xff]  ;;  %v3755_v48 = vsel %vm3737_vm9, %v3728_v15, %v2875_v63 }
 0x7ae   : > { %v3188_v28 = vpop.permute.xlu2 %3187  ;;  %v3027_v1 = vpop.permute.xlu0 %3026 }
 0x7af   : > { %v9710_v51 = vsel %vm3791_vm11, %v9626_v0, %v3188_v28  ;;  %v3743_v0 = vsel %vm3737_vm9, %v9479_v3, %v9574_v56  ;;  %v12943_v3 = vld [vmem:[#allocation442_spill] sm:$0xff]  ;;  %v12944_v56 = vld [vmem:[#allocation443_spill] sm:$0xff]  ;;  %v12948_v28 = vld [vmem:[#allocation445_spill] sm:$0xff] }
 0x7b3   : > { %v3407_v9 = vld [vmem:[#allocation1] sm:$0xff] }
 0x7b4   : > { %3506 = vrot.lane.b32.xlu1 %v3407_v9, %s6672_s15  ;;  %3409 = vst [vmem:[#allocation1] ss:$9 sm:$0xff] %v12917_v49  ;;  %v3753_v9 = vsel %vm3737_vm9, %v3726_v26, %v9591_v36  ;;  %v12933_v49 = vld [vmem:[#allocation432_spill] sm:$0xff] }
 0x7b5   : > { %3410 = vst [vmem:[#allocation1 + $0x1] ss:$9 sm:$0xff] %v12918_v21  ;;  %v3037_v21 = vpop.permute.xlu1 %3036  ;;  %v12937_v36 = vld [vmem:[#allocation436_spill] sm:$0xff] }
 0x7b6   : > { %3411 = vst [vmem:[#allocation1 + $0x2] ss:$9 sm:$0xff] %v12919_v39  ;;  %v12934_v39 = vld [vmem:[#allocation433_spill] sm:$0xff]  ;;  %v9729_v26 = vpop.permute.xlu2 %3191 }
 0x7b7   : > { %3412 = vst [vmem:[#allocation1 + $0x3] ss:$9 sm:$0xff] %v12920_v50  ;;  %v3780_v50 = vsel %vm3764_vm10, %v3753_v9, %v3037_v21  ;;  %v3035_v9 = vpop.permute.xlu0 %3034 }
 0x7b8   : > { %3413 = vst [vmem:[#allocation1 + $0x4] ss:$9 sm:$0xff] %v12921_v37 }
 0x7b9   : > { %3414 = vst [vmem:[#allocation1 + $0x5] ss:$9 sm:$0xff] %v12922_v47  ;;  %v12935_v47 = vld [vmem:[#allocation434_spill] sm:$0xff] }
 0x7ba   : > { %3415 = vst [vmem:[#allocation1 + $0x6] ss:$9 sm:$0xff] %v12923_v42  ;;  %v12936_v42 = vld [vmem:[#allocation435_spill] sm:$0xff] }
 0x7bb   : > { %3416 = vst [vmem:[#allocation1 + $0x7] ss:$9 sm:$0xff] %v12924_v55  ;;  %v12938_v55 = vld [vmem:[#allocation437_spill] sm:$0xff] }
 0x7be   : > { %v9740_v63 = vpop.permute.xlu2 %3336 }
 0x7c2   : > { %v9691_v54 = vld [vmem:[#allocation1] sm:$0xff] }
 0x7c3   : > { %3419 = vst [vmem:[#allocation1] ss:$9 sm:$0xff] %v12927_v40  ;;  %v3770_v40 = vsel %vm3764_vm10, %v3743_v0, %v3027_v1  ;;  %v12954_v1 = vld [vmem:[#allocation450_spill] sm:$0xff] }
 0x7c4   : > { %3420 = vst [vmem:[#allocation1 + $0x1] ss:$9 sm:$0xff] %v12928_v17  ;;  %v12942_v17 = vld [vmem:[#allocation441_spill] sm:$0xff]  ;;  %v9745_v21 = vsel %vm3791_vm11, %v3770_v40, %v3184_v35  ;;  %v12951_v35 = vld [vmem:[#allocation448_spill] sm:$0xff] }
 0x7c5   : > { %3421 = vst [vmem:[#allocation1 + $0x2] ss:$9 sm:$0xff] %v12929_v10  ;;  %v9731_v10 = vpop.permute.xlu1 %3181  ;;  %v12956_v40 = vld [vmem:[#allocation452_spill] sm:$0xff] }
 0x7c6   : > { %3422 = vst [vmem:[#allocation1 + $0x3] ss:$9 sm:$0xff] %v12930_v32  ;;  %v12945_v32 = vld [vmem:[#allocation362_spill] sm:$0xff] }
 0x7c7   : > { %3423 = vst [vmem:[#allocation1 + $0x4] ss:$9 sm:$0xff] %v12931_v25  ;;  %v12946_v25 = vld [vmem:[#allocation72_spill] sm:$0xff] }
 0x7c8   : > { %3424 = vst [vmem:[#allocation1 + $0x5] ss:$9 sm:$0xff] %v12932_v59  ;;  %v12947_v59 = vld [vmem:[#allocation444_spill] sm:$0xff] }
 0x7c9   : > { %3425 = vst [vmem:[#allocation1 + $0x6] ss:$9 sm:$0xff] %v12933_v49  ;;  %v3782_v49 = vsel %vm3764_vm10, %v3755_v48, %v9667_v7  ;;  %v12953_v48 = vld [vmem:[#allocation449_spill] sm:$0xff] }
 0x7ca   : > { %3426 = vst [vmem:[#allocation1 + $0x7] ss:$9 sm:$0xff] %v12934_v39  ;;  %v12949_v39 = vld [vmem:[#allocation446_spill] sm:$0xff] }
 0x7d1   : > { %v9715_v37 = vld [vmem:[#allocation1] sm:$0xff] }
 0x7d2   : > { %3429 = vst [vmem:[#allocation1] ss:$9 sm:$0xff] %v12935_v47  ;;  %v9750_v47 = vsel %vm3764_vm10, %v9631_v61, %v3035_v9  ;;  %v12952_v61 = vld [vmem:[#allocation80_spill] sm:$0xff]  ;;  %v12961_v9 = vld [vmem:[#allocation455_spill] sm:$0xff] }
 0x7d3   : > { %3430 = vst [vmem:[#allocation1 + $0x1] ss:$9 sm:$0xff] %v12936_v42  ;;  %v3196_v42 = vpop.permute.xlu1 %3195 }
 0x7d4   : > { %3431 = vst [vmem:[#allocation1 + $0x2] ss:$9 sm:$0xff] %v12937_v36  ;;  %v12950_v36 = vld [vmem:[#allocation447_spill] sm:$0xff]  ;;  %v3809_v0 = vsel %vm3791_vm11, %v3782_v49, %v3196_v42  ;;  %v12962_v49 = vld [vmem:[#allocation456_spill] sm:$0xff] }
 0x7d5   : > { %3432 = vst [vmem:[#allocation1 + $0x3] ss:$9 sm:$0xff] %v12938_v55  ;;  %v9754_v55 = vpop.permute.xlu2 %3342  ;;  %v12965_v42 = vld [vmem:[#allocation387_spill] sm:$0xff] }
 0x7d6   : > { %3433 = vst [vmem:[#allocation1 + $0x4] ss:$9 sm:$0xff] %v12939_v33  ;;  %v3186_v33 = vpop.permute.xlu0 %3185 }
 0x7d7   : > { %3434 = vst [vmem:[#allocation1 + $0x5] ss:$9 sm:$0xff] %v12940_v30  ;;  %v9758_v7 = vsel %vm3791_vm11, %v9675_v45, %v3186_v33  ;;  %v12966_v33 = vld [vmem:[#allocation96_spill] sm:$0xff] }
 0x7d8   : > { %3435 = vst [vmem:[#allocation1 + $0x6] ss:$9 sm:$0xff] %v12941_v18  ;;  %v12955_v18 = vld [vmem:[#allocation451_spill] sm:$0xff] }
 0x7d9   : > { %3436 = vst [vmem:[#allocation1 + $0x7] ss:$9 sm:$0xff] %v12942_v17 }
 0x7dd   : > { %v9768_v17 = vpop.permute.xlu2 %3344 }
 0x7de   : > { %v3194_v45 = vpop.permute.xlu0 %3193 }
 0x7e0   : > { %v3437_v15 = vld [vmem:[#allocation1] sm:$0xff] }
 0x7e1   : > { %3512 = vrot.lane.b32.xlu1 %v3437_v15, %s6672_s15  ;;  %3439 = vst [vmem:[#allocation1] ss:$9 sm:$0xff] %v12943_v3  ;;  %v12957_v15 = vld [vmem:[#allocation453_spill] sm:$0xff]  ;;  %v9772_v3 = vsel %vm3791_vm11, %v3780_v50, %v3194_v45  ;;  %v12963_v50 = vld [vmem:[#allocation458_spill] sm:$0xff] }
 0x7e2   : > { %3440 = vst [vmem:[#allocation1 + $0x1] ss:$9 sm:$0xff] %v12944_v56 }
 0x7e3   : > { %3441 = vst [vmem:[#allocation1 + $0x2] ss:$9 sm:$0xff] %v12945_v32  ;;  %v12958_v32 = vld [vmem:[#allocation382_spill] sm:$0xff] }
 0x7e4   : > { %3442 = vst [vmem:[#allocation1 + $0x3] ss:$9 sm:$0xff] %v12946_v25 }
 0x7e5   : > { %3443 = vst [vmem:[#allocation1 + $0x4] ss:$9 sm:$0xff] %v12947_v59  ;;  %v12959_v59 = vld [vmem:[#allocation88_spill] sm:$0xff] }
 0x7e6   : > { %3444 = vst [vmem:[#allocation1 + $0x5] ss:$9 sm:$0xff] %v12948_v28  ;;  %v12960_v28 = vld [vmem:[#allocation454_spill] sm:$0xff] }
 0x7e7   : > { %3445 = vst [vmem:[#allocation1 + $0x6] ss:$9 sm:$0xff] %v12949_v39  ;;  %v12964_v39 = vld [vmem:[#allocation459_spill] sm:$0xff] }
 0x7e8   : > { %3446 = vst [vmem:[#allocation1 + $0x7] ss:$9 sm:$0xff] %v12950_v36 }
 0x7ef   : > { %v3447_v30 = vld [vmem:[#allocation1] sm:$0xff] }
 0x7f0   : > { %3514 = vrot.lane.b32.xlu2 %v3447_v30, %s6672_s15  ;;  %3449 = vst [vmem:[#allocation1] ss:$9 sm:$0xff] %v12951_v35  ;;  %v2014_v30 = vshll.u32 %v9552_v14, 16  ;;  %v2017_v35 = vshrl.u32 %v9552_v14, 16  ;;  %v12967_v14 = vld [vmem:[#allocation11_spill] sm:$0xff] }
 0x7f1   : > { %3450 = vst [vmem:[#allocation1 + $0x1] ss:$9 sm:$0xff] %v12707_v34  ;;  %v3353_v34 = vpop.permute.xlu2 %3352 }
 0x7f2   : > { %3451 = vst [vmem:[#allocation1 + $0x2] ss:$9 sm:$0xff] %v12952_v61  ;;  %v9777_v25 = vsel %vm3818_vm12, %v3809_v0, %v3353_v34  ;;  %v2009_v0 = vshrl.u32 %v9550_v43, 16  ;;  %v2045_v43 = vshll.u32 %v9579_v22, 16 }
 0x7f3   : > { %3452 = vst [vmem:[#allocation1 + $0x3] ss:$9 sm:$0xff] %v12953_v48  ;;  %v12968_v48 = vld [vmem:[#allocation12_spill] sm:$0xff] }
 0x7f4   : > { %3453 = vst [vmem:[#allocation1 + $0x4] ss:$9 sm:$0xff] %v12954_v1 }
 0x7f5   : > { %3454 = vst [vmem:[#allocation1 + $0x5] ss:$9 sm:$0xff] %v12955_v18  ;;  %v12969_v18 = vld [vmem:[#allocation13_spill] sm:$0xff] }
 0x7f6   : > { %3455 = vst [vmem:[#allocation1 + $0x6] ss:$9 sm:$0xff] %v12956_v40 }
 0x7f7   : > { %3456 = vst [vmem:[#allocation1 + $0x7] ss:$9 sm:$0xff] %v12957_v15  ;;  %v2048_v15 = vshrl.u32 %v9579_v22, 16 }
 0x7fe   : > { %v3457_v56 = vld [vmem:[#allocation1] sm:$0xff] }
 0x7ff   : > { %3516 = vrot.lane.b32.xlu0 %v3457_v56, %s6672_s15  ;;  %3459 = vst [vmem:[#allocation1] ss:$9 sm:$0xff] %v12958_v32 }
 0x800   : > { %3460 = vst [vmem:[#allocation1 + $0x1] ss:$9 sm:$0xff] %v12959_v59 }
 0x801   : > { %3461 = vst [vmem:[#allocation1 + $0x2] ss:$9 sm:$0xff] %v12960_v28  ;;  %v9836_v28 = vsel %vm3791_vm11, %v9750_v47, %v9729_v26  ;;  %v12977_v26 = vld [vmem:[#allocation215_spill] sm:$0xff] }
 0x802   : > { %3462 = vst [vmem:[#allocation1 + $0x3] ss:$9 sm:$0xff] %v12961_v9  ;;  %v12970_v9 = vld [vmem:[#allocation208_spill] sm:$0xff] }
 0x803   : > { %3463 = vst [vmem:[#allocation1 + $0x4] ss:$9 sm:$0xff] %v12962_v49  ;;  %v12972_v49 = vld [vmem:[#allocation210_spill] sm:$0xff] }
 0x804   : > { %3464 = vst [vmem:[#allocation1 + $0x5] ss:$9 sm:$0xff] %v12963_v50  ;;  %v12973_v50 = vld [vmem:[#allocation211_spill] sm:$0xff] }
 0x805   : > { %3465 = vst [vmem:[#allocation1 + $0x6] ss:$9 sm:$0xff] %v12964_v39  ;;  %v12975_v39 = vld [vmem:[#allocation213_spill] sm:$0xff] }
 0x806   : > { %3466 = vst [vmem:[#allocation1 + $0x7] ss:$9 sm:$0xff] %v12965_v42  ;;  %v12976_v42 = vld [vmem:[#allocation214_spill] sm:$0xff] }
 0x80d   : > { %v9786_v36 = vld [vmem:[#allocation1] sm:$0xff] }
 0x80e   : > { %3469 = vst [vmem:[#allocation1] ss:$9 sm:$0xff] %v12966_v33  ;;  %v12978_v33 = vld [vmem:[#allocation216_spill] sm:$0xff] }
 0x80f   : > { %3470 = vst [vmem:[#allocation1 + $0x1] ss:$9 sm:$0xff] %v12719_v41  ;;  %v2022_v41 = vshll.u32 %v9555_v13, 16 }
 0x810   : > { %3471 = vst [vmem:[#allocation1 + $0x2] ss:$9 sm:$0xff] %v12720_v44  ;;  %v2025_v44 = vshrl.u32 %v9555_v13, 16 }
 0x811   : > { %3472 = vst [vmem:[#allocation1 + $0x3] ss:$9 sm:$0xff] %v12721_v27  ;;  %v2030_v27 = vshll.u32 %v9558_v16, 16  ;;  %v2024_v13 = vsel %vm8157_vm6, %v2017_v35, %v2022_v41  ;;  %v12981_v35 = vld [vmem:[#allocation219_spill] sm:$0xff]  ;;  %v12982_v41 = vld [vmem:[#allocation220_spill] sm:$0xff] }
 0x812   : > { %3473 = vst [vmem:[#allocation1 + $0x4] ss:$9 sm:$0xff] %v9243_v6  ;;  %v2033_v6 = vshrl.u32 %v9558_v16, 16  ;;  %v2006_v16 = vsel %vm519_vm0, %v12878_v4, %v9546_v5  ;;  %v2053_v4 = vshll.u32 %v9583_v20, 16  ;;  %v2056_v5 = vshrl.u32 %v9583_v20, 16  ;;  %v12971_v20 = vld [vmem:[#allocation209_spill] sm:$0xff] }
 0x813   : > { %3474 = vst [vmem:[#allocation1 + $0x5] ss:$9 sm:$0xff] %v9250_v8  ;;  %v2037_v8 = vshll.u32 %v9565_v19, 16  ;;  %v2032_v1 = vsel %vm8157_vm6, %v2025_v44, %v2030_v27  ;;  %v2008_v45 = vrot.slane %v2006_v16, 3  ;;  %v12983_v44 = vld [vmem:[#allocation221_spill] sm:$0xff]  ;;  %v12984_v27 = vld [vmem:[#allocation222_spill] sm:$0xff] }
 0x814   : > { %3475 = vst [vmem:[#allocation1 + $0x6] ss:$9 sm:$0xff] %v9258_v24  ;;  %v2040_v24 = vshrl.u32 %v9565_v19, 16  ;;  %v2055_v34 = vsel %vm8157_vm6, %v2048_v15, %v2053_v4  ;;  %v12992_v16 = vld [vmem:[#allocation230_spill] sm:$0xff]  ;;  %v12997_v15 = vld [vmem:[#allocation17_spill] sm:$0xff] }
 0x815   : > { %3476 = vst [vmem:[#allocation1 + $0x7] ss:$9 sm:$0xff] %v9263_v31  ;;  %v2016_v31 = vsel %vm8157_vm6, %v2009_v0, %v2014_v30  ;;  %v2039_v19 = vsel %vm8157_vm6, %v2033_v6, %v2037_v8  ;;  %v2061_v56 = vshll.u32 %v2008_v45, 16  ;;  %v12979_v0 = vld [vmem:[#allocation217_spill] sm:$0xff]  ;;  %v12980_v30 = vld [vmem:[#allocation218_spill] sm:$0xff]  ;;  %v12985_v6 = vld [vmem:[#allocation223_spill] sm:$0xff] }
 0x816   : > { %v2047_v40 = vsel %vm8157_vm6, %v2040_v24, %v2045_v43  ;;  %v12987_v24 = vld [vmem:[#allocation225_spill] sm:$0xff]  ;;  %v12988_v43 = vld [vmem:[#allocation226_spill] sm:$0xff] }
 0x817   : > { %v2063_v32 = vsel %vm8157_vm6, %v2056_v5, %v2061_v56  ;;  %v12996_v45 = vld [vmem:[#allocation233_spill] sm:$0xff]  ;;  %v12998_v4 = vld [vmem:[#allocation234_spill] sm:$0xff]  ;;  %v12999_v5 = vld [vmem:[#allocation235_spill] sm:$0xff]  ;;  %vm4701_vm6 = vcmask 1044484  }
 0x818   : > { %v13000_v56 = vld [vmem:[#allocation236_spill] sm:$0xff] }
 0x81c   : > { %v9804_v61 = vld [vmem:[#allocation1] sm:$0xff] }
 0x81d   : > { %3479 = vst [vmem:[#allocation1] ss:$9 sm:$0xff] %v12967_v14  ;;  %v12989_v14 = vld [vmem:[#allocation227_spill] sm:$0xff] }
 0x81e   : > { %3480 = vst [vmem:[#allocation1 + $0x1] ss:$9 sm:$0xff] %v12968_v48  ;;  %v12991_v48 = vld [vmem:[#allocation229_spill] sm:$0xff] }
 0x81f   : > { %3481 = vst [vmem:[#allocation1 + $0x2] ss:$9 sm:$0xff] %v12969_v18  ;;  %v12994_v18 = vld [vmem:[#allocation9_spill] sm:$0xff] }
 0x820   : > { %3483 = vst [vmem:[#allocation1 + $0x3] ss:$9 sm:$0xff] %v2016_v31  ;;  %v12986_v31 = vld [vmem:[#allocation224_spill] sm:$0xff] }
 0x821   : > { %3485 = vst [vmem:[#allocation1 + $0x4] ss:$9 sm:$0xff] %v2024_v13  ;;  %v12990_v13 = vld [vmem:[#allocation228_spill] sm:$0xff] }
 0x822   : > { %3487 = vst [vmem:[#allocation1 + $0x5] ss:$9 sm:$0xff] %v2032_v1  ;;  %v12993_v1 = vld [vmem:[#allocation231_spill] sm:$0xff] }
 0x823   : > { %3489 = vst [vmem:[#allocation1 + $0x6] ss:$9 sm:$0xff] %v2039_v19 }
 0x824   : > { %3491 = vst [vmem:[#allocation1 + $0x7] ss:$9 sm:$0xff] %v2047_v40  ;;  %v12995_v40 = vld [vmem:[#allocation232_spill] sm:$0xff] }
 0x82b   : > { %v9831_v59 = vld [vmem:[#allocation1] sm:$0xff] }
 0x82c   : > { %3495 = vst [vmem:[#allocation1] ss:$9 sm:$0xff] %v2055_v34  ;;  %v13001_v34 = vld [vmem:[#allocation237_spill] sm:$0xff] }
 0x82d   : > { %3497 = vst [vmem:[#allocation1 + $0x1] ss:$9 sm:$0xff] %v2063_v32  ;;  %v13002_v32 = vld [vmem:[#allocation238_spill] sm:$0xff] }
 0x834   : > { %v9838_v22 = vld [vmem:[#allocation1] sm:$0xff] }
 0x835   : > { %3526 = vst [vmem:[#allocation1] ss:$9 sm:$0xff] %v12970_v9  ;;  %v13003_v9 = vld [vmem:[#allocation239_spill] sm:$0xff] }
 0x836   : > { %3528 = vst [vmem:[#allocation1 + $0x1] ss:$9 sm:$0xff] %v12971_v20 }
 0x837   : > { %3530 = vst [vmem:[#allocation1 + $0x2] ss:$9 sm:$0xff] %v12972_v49  ;;  %v13004_v49 = vld [vmem:[#allocation240_spill] sm:$0xff] }
 0x838   : > { %3532 = vst [vmem:[#allocation1 + $0x3] ss:$9 sm:$0xff] %v12973_v50  ;;  %v13005_v50 = vld [vmem:[#allocation241_spill] sm:$0xff] }
 0x839   : > { %3534 = vst [vmem:[#allocation1 + $0x4] ss:$9 sm:$0xff] %v12974_v52  ;;  %v13006_v52 = vld [vmem:[#allocation242_spill] sm:$0xff] }
 0x83a   : > { %3536 = vst [vmem:[#allocation1 + $0x5] ss:$9 sm:$0xff] %v12975_v39  ;;  %v13007_v39 = vld [vmem:[#allocation5_spill] sm:$0xff] }
 0x83b   : > { %3538 = vst [vmem:[#allocation1 + $0x6] ss:$9 sm:$0xff] %v12976_v42  ;;  %v13008_v42 = vld [vmem:[#allocation243_spill] sm:$0xff] }
 0x83c   : > { %3540 = vst [vmem:[#allocation1 + $0x7] ss:$9 sm:$0xff] %v12977_v26  ;;  %v13009_v26 = vld [vmem:[#allocation244_spill] sm:$0xff] }
 0x843   : > { %v3541_v47 = vld [vmem:[#allocation1] sm:$0xff] }
 0x844   : > { %3657 = vrot.lane.b32.xlu1 %v3541_v47, %s6673_s16  ;;  %3543 = vst [vmem:[#allocation1] ss:$9 sm:$0xff] %v12978_v33  ;;  %v13010_v47 = vld [vmem:[#allocation245_spill] sm:$0xff]  ;;  %v13011_v33 = vld [vmem:[#allocation246_spill] sm:$0xff] }
 0x845   : > { %3544 = vst [vmem:[#allocation1 + $0x1] ss:$9 sm:$0xff] %v12979_v0  ;;  %v13013_v0 = vld [vmem:[#allocation8_spill] sm:$0xff] }
 0x846   : > { %3545 = vst [vmem:[#allocation1 + $0x2] ss:$9 sm:$0xff] %v12980_v30 }
 0x847   : > { %3546 = vst [vmem:[#allocation1 + $0x3] ss:$9 sm:$0xff] %v12981_v35  ;;  %v13014_v35 = vld [vmem:[#allocation248_spill] sm:$0xff] }
 0x848   : > { %3547 = vst [vmem:[#allocation1 + $0x4] ss:$9 sm:$0xff] %v12982_v41  ;;  %v13015_v41 = vld [vmem:[#allocation16_spill] sm:$0xff] }
 0x849   : > { %3548 = vst [vmem:[#allocation1 + $0x5] ss:$9 sm:$0xff] %v12983_v44  ;;  %v13016_v44 = vld [vmem:[#allocation249_spill] sm:$0xff] }
 0x84a   : > { %3549 = vst [vmem:[#allocation1 + $0x6] ss:$9 sm:$0xff] %v12984_v27  ;;  %v13017_v27 = vld [vmem:[#allocation250_spill] sm:$0xff] }
 0x84b   : > { %3550 = vst [vmem:[#allocation1 + $0x7] ss:$9 sm:$0xff] %v12985_v6  ;;  %v13018_v6 = vld [vmem:[#allocation251_spill] sm:$0xff] }
 0x852   : > { %v3551_v8 = vld [vmem:[#allocation1] sm:$0xff] }
 0x853   : > { %3659 = vrot.lane.b32.xlu1 %v3551_v8, %s6673_s16  ;;  %3553 = vst [vmem:[#allocation1] ss:$9 sm:$0xff] %v12986_v31  ;;  %v13019_v8 = vld [vmem:[#allocation252_spill] sm:$0xff]  ;;  %v13020_v31 = vld [vmem:[#allocation253_spill] sm:$0xff] }
 0x854   : > { %3554 = vst [vmem:[#allocation1 + $0x1] ss:$9 sm:$0xff] %v12987_v24  ;;  %v13021_v24 = vld [vmem:[#allocation254_spill] sm:$0xff] }
 0x855   : > { %3555 = vst [vmem:[#allocation1 + $0x2] ss:$9 sm:$0xff] %v12988_v43  ;;  %v13022_v43 = vld [vmem:[#allocation255_spill] sm:$0xff] }
 0x856   : > { %3556 = vst [vmem:[#allocation1 + $0x3] ss:$9 sm:$0xff] %v12989_v14 }
 0x857   : > { %3557 = vst [vmem:[#allocation1 + $0x4] ss:$9 sm:$0xff] %v12990_v13  ;;  %v13023_v13 = vld [vmem:[#allocation256_spill] sm:$0xff] }
 0x858   : > { %3558 = vst [vmem:[#allocation1 + $0x5] ss:$9 sm:$0xff] %v12991_v48  ;;  %v13024_v48 = vld [vmem:[#allocation257_spill] sm:$0xff] }
 0x859   : > { %3559 = vst [vmem:[#allocation1 + $0x6] ss:$9 sm:$0xff] %v12992_v16  ;;  %v13025_v16 = vld [vmem:[#allocation258_spill] sm:$0xff] }
 0x85a   : > { %3560 = vst [vmem:[#allocation1 + $0x7] ss:$9 sm:$0xff] %v12993_v1  ;;  %v13026_v1 = vld [vmem:[#allocation259_spill] sm:$0xff] }
 0x85b   : > { %3040 = vrot.lane.b32.xlu1 %v12994_v18, %s6669_s30  ;;  %v13027_v18 = vld [vmem:[#allocation260_spill] sm:$0xff] }
 0x861   : > { %v3561_v19 = vld [vmem:[#allocation1] sm:$0xff] }
 0x862   : > { %3661 = vrot.lane.b32.xlu2 %v3561_v19, %s6673_s16  ;;  %3563 = vst [vmem:[#allocation1] ss:$9 sm:$0xff] %v12995_v40  ;;  %v13028_v19 = vld [vmem:[#allocation261_spill] sm:$0xff]  ;;  %v13029_v40 = vld [vmem:[#allocation262_spill] sm:$0xff] }
 0x863   : > { %3564 = vst [vmem:[#allocation1 + $0x1] ss:$9 sm:$0xff] %v12996_v45  ;;  %3197 = vrot.lane.b32.xlu1 %v12997_v15, %s6670_s13  ;;  %v13030_v45 = vld [vmem:[#allocation263_spill] sm:$0xff] }
 0x864   : > { %3565 = vst [vmem:[#allocation1 + $0x2] ss:$9 sm:$0xff] %v12998_v4  ;;  %v13031_v4 = vld [vmem:[#allocation264_spill] sm:$0xff] }
 0x865   : > { %3566 = vst [vmem:[#allocation1 + $0x3] ss:$9 sm:$0xff] %v12999_v5  ;;  %v13032_v5 = vld [vmem:[#allocation265_spill] sm:$0xff] }
 0x866   : > { %3567 = vst [vmem:[#allocation1 + $0x4] ss:$9 sm:$0xff] %v13000_v56  ;;  %v13033_v56 = vld [vmem:[#allocation266_spill] sm:$0xff] }
 0x867   : > { %3568 = vst [vmem:[#allocation1 + $0x5] ss:$9 sm:$0xff] %v13001_v34  ;;  %v13034_v34 = vld [vmem:[#allocation267_spill] sm:$0xff] }
 0x868   : > { %3569 = vst [vmem:[#allocation1 + $0x6] ss:$9 sm:$0xff] %v13002_v32  ;;  %v13035_v32 = vld [vmem:[#allocation268_spill] sm:$0xff] }
 0x869   : > { %3570 = vst [vmem:[#allocation1 + $0x7] ss:$9 sm:$0xff] %v13003_v9  ;;  %v13036_v9 = vld [vmem:[#allocation269_spill] sm:$0xff] }
 0x86b   : > { %3510 = vrot.lane.b32.xlu1 %v9715_v37, %s6672_s15  ;;  %v13012_v37 = vld [vmem:[#allocation247_spill] sm:$0xff] }
 0x870   : > { %v3571_v20 = vld [vmem:[#allocation1] sm:$0xff] }
 0x871   : > { %3663 = vrot.lane.b32.xlu0 %v3571_v20, %s6673_s16  ;;  %3573 = vst [vmem:[#allocation1] ss:$9 sm:$0xff] %v13004_v49  ;;  %v13037_v20 = vld [vmem:[#allocation270_spill] sm:$0xff]  ;;  %v13038_v49 = vld [vmem:[#allocation271_spill] sm:$0xff] }
 0x872   : > { %3574 = vst [vmem:[#allocation1 + $0x1] ss:$9 sm:$0xff] %v13005_v50  ;;  %v9921_v50 = vpop.permute.xlu1 %3340 }
 0x873   : > { %3575 = vst [vmem:[#allocation1 + $0x2] ss:$9 sm:$0xff] %v13006_v52  ;;  %2878 = vrot.lane.b32.xlu1 %v13007_v39, %s6668_s29  ;;  %v13039_v39 = vld [vmem:[#allocation272_spill] sm:$0xff] }
 0x874   : > { %3576 = vst [vmem:[#allocation1 + $0x3] ss:$9 sm:$0xff] %v13008_v42  ;;  %v13040_v42 = vld [vmem:[#allocation273_spill] sm:$0xff] }
 0x875   : > { %3577 = vst [vmem:[#allocation1 + $0x4] ss:$9 sm:$0xff] %v13009_v26  ;;  %v13041_v26 = vld [vmem:[#allocation274_spill] sm:$0xff] }
 0x876   : > { %3578 = vst [vmem:[#allocation1 + $0x5] ss:$9 sm:$0xff] %v13010_v47 }
 0x877   : > { %3579 = vst [vmem:[#allocation1 + $0x6] ss:$9 sm:$0xff] %v13011_v33  ;;  %v13042_v33 = vld [vmem:[#allocation275_spill] sm:$0xff] }
 0x878   : > { %3580 = vst [vmem:[#allocation1 + $0x7] ss:$9 sm:$0xff] %v13012_v37  ;;  %v13043_v37 = vld [vmem:[#allocation276_spill] sm:$0xff] }
 0x879   : > { %3032 = vrot.lane.b32.xlu0 %v13013_v0, %s6669_s30  ;;  %v13044_v0 = vld [vmem:[#allocation277_spill] sm:$0xff] }
 0x87a   : > { %v9930_v47 = vpop.permute.xlu1 %3350 }
 0x87f   : > { %v3581_v30 = vld [vmem:[#allocation1] sm:$0xff] }
 0x880   : > { %3583 = vst [vmem:[#allocation1] ss:$9 sm:$0xff] %v13014_v35  ;;  %v13046_v35 = vld [vmem:[#allocation279_spill] sm:$0xff] }
 0x881   : > { %3189 = vrot.lane.b32.xlu0 %v13015_v41, %s6670_s13  ;;  %3584 = vst [vmem:[#allocation1 + $0x1] ss:$9 sm:$0xff] %v13016_v44  ;;  %v9937_v41 = vpop.permute.xlu0 %3338 }
 0x882   : > { %3585 = vst [vmem:[#allocation1 + $0x2] ss:$9 sm:$0xff] %v13017_v27  ;;  %v13047_v27 = vld [vmem:[#allocation280_spill] sm:$0xff] }
 0x883   : > { %3586 = vst [vmem:[#allocation1 + $0x3] ss:$9 sm:$0xff] %v13018_v6 }
 0x884   : > { %3587 = vst [vmem:[#allocation1 + $0x4] ss:$9 sm:$0xff] %v13019_v8  ;;  %v13048_v8 = vld [vmem:[#allocation281_spill] sm:$0xff] }
 0x885   : > { %3588 = vst [vmem:[#allocation1 + $0x5] ss:$9 sm:$0xff] %v13020_v31  ;;  %v13049_v31 = vld [vmem:[#allocation282_spill] sm:$0xff] }
 0x886   : > { %3589 = vst [vmem:[#allocation1 + $0x6] ss:$9 sm:$0xff] %v13021_v24  ;;  %v13051_v24 = vld [vmem:[#allocation284_spill] sm:$0xff] }
 0x887   : > { %3590 = vst [vmem:[#allocation1 + $0x7] ss:$9 sm:$0xff] %v13022_v43  ;;  %v13052_v43 = vld [vmem:[#allocation285_spill] sm:$0xff] }
 0x889   : > { %v9947_v6 = vpop.permute.xlu0 %3348 }
 0x88e   : > { %v3591_v14 = vld [vmem:[#allocation1] sm:$0xff] }
 0x88f   : > { %3593 = vst [vmem:[#allocation1] ss:$9 sm:$0xff] %v13023_v13  ;;  %v6370_v13 = vld [vmem:[%s11484_s1 + $0x8] sm:$0xf] }
 0x890   : > { %3594 = vst [vmem:[#allocation1 + $0x1] ss:$9 sm:$0xff] %v13024_v48  ;;  %v13053_v48 = vld [vmem:[#allocation286_spill] sm:$0xff] }
 0x891   : > { %3595 = vst [vmem:[#allocation1 + $0x2] ss:$9 sm:$0xff] %v13025_v16 }
 0x892   : > { %3596 = vst [vmem:[#allocation1 + $0x3] ss:$9 sm:$0xff] %v13026_v1  ;;  %v6674_v1 = vmov 65535  }
 0x893   : > { %3597 = vst [vmem:[#allocation1 + $0x4] ss:$9 sm:$0xff] %v13027_v18  ;;  %v3939_v18 = vsel %vm3937_vm13, 4294967295, %v6674_v1 }
 0x894   : > { %3598 = vst [vmem:[#allocation1 + $0x5] ss:$9 sm:$0xff] %v13028_v19  ;;  %v3940_v19 = vsel %vm3938_vm14, %v3939_v18, 0 }
 0x895   : > { %3599 = vst [vmem:[#allocation1 + $0x6] ss:$9 sm:$0xff] %v13029_v40  ;;  %v13055_v40 = vld [vmem:[#allocation2_spill] sm:$0xff] }
 0x896   : > { %3600 = vst [vmem:[#allocation1 + $0x7] ss:$9 sm:$0xff] %v13030_v45 }
 0x89d   : > { %v3601_v15 = vld [vmem:[#allocation1] sm:$0xff] }
 0x89e   : > { %3669 = vrot.lane.b32.xlu2 %v3601_v15, %s6673_s16  ;;  %3603 = vst [vmem:[#allocation1] ss:$9 sm:$0xff] %v13031_v4  ;;  %v3793_v15 = vsel %vm3791_vm11, %v9660_v2, %v9679_v38  ;;  %v13056_v4 = vld [vmem:[#allocation457_spill] sm:$0xff]  ;;  %v13057_v38 = vld [vmem:[#allocation288_spill] sm:$0xff] }
 0x89f   : > { %3604 = vst [vmem:[#allocation1 + $0x1] ss:$9 sm:$0xff] %v13032_v5  ;;  %v3501_v5 = vpop.permute.xlu0 %3500 }
 0x8a0   : > { %3605 = vst [vmem:[#allocation1 + $0x2] ss:$9 sm:$0xff] %v13033_v56  ;;  %v6585_v56 = vld [vmem:[%s11484_s1] sm:$0xff] }
 0x8a1   : > { %3606 = vst [vmem:[#allocation1 + $0x3] ss:$9 sm:$0xff] %v13034_v34  ;;  %v3820_v34 = vsel %vm3818_vm12, %v3793_v15, %v9740_v63  ;;  %v13060_v63 = vld [vmem:[#allocation18_spill] sm:$0xff]  ;;  %v13080_v15 = vld [vmem:[#allocation307_spill] sm:$0xff] }
 0x8a2   : > { %3607 = vst [vmem:[#allocation1 + $0x4] ss:$9 sm:$0xff] %v13035_v32  ;;  %v3847_v32 = vsel %vm3845_vm15, %v3820_v34, %v3501_v5 }
 0x8a3   : > { %3608 = vst [vmem:[#allocation1 + $0x5] ss:$9 sm:$0xff] %v13036_v9 }
 0x8a4   : > { %3609 = vst [vmem:[#allocation1 + $0x6] ss:$9 sm:$0xff] %v13037_v20  ;;  %v13058_v20 = vld [vmem:[#allocation289_spill] sm:$0xff] }
 0x8a5   : > { %3610 = vst [vmem:[#allocation1 + $0x7] ss:$9 sm:$0xff] %v13038_v49  ;;  %v13059_v49 = vld [vmem:[#allocation290_spill] sm:$0xff] }
 0x8a6   : > { %3508 = vrot.lane.b32.xlu2 %v9691_v54, %s6672_s15  ;;  %v13045_v54 = vld [vmem:[#allocation278_spill] sm:$0xff] }
 0x8ac   : > { %v3611_v52 = vld [vmem:[#allocation1] sm:$0xff] }
 0x8ad   : > { %3671 = vrot.lane.b32.xlu0 %v3611_v52, %s6673_s16  ;;  %3613 = vst [vmem:[#allocation1] ss:$9 sm:$0xff] %v13039_v39  ;;  %v13061_v52 = vld [vmem:[#allocation292_spill] sm:$0xff]  ;;  %v13062_v39 = vld [vmem:[#allocation10_spill] sm:$0xff] }
 0x8ae   : > { %3614 = vst [vmem:[#allocation1 + $0x1] ss:$9 sm:$0xff] %v13040_v42  ;;  %3665 = vrot.lane.b32.xlu2 %v3581_v30, %s6673_s16  ;;  %v9943_v30 = vpop.permute.xlu1 %3506  ;;  %v13063_v42 = vld [vmem:[#allocation293_spill] sm:$0xff] }
 0x8af   : > { %3615 = vst [vmem:[#allocation1 + $0x2] ss:$9 sm:$0xff] %v13041_v26  ;;  %v13064_v26 = vld [vmem:[#allocation294_spill] sm:$0xff] }
 0x8b0   : > { %3616 = vst [vmem:[#allocation1 + $0x3] ss:$9 sm:$0xff] %v13042_v33  ;;  %v13065_v33 = vld [vmem:[#allocation295_spill] sm:$0xff] }
 0x8b1   : > { %3617 = vst [vmem:[#allocation1 + $0x4] ss:$9 sm:$0xff] %v13043_v37  ;;  %v13066_v37 = vld [vmem:[#allocation297_spill] sm:$0xff] }
 0x8b2   : > { %3618 = vst [vmem:[#allocation1 + $0x5] ss:$9 sm:$0xff] %v13044_v0  ;;  %v13067_v0 = vld [vmem:[#allocation463_spill] sm:$0xff] }
 0x8b3   : > { %3619 = vst [vmem:[#allocation1 + $0x6] ss:$9 sm:$0xff] %v13045_v54  ;;  %v13068_v54 = vld [vmem:[#allocation6_spill] sm:$0xff] }
 0x8b4   : > { %3620 = vst [vmem:[#allocation1 + $0x7] ss:$9 sm:$0xff] %v13046_v35  ;;  %v3795_v35 = vsel %vm3791_vm11, %v9605_v60, %v9731_v10  ;;  %v13073_v60 = vld [vmem:[#allocation301_spill] sm:$0xff] }
 0x8b5   : > { %3354 = vrot.lane.b32.xlu0 %v9524_v57, %s6671_s14  ;;  %v13050_v57 = vld [vmem:[#allocation283_spill] sm:$0xff] }
 0x8b6   : > { %3346 = vrot.lane.b32.xlu2 %v9466_v58, %s6671_s14  ;;  %v9955_v58 = vpop.permute.xlu1 %3512 }
 0x8bb   : > { %v3621_v44 = vld [vmem:[#allocation1] sm:$0xff] }
 0x8bc   : > { %3673 = vrot.lane.b32.xlu1 %v3621_v44, %s6673_s16  ;;  %3623 = vst [vmem:[#allocation1] ss:$9 sm:$0xff] %v13047_v27  ;;  %v3503_v44 = vpop.permute.xlu2 %3502 }
 0x8bd   : > { %3624 = vst [vmem:[#allocation1 + $0x1] ss:$9 sm:$0xff] %v13048_v8  ;;  %3667 = vrot.lane.b32.xlu0 %v3591_v14, %s6673_s16  ;;  %v6586_v14 = vld [vmem:[%s11484_s1 + $0x8] sm:$0x30] }
 0x8be   : > { %3625 = vst [vmem:[#allocation1 + $0x2] ss:$9 sm:$0xff] %v13049_v31  ;;  %3518 = vrot.lane.b32.xlu2 %v9786_v36, %s6672_s15  ;;  %v6371_v16 = vor.u32 %v6586_v14, %v6370_v13  ;;  %v13054_v36 = vld [vmem:[#allocation287_spill] sm:$0xff]  ;;  %v13069_v8 = vld [vmem:[#allocation298_spill] sm:$0xff] }
 0x8bf   : > { %3626 = vst [vmem:[#allocation1 + $0x3] ss:$9 sm:$0xff] %v13050_v57  ;;  %v3822_v57 = vsel %vm3818_vm12, %v3795_v35, %v9937_v41  ;;  %v13071_v13 = vld [vmem:[#allocation14_spill] sm:$0xff]  ;;  %v13076_v41 = vld [vmem:[#allocation303_spill] sm:$0xff] }
 0x8c0   : > { %3627 = vst [vmem:[#allocation1 + $0x4] ss:$9 sm:$0xff] %v13051_v24  ;;  %v3942_v45 = vand.u32 %v6371_v16, %v3940_v19  ;;  %v13070_v24 = vld [vmem:[#allocation299_spill] sm:$0xff]  ;;  %v13074_v14 = vld [vmem:[#allocation302_spill] sm:$0xff]  ;;  %v13077_v16 = vld [vmem:[#allocation304_spill] sm:$0xff]  ;;  %v3505_v19 = vpop.permute.xlu0 %3504 }
 0x8c1   : > { %3628 = vst [vmem:[#allocation1 + $0x5] ss:$9 sm:$0xff] %v13052_v43  ;;  %v3849_v43 = vsel %vm3845_vm15, %v3822_v57, %v3503_v44 }
 0x8c2   : > { %3629 = vst [vmem:[#allocation1 + $0x6] ss:$9 sm:$0xff] %v13053_v48  ;;  %3950 = vmatpush.bf16.msra.mxu0 %v3942_v45  ;;  %6605 = vmatpush.bf16.msra.mxu2 %v3942_v45  ;;  %v13075_v48 = vld [vmem:[#allocation3_spill] sm:$0xff] }
 0x8c3   : > { %3630 = vst [vmem:[#allocation1 + $0x7] ss:$9 sm:$0xff] %v13054_v36  ;;  %6604 = vmatpush.bf16.msra.mxu1 %v3942_v45  ;;  %6606 = vmatpush.bf16.msra.mxu3 %v3942_v45  ;;  %v13078_v36 = vld [vmem:[#allocation305_spill] sm:$0xff] }
 0x8c4   : > { %3356 = vrot.lane.b32.xlu1 %v9543_v12, %s6671_s14  ;;  %v3658_v12 = vpop.permute.xlu1 %3657  ;;  %v3515_v1 = vpop.permute.xlu2 %3514 }
 0x8c5   : > { %2721 = vrot.lane.b32.xlu0 %v13055_v40, %s6667_s28  ;;  %v3874_v9 = vsel %vm3872_vm4, %v3847_v32, %v3658_v12  ;;  %v13079_v40 = vld [vmem:[#allocation306_spill] sm:$0xff]  ;;  %v3832_v12 = vsel %vm3818_vm12, %v9836_v28, %v9947_v6 }
 0x8c6   : > { %2564 = vrot.lane.b32.xlu2 %v13056_v4, %s6666_s27  ;;  %3951 = vmatpush.bf16.msra.mxu0 %v6585_v56  ;;  %v3824_v4 = vsel %vm3818_vm12, %v9745_v21, %v9921_v50  ;;  %v13083_v21 = vld [vmem:[#allocation15_spill] sm:$0xff]  ;;  %v3859_v34 = vsel %vm3845_vm15, %v3832_v12, %v9955_v58 }
 0x8c7   : > { %6608 = vmatpush.bf16.msra.mxu2 %v6585_v56  ;;  %6607 = vmatpush.bf16.msra.mxu1 %v6585_v56  ;;  %v3851_v5 = vsel %vm3845_vm15, %v3824_v4, %v3505_v19  ;;  %v13084_v50 = vld [vmem:[#allocation7_spill] sm:$0xff] }
 0x8c8   : > { %6609 = vmatpush.bf16.msra.mxu3 %v6585_v56  ;;  %v3517_v56 = vpop.permute.xlu0 %3516 }
 0x8c9   : > { %6372 = vmatmul.msk.bf16.vlgmr.msra.gmra.mxu0 %vm3910_vm5, %v3874_v9 }
 0x8ca   : > { %v3631_v2 = vld [vmem:[#allocation1] sm:$0xff] }
 0x8cb   : > { %3633 = vst [vmem:[#allocation1] ss:$9 sm:$0xff] %v13057_v38 }
 0x8cc   : > { %3675 = vrot.lane.b32.xlu1 %v3631_v2, %s6673_s16  ;;  %3634 = vst [vmem:[#allocation1 + $0x1] ss:$9 sm:$0xff] %v13058_v20  ;;  %v3660_v31 = vpop.permute.xlu1 %3659  ;;  %v3662_v45 = vpop.permute.xlu2 %3661 }
 0x8cd   : > { %3635 = vst [vmem:[#allocation1 + $0x2] ss:$9 sm:$0xff] %v13059_v49  ;;  %3199 = vrot.lane.b32.xlu0 %v13060_v63, %s6670_s13  ;;  %v3876_v10 = vsel %vm3872_vm4, %v3849_v43, %v3660_v31 }
 0x8ce   : > { %3636 = vst [vmem:[#allocation1 + $0x3] ss:$9 sm:$0xff] %v13061_v52  ;;  %3042 = vrot.lane.b32.xlu2 %v13062_v39, %s6669_s30 }
 0x8cf   : > { %3637 = vst [vmem:[#allocation1 + $0x4] ss:$9 sm:$0xff] %v13063_v42  ;;  %v3834_v42 = vsel %vm3818_vm12, %v9772_v3, %v9930_v47  ;;  %v3863_v3 = vsel %vm3845_vm15, %v9777_v25, %v3517_v56 }
 0x8d0   : > { %3638 = vst [vmem:[#allocation1 + $0x5] ss:$9 sm:$0xff] %v13064_v26 }
 0x8d1   : > { %3639 = vst [vmem:[#allocation1 + $0x6] ss:$9 sm:$0xff] %v13065_v33  ;;  %v3861_v33 = vsel %vm3845_vm15, %v3834_v42, %v3515_v1 }
 0x8d2   : > { %3640 = vst [vmem:[#allocation1 + $0x7] ss:$9 sm:$0xff] %v13066_v37 }
 0x8d4   : > { %2566 = vrot.lane.b32.xlu1 %v13067_v0, %s6666_s27  ;;  %v3041_v58 = vpop.permute.xlu1 %3040 }
 0x8d5   : > { %2880 = vrot.lane.b32.xlu0 %v13068_v54, %s6668_s29 }
 0x8d6   : > { %3520 = vrot.lane.b32.xlu2 %v9804_v61, %s6672_s15  ;;  %v13072_v61 = vld [vmem:[#allocation300_spill] sm:$0xff] }
 0x8d9   : > { %v3641_v27 = vld [vmem:[#allocation1] sm:$0xff]  ;;  %6373 = vmatmul.msk.bf16.gmra.mxu0 %vm3910_vm5, %v3876_v10 }
 0x8da   : > { %3643 = vst [vmem:[#allocation1] ss:$9 sm:$0xff] %v13069_v8 }
 0x8db   : > { %3644 = vst [vmem:[#allocation1 + $0x1] ss:$9 sm:$0xff] %v13070_v24 }
 0x8dc   : > { %3044 = vrot.lane.b32.xlu1 %v13071_v13, %s6669_s30  ;;  %3645 = vst [vmem:[#allocation1 + $0x2] ss:$9 sm:$0xff] %v13072_v61  ;;  %v3784_v61 = vsel %vm3764_vm10, %v9648_v23, %v3041_v58 }
 0x8dd   : > { %3677 = vrot.lane.b32.xlu0 %v3641_v27, %s6673_s16  ;;  %3646 = vst [vmem:[#allocation1 + $0x3] ss:$9 sm:$0xff] %v13073_v60 }
 0x8de   : > { %3647 = vst [vmem:[#allocation1 + $0x4] ss:$9 sm:$0xff] %v13074_v14  ;;  %2723 = vrot.lane.b32.xlu2 %v13075_v48, %s6667_s28  ;;  %v13085_v48 = vld [vmem:[#allocation386_spill] sm:$0xff] }
 0x8df   : > { %3648 = vst [vmem:[#allocation1 + $0x5] ss:$9 sm:$0xff] %v13076_v41 }
 0x8e0   : > { %3649 = vst [vmem:[#allocation1 + $0x6] ss:$9 sm:$0xff] %v13077_v16 }
 0x8e1   : > { %3650 = vst [vmem:[#allocation1 + $0x7] ss:$9 sm:$0xff] %v13078_v36 }
 0x8e3   : > { %v3664_v9 = vpop.permute.xlu0 %3663 }
 0x8e4   : > { %3522 = vrot.lane.b32.xlu1 %v9831_v59, %s6672_s15  ;;  %v13081_v59 = vld [vmem:[#allocation4_spill] sm:$0xff] }
 0x8e5   : > { %3358 = vrot.lane.b32.xlu0 %v9585_v29, %s6671_s14  ;;  %v13082_v29 = vld [vmem:[#allocation464_spill] sm:$0xff] }
 0x8e6   : > { %3201 = vrot.lane.b32.xlu2 %v9401_v62, %s6670_s13  ;;  %v3878_v62 = vsel %vm3872_vm4, %v3851_v5, %v3662_v45 }
 0x8e8   : > { %v3651_v18 = vld [vmem:[#allocation1] sm:$0xff] }
 0x8e9   : > { %3653 = vst [vmem:[#allocation1] ss:$9 sm:$0xff] %v13079_v40  ;;  %6374 = vmatmul.msk.bf16.gmra.mxu0 %vm3910_vm5, %v3878_v62 }
 0x8ea   : > { %3654 = vst [vmem:[#allocation1 + $0x1] ss:$9 sm:$0xff] %v13080_v15 }
 0x8ec   : > { %2725 = vrot.lane.b32.xlu1 %v13081_v59, %s6667_s28  ;;  %s6683_s28 = smov 16  }
 0x8ed   : > { %2568 = vrot.lane.b32.xlu0 %v13082_v29, %s6666_s27  ;;  %v13086_v29 = vld [vmem:[#allocation395_spill] sm:$0xff] }
 0x8ee   : > { %3679 = vrot.lane.b32.xlu2 %v3651_v18, %s6673_s16 }
 0x8f1   : > { %v3655_v2 = vld [vmem:[#allocation1] sm:$0xff] }
 0x8f4   : > { %3203 = vrot.lane.b32.xlu1 %v9405_v53, %s6670_s13  ;;  %v3826_v53 = vsel %vm3818_vm12, %v9758_v7, %v9754_v55  ;;  %v3828_v55 = vsel %vm3818_vm12, %v9710_v51, %v9768_v17  ;;  %s6677_s13 = smov 30  }
 0x8f5   : > { %3046 = vrot.lane.b32.xlu0 %v13083_v21, %s6669_s30  ;;  %v3853_v20 = vsel %vm3845_vm15, %v3826_v53, %v9943_v30  ;;  %v3033_v30 = vpop.permute.xlu0 %3032  ;;  %s6676_s30 = smov 10  }
 0x8f6   : > { %2882 = vrot.lane.b32.xlu2 %v13084_v50, %s6668_s29  ;;  %v3880_v28 = vsel %vm3872_vm4, %v3853_v20, %v3664_v9  ;;  %v3776_v35 = vsel %vm3764_vm10, %v9672_v11, %v3033_v30  ;;  %v10122_v30 = vld [vmem:[%s11485_s2] ss:$0 sm:$0xff]  ;;  %s6675_s29 = smov 20  }
 0x8f8   : > { %v3670_v32 = vpop.permute.xlu2 %3669 }
 0x8f9   : > { %v3886_v38 = vsel %vm3872_vm4, %v3859_v34, %v3670_v32  ;;  %6375 = vmatmul.msk.bf16.gmra.mxu0 %vm3910_vm5, %v3880_v28 }
 0x8fa   : > { %6378 = vmatmul.msk.bf16.vlgmr.msra.gmra.mxu2 %vm3910_vm5, %v3886_v38 }
 0x8fc   : > { %3681 = vrot.lane.b32.xlu1 %v3655_v2, %s6673_s16 }
 0x8fd   : > { %3524 = vrot.lane.b32.xlu0 %v9838_v22, %s6672_s15  ;;  %v3198_v22 = vpop.permute.xlu1 %3197  ;;  %v3190_v39 = vpop.permute.xlu0 %3189  ;;  %s6679_s15 = smov 40  }
 0x8fe   : > { %3360 = vrot.lane.b32.xlu2 %v9593_v46, %s6671_s14  ;;  %v3803_v44 = vsel %vm3791_vm11, %v3776_v35, %v3190_v39  ;;  %v3811_v60 = vsel %vm3791_vm11, %v3784_v61, %v3198_v22  ;;  %v10141_v61 = vrot.slane %v10122_v30, 4  ;;  %s6678_s14 = smov 50  }
 0x900   : > { %v3509_v6 = vpop.permute.xlu2 %3508 }
 0x901   : > { %v3855_v7 = vsel %vm3845_vm15, %v3828_v55, %v3509_v6 }
 0x905   : > { %v3511_v46 = vpop.permute.xlu1 %3510 }
 0x908   : > { %v3666_v49 = vpop.permute.xlu2 %3665 }
 0x909   : > { %v3882_v63 = vsel %vm3872_vm4, %v3855_v7, %v3666_v49 }
 0x90a   : > { %6376 = vmatmul.msk.bf16.gmra.mxu0 %vm3910_vm5, %v3882_v63 }
 0x90d   : > { %v2879_v17 = vpop.permute.xlu1 %2878 }
 0x910   : > { %v3347_v52 = vpop.permute.xlu2 %3346 }
 0x911   : > { %v3830_v27 = vsel %vm3818_vm12, %v3803_v44, %v3347_v52 }
 0x912   : > { %v3857_v31 = vsel %vm3845_vm15, %v3830_v27, %v3511_v46 }
 0x918   : > { %v3519_v26 = vpop.permute.xlu2 %3518 }
 0x91f   : > { %v3672_v37 = vpop.permute.xlu0 %3671 }
 0x920   : > { %v3888_v51 = vsel %vm3872_vm4, %v3861_v33, %v3672_v37  ;;  %v2565_v54 = vpop.permute.xlu2 %2564  ;;  %v10125_v33 = vrot.slane %v10122_v30, 2 }
 0x921   : > { %6379 = vmatmul.msk.bf16.gmra.mxu2 %vm3910_vm5, %v3888_v51  ;;  %v3705_v41 = vsel %vm3683_vm7, %v13085_v48, %v2565_v54 }
 0x927   : > { %v3355_v0 = vpop.permute.xlu0 %3354 }
 0x928   : > { %v3043_v11 = vpop.permute.xlu2 %3042  ;;  %v3838_v25 = vsel %vm3818_vm12, %v3811_v60, %v3355_v0  ;;  %v13088_v60 = vld [vmem:[#allocation396_spill] sm:$0xff] }
 0x929   : > { %v3865_v36 = vsel %vm3845_vm15, %v3838_v25, %v3519_v26 }
 0x92e   : > { %v3674_v8 = vpop.permute.xlu1 %3673 }
 0x92f   : > { %v3668_v47 = vpop.permute.xlu0 %3667  ;;  %v3890_v24 = vsel %vm3872_vm4, %v3863_v3, %v3674_v8  ;;  %v10130_v3 = vrot.slane %v10122_v30, 1 }
 0x930   : > { %v3884_v57 = vsel %vm3872_vm4, %v3857_v31, %v3668_v47  ;;  %v3521_v10 = vpop.permute.xlu2 %3520 }
 0x931   : > { %6377 = vmatmul.msk.bf16.vlgmr.msra.gmra.mxu1 %vm3910_vm5, %v3884_v57  ;;  %6380 = vmatmul.msk.bf16.gmra.mxu2 %vm3910_vm5, %v3890_v24  ;;  %v10134_v24 = vrot.slane %v10125_v33, 1 }
 0x936   : > { %v3357_v43 = vpop.permute.xlu1 %3356 }
 0x937   : > { %v2722_v13 = vpop.permute.xlu0 %2721 }
 0x938   : > { %v3732_v18 = vsel %vm3710_vm8, %v3705_v41, %v2722_v13  ;;  %v2724_v40 = vpop.permute.xlu2 %2723 }
 0x939   : > { %v3759_v23 = vsel %vm3737_vm9, %v3732_v18, %v2879_v17 }
 0x93a   : > { %v3786_v15 = vsel %vm3764_vm10, %v3759_v23, %v3043_v11 }
 0x93e   : > { %v3676_v14 = vpop.permute.xlu1 %3675 }
 0x93f   : > { %v3200_v16 = vpop.permute.xlu0 %3199  ;;  %v3892_v1 = vsel %vm3872_vm4, %v3865_v36, %v3676_v14 }
 0x940   : > { %v3813_v4 = vsel %vm3791_vm11, %v3786_v15, %v3200_v16  ;;  %v3202_v34 = vpop.permute.xlu2 %3201 }
 0x941   : > { %6381 = vmatmul.msk.bf16.gmra.mxu2 %vm3910_vm5, %v3892_v1  ;;  %v3840_v59 = vsel %vm3818_vm12, %v3813_v4, %v3357_v43 }
 0x942   : > { %v3867_v50 = vsel %vm3845_vm15, %v3840_v59, %v3521_v10 }
 0x946   : > { %v2567_v19 = vpop.permute.xlu1 %2566  ;;  %v3953_v5 = vpop.f32.mrf.mxu0 }
 0x947   : > { %v2881_v45 = vpop.permute.xlu0 %2880  ;;  %v3707_v62 = vsel %vm3683_vm7, %v13086_v29, %v2567_v19  ;;  %v4042_v63 = vrot.slane %v3953_v5, 2  ;;  %v4043_v22 = vrot.slane %v3953_v5, 4  ;;  %v4044_v52 = vrot.slane %v3953_v5, 6 }
 0x948   : > { %v3734_v12 = vsel %vm3710_vm8, %v3707_v62, %v2724_v40  ;;  %v3680_v58 = vpop.permute.xlu2 %3679 }
 0x949   : > { %v3761_v2 = vsel %vm3737_vm9, %v3734_v12, %v2881_v45 }
 0x94e   : > { %v3045_v56 = vpop.permute.xlu1 %3044  ;;  %v10113_v38 = vpop.f32.mrf.mxu0 }
 0x94f   : > { %v3678_v21 = vpop.permute.xlu0 %3677  ;;  %v4047_v9 = vrot.slane %v10113_v38, 6  ;;  %v3788_v53 = vsel %vm3764_vm10, %v3761_v2, %v3045_v56  ;;  %v4045_v1 = vrot.slane %v10113_v38, 2  ;;  %v4046_v59 = vrot.slane %v10113_v38, 4 }
 0x950   : > { %v3894_v32 = vsel %vm3872_vm4, %v3867_v50, %v3678_v21  ;;  %v3815_v49 = vsel %vm3791_vm11, %v3788_v53, %v3202_v34  ;;  %v2883_v10 = vpop.permute.xlu2 %2882 }
 0x951   : > { %6382 = vmatmul.msk.bf16.vlgmr.msra.gmra.mxu3 %vm3910_vm5, %v3894_v32  ;;  %v4188_v28 = vmax.f32 %v3953_v5, %v4047_v9 }
 0x953   : > { %v6385_v55 = vrot.slane %v4188_v28, 9 }
 0x955   : > { %v4433_v51 = vmax.f32 %v4188_v28, %v6385_v55 }
 0x956   : > { %v3523_v20 = vpop.permute.xlu1 %3522  ;;  %v3958_v39 = vpop.f32.mrf.mxu0 }
 0x957   : > { %v3359_v6 = vpop.permute.xlu0 %3358  ;;  %v4048_v46 = vrot.slane %v3958_v39, 2  ;;  %v4049_v42 = vrot.slane %v3958_v39, 4  ;;  %v4050_v26 = vrot.slane %v3958_v39, 6  ;;  %v4189_v17 = vmax.f32 %v4042_v63, %v3958_v39 }
 0x958   : > { %v3842_v7 = vsel %vm3818_vm12, %v3815_v49, %v3359_v6  ;;  %v10138_v11 = vadd.f32 %v10122_v30, %v4433_v51  ;;  %v3361_v63 = vpop.permute.xlu2 %3360 }
 0x959   : > { %v3869_v37 = vsel %vm3845_vm15, %v3842_v7, %v3523_v20  ;;  %v4190_v54 = vmax.f32 %v4043_v22, %v4048_v46  ;;  %v4191_v35 = vmax.f32 %v4044_v52, %v4049_v42  ;;  %v4192_v27 = vmax.f32 %v10113_v38, %v4050_v26 }
 0x95a   : > { %v6386_v8 = vrot.slane %v4189_v17, 9  ;;  %v3896_v47 = vsel %vm3872_vm4, %v3869_v37, %v3680_v58  ;;  %13087 = vst [vmem:[#allocation19_spill] sm:$0xff] %v10138_v11  ;;  %v4649_v45 = vperm.slane %v10138_v11, 0  ;;  %v10171_v20 = vrot.slane %v10141_v61, 1 }
 0x95b   : > { %v6387_v31 = vrot.slane %v4190_v54, 9  ;;  %v6388_v57 = vrot.slane %v4191_v35, 9  ;;  %v6389_v43 = vrot.slane %v4192_v27, 9  ;;  %v10175_v58 = vrot.slane %v10122_v30, 6 }
 0x95c   : > { %v4434_v13 = vmax.f32 %v4189_v17, %v6386_v8 }
 0x95d   : > { %v4435_v14 = vmax.f32 %v4190_v54, %v6387_v31  ;;  %v4436_v48 = vmax.f32 %v4191_v35, %v6388_v57  ;;  %v4437_v41 = vmax.f32 %v4192_v27, %v6389_v43 }
 0x95e   : > { %v2726_v0 = vpop.permute.xlu1 %2725  ;;  %v10146_v16 = vadd.f32 %v10130_v3, %v4434_v13  ;;  %v3960_v36 = vpop.f32.mrf.mxu0 }
 0x95f   : > { %v2569_v44 = vpop.permute.xlu0 %2568  ;;  %v10150_v18 = vadd.f32 %v10125_v33, %v4435_v14  ;;  %v10153_v23 = vadd.f32 %v10134_v24, %v4436_v48  ;;  %v4051_v19 = vrot.slane %v3960_v36, 2  ;;  %v10158_v15 = vadd.f32 %v10141_v61, %v4437_v41 }
 0x960   : > { %v3709_v25 = vsel %vm3683_vm7, %v13088_v60, %v2569_v44  ;;  %v4650_v4 = vperm.slane %v10146_v16, 0  ;;  %v4193_v50 = vmax.f32 %v4045_v1, %v3960_v36  ;;  %vm4703_vm7 = vcmask 1045509  }
 0x961   : > { %6383 = vmatmul.msk.bf16.gmra.mxu3 %vm3910_vm5, %v3896_v47  ;;  %v3736_v40 = vsel %vm3710_vm8, %v3709_v25, %v2726_v0  ;;  %v4651_v29 = vperm.slane %v10150_v18, 0  ;;  %v4652_v62 = vperm.slane %v10153_v23, 0  ;;  %v4653_v34 = vperm.slane %v10158_v15, 0 }
 0x962   : > { %v4698_v21 = vsel %vm511_vm1, %v4650_v4, %v4649_v45  ;;  %v3763_v12 = vsel %vm3737_vm9, %v3736_v40, %v2883_v10  ;;  %v4194_v2 = vmax.f32 %v4046_v59, %v4051_v19  ;;  %v6390_v53 = vrot.slane %v4193_v50, 9  ;;  %v10195_v4 = vld [vmem:[%s11486_s3] ss:$0 sm:$0xff] }
 0x963   : > { %v4699_v32 = vsel %vm515_vm2, %v4651_v29, %v4698_v21  ;;  %vm4705_vm8 = vcmask 1046534   ;;  %v4052_v47 = vrot.slane %v3960_v36, 4  ;;  %v4053_v31 = vrot.slane %v3960_v36, 6 }
 0x964   : > { %v4700_v38 = vsel %vm519_vm0, %v4652_v62, %v4699_v32  ;;  %v6391_v6 = vrot.slane %v4194_v2, 9  ;;  %v4438_v49 = vmax.f32 %v4193_v50, %v6390_v53  ;;  %vm4550_vm14 = vcmp.gt.f32.partialorder %v10150_v18, 0.0 }
 0x965   : > { %v4702_v28 = vsel %vm4701_vm6, %v4653_v34, %v4700_v38 }
 0x966   : > { %v3204_v5 = vpop.permute.xlu1 %3203  ;;  %v3963_v55 = vpop.f32.mrf.mxu0  ;;  %v4439_v22 = vmax.f32 %v4194_v2, %v6391_v6  ;;  %v10179_v52 = vadd.f32 %v10171_v20, %v4438_v49 }
 0x967   : > { %v3047_v56 = vpop.permute.xlu0 %3046  ;;  %v4054_v25 = vrot.slane %v3963_v55, 2  ;;  %v4055_v40 = vrot.slane %v3963_v55, 4 }
 0x968   : > { %v3790_v9 = vsel %vm3764_vm10, %v3763_v12, %v3047_v56  ;;  %v10182_v46 = vadd.f32 %v10175_v58, %v4439_v22  ;;  %v4654_v37 = vperm.slane %v10179_v52, 0  ;;  %vm4553_vm9 = vcmp.gt.f32.partialorder %v10179_v52, 0.0 }
 0x969   : > { %v3817_v7 = vsel %vm3791_vm11, %v3790_v9, %v3204_v5  ;;  %v4056_v5 = vrot.slane %v3963_v55, 6  ;;  %vm4552_vm11 = vcmp.gt.f32.partialorder %v10158_v15, 0.0 }
 0x96a   : > { %v3844_v42 = vsel %vm3818_vm12, %v3817_v7, %v3361_v63  ;;  %v4655_v17 = vperm.slane %v10182_v46, 0  ;;  %v4704_v54 = vsel %vm4703_vm7, %v4654_v37, %v4702_v28  ;;  %vm4554_vm10 = vcmp.gt.f32.partialorder %v10182_v46, 0.0 }
 0x96b   : > { %vm4551_vm12 = vcmp.gt.f32.partialorder %v10153_v23, 0.0 }
 0x96c   : > { %v4706_v35 = vsel %vm4705_vm8, %v4655_v17, %v4704_v54 }
 0x96d   : > { %v10198_v34 = vmul.f32 %v10195_v4, %v4706_v35 }
 0x96e   : > { %v3682_v39 = vpop.permute.xlu1 %3681  ;;  %v3965_v44 = vpop.f32.mrf.mxu0 }
 0x96f   : > { %v3525_v26 = vpop.permute.xlu0 %3524  ;;  %v4057_v27 = vrot.slane %v3965_v44, 2  ;;  %v4058_v8 = vrot.slane %v3965_v44, 4  ;;  %v4059_v57 = vrot.slane %v3965_v44, 6 }
 0x970   : > { %v3871_v51 = vsel %vm3845_vm15, %v3844_v42, %v3525_v26 }
 0x971   : > { %v3898_v0 = vsel %vm3872_vm4, %v3871_v51, %v3682_v39  ;;  %v4195_v43 = vmax.f32 %v4052_v47, %v4057_v27  ;;  %v4196_v13 = vmax.f32 %v4053_v31, %v4058_v8  ;;  %v4197_v60 = vmax.f32 %v3963_v55, %v4059_v57 }
 0x972   : > { %6384 = vmatmul.msk.bf16.gmra.mxu3 %vm3910_vm5, %v3898_v0  ;;  %v4765_v55 = vrot.slane %v10198_v34, 4 }
 0x973   : > { %v6392_v10 = vrot.slane %v4195_v43, 9  ;;  %v6393_v14 = vrot.slane %v4196_v13, 9  ;;  %v6394_v45 = vrot.slane %v4197_v60, 9 }
 0x974   : > { %v4787_v17 = vrot.slane %v4765_v55, 1 }
 0x975   : > { %v4440_v36 = vmax.f32 %v4195_v43, %v6392_v10  ;;  %v4441_v59 = vmax.f32 %v4196_v13, %v6393_v14  ;;  %v4442_v21 = vmax.f32 %v4197_v60, %v6394_v45  ;;  %v4766_v43 = vrot.slane %v10198_v34, 6 }
 0x976   : > { %v3968_v48 = vpop.f32.mrf.mxu0  ;;  %v4860_v31 = vsel %vm4553_vm9, %v10179_v52, %v4787_v17  ;;  %v4764_v60 = vrot.slane %v10198_v34, 2 }
 0x977   : > { %v4060_v41 = vrot.slane %v3968_v48, 2  ;;  %v4061_v1 = vrot.slane %v3968_v48, 4  ;;  %v4198_v19 = vmax.f32 %v4054_v25, %v3968_v48  ;;  %v4062_v50 = vrot.slane %v3968_v48, 6 }
 0x978   : > { %v10201_v32 = vadd.f32 %v10122_v30, %v4440_v36  ;;  %v10204_v2 = vadd.f32 %v10130_v3, %v4441_v59  ;;  %v10209_v28 = vadd.f32 %v10125_v33, %v4442_v21  ;;  %v4909_v25 = vpack.c.bf16 %v4860_v31, %v4860_v31 }
 0x979   : > { %v4199_v29 = vmax.f32 %v4055_v40, %v4060_v41  ;;  %v4200_v62 = vmax.f32 %v4056_v5, %v4061_v1  ;;  %v6395_v56 = vrot.slane %v4198_v19, 9  ;;  %v4201_v6 = vmax.f32 %v3965_v44, %v4062_v50 }
 0x97a   : > { %v4656_v7 = vperm.slane %v10201_v32, 0  ;;  %v4657_v63 = vperm.slane %v10204_v2, 0  ;;  %v4658_v26 = vperm.slane %v10209_v28, 0  ;;  %v4861_v52 = vsel %vm4554_vm10, %v10182_v46, %v4766_v43 }
 0x97b   : > { %v6396_v12 = vrot.slane %v4199_v29, 9  ;;  %v4443_v9 = vmax.f32 %v4198_v19, %v6395_v56  ;;  %v6397_v53 = vrot.slane %v4200_v62, 9  ;;  %v6398_v37 = vrot.slane %v4201_v6, 9 }
 0x97c   : > { %v4707_v0 = vsel %vm511_vm1, %v4657_v63, %v4656_v7  ;;  %v4786_v1 = vrot.slane %v4764_v60, 1  ;;  %v10248_v19 = vunpack.c.l.b16 %v4909_v25  ;;  %v4859_v5 = vsel %vm4552_vm11, %v10158_v15, %v4765_v55 }
 0x97d   : > { %v4444_v49 = vmax.f32 %v4199_v29, %v6396_v12  ;;  %v10215_v22 = vadd.f32 %v10134_v24, %v4443_v9  ;;  %v4445_v39 = vmax.f32 %v4200_v62, %v6397_v53  ;;  %v10217_v42 = vpop.f32.mrf.mxu2  ;;  %v4708_v27 = vsel %vm515_vm2, %v4658_v26, %v4707_v0 }
 0x97e   : > { %v10206_v38 = vpop.f32.mrf.mxu0  ;;  %v4446_v8 = vmax.f32 %v4201_v6, %v6398_v37  ;;  %13089 = vst [vmem:[#allocation20_spill] sm:$0xff] %v10248_v19  ;;  %v4910_v59 = vpack.c.bf16 %v4861_v52, %v4861_v52  ;;  %v4858_v21 = vsel %vm4551_vm12, %v10153_v23, %v4786_v1  ;;  %v11874_v50 = vunpack.i.l.s16 %v10248_v19 }
 0x97f   : > { %v10221_v51 = vadd.f32 %v10141_v61, %v4444_v49  ;;  %v4659_v54 = vperm.slane %v10215_v22, 0  ;;  %v10228_v44 = vadd.f32 %v10171_v20, %v4445_v39  ;;  %v4063_v62 = vrot.slane %v10206_v38, 2 }
 0x980   : > { %v10239_v10 = vadd.f32 %v10175_v58, %v4446_v8  ;;  %v4908_v9 = vpack.c.bf16 %v4859_v5, %v4859_v5  ;;  %v4064_v6 = vrot.slane %v10206_v38, 4  ;;  %v10265_v49 = vunpack.c.l.b16 %v4910_v59 }
 0x981   : > { %v4660_v47 = vperm.slane %v10221_v51, 0  ;;  %v4709_v57 = vsel %vm519_vm0, %v4659_v54, %v4708_v27  ;;  %v4661_v13 = vperm.slane %v10228_v44, 0  ;;  %v4907_v63 = vpack.c.bf16 %v4858_v21, %v4858_v21 }
 0x982   : > { %v4662_v40 = vperm.slane %v10239_v10, 0  ;;  %v4078_v23 = vrot.slane %v10217_v42, 2  ;;  %v4079_v39 = vrot.slane %v10217_v42, 4  ;;  %v10273_v17 = vrot.slane %v11874_v50, 5 }
 0x983   : > { %v4710_v14 = vsel %vm4701_vm6, %v4660_v47, %v4709_v57  ;;  %vm4557_vm15 = vcmp.gt.f32.partialorder %v10209_v28, 0.0  ;;  %v4065_v0 = vrot.slane %v10206_v38, 6  ;;  %v4857_v31 = vsel %vm4550_vm14, %v10150_v18, %v4764_v60 }
 0x984   : > { %v4711_v41 = vsel %vm4703_vm7, %v4661_v13, %v4710_v14  ;;  %v4993_v25 = vunpack.c.l.b16 %v4907_v63  ;;  %vm4558_vm4 = vcmp.gt.f32.partialorder %v10215_v22, 0.0  ;;  %vm4559_vm5 = vcmp.gt.f32.partialorder %v10221_v51, 0.0 }
 0x985   : > { %v10243_v48 = vpop.f32.mrf.mxu2  ;;  %v4712_v29 = vsel %vm4705_vm8, %v4662_v40, %v4711_v41  ;;  %vm4560_vm9 = vcmp.gt.f32.partialorder %v10228_v44, 0.0  ;;  %v4906_v5 = vpack.c.bf16 %v4857_v31, %v4857_v31  ;;  %vm4561_vm10 = vcmp.gt.f32.partialorder %v10239_v10, 0.0 }
 0x986   : > { %v4083_v36 = vrot.slane %v10243_v48, 6  ;;  %v10262_v53 = vmul.f32 %v10195_v4, %v4712_v29 }
 0x987   : > { %v10225_v35 = vpop.f32.mrf.mxu0  ;;  %v4992_v63 = vunpack.c.l.b16 %v4906_v5 }
 0x988   : > { %v4068_v46 = vrot.slane %v10225_v35, 6  ;;  %v4215_v15 = vmax.f32 %v10217_v42, %v4083_v36  ;;  %v4767_v8 = vrot.slane %v10262_v53, 2  ;;  %v4768_v47 = vrot.slane %v10262_v53, 4 }
 0x989   : > { %v4769_v52 = vrot.slane %v10262_v53, 6 }
 0x98a   : > { %v4202_v55 = vmax.f32 %v10206_v38, %v4068_v46  ;;  %v6412_v27 = vrot.slane %v4215_v15, 9  ;;  %v4789_v18 = vrot.slane %v4767_v8, 1  ;;  %v4790_v60 = vrot.slane %v4768_v47, 1 }
 0x98b   : > { %v10291_v46 = vunpack.i.l.s16 %v4993_v25 }
 0x98c   : > { %v6399_v43 = vrot.slane %v4202_v55, 9  ;;  %v4460_v40 = vmax.f32 %v4215_v15, %v6412_v27 }
 0x98d   : > { %13090 = vst [vmem:[#allocation21_spill] sm:$0xff] %v10291_v46 }
 0x98e   : > { %v4447_v59 = vmax.f32 %v4202_v55, %v6399_v43  ;;  %v6466_v55 = vunpack.i.l.s16 %v10265_v49 }
 0x98f   : > { %v3975_v45 = vpop.f32.mrf.mxu0 }
 0x990   : > { %v4069_v56 = vrot.slane %v3975_v45, 2  ;;  %v4203_v12 = vmax.f32 %v4063_v62, %v3975_v45  ;;  %v4070_v7 = vrot.slane %v3975_v45, 4  ;;  %v4071_v38 = vrot.slane %v3975_v45, 6 }
 0x991   : > { %v4864_v45 = vsel %vm4557_vm15, %v10209_v28, %v4767_v8  ;;  %v4868_v62 = vsel %vm4561_vm10, %v10239_v10, %v4769_v52  ;;  %v4865_v28 = vsel %vm4558_vm4, %v10215_v22, %v4789_v18  ;;  %v4867_v10 = vsel %vm4560_vm9, %v10228_v44, %v4790_v60 }
 0x992   : > { %v4204_v37 = vmax.f32 %v4064_v6, %v4069_v56  ;;  %v6400_v54 = vrot.slane %v4203_v12, 9  ;;  %v4205_v13 = vmax.f32 %v4065_v0, %v4070_v7  ;;  %v4206_v56 = vmax.f32 %v10225_v35, %v4071_v38 }
 0x993   : > { %v4994_v6 = vunpack.c.l.b16 %v4908_v9  ;;  %v10306_v7 = vadd.f32 %v10175_v58, %v4460_v40  ;;  %v10315_v0 = vadd.f32 %v10122_v30, %v4447_v59  ;;  %v4914_v31 = vpack.c.bf16 %v4865_v28, %v4865_v28 }
 0x994   : > { %v6401_v41 = vrot.slane %v4204_v37, 9  ;;  %v4448_v1 = vmax.f32 %v4203_v12, %v6400_v54  ;;  %v6402_v29 = vrot.slane %v4205_v13, 9  ;;  %v4866_v12 = vsel %vm4559_vm5, %v10221_v51, %v4768_v47 }
 0x995   : > { %13091 = vst [vmem:[#allocation22_spill] sm:$0xff] %v10306_v7  ;;  %v4917_v51 = vpack.c.bf16 %v4868_v62, %v4868_v62  ;;  %v4915_v54 = vpack.c.bf16 %v4866_v12, %v4866_v12  ;;  %v6403_v27 = vrot.slane %v4206_v56, 9  ;;  %v5198_v47 = vrot.slane %v10291_v46, 7 }
 0x996   : > { %v4449_v21 = vmax.f32 %v4204_v37, %v6401_v41  ;;  %v10302_v15 = vadd.f32 %v10130_v3, %v4448_v1  ;;  %v4913_v37 = vpack.c.bf16 %v4864_v45, %v4864_v45  ;;  %v4450_v9 = vmax.f32 %v4205_v13, %v6402_v29 }
 0x997   : > { %v4916_v22 = vpack.c.bf16 %v4867_v10, %v4867_v10  ;;  %v10322_v25 = vunpack.i.l.s16 %v4994_v6  ;;  %v4066_v52 = vrot.slane %v10225_v35, 2  ;;  %v4067_v38 = vrot.slane %v10225_v35, 4 }
 0x998   : > { %v10318_v8 = vadd.f32 %v10125_v33, %v4449_v21  ;;  %v4664_v43 = vperm.slane %v10302_v15, 0  ;;  %v10327_v13 = vunpack.i.l.s16 %v4992_v63  ;;  %v4997_v41 = vunpack.c.l.b16 %v4913_v37 }
 0x999   : > { %13092 = vst [vmem:[#allocation23_spill] sm:$0xff] %v10322_v25  ;;  %v10329_v1 = vunpack.c.l.b16 %v4917_v51  ;;  %v4663_v40 = vperm.slane %v10315_v0, 0  ;;  %v10335_v60 = vadd.f32 %v10134_v24, %v4450_v9  ;;  %v4999_v5 = vunpack.c.l.b16 %v4915_v54 }
 0x99a   : > { %13093 = vst [vmem:[#allocation24_spill] sm:$0xff] %v10327_v13  ;;  %v4451_v59 = vmax.f32 %v4206_v56, %v6403_v27  ;;  %v4665_v29 = vperm.slane %v10318_v8, 0  ;;  %v5199_v45 = vsel %vm511_vm1, %v5198_v47, %v10327_v13  ;;  %v4998_v35 = vunpack.c.l.b16 %v4914_v31 }
 0x99b   : > { %13094 = vst [vmem:[#allocation26_spill] sm:$0xff] %v10329_v1  ;;  %v5116_v62 = vunpack.c.l.b16 %v4916_v22  ;;  %v4713_v21 = vsel %vm511_vm1, %v4664_v43, %v4663_v40  ;;  %v5200_v6 = vrot.slane %v10322_v25, 6  ;;  %v11875_v51 = vunpack.i.l.s16 %v10329_v1 }
 0x99c   : > { %v4666_v56 = vperm.slane %v10335_v60, 0  ;;  %v10347_v27 = vadd.f32 %v10141_v61, %v4451_v59  ;;  %v4714_v47 = vsel %vm515_vm2, %v4665_v29, %v4713_v21  ;;  %v10352_v43 = vunpack.i.l.s16 %v4997_v41 }
 0x99d   : > { %v5201_v54 = vsel %vm515_vm2, %v5200_v6, %v5199_v45  ;;  %v10354_v40 = vunpack.i.l.s16 %v4999_v5  ;;  %v10360_v45 = vunpack.i.l.s16 %v5116_v62  ;;  %v5204_v62 = vrot.slane %v6466_v55, 4 }
 0x99e   : > { %13095 = vst [vmem:[#allocation27_spill] sm:$0xff] %v10352_v43  ;;  %v5203_v29 = vsel %vm519_vm0, %v10273_v17, %v5201_v54  ;;  %vm4563_vm11 = vcmp.gt.f32.partialorder %v10302_v15, 0.0  ;;  %vm4564_vm12 = vcmp.gt.f32.partialorder %v10318_v8, 0.0  ;;  %vm4565_vm14 = vcmp.gt.f32.partialorder %v10335_v60, 0.0 }
 0x99f   : > { %13096 = vst [vmem:[#allocation28_spill] sm:$0xff] %v10354_v40  ;;  %v5205_v17 = vsel %vm4701_vm6, %v5204_v62, %v5203_v29  ;;  %vm4566_vm15 = vcmp.gt.f32.partialorder %v10347_v27, 0.0 }
 0x9a4   : > { %v10289_v36 = vpop.f32.mrf.mxu2 }
 0x9a5   : > { %v4084_v6 = vrot.slane %v10289_v36, 2 }
 0x9ac   : > { %v10332_v18 = vpop.f32.mrf.mxu2 }
 0x9ad   : > { %v4089_v28 = vrot.slane %v10332_v18, 6 }
 0x9ae   : > { %v3978_v12 = vpop.f32.mrf.mxu1 }
 0x9af   : > { %v4072_v10 = vrot.slane %v3978_v12, 2  ;;  %v4073_v63 = vrot.slane %v3978_v12, 4  ;;  %v4074_v37 = vrot.slane %v3978_v12, 6  ;;  %v4207_v9 = vmax.f32 %v4066_v52, %v3978_v12 }
 0x9b0   : > { %v10358_v52 = vunpack.i.l.s16 %v4998_v35  ;;  %v4216_v59 = vmax.f32 %v10289_v36, %v4089_v28 }
 0x9b1   : > { %v4208_v31 = vmax.f32 %v4067_v38, %v4072_v10  ;;  %v4209_v22 = vmax.f32 %v4073_v63, %v4078_v23  ;;  %v4210_v50 = vmax.f32 %v4074_v37, %v4079_v39  ;;  %v6404_v44 = vrot.slane %v4207_v9, 9 }
 0x9b2   : > { %13097 = vst [vmem:[#allocation29_spill] sm:$0xff] %v10358_v52  ;;  %v10365_v38 = vrot.slane %v11875_v51, 7  ;;  %v4715_v23 = vsel %vm519_vm0, %v4666_v56, %v4714_v47  ;;  %v4667_v39 = vperm.slane %v10347_v27, 0  ;;  %v6413_v37 = vrot.slane %v4216_v59, 9 }
 0x9b3   : > { %v6405_v12 = vrot.slane %v4208_v31, 9  ;;  %v4452_v41 = vmax.f32 %v4207_v9, %v6404_v44  ;;  %v6406_v35 = vrot.slane %v4209_v22, 9  ;;  %v6407_v28 = vrot.slane %v4210_v50, 9 }
 0x9b4   : > { %v3993_v5 = vpop.f32.mrf.mxu2  ;;  %v4716_v44 = vsel %vm4701_vm6, %v4667_v39, %v4715_v23  ;;  %v4085_v9 = vrot.slane %v10289_v36, 4  ;;  %v4086_v47 = vrot.slane %v10289_v36, 6  ;;  %v4461_v14 = vmax.f32 %v4216_v59, %v6413_v37 }
 0x9b5   : > { %v4453_v21 = vmax.f32 %v4208_v31, %v6405_v12  ;;  %v10375_v10 = vadd.f32 %v10171_v20, %v4452_v41  ;;  %v4090_v63 = vrot.slane %v3993_v5, 2  ;;  %v4091_v55 = vrot.slane %v3993_v5, 4 }
 0x9b6   : > { %v4217_v54 = vmax.f32 %v4084_v6, %v3993_v5  ;;  %v4454_v31 = vmax.f32 %v4209_v22, %v6406_v35  ;;  %v5206_v41 = vrot.slane %v10352_v43, 3  ;;  %v4455_v51 = vmax.f32 %v4210_v50, %v6407_v28 }
 0x9b7   : > { %v10379_v56 = vadd.f32 %v10175_v58, %v4453_v21  ;;  %v4668_v49 = vperm.slane %v10375_v10, 0  ;;  %v4092_v39 = vrot.slane %v3993_v5, 6  ;;  %v4218_v21 = vmax.f32 %v4085_v9, %v4090_v63 }
 0x9b8   : > { %v6414_v62 = vrot.slane %v4217_v54, 9  ;;  %v4219_v50 = vmax.f32 %v4086_v47, %v4091_v55  ;;  %v10399_v5 = vadd.f32 %v10122_v30, %v4454_v31  ;;  %v5207_v35 = vsel %vm4703_vm7, %v5206_v41, %v5205_v17 }
 0x9b9   : > { %v4669_v12 = vperm.slane %v10379_v56, 0  ;;  %v4717_v23 = vsel %vm4703_vm7, %v4668_v49, %v4716_v44  ;;  %v6415_v59 = vrot.slane %v4218_v21, 9  ;;  %v5208_v6 = vrot.slane %v10358_v52, 2 }
 0x9ba   : > { %v10404_v28 = vadd.f32 %v10130_v3, %v4455_v51  ;;  %v4220_v37 = vmax.f32 %v10332_v18, %v4092_v39  ;;  %v4462_v44 = vmax.f32 %v4217_v54, %v6414_v62  ;;  %v4087_v9 = vrot.slane %v10332_v18, 2 }
 0x9bb   : > { %v4718_v29 = vsel %vm4705_vm8, %v4669_v12, %v4717_v23  ;;  %v10410_v49 = vadd.f32 %v10122_v30, %v4461_v14  ;;  %v4088_v17 = vrot.slane %v10332_v18, 4  ;;  %v6416_v51 = vrot.slane %v4219_v50, 9  ;;  %v3980_v18 = vpop.f32.mrf.mxu1 }
 0x9bc   : > { %v10394_v36 = vmul.f32 %v10195_v4, %v4718_v29  ;;  %v10396_v22 = vpop.f32.mrf.mxu2  ;;  %v4670_v41 = vperm.slane %v10399_v5, 0  ;;  %v4463_v54 = vmax.f32 %v4218_v21, %v6415_v59  ;;  %v10419_v39 = vsel %vm4705_vm8, %v5208_v6, %v5207_v35 }
 0x9bd   : > { %13099 = vst [vmem:[#allocation31_spill] sm:$0xff] %v10410_v49  ;;  %v4671_v14 = vperm.slane %v10404_v28, 0  ;;  %v6417_v62 = vrot.slane %v4220_v37, 9  ;;  %v10424_v47 = vadd.f32 %v10130_v3, %v4462_v44  ;;  %v4677_v57 = vperm.slane %v10410_v49, 0 }
 0x9be   : > { %13098 = vst [vmem:[#allocation30_spill] sm:$0xff] %v10394_v36  ;;  %v4770_v63 = vrot.slane %v10394_v36, 2  ;;  %v4771_v55 = vrot.slane %v10394_v36, 4  ;;  %v4791_v31 = vrot.slane %v10394_v36, 1  ;;  %v4772_v29 = vrot.slane %v10394_v36, 6 }
 0x9bf   : > { %13100 = vst [vmem:[#allocation32_spill] sm:$0xff] %v10424_v47  ;;  %vm4567_vm4 = vcmp.gt.f32.partialorder %v10375_v10, 0.0  ;;  %vm4568_vm5 = vcmp.gt.f32.partialorder %v10379_v56, 0.0  ;;  %v4464_v6 = vmax.f32 %v4219_v50, %v6416_v51  ;;  %v10446_v11 = vadd.f32 %v10125_v33, %v4463_v54 }
 0x9c0   : > { %v4792_v23 = vrot.slane %v4770_v63, 1  ;;  %v4793_v12 = vrot.slane %v4771_v55, 1  ;;  %v10432_v21 = vsel %vm4563_vm11, %v10302_v15, %v4791_v31  ;;  %v4871_v59 = vsel %vm4564_vm12, %v10318_v8, %v4770_v63 }
 0x9c1   : > { %v4873_v35 = vsel %vm4566_vm15, %v10347_v27, %v4771_v55  ;;  %v4075_v15 = vrot.slane %v3980_v18, 2  ;;  %v4076_v31 = vrot.slane %v3980_v18, 4  ;;  %v4719_v1 = vsel %vm511_vm1, %v4671_v14, %v4670_v41 }
 0x9c2   : > { %v4872_v26 = vsel %vm4565_vm14, %v10335_v60, %v4792_v23  ;;  %v10450_v8 = vsel %vm4568_vm5, %v10379_v56, %v4772_v29  ;;  %v4465_v63 = vmax.f32 %v4220_v37, %v6417_v62  ;;  %v4678_v27 = vperm.slane %v10424_v47, 0 }
 0x9c3   : > { %v4874_v50 = vsel %vm4567_vm4, %v10375_v10, %v4793_v12  ;;  %v4920_v55 = vpack.c.bf16 %v4871_v59, %v4871_v59  ;;  %v4922_v51 = vpack.c.bf16 %v4873_v35, %v4873_v35  ;;  %v4921_v23 = vpack.c.bf16 %v4872_v26, %v4872_v26 }
 0x9c4   : > { %v10440_v44 = vpop.f32.mrf.mxu2  ;;  %v10459_v54 = vadd.f32 %v10134_v24, %v4464_v6  ;;  %v4077_v41 = vrot.slane %v3980_v18, 6  ;;  %v13101_v56 = vrot.slane %v10217_v42, 6  ;;  %v4679_v37 = vperm.slane %v10446_v11, 0 }
 0x9c5   : > { %v4212_v29 = vmax.f32 %v4075_v15, %v10243_v48  ;;  %v13102_v62 = vrot.slane %v10243_v48, 2  ;;  %v4093_v12 = vrot.slane %v10396_v22, 2  ;;  %v4923_v60 = vpack.c.bf16 %v4874_v50, %v4874_v50 }
 0x9c6   : > { %v4211_v14 = vmax.f32 %v3980_v18, %v13101_v56  ;;  %v4725_v59 = vsel %vm511_vm1, %v4678_v27, %v4677_v57  ;;  %v13103_v26 = vrot.slane %v10243_v48, 4  ;;  %v5002_v47 = vunpack.c.l.b16 %v4920_v55 }
 0x9c7   : > { %v4213_v10 = vmax.f32 %v4076_v31, %v13102_v62  ;;  %v10472_v42 = vadd.f32 %v10141_v61, %v4465_v63  ;;  %v6409_v18 = vrot.slane %v4212_v29, 9  ;;  %v4221_v52 = vmax.f32 %v4087_v9, %v10396_v22 }
 0x9c8   : > { %v4214_v35 = vmax.f32 %v4077_v41, %v13103_v26  ;;  %v6408_v6 = vrot.slane %v4211_v14, 9  ;;  %v4222_v31 = vmax.f32 %v4088_v17, %v4093_v12  ;;  %v4680_v62 = vperm.slane %v10459_v54, 0 }
 0x9c9   : > { %v6410_v56 = vrot.slane %v4213_v10, 9  ;;  %v4726_v50 = vsel %vm515_vm2, %v4679_v37, %v4725_v59  ;;  %v4457_v57 = vmax.f32 %v4212_v29, %v6409_v18  ;;  %v6418_v63 = vrot.slane %v4221_v52, 9 }
 0x9ca   : > { %v6411_v36 = vrot.slane %v4214_v35, 9  ;;  %v4456_v15 = vmax.f32 %v4211_v14, %v6408_v6  ;;  %v6419_v26 = vrot.slane %v4222_v31, 9  ;;  %v5003_v43 = vunpack.c.l.b16 %v4921_v23 }
 0x9cb   : > { %v4458_v27 = vmax.f32 %v4213_v10, %v6410_v56  ;;  %v5004_v19 = vunpack.c.l.b16 %v4922_v51  ;;  %v10481_v14 = vadd.f32 %v10134_v24, %v4457_v57  ;;  %v4466_v29 = vmax.f32 %v4221_v52, %v6418_v63 }
 0x9cc   : > { %v10477_v48 = vpop.f32.mrf.mxu2  ;;  %v4459_v41 = vmax.f32 %v4214_v35, %v6411_v36  ;;  %v4522_v55 = vadd.f32 %v10125_v33, %v4456_v15  ;;  %v4681_v36 = vperm.slane %v10472_v42, 0  ;;  %v4727_v12 = vsel %vm519_vm0, %v4680_v62, %v4726_v50 }
 0x9cd   : > { %v4524_v9 = vadd.f32 %v10141_v61, %v4458_v27  ;;  %v4099_v10 = vrot.slane %v10477_v48, 2  ;;  %v4673_v59 = vperm.slane %v10481_v14, 0  ;;  %v4094_v35 = vrot.slane %v10396_v22, 4 }
 0x9ce   : > { %v10485_v17 = vadd.f32 %v10171_v20, %v4459_v41  ;;  %v4672_v37 = vperm.slane %v4522_v55, 0  ;;  %v4095_v6 = vrot.slane %v10396_v22, 6  ;;  %v4467_v18 = vmax.f32 %v4222_v31, %v6419_v26 }
 0x9cf   : > { %v4674_v23 = vperm.slane %v4524_v9, 0  ;;  %v10497_v15 = vadd.f32 %v10171_v20, %v4466_v29  ;;  %v4100_v57 = vrot.slane %v10477_v48, 4  ;;  %v4223_v27 = vmax.f32 %v4094_v35, %v4099_v10 }
 0x9d0   : > { %v4720_v51 = vsel %vm515_vm2, %v4672_v37, %v4719_v1  ;;  %v4675_v56 = vperm.slane %v10485_v17, 0  ;;  %v10502_v50 = vadd.f32 %v10175_v58, %v4467_v18  ;;  %v4101_v1 = vrot.slane %v10477_v48, 6 }
 0x9d1   : > { %v4721_v52 = vsel %vm519_vm0, %v4673_v59, %v4720_v51  ;;  %v4924_v22 = vpack.c.bf16 %v10450_v8, %v10450_v8  ;;  %v5117_v31 = vunpack.c.l.b16 %v4923_v60  ;;  %v4682_v63 = vperm.slane %v10497_v15, 0 }
 0x9d2   : > { %v4722_v62 = vsel %vm4701_vm6, %v4674_v23, %v4721_v52  ;;  %13104 = vst [vmem:[#allocation34_spill] sm:$0xff] %v10502_v50  ;;  %v4728_v26 = vsel %vm4701_vm6, %v4681_v36, %v4727_v12  ;;  %v13105_v37 = vperm.slane %v10306_v7, 0  ;;  %v4683_v59 = vperm.slane %v10502_v50, 0 }
 0x9d3   : > { %v4723_v41 = vsel %vm4703_vm7, %v4675_v56, %v4722_v62  ;;  %v4224_v23 = vmax.f32 %v4095_v6, %v4100_v57  ;;  %v10514_v51 = vunpack.i.l.s16 %v5002_v47  ;;  %v10516_v10 = vunpack.i.l.s16 %v5004_v19 }
 0x9d4   : > { %v4724_v29 = vsel %vm4705_vm8, %v13105_v37, %v4723_v41  ;;  %v4729_v60 = vsel %vm4703_vm7, %v4682_v63, %v4728_v26  ;;  %v10522_v35 = vunpack.i.l.s16 %v5003_v43  ;;  %vm4578_vm9 = vcmp.gt.f32.partialorder %v10446_v11, 0.0 }
 0x9d5   : > { %v10519_v8 = vmul.f32 %v10195_v4, %v4724_v29  ;;  %v4730_v36 = vsel %vm4705_vm8, %v4683_v59, %v4729_v60  ;;  %v4225_v12 = vmax.f32 %v10440_v44, %v4101_v1  ;;  %v6420_v18 = vrot.slane %v4223_v27, 9 }
 0x9d6   : > { %v10527_v56 = vunpack.i.l.s16 %v5117_v31  ;;  %v10532_v6 = vmul.f32 %v10195_v4, %v4730_v36  ;;  %vm4579_vm10 = vcmp.gt.f32.partialorder %v10459_v54, 0.0  ;;  %vm4580_vm11 = vcmp.gt.f32.partialorder %v10472_v42, 0.0  ;;  %v4003_v36 = vpop.f32.mrf.mxu3 }
 0x9d7   : > { %v4773_v47 = vrot.slane %v10519_v8, 2  ;;  %v4774_v19 = vrot.slane %v10519_v8, 4  ;;  %vm4571_vm12 = vcmp.gt.f32.partialorder %v4522_v55, 0.0  ;;  %vm4573_vm14 = vcmp.gt.f32.partialorder %v4524_v9, 0.0 }
 0x9d8   : > { %v4096_v43 = vrot.slane %v10440_v44, 2  ;;  %v6421_v52 = vrot.slane %v4224_v23, 9  ;;  %v4776_v41 = vrot.slane %v10532_v6, 2  ;;  %v4777_v63 = vrot.slane %v10532_v6, 4 }
 0x9d9   : > { %v4795_v57 = vrot.slane %v4773_v47, 1  ;;  %v4796_v62 = vrot.slane %v4774_v19, 1  ;;  %v4878_v1 = vsel %vm4571_vm12, %v4522_v55, %v4773_v47  ;;  %v4880_v31 = vsel %vm4573_vm14, %v4524_v9, %v4774_v19 }
 0x9da   : > { %v6422_v26 = vrot.slane %v4225_v12, 9  ;;  %v4468_v37 = vmax.f32 %v4223_v27, %v6420_v18  ;;  %vm4572_vm15 = vcmp.gt.f32.partialorder %v10481_v14, 0.0  ;;  %v4927_v29 = vpack.c.bf16 %v4878_v1, %v4878_v1 }
 0x9db   : > { %v4929_v59 = vpack.c.bf16 %v4880_v31, %v4880_v31  ;;  %v4097_v60 = vrot.slane %v10440_v44, 4  ;;  %vm4574_vm4 = vcmp.gt.f32.partialorder %v10485_v17, 0.0  ;;  %v4879_v50 = vsel %vm4572_vm15, %v10481_v14, %v4795_v57 }
 0x9dc   : > { %v4098_v55 = vrot.slane %v10440_v44, 6  ;;  %v5185_v9 = vunpack.c.l.b16 %v4924_v22  ;;  %v4881_v47 = vsel %vm4574_vm4, %v10485_v17, %v4796_v62  ;;  %v4798_v19 = vrot.slane %v4776_v41, 1 }
 0x9dd   : > { %v4799_v7 = vrot.slane %v4777_v63, 1  ;;  %v4469_v25 = vmax.f32 %v4224_v23, %v6421_v52  ;;  %vm4581_vm5 = vcmp.gt.f32.partialorder %v10497_v15, 0.0  ;;  %v4470_v27 = vmax.f32 %v4225_v12, %v6422_v26 }
 0x9de   : > { %v10547_v18 = vadd.f32 %v10122_v30, %v4468_v37  ;;  %v4102_v1 = vrot.slane %v4003_v36, 2  ;;  %v4928_v31 = vpack.c.bf16 %v4879_v50, %v4879_v50  ;;  %v5007_v49 = vunpack.c.l.b16 %v4927_v29 }
 0x9df   : > { %v5009_v46 = vunpack.c.l.b16 %v4929_v59  ;;  %v4885_v44 = vsel %vm4578_vm9, %v10446_v11, %v4776_v41  ;;  %vm5078_vm12 = vcmask 1047559   ;;  %v4930_v14 = vpack.c.bf16 %v4881_v47, %v4881_v47 }
 0x9e0   : > { %v4103_v17 = vrot.slane %v4003_v36, 4  ;;  %v4104_v22 = vrot.slane %v4003_v36, 6  ;;  %v4226_v57 = vmax.f32 %v4096_v43, %v4003_v36  ;;  %v10555_v23 = vsel %vm4579_vm10, %v10459_v54, %v4798_v19 }
 0x9e1   : > { %v10560_v30 = vsel %vm4580_vm11, %v10472_v42, %v4777_v63  ;;  %v10563_v50 = vsel %vm4581_vm5, %v10497_v15, %v4799_v7  ;;  %v10566_v11 = vadd.f32 %v10130_v3, %v4469_v25  ;;  %v4934_v12 = vpack.c.bf16 %v4885_v44, %v4885_v44 }
 0x9e2   : > { %v10569_v52 = vadd.f32 %v10125_v33, %v4470_v27  ;;  %v4684_v43 = vperm.slane %v10547_v18, 0  ;;  %v4227_v62 = vmax.f32 %v4097_v60, %v4102_v1  ;;  %v10572_v54 = vunpack.c.l.b16 %v4928_v31 }
 0x9e3   : > { %v10574_v41 = vunpack.i.l.s16 %v5007_v49  ;;  %v10576_v26 = vunpack.i.l.s16 %v5009_v46  ;;  %v5118_v7 = vunpack.c.l.b16 %v4930_v14  ;;  %v4935_v25 = vpack.c.bf16 %v10555_v23, %v10555_v23 }
 0x9e4   : > { %v4936_v15 = vpack.c.bf16 %v10560_v30, %v10560_v30  ;;  %v4685_v63 = vperm.slane %v10566_v11, 0  ;;  %v4937_v37 = vpack.c.bf16 %v10563_v50, %v10563_v50  ;;  %v4228_v29 = vmax.f32 %v4098_v55, %v4103_v17 }
 0x9e5   : > { %v4229_v49 = vmax.f32 %v10477_v48, %v4104_v22  ;;  %v6423_v59 = vrot.slane %v4226_v57, 9  ;;  %vm4549_vm9 = vcmp.gt.f32.partialorder %v10146_v16, 0.0  ;;  %v10588_v46 = vunpack.c.l.b16 %v4934_v12 }
 0x9e6   : > { %v4686_v60 = vperm.slane %v10569_v52, 0  ;;  %v4731_v36 = vsel %vm511_vm1, %v4685_v63, %v4684_v43  ;;  %v6424_v47 = vrot.slane %v4227_v62, 9  ;;  %vm4556_vm10 = vcmp.gt.f32.partialorder %v10204_v2, 0.0 }
 0x9e7   : > { %vm4570_vm11 = vcmp.gt.f32.partialorder %v10404_v28, 0.0  ;;  %v6425_v19 = vrot.slane %v4228_v29, 9  ;;  %v6426_v27 = vrot.slane %v4229_v49, 9  ;;  %v4471_v1 = vmax.f32 %v4226_v57, %v6423_v59 }
 0x9e8   : > { %v10594_v55 = vunpack.i.l.s16 %v5185_v9  ;;  %v4472_v48 = vmax.f32 %v4227_v62, %v6424_v47  ;;  %v13106_v31 = vrot.slane %v10354_v40, 1  ;;  %v11898_v14 = vrot.slane %v10514_v51, 6 }
 0x9e9   : > { %v11897_v17 = vrot.slane %v10522_v35, 5  ;;  %v4473_v22 = vmax.f32 %v4228_v29, %v6425_v19  ;;  %v4474_v23 = vmax.f32 %v4229_v49, %v6426_v27  ;;  %v10603_v12 = vadd.f32 %v10134_v24, %v4471_v1 }
 0x9ea   : > { %v5211_v44 = vsel %vm5078_vm12, %v13106_v31, %v10419_v39  ;;  %v5213_v9 = vsel %vm511_vm1, %v10365_v38, %v10360_v45  ;;  %v4732_v57 = vsel %vm515_vm2, %v4686_v60, %v4731_v36  ;;  %v10610_v43 = vadd.f32 %v10141_v61, %v4472_v48 }
 0x9eb   : > { %v5215_v39 = vsel %vm515_vm2, %v11898_v14, %v5213_v9  ;;  %v11900_v62 = vrot.slane %v10516_v10, 4  ;;  %v10617_v63 = vadd.f32 %v10171_v20, %v4473_v22  ;;  %v10620_v29 = vadd.f32 %v10175_v58, %v4474_v23 }
 0x9ec   : > { %v4687_v49 = vperm.slane %v10603_v12, 0  ;;  %v5220_v38 = vrot.slane %v10527_v56, 3  ;;  %v4688_v59 = vperm.slane %v10610_v43, 0  ;;  %v5217_v60 = vsel %vm519_vm0, %v11897_v17, %v5215_v39 }
 0x9ed   : > { %v5222_v36 = vrot.slane %v10594_v55, 2  ;;  %v11899_v47 = vrot.slane %v10574_v41, 1  ;;  %v4689_v19 = vperm.slane %v10617_v63, 0  ;;  %v4690_v27 = vperm.slane %v10620_v29, 0 }
 0x9ee   : > { %v4733_v1 = vsel %vm519_vm0, %v4687_v49, %v4732_v57  ;;  %v5219_v48 = vsel %vm4701_vm6, %v11900_v62, %v5217_v60  ;;  %v4788_v23 = vrot.slane %v10262_v53, 1  ;;  %v4794_v9 = vrot.slane %v10519_v8, 1 }
 0x9ef   : > { %v4734_v31 = vsel %vm4701_vm6, %v4688_v59, %v4733_v1  ;;  %v5221_v22 = vsel %vm4703_vm7, %v5220_v38, %v5219_v48  ;;  %v13107_v14 = vrot.slane %v10198_v34, 1  ;;  %v13108_v49 = vpack.c.bf16 %v10432_v21, %v10432_v21 }
 0x9f0   : > { %v4735_v39 = vsel %vm4703_vm7, %v4689_v19, %v4734_v31  ;;  %v5223_v17 = vsel %vm4705_vm8, %v5222_v36, %v5221_v22  ;;  %v4863_v36 = vsel %vm4556_vm10, %v10204_v2, %v4788_v23  ;;  %v4877_v19 = vsel %vm4570_vm11, %v10404_v28, %v4794_v9  ;;  %v13110_v22 = vld [vmem:[#allocation21_spill] sm:$0xff]  ;;  %v13111_v9 = vld [vmem:[#allocation31_spill] sm:$0xff] }
 0x9f1   : > { %v4856_v57 = vsel %vm4549_vm9, %v10146_v16, %v13107_v14  ;;  %v5001_v59 = vunpack.c.l.b16 %v13108_v49  ;;  %v4736_v38 = vsel %vm4705_vm8, %v4690_v27, %v4735_v39  ;;  %v5225_v60 = vsel %vm5078_vm12, %v11899_v47, %v5223_v17 }
 0x9f2   : > { %v10661_v16 = vmul.f32 %v10195_v4, %v4736_v38  ;;  %v5240_v14 = vpack.c.b16 %v5225_v60, %v5211_v44  ;;  %v4905_v21 = vpack.c.bf16 %v4856_v57, %v4856_v57  ;;  %v4912_v1 = vpack.c.bf16 %v4863_v36, %v4863_v36 }
 0x9f3   : > { %v10664_v27 = vunpack.i.l.s16 %v10572_v54  ;;  %v10666_v48 = vunpack.i.l.s16 %v5118_v7  ;;  %v4926_v17 = vpack.c.bf16 %v4877_v19, %v4877_v19  ;;  %v10668_v31 = vunpack.i.l.s16 %v5001_v59 }
 0x9f4   : > { %vm4555_vm14 = vcmp.gt.f32.partialorder %v10201_v32, 0.0  ;;  %v10671_v2 = vunpack.c.l.b16 %v4935_v25  ;;  %5242 = vrot.lane.b32.xlu0 %v5240_v14, %s6675_s29  ;;  %v10674_v4 = vunpack.c.l.b16 %v4905_v21  ;;  %v4996_v28 = vunpack.c.l.b16 %v4912_v1 }
 0x9f5   : > { %v5130_v44 = vrot.slane %v10327_v13, 7  ;;  %vm4562_vm15 = vcmp.gt.f32.partialorder %v10315_v0, 0.0  ;;  %vm4569_vm4 = vcmp.gt.f32.partialorder %v10399_v5, 0.0  ;;  %v10682_v54 = vunpack.c.l.b16 %v4936_v15  ;;  %v13113_v15 = vld [vmem:[#allocation23_spill] sm:$0xff] }
 0x9f6   : > { %13109 = vst [vmem:[#allocation35_spill] sm:$0xff] %v10674_v4  ;;  %v4779_v7 = vrot.slane %v10661_v16, 2  ;;  %v5006_v25 = vunpack.c.l.b16 %v4926_v17  ;;  %v5132_v23 = vrot.slane %v13110_v22, 6  ;;  %vm4576_vm5 = vcmp.gt.f32.partialorder %v13111_v9, 0.0  ;;  %v13116_v17 = vld [vmem:[#allocation27_spill] sm:$0xff]  ;;  %v13121_v22 = vld [vmem:[#allocation32_spill] sm:$0xff] }
 0x9f7   : > { %v10688_v39 = vunpack.i.l.s16 %v10588_v46  ;;  %v10693_v57 = vunpack.c.l.b16 %v4937_v37  ;;  %v11901_v49 = vunpack.i.l.s16 %v10674_v4  ;;  %v10696_v30 = vunpack.i.l.s16 %v4996_v28  ;;  %v13114_v37 = vld [vmem:[#allocation20_spill] sm:$0xff] }
 0x9f8   : > { %vm4585_vm9 = vcmp.gt.f32.partialorder %v10569_v52, 0.0  ;;  %v5134_v59 = vrot.slane %v13113_v15, 5  ;;  %v5144_v38 = vrot.slane %v10360_v45, 7  ;;  %v5146_v60 = vrot.slane %v10668_v31, 6 }
 0x9f9   : > { %13112 = vst [vmem:[#allocation36_spill] sm:$0xff] %v10696_v30  ;;  %v10702_v36 = vunpack.i.l.s16 %v5006_v25  ;;  %v5131_v50 = vsel %vm511_vm1, %v5130_v44, %v11901_v49  ;;  %v13115_v46 = vunpack.i.l.s16 %v13114_v37  ;;  %v5138_v14 = vrot.slane %v10696_v30, 3 }
 0x9fa   : > { %v4801_v21 = vrot.slane %v4779_v7, 1  ;;  %v5133_v1 = vsel %vm515_vm2, %v5132_v23, %v5131_v50  ;;  %v5140_v28 = vrot.slane %v13116_v17, 2  ;;  %v5145_v47 = vsel %vm511_vm1, %v5144_v38, %v10354_v40  ;;  %v13117_v50 = vld [vmem:[#allocation29_spill] sm:$0xff] }
 0x9fb   : > { %v5136_v19 = vrot.slane %v13115_v46, 4  ;;  %v5135_v25 = vsel %vm519_vm0, %v5134_v59, %v5133_v1  ;;  %v5147_v62 = vsel %vm515_vm2, %v5146_v60, %v5145_v47  ;;  %v5148_v42 = vrot.slane %v10514_v51, 5 }
 0x9fc   : > { %v5150_v44 = vrot.slane %v10522_v35, 4  ;;  %vm4586_vm10 = vcmp.gt.f32.partialorder %v10603_v12, 0.0  ;;  %v10722_v37 = vsel %vm4585_vm9, %v10569_v52, %v4779_v7  ;;  %v5142_v46 = vrot.slane %v13117_v50, 1 }
 0x9fd   : > { %v5137_v23 = vsel %vm4701_vm6, %v5136_v19, %v5135_v25  ;;  %v5149_v59 = vsel %vm519_vm0, %v5148_v42, %v5147_v62  ;;  %v5152_v47 = vrot.slane %v10516_v10, 3  ;;  %v5156_v60 = vrot.slane %v10702_v36, 1  ;;  %v13118_v62 = vld [vmem:[#allocation30_spill] sm:$0xff] }
 0x9fe   : > { %v5139_v38 = vsel %vm4703_vm7, %v5138_v14, %v5137_v23  ;;  %v5151_v49 = vsel %vm4701_vm6, %v5150_v44, %v5149_v59  ;;  %v5154_v15 = vrot.slane %v10527_v56, 2  ;;  %v4862_v52 = vsel %vm4555_vm14, %v10201_v32, %v10262_v53 }
 0x9ff   : > { %v5141_v1 = vsel %vm4705_vm8, %v5140_v28, %v5139_v38  ;;  %v10738_v7 = vsel %vm4586_vm10, %v10603_v12, %v4801_v21  ;;  %v5153_v42 = vsel %vm4703_vm7, %v5152_v47, %v5151_v49  ;;  %v4869_v19 = vsel %vm4562_vm15, %v10315_v0, %v13118_v62  ;;  %v10769_v62 = vpop.f32.mrf.mxu3 }
 0xa00   : > { %v4876_v14 = vsel %vm4569_vm4, %v10399_v5, %v10519_v8  ;;  %v5155_v28 = vsel %vm4705_vm8, %v5154_v15, %v5153_v42  ;;  %v4883_v32 = vsel %vm4576_vm5, %v13111_v9, %v10532_v6  ;;  %v4911_v53 = vpack.c.bf16 %v4862_v52, %v4862_v52  ;;  %v13120_v15 = vld [vmem:[#allocation22_spill] sm:$0xff] }
 0xa01   : > { %v4918_v12 = vpack.c.bf16 %v4869_v19, %v4869_v19  ;;  %v5143_v49 = vsel %vm5078_vm12, %v5142_v46, %v5141_v1  ;;  %v5157_v21 = vsel %vm5078_vm12, %v5156_v60, %v5155_v28  ;;  %v4925_v25 = vpack.c.bf16 %v4876_v14, %v4876_v14 }
 0xa02   : > { %v4932_v0 = vpack.c.bf16 %v4883_v32, %v4883_v32  ;;  %v5172_v44 = vpack.c.b16 %v5157_v21, %v5143_v49  ;;  %v10756_v23 = vunpack.c.l.b16 %v4911_v53  ;;  %v5266_v5 = vrot.slane %v10696_v30, 7 }
 0xa03   : > { %v5000_v38 = vunpack.c.l.b16 %v4918_v12  ;;  %vm4575_vm11 = vcmp.gt.f32.partialorder %v13120_v15, 0.0  ;;  %v5005_v47 = vunpack.c.l.b16 %v4925_v25  ;;  %v5268_v52 = vrot.slane %v13116_v17, 6 }
 0xa04   : > { %13119 = vst [vmem:[#allocation37_spill] sm:$0xff] %v10756_v23  ;;  %v5010_v9 = vunpack.c.l.b16 %v4932_v0  ;;  %5174 = vrot.lane.b32.xlu2 %v5172_v44, %s6676_s30  ;;  %v11902_v60 = vunpack.i.l.s16 %v10756_v23  ;;  %v5270_v42 = vrot.slane %v13117_v50, 5  ;;  %v5280_v32 = vrot.slane %v10516_v10, 7 }
 0xa05   : > { %v10766_v1 = vunpack.i.l.s16 %v5000_v38  ;;  %v10773_v14 = vunpack.i.l.s16 %v5005_v47  ;;  %v5272_v12 = vrot.slane %v10354_v40, 4  ;;  %v5284_v21 = vrot.slane %v10702_v36, 5 }
 0xa06   : > { %v10775_v28 = vunpack.i.l.s16 %v5010_v9  ;;  %v5267_v53 = vsel %vm511_vm1, %v5266_v5, %v11902_v60  ;;  %v5276_v0 = vrot.slane %v10668_v31, 2  ;;  %v5286_v38 = vrot.slane %v10574_v41, 4 }
 0xa07   : > { %v5274_v49 = vrot.slane %v10766_v1, 3  ;;  %v5269_v25 = vsel %vm515_vm2, %v5268_v52, %v5267_v53  ;;  %v5282_v44 = vrot.slane %v10773_v14, 6  ;;  %v5278_v9 = vrot.slane %v10514_v51, 1 }
 0xa08   : > { %v5271_v47 = vsel %vm519_vm0, %v5270_v42, %v5269_v25  ;;  %v5281_v5 = vsel %vm511_vm1, %v5280_v32, %v10522_v35  ;;  %v5288_v60 = vrot.slane %v10664_v27, 3  ;;  %v5290_v52 = vrot.slane %v10576_v26, 2 }
 0xa09   : > { %v5273_v19 = vsel %vm4701_vm6, %v5272_v12, %v5271_v47  ;;  %v5283_v46 = vsel %vm515_vm2, %v5282_v44, %v5281_v5  ;;  %v5292_v53 = vrot.slane %v10775_v28, 1  ;;  %v4775_v42 = vrot.slane %v10519_v8, 6 }
 0xa0a   : > { %v5275_v59 = vsel %vm4703_vm7, %v5274_v49, %v5273_v19  ;;  %v5285_v23 = vsel %vm519_vm0, %v5284_v21, %v5283_v46  ;;  %v5370_v25 = vrot.slane %v13117_v50, 7  ;;  %vm4577_vm14 = vcmp.gt.f32.partialorder %v13121_v22, 0.0  ;;  %v13122_v21 = vld [vmem:[#allocation26_spill] sm:$0xff] }
 0xa0b   : > { %v5277_v32 = vsel %vm4705_vm8, %v5276_v0, %v5275_v59  ;;  %v5287_v12 = vsel %vm4701_vm6, %v5286_v38, %v5285_v23  ;;  %v5372_v44 = vrot.slane %v10354_v40, 6  ;;  %v5374_v47 = vrot.slane %v10360_v45, 5 }
 0xa0c   : > { %v5279_v5 = vsel %vm5078_vm12, %v5278_v9, %v5277_v32  ;;  %v5289_v19 = vsel %vm4703_vm7, %v5288_v60, %v5287_v12  ;;  %v4882_v8 = vsel %vm4575_vm11, %v13120_v15, %v4775_v42  ;;  %v5371_v46 = vsel %vm511_vm1, %v5370_v25, %v13116_v17  ;;  %v10821_v15 = vpop.f32.mrf.mxu3 }
 0xa0d   : > { %v5291_v49 = vsel %vm4705_vm8, %v5290_v52, %v5289_v19  ;;  %v4931_v59 = vpack.c.bf16 %v4882_v8, %v4882_v8  ;;  %v5373_v23 = vsel %vm515_vm2, %v5372_v44, %v5371_v46  ;;  %v13123_v0 = vunpack.i.l.s16 %v13122_v21 }
 0xa0e   : > { %v5293_v13 = vsel %vm5078_vm12, %v5292_v53, %v5291_v49  ;;  %v5375_v9 = vsel %vm519_vm0, %v5374_v47, %v5373_v23  ;;  %v5378_v60 = vrot.slane %v10514_v51, 3  ;;  %v5380_v32 = vrot.slane %v10522_v35, 2 }
 0xa0f   : > { %v5376_v38 = vrot.slane %v13123_v0, 4  ;;  %v5308_v42 = vpack.c.b16 %v5293_v13, %v5279_v5  ;;  %v5186_v52 = vunpack.c.l.b16 %v4931_v59  ;;  %v5386_v53 = vrot.slane %v10574_v41, 6 }
 0xa10   : > { %v5388_v47 = vrot.slane %v10664_v27, 5  ;;  %v5382_v5 = vrot.slane %v10516_v10, 1  ;;  %v13124_v46 = vrot.slane %v10594_v55, 7  ;;  %v5390_v23 = vrot.slane %v10576_v26, 4 }
 0xa11   : > { %v5377_v12 = vsel %vm4701_vm6, %v5376_v38, %v5375_v9  ;;  %5310 = vrot.lane.b32.xlu1 %v5308_v42, %s6677_s13  ;;  %v10830_v8 = vunpack.i.l.s16 %v5186_v52  ;;  %v5392_v21 = vrot.slane %v10666_v48, 3  ;;  %v4797_v0 = vrot.slane %v10532_v6, 1 }
 0xa12   : > { %v5379_v19 = vsel %vm4703_vm7, %v5378_v60, %v5377_v12  ;;  %v5385_v49 = vsel %vm511_vm1, %v13124_v46, %v10527_v56  ;;  %v5396_v60 = vrot.slane %v10688_v39, 1  ;;  %v5320_v12 = vrot.slane %v13117_v50, 6 }
 0xa13   : > { %v5381_v13 = vsel %vm4705_vm8, %v5380_v32, %v5379_v19  ;;  %v5387_v59 = vsel %vm515_vm2, %v5386_v53, %v5385_v49  ;;  %v5394_v9 = vrot.slane %v10830_v8, 2  ;;  %v5318_v32 = vrot.slane %v13116_v17, 7 }
 0xa14   : > { %v5389_v38 = vsel %vm519_vm0, %v5388_v47, %v5387_v59  ;;  %v4884_v52 = vsel %vm4577_vm14, %v13121_v22, %v4797_v0  ;;  %v5322_v19 = vrot.slane %v10354_v40, 5  ;;  %v5324_v49 = vrot.slane %v10360_v45, 4 }
 0xa15   : > { %v5391_v42 = vsel %vm4701_vm6, %v5390_v23, %v5389_v38  ;;  %v4933_v46 = vpack.c.bf16 %v4884_v52, %v4884_v52  ;;  %v5319_v47 = vsel %vm511_vm1, %v5318_v32, %v10696_v30  ;;  %v5326_v38 = vrot.slane %v10668_v31, 3  ;;  %v4010_v52 = vpop.f32.mrf.mxu3 }
 0xa16   : > { %v5393_v53 = vsel %vm4703_vm7, %v5392_v21, %v5391_v42  ;;  %v5321_v23 = vsel %vm515_vm2, %v5320_v12, %v5319_v47  ;;  %v5328_v22 = vrot.slane %v10514_v51, 2  ;;  %v5383_v0 = vsel %vm5078_vm12, %v5382_v5, %v5381_v13  ;;  %v13125_v5 = vld [vmem:[#allocation34_spill] sm:$0xff] }
 0xa17   : > { %v5395_v59 = vsel %vm4705_vm8, %v5394_v9, %v5393_v53  ;;  %v5011_v25 = vunpack.c.l.b16 %v4933_v46  ;;  %v5323_v21 = vsel %vm519_vm0, %v5322_v19, %v5321_v23  ;;  %v5332_v45 = vrot.slane %v10527_v56, 7 }
 0xa18   : > { %v5397_v44 = vsel %vm5078_vm12, %v5396_v60, %v5395_v59  ;;  %v5325_v32 = vsel %vm4701_vm6, %v5324_v49, %v5323_v21  ;;  %v5334_v9 = vrot.slane %v10702_v36, 6  ;;  %v5336_v47 = vrot.slane %v10574_v41, 5 }
 0xa19   : > { %v5412_v42 = vpack.c.b16 %v5397_v44, %v5383_v0  ;;  %v10866_v12 = vunpack.i.l.s16 %v5011_v25  ;;  %v5327_v53 = vsel %vm4703_vm7, %v5326_v38, %v5325_v32  ;;  %v5338_v13 = vrot.slane %v10664_v27, 4 }
 0xa1a   : > { %vm4582_vm15 = vcmp.gt.f32.partialorder %v13125_v5, 0.0  ;;  %v4107_v60 = vrot.slane %v10769_v62, 6  ;;  %v5329_v44 = vsel %vm4705_vm8, %v5328_v22, %v5327_v53  ;;  %v5330_v19 = vrot.slane %v10522_v35, 1 }
 0xa1b   : > { %5414 = vrot.lane.b32.xlu0 %v5412_v42, %s6678_s14  ;;  %v5333_v25 = vsel %vm511_vm1, %v5332_v45, %v10516_v10  ;;  %v5340_v49 = vrot.slane %v10576_v26, 3  ;;  %v5342_v59 = vrot.slane %v10666_v48, 2  ;;  %v4110_v23 = vrot.slane %v10821_v15, 6 }
 0xa1c   : > { %v5335_v46 = vsel %vm515_vm2, %v5334_v9, %v5333_v25  ;;  %v4111_v0 = vrot.slane %v4010_v52, 2  ;;  %v4112_v21 = vrot.slane %v4010_v52, 4  ;;  %v4113_v42 = vrot.slane %v4010_v52, 6 }
 0xa1d   : > { %v5337_v38 = vsel %vm519_vm0, %v5336_v47, %v5335_v46  ;;  %v5344_v32 = vrot.slane %v10866_v12, 1  ;;  %v4230_v53 = vmax.f32 %v10769_v62, %v4110_v23  ;;  %v13126_v45 = vrot.slane %v10769_v62, 2 }
 0xa1e   : > { %v5339_v22 = vsel %vm4701_vm6, %v5338_v13, %v5337_v38  ;;  %v13127_v17 = vrot.slane %v10769_v62, 4  ;;  %v4233_v50 = vmax.f32 %v4107_v60, %v4112_v21  ;;  %v4234_v47 = vmax.f32 %v10821_v15, %v4113_v42 }
 0xa1f   : > { %v4231_v9 = vmax.f32 %v13126_v45, %v4010_v52  ;;  %v5341_v25 = vsel %vm4703_vm7, %v5340_v49, %v5339_v22  ;;  %v6427_v4 = vrot.slane %v4230_v53, 9  ;;  %vm4583_vm4 = vcmp.gt.f32.partialorder %v10547_v18, 0.0 }
 0xa20   : > { %v4232_v30 = vmax.f32 %v13127_v17, %v4111_v0  ;;  %v5343_v46 = vsel %vm4705_vm8, %v5342_v59, %v5341_v25  ;;  %v5331_v13 = vsel %vm5078_vm12, %v5330_v19, %v5329_v44  ;;  %v4890_v52 = vsel %vm4583_vm4, %v10547_v18, %v10661_v16  ;;  %v10905_v19 = vpop.f32.mrf.mxu3  ;;  %v6656_v25 = vld [vmem:[%s11485_s2] ss:$0 sm:$0xff] }
 0xa21   : > { %v6428_v40 = vrot.slane %v4231_v9, 9  ;;  %v5345_v23 = vsel %vm5078_vm12, %v5344_v32, %v5343_v46  ;;  %v13128_v17 = vpack.c.bf16 %v10722_v37, %v10722_v37  ;;  %v13129_v60 = vpack.c.bf16 %v10738_v7, %v10738_v7 }
 0xa22   : > { %v6429_v38 = vrot.slane %v4232_v30, 9  ;;  %v5360_v59 = vpack.c.b16 %v5345_v23, %v5331_v13  ;;  %v6430_v0 = vrot.slane %v4233_v50, 9  ;;  %v4475_v21 = vmax.f32 %v4230_v53, %v6427_v4 }
 0xa23   : > { %v5253_v62 = vunpack.c.l.b16 %v13128_v17  ;;  %v5254_v49 = vunpack.c.l.b16 %v13129_v60  ;;  %v6431_v42 = vrot.slane %v4234_v47, 9  ;;  %v4476_v22 = vmax.f32 %v4231_v9, %v6428_v40 }
 0xa24   : > { %v5226_v44 = vrot.slane %v10576_v26, 7  ;;  %v13130_v32 = vrot.slane %v10532_v6, 6  ;;  %v10913_v37 = vunpack.i.l.s16 %v10671_v2  ;;  %5362 = vrot.lane.b32.xlu2 %v5360_v59, %s6679_s15  ;;  %v4939_v7 = vpack.c.bf16 %v4890_v52, %v4890_v52 }
 0xa25   : > { %v10917_v4 = vunpack.i.l.s16 %v10682_v54  ;;  %v10920_v40 = vunpack.i.l.s16 %v10693_v57  ;;  %v5448_v53 = vrot.slane %v10775_v28, 6  ;;  %v4477_v6 = vmax.f32 %v4232_v30, %v6429_v38 }
 0xa26   : > { %v4889_v18 = vsel %vm4582_vm15, %v13125_v5, %v13130_v32  ;;  %v10923_v45 = vunpack.i.l.s16 %v5253_v62  ;;  %v10925_v9 = vunpack.i.l.s16 %v5254_v49  ;;  %v5547_v2 = vrot.slane %v10830_v8, 7 }
 0xa27   : > { %v10930_v5 = vsel %vm511_vm1, %v5226_v44, %v10664_v27  ;;  %v10935_v46 = vadd.f32 %v6656_v25, %v4475_v21  ;;  %v10937_v13 = vmax.f32 %v4233_v50, %v6430_v0  ;;  %v10939_v23 = vmax.f32 %v4234_v47, %v6431_v42 }
 0xa28   : > { %v10942_v30 = vadd.f32 %v10130_v3, %v4476_v22  ;;  %v11910_v38 = vrot.slane %v10688_v39, 4  ;;  %v11912_v52 = vrot.slane %v10913_v37, 3  ;;  %v10946_v17 = vunpack.c.l.b16 %v4939_v7  ;;  %v4015_v7 = vpop.f32.mrf.mxu3 }
 0xa29   : > { %v5438_v62 = vrot.slane %v10668_v31, 7  ;;  %v10950_v60 = vadd.f32 %v10125_v33, %v4477_v6  ;;  %v11911_v49 = vrot.slane %v10917_v4, 2  ;;  %v5449_v50 = vsel %vm515_vm2, %v5448_v53, %v10930_v5 }
 0xa2a   : > { %v5450_v47 = vrot.slane %v10866_v12, 5  ;;  %v11914_v3 = vunpack.i.l.s16 %v10946_v17  ;;  %v5443_v0 = vrot.slane %v10773_v14, 3  ;;  %v4938_v21 = vpack.c.bf16 %v4889_v18, %v4889_v18 }
 0xa2b   : > { %v5439_v59 = vsel %vm511_vm1, %v5438_v62, %v10766_v1  ;;  %v13131_v42 = vrot.slane %v10514_v51, 6  ;;  %v5445_v22 = vrot.slane %v10702_v36, 2  ;;  %v5533_v32 = vrot.slane %v10522_v35, 7 }
 0xa2c   : > { %v5451_v44 = vsel %vm519_vm0, %v5450_v47, %v5449_v50  ;;  %v13132_v53 = vrot.slane %v10522_v35, 5  ;;  %v5455_v18 = vrot.slane %v11914_v3, 1  ;;  %v5535_v62 = vrot.slane %v10516_v10, 6 }
 0xa2d   : > { %v5440_v33 = vsel %vm515_vm2, %v13131_v42, %v5439_v59  ;;  %v5452_v25 = vsel %vm4701_vm6, %v11910_v38, %v5451_v44  ;;  %vm4584_vm5 = vcmp.gt.f32.partialorder %v10566_v11, 0.0  ;;  %v13133_v50 = vrot.slane %v10516_v10, 4 }
 0xa2e   : > { %v5441_v6 = vsel %vm519_vm0, %v13132_v53, %v5440_v33  ;;  %v5453_v59 = vsel %vm4703_vm7, %v11912_v52, %v5452_v25  ;;  %v10982_v42 = vunpack.c.l.b16 %v4938_v21  ;;  %v5534_v33 = vsel %vm511_vm1, %v5533_v32, %v10514_v51 }
 0xa2f   : > { %v5442_v47 = vsel %vm4701_vm6, %v13133_v50, %v5441_v6  ;;  %v5454_v7 = vsel %vm4705_vm8, %v11911_v49, %v5453_v59  ;;  %v5536_v53 = vsel %vm515_vm2, %v5535_v62, %v5534_v33  ;;  %v5537_v38 = vrot.slane %v10527_v56, 5 }
 0xa30   : > { %v5444_v44 = vsel %vm4703_vm7, %v5443_v0, %v5442_v47  ;;  %v5456_v50 = vsel %vm5078_vm12, %v5455_v18, %v5454_v7  ;;  %v11913_v21 = vunpack.i.l.s16 %v10982_v42  ;;  %v5539_v25 = vrot.slane %v10594_v55, 4 }
 0xa31   : > { %v5446_v6 = vsel %vm4705_vm8, %v5445_v22, %v5444_v44  ;;  %v13134_v32 = vrot.slane %v10574_v41, 1  ;;  %v5538_v47 = vsel %vm519_vm0, %v5537_v38, %v5536_v53  ;;  %v5541_v59 = vrot.slane %v10574_v41, 3 }
 0xa32   : > { %v5543_v62 = vrot.slane %v10664_v27, 2  ;;  %v4692_v33 = vperm.slane %v10942_v30, 0  ;;  %v5540_v22 = vsel %vm4701_vm6, %v5539_v25, %v5538_v47  ;;  %v5545_v18 = vrot.slane %v10576_v26, 1 }
 0xa33   : > { %v5447_v0 = vsel %vm5078_vm12, %v13134_v32, %v5446_v6  ;;  %v5542_v44 = vsel %vm4703_vm7, %v5541_v59, %v5540_v22  ;;  %v5548_v55 = vsel %vm511_vm1, %v5547_v2, %v10666_v48  ;;  %v5549_v7 = vrot.slane %v10688_v39, 6 }
 0xa34   : > { %v5471_v49 = vpack.c.b16 %v5456_v50, %v5447_v0  ;;  %v5551_v38 = vrot.slane %v10913_v37, 5  ;;  %v5544_v53 = vsel %vm4705_vm8, %v5543_v62, %v5542_v44  ;;  %v5553_v6 = vrot.slane %v10917_v4, 4 }
 0xa35   : > { %v5555_v50 = vrot.slane %v10920_v40, 3  ;;  %v5557_v25 = vrot.slane %v11913_v21, 2  ;;  %v5546_v32 = vsel %vm5078_vm12, %v5545_v18, %v5544_v53  ;;  %v5550_v2 = vsel %vm515_vm2, %v5549_v7, %v5548_v55 }
 0xa36   : > { %5473 = vrot.lane.b32.xlu1 %v5471_v49, %s6680_s18  ;;  %v5559_v0 = vrot.slane %v10923_v45, 1  ;;  %v4800_v47 = vrot.slane %v10661_v16, 1  ;;  %v5552_v59 = vsel %vm519_vm0, %v5551_v38, %v5550_v2  ;;  %v5481_v49 = vrot.slane %v10514_v51, 7 }
 0xa37   : > { %v5483_v62 = vrot.slane %v10522_v35, 6  ;;  %v5485_v22 = vrot.slane %v10516_v10, 5  ;;  %v5554_v44 = vsel %vm4701_vm6, %v5553_v6, %v5552_v59  ;;  %v5487_v55 = vrot.slane %v10527_v56, 4 }
 0xa38   : > { %v4891_v18 = vsel %vm4584_vm5, %v10566_v11, %v4800_v47  ;;  %v5489_v7 = vrot.slane %v10702_v36, 3  ;;  %v5556_v53 = vsel %vm4703_vm7, %v5555_v50, %v5554_v44  ;;  %v5482_v38 = vsel %vm511_vm1, %v5481_v49, %v10668_v31 }
 0xa39   : > { %v4940_v52 = vpack.c.bf16 %v4891_v18, %v4891_v18  ;;  %v5491_v2 = vrot.slane %v10574_v41, 2  ;;  %v5558_v21 = vsel %vm4705_vm8, %v5557_v25, %v5556_v53  ;;  %v5484_v6 = vsel %vm515_vm2, %v5483_v62, %v5482_v38 }
 0xa3a   : > { %v5493_v59 = vrot.slane %v10664_v27, 1  ;;  %v5495_v11 = vrot.slane %v10666_v48, 7  ;;  %v5560_v56 = vsel %vm5078_vm12, %v5559_v0, %v5558_v21  ;;  %v5486_v3 = vsel %vm519_vm0, %v5485_v22, %v5484_v6 }
 0xa3b   : > { %v5252_v47 = vunpack.c.l.b16 %v4940_v52  ;;  %v5497_v50 = vrot.slane %v10866_v12, 6  ;;  %v5575_v44 = vpack.c.b16 %v5560_v56, %v5546_v32  ;;  %v5488_v49 = vsel %vm4701_vm6, %v5487_v55, %v5486_v3 }
 0xa3c   : > { %v5496_v18 = vsel %vm511_vm1, %v5495_v11, %v10576_v26  ;;  %v5499_v25 = vrot.slane %v10688_v39, 5  ;;  %v5490_v53 = vsel %vm4703_vm7, %v5489_v7, %v5488_v49  ;;  %v5501_v52 = vrot.slane %v10913_v37, 4 }
 0xa3d   : > { %v11045_v62 = vunpack.i.l.s16 %v5252_v47  ;;  %v5498_v38 = vsel %vm515_vm2, %v5497_v50, %v5496_v18  ;;  %v4691_v21 = vperm.slane %v10935_v46, 0  ;;  %5577 = vrot.lane.b32.xlu0 %v5575_v44, %s6681_s19  ;;  %v5492_v3 = vsel %vm4705_vm8, %v5491_v2, %v5490_v53 }
 0xa3e   : > { %v5500_v32 = vsel %vm519_vm0, %v5499_v25, %v5498_v38  ;;  %v5503_v0 = vrot.slane %v10917_v4, 3  ;;  %v11057_v22 = vadd.f32 %v10134_v24, %v10937_v13  ;;  %v5505_v7 = vrot.slane %v10920_v40, 2 }
 0xa3f   : > { %v5502_v55 = vsel %vm4701_vm6, %v5501_v52, %v5500_v32  ;;  %v5507_v6 = vrot.slane %v11045_v62, 1  ;;  %v4693_v11 = vperm.slane %v10950_v60, 0  ;;  %v4737_v56 = vsel %vm511_vm1, %v4692_v33, %v4691_v21 }
 0xa40   : > { %v5504_v2 = vsel %vm4703_vm7, %v5503_v0, %v5502_v55  ;;  %v5158_v47 = vrot.slane %v10664_v27, 7  ;;  %v5494_v50 = vsel %vm5078_vm12, %v5493_v59, %v5492_v3  ;;  %v4108_v24 = vrot.slane %v10821_v15, 2 }
 0xa41   : > { %v5506_v44 = vsel %vm4705_vm8, %v5505_v7, %v5504_v2  ;;  %v5160_v13 = vrot.slane %v10576_v26, 6  ;;  %v4114_v18 = vrot.slane %v10905_v19, 2  ;;  %v5162_v33 = vrot.slane %v10666_v48, 5 }
 0xa42   : > { %v5508_v49 = vsel %vm5078_vm12, %v5507_v6, %v5506_v44  ;;  %v5159_v25 = vsel %vm511_vm1, %v5158_v47, %v10574_v41  ;;  %v4235_v38 = vmax.f32 %v4108_v24, %v10905_v19  ;;  %v5164_v52 = vrot.slane %v10866_v12, 4 }
 0xa43   : > { %v5523_v53 = vpack.c.b16 %v5508_v49, %v5494_v50  ;;  %v5161_v59 = vsel %vm515_vm2, %v5160_v13, %v5159_v25  ;;  %v13135_v21 = vunpack.i.l.s16 %v10946_v17  ;;  %v4109_v32 = vrot.slane %v10821_v15, 4 }
 0xa44   : > { %v5163_v0 = vsel %vm519_vm0, %v5162_v33, %v5161_v59  ;;  %v5166_v55 = vrot.slane %v10688_v39, 3  ;;  %v5168_v19 = vrot.slane %v10913_v37, 2  ;;  %v5170_v6 = vrot.slane %v10917_v4, 1 }
 0xa45   : > { %v5300_v3 = vrot.slane %v13135_v21, 4  ;;  %5525 = vrot.lane.b32.xlu2 %v5523_v53, %s6682_s20  ;;  %v5165_v7 = vsel %vm4701_vm6, %v5164_v52, %v5163_v0  ;;  %v4780_v2 = vrot.slane %v10661_v16, 4  ;;  %vm4587_vm9 = vcmp.gt.f32.partialorder %v10610_v43, 0.0 }
 0xa46   : > { %v5167_v17 = vsel %vm4703_vm7, %v5166_v55, %v5165_v7  ;;  %v5294_v15 = vrot.slane %v10688_v39, 7  ;;  %v5296_v47 = vrot.slane %v10913_v37, 6  ;;  %v4236_v50 = vmax.f32 %v4109_v32, %v4114_v18 }
 0xa47   : > { %v6432_v44 = vrot.slane %v4235_v38, 9  ;;  %v5169_v24 = vsel %vm4705_vm8, %v5168_v19, %v5167_v17  ;;  %v4894_v13 = vsel %vm4587_vm9, %v10610_v43, %v4780_v2  ;;  %v5298_v53 = vrot.slane %v10917_v4, 5 }
 0xa48   : > { %v5171_v49 = vsel %vm5078_vm12, %v5170_v6, %v5169_v24  ;;  %v4943_v25 = vpack.c.bf16 %v4894_v13, %v4894_v13  ;;  %v5295_v33 = vsel %vm511_vm1, %v5294_v15, %v10866_v12  ;;  %v4694_v59 = vperm.slane %v11057_v22, 0 }
 0xa49   : > { %v6465_v52 = vpack.c.b16 %v10693_v57, %v5171_v49  ;;  %v5297_v21 = vsel %vm515_vm2, %v5296_v47, %v5295_v33  ;;  %v5302_v18 = vrot.slane %v11045_v62, 3  ;;  %v4738_v32 = vsel %vm515_vm2, %v4693_v11, %v4737_v56 }
 0xa4a   : > { %v5255_v0 = vunpack.c.l.b16 %v4943_v25  ;;  %v5299_v43 = vsel %vm519_vm0, %v5298_v53, %v5297_v21  ;;  %v5304_v55 = vrot.slane %v10923_v45, 2  ;;  %v13136_v7 = vunpack.i.l.s16 %v10982_v42 }
 0xa4b   : > { %5176 = vrot.lane.b32.xlu1 %v6465_v52, %s6676_s30  ;;  %v5301_v6 = vsel %vm4701_vm6, %v5300_v3, %v5299_v43  ;;  %v5306_v57 = vrot.slane %v10925_v9, 1  ;;  %v5228_v17 = vrot.slane %v10666_v48, 6  ;;  %v6433_v15 = vrot.slane %v4236_v50, 9  ;;  %s6685_s30 = smov 48  }
 0xa4c   : > { %v5402_v19 = vrot.slane %v13136_v7, 5  ;;  %v4480_v47 = vmax.f32 %v4235_v38, %v6432_v44  ;;  %v5303_v11 = vsel %vm4703_vm7, %v5302_v18, %v5301_v6  ;;  %v5230_v56 = vrot.slane %v10830_v8, 5 }
 0xa4d   : > { %v5305_v24 = vsel %vm4705_vm8, %v5304_v55, %v5303_v11  ;;  %v5229_v13 = vsel %vm515_vm2, %v5228_v17, %v10930_v5  ;;  %v4802_v49 = vrot.slane %v4780_v2, 1  ;;  %v5346_v25 = vrot.slane %v10913_v37, 7 }
 0xa4e   : > { %v5307_v3 = vsel %vm5078_vm12, %v5306_v57, %v5305_v24  ;;  %v11118_v33 = vunpack.i.l.s16 %v5255_v0  ;;  %v5231_v48 = vsel %vm519_vm0, %v5230_v56, %v5229_v13  ;;  %vm4588_vm10 = vcmp.gt.f32.partialorder %v10617_v63, 0.0 }
 0xa4f   : > { %v6477_v38 = vpack.c.b16 %v5255_v0, %v5307_v3  ;;  %v13137_v44 = vrot.slane %v10688_v39, 4  ;;  %v4895_v53 = vsel %vm4588_vm10, %v10617_v63, %v4802_v49  ;;  %v5347_v5 = vsel %vm511_vm1, %v5346_v25, %v10688_v39 }
 0xa50   : > { %v13138_v2 = vrot.slane %v10913_v37, 3  ;;  %v5238_v21 = vrot.slane %v10920_v40, 1  ;;  %v4944_v18 = vpack.c.bf16 %v4895_v53, %v4895_v53  ;;  %v5348_v43 = vrot.slane %v10917_v4, 6 }
 0xa51   : > { %v5233_v8 = vsel %vm4701_vm6, %v13137_v44, %v5231_v48  ;;  %5312 = vrot.lane.b32.xlu0 %v6477_v38, %s6677_s13  ;;  %v13139_v0 = vrot.slane %v10917_v4, 2  ;;  %v5350_v63 = vrot.slane %v10920_v40, 5  ;;  %v5352_v7 = vrot.slane %v11045_v62, 4  ;;  %s6686_s13 = smov 64  }
 0xa52   : > { %v5235_v52 = vsel %vm4703_vm7, %v13138_v2, %v5233_v8  ;;  %v5354_v6 = vrot.slane %v10923_v45, 3  ;;  %v4481_v57 = vmax.f32 %v4236_v50, %v6433_v15  ;;  %v5349_v11 = vsel %vm515_vm2, %v5348_v43, %v5347_v5 }
 0xa53   : > { %v5237_v55 = vsel %vm4705_vm8, %v13139_v0, %v5235_v52  ;;  %v5356_v56 = vrot.slane %v10925_v9, 2  ;;  %v5315_v13 = vunpack.c.l.b16 %v4944_v18  ;;  %v5351_v49 = vsel %vm519_vm0, %v5350_v63, %v5349_v11 }
 0xa54   : > { %v5239_v17 = vsel %vm5078_vm12, %v5238_v21, %v5237_v55  ;;  %v4781_v25 = vrot.slane %v10661_v16, 6  ;;  %v5353_v3 = vsel %vm4701_vm6, %v5352_v7, %v5351_v49  ;;  %vm4589_vm11 = vcmp.gt.f32.partialorder %v10620_v29, 0.0 }
 0xa55   : > { %v6471_v24 = vpack.c.b16 %v10982_v42, %v5239_v17  ;;  %v5398_v48 = vrot.slane %v10917_v4, 7  ;;  %v5400_v50 = vrot.slane %v10920_v40, 6  ;;  %v11151_v15 = vadd.f32 %v10171_v20, %v4480_v47 }
 0xa56   : > { %v5355_v42 = vsel %vm4703_vm7, %v5354_v6, %v5353_v3  ;;  %v5358_v38 = vrot.slane %v11118_v33, 1  ;;  %v4896_v44 = vsel %vm4589_vm11, %v10620_v29, %v4781_v25  ;;  %v11158_v16 = vadd.f32 %v10175_v58, %v4481_v57 }
 0xa57   : > { %5244 = vrot.lane.b32.xlu2 %v6471_v24, %s6675_s29  ;;  %v5357_v8 = vsel %vm4705_vm8, %v5356_v56, %v5355_v42  ;;  %v4945_v53 = vpack.c.bf16 %v4896_v44, %v4896_v44  ;;  %v5404_v4 = vrot.slane %v10923_v45, 4  ;;  %v11162_v40 = vunpack.i.l.s16 %v5315_v13  ;;  %v6657_v42 = vld [vmem:[%s11486_s3] ss:$0 sm:$0xff]  ;;  %s6684_s29 = smov 32  }
 0xa58   : > { %v5359_v20 = vsel %vm5078_vm12, %v5358_v38, %v5357_v8  ;;  %v5399_v47 = vsel %vm511_vm1, %v5398_v48, %v10913_v37  ;;  %v5406_v5 = vrot.slane %v10925_v9, 3  ;;  %v4739_v58 = vsel %vm519_vm0, %v4694_v59, %v4738_v32 }
 0xa59   : > { %v6479_v2 = vpack.c.b16 %v5315_v13, %v5359_v20  ;;  %v5401_v29 = vsel %vm515_vm2, %v5400_v50, %v5399_v47  ;;  %v5367_v52 = vunpack.c.l.b16 %v4945_v53  ;;  %v4545_v18 = vadd.f32 %v10141_v61, %v10939_v23 }
 0xa5a   : > { %v5403_v21 = vsel %vm519_vm0, %v5402_v19, %v5401_v29  ;;  %v4696_v43 = vperm.slane %v11151_v15, 0  ;;  %v5561_v0 = vrot.slane %v11118_v33, 7  ;;  %v5408_v63 = vrot.slane %v11118_v33, 2 }
 0xa5b   : > { %5364 = vrot.lane.b32.xlu1 %v6479_v2, %s6679_s15  ;;  %v5405_v55 = vsel %vm4701_vm6, %v5404_v4, %v5403_v21  ;;  %v4697_v7 = vperm.slane %v11158_v16, 0  ;;  %v5410_v32 = vrot.slane %v11162_v40, 1  ;;  %v4695_v19 = vperm.slane %v4545_v18, 0 }
 0xa5c   : > { %v5407_v59 = vsel %vm4703_vm7, %v5406_v5, %v5405_v55  ;;  %vm4590_vm14 = vcmp.gt.f32.partialorder %v10935_v46, 0.0  ;;  %vm4591_vm15 = vcmp.gt.f32.partialorder %v10942_v30, 0.0  ;;  %v5457_v23 = vrot.slane %v10923_v45, 7 }
 0xa5d   : > { %v5409_v61 = vsel %vm4705_vm8, %v5408_v63, %v5407_v59  ;;  %v5563_v6 = vrot.slane %v11162_v40, 6  ;;  %v6480_v57 = vunpack.i.l.s16 %v5367_v52  ;;  %v4740_v11 = vsel %vm4701_vm6, %v4695_v19, %v4739_v58 }
 0xa5e   : > { %v5411_v17 = vsel %vm5078_vm12, %v5410_v32, %v5409_v61  ;;  %vm4592_vm4 = vcmp.gt.f32.partialorder %v10950_v60, 0.0  ;;  %v5562_v24 = vsel %vm511_vm1, %v5561_v0, %v10925_v9  ;;  %v4741_v13 = vsel %vm4703_vm7, %v4696_v43, %v4740_v11 }
 0xa5f   : > { %v6481_v56 = vpack.c.b16 %v5367_v52, %v5411_v17  ;;  %vm4593_vm5 = vcmp.gt.f32.partialorder %v11057_v22, 0.0  ;;  %v4742_v49 = vsel %vm4705_vm8, %v4697_v7, %v4741_v13  ;;  %v5459_v25 = vrot.slane %v10925_v9, 6 }
 0xa60   : > { %v5509_v3 = vrot.slane %v10925_v9, 7  ;;  %v5511_v48 = vrot.slane %v11118_v33, 6  ;;  %v5513_v50 = vrot.slane %v11162_v40, 5  ;;  %v4756_v38 = vmul.f32 %v6657_v42, %v4742_v49 }
 0xa61   : > { %5416 = vrot.lane.b32.xlu2 %v6481_v56, %s6678_s14  ;;  %v5458_v44 = vsel %vm511_vm1, %v5457_v23, %v11045_v62  ;;  %v5564_v8 = vsel %vm515_vm2, %v5563_v6, %v5562_v24  ;;  %v5565_v53 = vrot.slane %v6480_v57, 5  ;;  %vm4594_vm9 = vcmp.gt.f32.partialorder %v4545_v18, 0.0 }
 0xa62   : > { %v5461_v9 = vrot.slane %v11118_v33, 5  ;;  %v4782_v4 = vrot.slane %v4756_v38, 2  ;;  %v4783_v20 = vrot.slane %v4756_v38, 4  ;;  %v4803_v47 = vrot.slane %v4756_v38, 1 }
 0xa63   : > { %v4897_v40 = vsel %vm4590_vm14, %v10935_v46, %v4756_v38  ;;  %v5460_v2 = vsel %vm515_vm2, %v5459_v25, %v5458_v44  ;;  %vm4595_vm10 = vcmp.gt.f32.partialorder %v11151_v15, 0.0  ;;  %v5510_v62 = vsel %vm511_vm1, %v5509_v3, %v10923_v45 }
 0xa64   : > { %v4946_v5 = vpack.c.bf16 %v4897_v40, %v4897_v40  ;;  %v4804_v29 = vrot.slane %v4782_v4, 1  ;;  %v4898_v33 = vsel %vm4591_vm15, %v10942_v30, %v4803_v47  ;;  %v4899_v58 = vsel %vm4592_vm4, %v10950_v60, %v4782_v4 }
 0xa65   : > { %v4901_v52 = vsel %vm4594_vm9, %v4545_v18, %v4783_v20  ;;  %v4947_v21 = vpack.c.bf16 %v4898_v33, %v4898_v33  ;;  %v4948_v46 = vpack.c.bf16 %v4899_v58, %v4899_v58  ;;  %v4805_v63 = vrot.slane %v4783_v20, 1 }
 0xa66   : > { %v4950_v43 = vpack.c.bf16 %v4901_v52, %v4901_v52  ;;  %v5423_v0 = vunpack.c.l.b16 %v4946_v5  ;;  %v4900_v55 = vsel %vm4593_vm5, %v11057_v22, %v4804_v29  ;;  %v5512_v45 = vsel %vm515_vm2, %v5511_v48, %v5510_v62 }
 0xa67   : > { %v4784_v7 = vrot.slane %v4756_v38, 6  ;;  %v4949_v59 = vpack.c.bf16 %v4900_v55, %v4900_v55  ;;  %v5424_v32 = vunpack.c.l.b16 %v4947_v21  ;;  %v5425_v30 = vunpack.c.l.b16 %v4948_v46 }
 0xa68   : > { %v5427_v19 = vunpack.c.l.b16 %v4950_v43  ;;  %v5566_v61 = vsel %vm519_vm0, %v5565_v53, %v5564_v8  ;;  %v6482_v60 = vunpack.i.l.s16 %v5423_v0  ;;  %v5462_v18 = vsel %vm519_vm0, %v5461_v9, %v5460_v2 }
 0xa69   : > { %v4902_v23 = vsel %vm4595_vm10, %v11151_v15, %v4805_v63  ;;  %v5426_v6 = vunpack.c.l.b16 %v4949_v59  ;;  %v6483_v57 = vunpack.i.l.s16 %v5424_v32  ;;  %v6484_v22 = vunpack.i.l.s16 %v5425_v30  ;;  %v6592_v59 = vld [vmem:[%s11487_s4 + $0x28] sm:$0x10] }
 0xa6a   : > { %vm4596_vm11 = vcmp.gt.f32.partialorder %v11158_v16, 0.0  ;;  %v5463_v17 = vrot.slane %v6482_v60, 4  ;;  %v4951_v11 = vpack.c.bf16 %v4902_v23, %v4902_v23  ;;  %v5514_v56 = vsel %vm519_vm0, %v5513_v50, %v5512_v45 }
 0xa6b   : > { %v4903_v24 = vsel %vm4596_vm11, %v11158_v16, %v4784_v7  ;;  %v6485_v13 = vunpack.i.l.s16 %v5426_v6  ;;  %v6486_v49 = vunpack.i.l.s16 %v5427_v19  ;;  %v5465_v25 = vrot.slane %v6483_v57, 3  ;;  %v6514_v7 = vld [vmem:[%s11487_s4 + $0x28] sm:$0xf]  ;;  %v13141_v6 = vld [vmem:[#allocation28_spill] sm:$0xff] }
 0xa6c   : > { %v5467_v3 = vrot.slane %v6484_v22, 2  ;;  %v5464_v48 = vsel %vm4701_vm6, %v5463_v17, %v5462_v18  ;;  %v5478_v42 = vunpack.c.l.b16 %v4951_v11  ;;  %v5515_v38 = vrot.slane %v6483_v57, 4  ;;  %v13142_v17 = vld [vmem:[#allocation35_spill] sm:$0xff] }
 0xa6d   : > { %v5517_v15 = vrot.slane %v6484_v22, 3  ;;  %v5466_v44 = vsel %vm4703_vm7, %v5465_v25, %v5464_v48  ;;  %v5469_v8 = vrot.slane %v6485_v13, 1  ;;  %v5519_v53 = vrot.slane %v6485_v13, 2 }
 0xa6e   : > { %v4952_v9 = vpack.c.bf16 %v4903_v24, %v4903_v24  ;;  %v5468_v4 = vsel %vm4705_vm8, %v5467_v3, %v5466_v44  ;;  %v6488_v20 = vunpack.i.l.s16 %v5478_v42  ;;  %v5516_v50 = vsel %vm4701_vm6, %v5515_v38, %v5514_v56  ;;  %v13145_v3 = vld [vmem:[#allocation24_spill] sm:$0xff]  ;;  %v13146_v44 = vld [vmem:[#allocation21_spill] sm:$0xff] }
 0xa6f   : > { %v5567_v16 = vrot.slane %v6484_v22, 4  ;;  %v5470_v47 = vsel %vm5078_vm12, %v5469_v8, %v5468_v4  ;;  %v5518_v40 = vsel %vm4703_vm7, %v5517_v15, %v5516_v50  ;;  %v5521_v5 = vrot.slane %v6486_v49, 1  ;;  %v13147_v50 = vld [vmem:[#allocation37_spill] sm:$0xff] }
 0xa70   : > { %v5569_v2 = vrot.slane %v6485_v13, 3  ;;  %v6487_v62 = vpack.c.b16 %v5427_v19, %v5470_v47  ;;  %v5571_v29 = vrot.slane %v6486_v49, 2  ;;  %v5520_v33 = vsel %vm4705_vm8, %v5519_v53, %v5518_v40  ;;  %v13140_v19 = vld [vmem:[#allocation19_spill] sm:$0xff]  ;;  %v13144_v13 = vld [vmem:[#allocation29_spill] sm:$0xff] }
 0xa71   : > { %v5568_v58 = vsel %vm4701_vm6, %v5567_v16, %v5566_v61  ;;  %v5522_v52 = vsel %vm5078_vm12, %v5521_v5, %v5520_v33  ;;  %v5573_v21 = vrot.slane %v6488_v20, 1  ;;  %v5530_v0 = vunpack.c.l.b16 %v4952_v9  ;;  %v6591_v61 = vld [vmem:[%s11487_s4 + $0x20] sm:$0xff]  ;;  %v13149_v40 = vld [vmem:[#allocation23_spill] sm:$0xff] }
 0xa72   : > { %v5570_v46 = vsel %vm4703_vm7, %v5569_v2, %v5568_v58  ;;  %5475 = vrot.lane.b32.xlu0 %v6487_v62, %s6680_s18  ;;  %v6489_v43 = vpack.c.b16 %v5478_v42, %v5522_v52  ;;  %v6515_v32 = vor.u32 %v6592_v59, %v6514_v7  ;;  %vm4548_vm14 = vcmp.gt.f32.partialorder %v13140_v19, 0.0  ;;  %v13150_v62 = vld [vmem:[#allocation36_spill] sm:$0xff]  ;;  %s6687_s18 = smov 96  }
 0xa73   : > { %v5572_v55 = vsel %vm4705_vm8, %v5571_v29, %v5570_v46  ;;  %v4855_v60 = vsel %vm4548_vm14, %v13140_v19, %v10198_v34  ;;  %v5080_v57 = vrot.slane %v13141_v6, 7  ;;  %v5082_v22 = vrot.slane %v10766_v1, 6  ;;  %v6590_v34 = vld [vmem:[%s11487_s4 + $0x18] sm:$0xff]  ;;  %v6589_v1 = vld [vmem:[%s11487_s4 + $0x10] sm:$0xff] }
 0xa74   : > { %v5574_v63 = vsel %vm5078_vm12, %v5573_v21, %v5572_v55  ;;  %5527 = vrot.lane.b32.xlu1 %v6489_v43, %s6682_s20  ;;  %v5669_v30 = vsel %vm3937_vm13, %v6515_v32, 0  ;;  %v4904_v18 = vpack.c.bf16 %v4855_v60, %v4855_v60  ;;  %v13143_v11 = vunpack.i.l.s16 %v13142_v17  ;;  %v5175_v21 = vpop.permute.xlu2 %5174  ;;  %v6587_v43 = vld [vmem:[%s11487_s4] sm:$0xff] }
 0xa75   : > { %v6491_v45 = vpack.c.b16 %v5530_v0, %v5574_v63  ;;  %5673 = vmatpush.bf16.msrb.mxu1 %v5669_v30  ;;  %v5081_v49 = vsel %vm511_vm1, %v5080_v57, %v13144_v13  ;;  %v5084_v25 = vrot.slane %v10668_v31, 5  ;;  %v5067_v48 = vrot.slane %v13145_v3, 6  ;;  %v13151_v0 = vld [vmem:[#allocation27_spill] sm:$0xff]  ;;  %v5243_v63 = vpop.permute.xlu0 %5242 }
 0xa76   : > { %v4990_v23 = vunpack.c.l.b16 %v4904_v18  ;;  %v5065_v56 = vrot.slane %v13143_v11, 7  ;;  %v5083_v42 = vsel %vm515_vm2, %v5082_v22, %v5081_v49  ;;  %v5086_v15 = vrot.slane %v10514_v51, 4 }
 0xa77   : > { %5579 = vrot.lane.b32.xlu2 %v6491_v45, %s6681_s19  ;;  %v5069_v8 = vrot.slane %v13146_v44, 5  ;;  %v5085_v31 = vsel %vm519_vm0, %v5084_v25, %v5083_v42  ;;  %v5088_v9 = vrot.slane %v10522_v35, 3  ;;  %v13148_v16 = vunpack.i.l.s16 %v13147_v50  ;;  %v6588_v35 = vld [vmem:[%s11487_s4 + $0x8] sm:$0xff] }
 0xa78   : > { %v6434_v24 = vunpack.i.l.s16 %v4990_v23  ;;  %v5087_v4 = vsel %vm4701_vm6, %v5086_v15, %v5085_v31  ;;  %v5071_v5 = vrot.slane %v13149_v40, 4  ;;  %v5075_v29 = vrot.slane %v13150_v62, 2 }
 0xa79   : > { %5674 = vmatpush.bf16.msrb.mxu1 %v6591_v61  ;;  %v5073_v47 = vrot.slane %v13148_v16, 3  ;;  %v5089_v51 = vsel %vm4703_vm7, %v5088_v9, %v5087_v4  ;;  %v5090_v33 = vrot.slane %v10516_v10, 2  ;;  %v5092_v52 = vrot.slane %v10773_v14, 1 }
 0xa7a   : > { %v5066_v38 = vsel %vm511_vm1, %v5065_v56, %v6434_v24  ;;  %v5077_v55 = vrot.slane %v13151_v0, 1  ;;  %vm5581_vm13 = vcmask 80896   ;;  %vm5588_vm15 = vcmask 162816  }
 0xa7b   : > { %v5068_v53 = vsel %vm515_vm2, %v5067_v48, %v5066_v38  ;;  %v5091_v46 = vsel %vm4705_vm8, %v5090_v33, %v5089_v51  ;;  %vm5593_vm4 = vcmask 244736   ;;  %vm5598_vm5 = vcmask 326656   ;;  %v11346_v51 = vld [vmem:[%s11489_s6] ss:$0 sm:$0xff] }
 0xa7c   : > { %v5070_v20 = vsel %vm519_vm0, %v5069_v8, %v5068_v53  ;;  %v5093_v45 = vsel %vm5078_vm12, %v5092_v52, %v5091_v46  ;;  %vm5603_vm9 = vcmask 408576   ;;  %vm5608_vm10 = vcmask 490496  }
 0xa7d   : > { %5675 = vmatpush.bf16.msrb.mxu1 %v6590_v34  ;;  %v5072_v2 = vsel %vm4701_vm6, %v5071_v5, %v5070_v20  ;;  %vm5613_vm11 = vcmask 572416   ;;  %vm5618_vm14 = vcmask 654336   ;;  %v5094_v24 = vrot.slane %v10574_v41, 7  ;;  %v11341_v5 = vld [vmem:[%s11488_s5] ss:$0 sm:$0xff] }
 0xa7e   : > { %v5074_v58 = vsel %vm4703_vm7, %v5073_v47, %v5072_v2  ;;  %v5363_v30 = vpop.permute.xlu2 %5362  ;;  %v5096_v13 = vrot.slane %v10664_v27, 6  ;;  %v5098_v34 = vrot.slane %v10576_v26, 5  ;;  %v5100_v48 = vrot.slane %v10775_v28, 4 }
 0xa7f   : > { %v5076_v10 = vsel %vm4705_vm8, %v5075_v29, %v5074_v58  ;;  %v5095_v49 = vsel %vm511_vm1, %v5094_v24, %v10702_v36  ;;  %v5102_v38 = vrot.slane %v10866_v12, 3  ;;  %v5104_v41 = vrot.slane %v10688_v39, 2 }
 0xa80   : > { %v5079_v59 = vsel %vm5078_vm12, %v5077_v55, %v5076_v10  ;;  %v5097_v25 = vsel %vm515_vm2, %v5096_v13, %v5095_v49  ;;  %v5106_v36 = vrot.slane %v10913_v37, 1 }
 0xa81   : > { %5676 = vmatpush.bf16.msrb.mxu1 %v6589_v1  ;;  %v5108_v14 = vpack.c.b16 %v5093_v45, %v5079_v59  ;;  %v5099_v3 = vsel %vm519_vm0, %v5098_v34, %v5097_v25 }
 0xa82   : > { %v5101_v42 = vsel %vm4701_vm6, %v5100_v48, %v5099_v3 }
 0xa83   : > { %v5311_v7 = vpop.permute.xlu1 %5310  ;;  %v5584_v32 = vsel %vm5581_vm13, %v5108_v14, %v5175_v21  ;;  %v5103_v1 = vsel %vm4703_vm7, %v5102_v38, %v5101_v42 }
 0xa84   : > { %v5590_v19 = vsel %vm5588_vm15, %v5584_v32, %v5243_v63  ;;  %v5105_v27 = vsel %vm4705_vm8, %v5104_v41, %v5103_v1 }
 0xa85   : > { %5677 = vmatpush.bf16.msrb.mxu1 %v6588_v35  ;;  %v5595_v61 = vsel %vm5593_vm4, %v5590_v19, %v5311_v7  ;;  %v5107_v26 = vsel %vm5078_vm12, %v5106_v36, %v5105_v27 }
 0xa86   : > { %v5600_v23 = vsel %vm5598_vm5, %v5595_v61, %v5363_v30  ;;  %v6459_v8 = vpack.c.b16 %v10682_v54, %v5107_v26 }
 0xa89   : > { %5678 = vmatpush.bf16.msrb.mxu1 %v6587_v43 }
 0xa8d   : > { %v5415_v60 = vpop.permute.xlu0 %5414 }
 0xa8e   : > { %v5605_v6 = vsel %vm5603_vm9, %v5600_v23, %v5415_v60 }
 0xa9f   : > { %v5526_v22 = vpop.permute.xlu2 %5525 }
 0xaa8   : > { %v5474_v18 = vpop.permute.xlu1 %5473 }
 0xaa9   : > { %v5610_v57 = vsel %vm5608_vm10, %v5605_v6, %v5474_v18 }
 0xaaa   : > { %v5615_v17 = vsel %vm5613_vm11, %v5610_v57, %v5526_v22 }
 0xaaf   : > { %v5578_v11 = vpop.permute.xlu0 %5577 }
 0xab0   : > { %v5620_v56 = vsel %vm5618_vm14, %v5615_v17, %v5578_v11 }
 0xab1   : > { %6516 = vmatmul.msk.bf16.vlgmr.msrb.gmra.mxu1 %vm5663_vm3, %v5620_v56  ;;  %v5245_v44 = vpop.permute.xlu2 %5244 }
 0xabb   : > { %v5417_v9 = vpop.permute.xlu2 %5416 }
 0xabd   : > { %v5177_v15 = vpop.permute.xlu1 %5176 }
 0xabe   : > { %v5587_v28 = vsel %vm5581_vm13, %v6459_v8, %v5177_v15 }
 0xabf   : > { %v5592_v53 = vsel %vm5588_vm15, %v5587_v28, %v5245_v44 }
 0xac3   : > { %v5313_v31 = vpop.permute.xlu0 %5312 }
 0xac4   : > { %v5597_v4 = vsel %vm5593_vm4, %v5592_v53, %v5313_v31  ;;  %vm5992_vm4 = vcmask 392192  }
 0xacd   : > { %v5365_v12 = vpop.permute.xlu1 %5364 }
 0xace   : > { %v5602_v39 = vsel %vm5598_vm5, %v5597_v4, %v5365_v12  ;;  %vm5995_vm5 = vcmask 523264  }
 0xacf   : > { %v5607_v37 = vsel %vm5603_vm9, %v5602_v39, %v5417_v9  ;;  %vm6000_vm9 = vcmask 785408  }
 0xad1   : > { %v5580_v47 = vpop.permute.xlu2 %5579 }
 0xae4   : > { %v5476_v20 = vpop.permute.xlu0 %5475 }
 0xae5   : > { %v5612_v50 = vsel %vm5608_vm10, %v5607_v37, %v5476_v20  ;;  %vm6003_vm10 = vcmask 916480  }
 0xae6   : > { %v5528_v16 = vpop.permute.xlu1 %5527 }
 0xae7   : > { %v5617_v54 = vsel %vm5613_vm11, %v5612_v50, %v5528_v16 }
 0xae8   : > { %v5622_v40 = vsel %vm5618_vm14, %v5617_v54, %v5580_v47 }
 0xae9   : > { %6517 = vmatmul.msk.bf16.gmra.mxu1 %vm5663_vm3, %v5622_v40  ;;  %vm13152_vm3 = vcmask 1040384  }
 0xaea   : > { %vm13153_vm8 = vmmov %vm13152_vm3 }
 0xaeb   : > { %vm13154_vm13 = vmmov %vm13152_vm3 }
 0xb2e   : > { %v5680_v2 = vpop.f32.mrf.mxu1 }
 0xb2f   : > { %v5681_v62 = vadd.f32 %v11341_v5, %v5680_v2 }
 0xb31   : > { %vm5690_vm6 = vcmp.gt.f32.partialorder %v5681_v62, 0.0  ;;  %v5697_v29 = vmul.f32 %v11346_v51, %v5681_v62 }
 0xb33   : > { %v5701_v33 = vsel %vm5690_vm6, %v5681_v62, %v5697_v29 }
 0xb34   : > { %v5705_v35 = vpack.c.bf16 %v5701_v33, %v5701_v33 }
 0xb36   : > { %v5713_v58 = vrot.slane %v5705_v35, 3  ;;  %v5682_v52 = vpop.f32.mrf.mxu1 }
 0xb37   : > { %v5683_v21 = vadd.f32 %v11341_v5, %v5682_v52 }
 0xb38   : > { %v5719_v46 = vsel %vm13152_vm3, %v5705_v35, %v5713_v58  ;;  %v5721_v43 = vsel %vm511_vm1, %v5705_v35, %v5713_v58  ;;  %v5724_v0 = vsel %vm515_vm2, %v5705_v35, %v5713_v58  ;;  %v5727_v55 = vsel %vm519_vm0, %v5705_v35, %v5713_v58 }
 0xb39   : > { %v5726_v63 = vrot.slane %v5724_v0, 2  ;;  %v11355_v10 = vrot.slane %v5727_v55, 3  ;;  %5809 = vst [vmem:[#allocation1] ss:$9 sm:$0xff] %v5719_v46  ;;  %vm5691_vm7 = vcmp.gt.f32.partialorder %v5683_v21, 0.0  ;;  %v5698_v45 = vmul.f32 %v11346_v51, %v5683_v21 }
 0xb3a   : > { %v5723_v7 = vrot.slane %v5721_v43, 1  ;;  %v5761_v57 = vunpack.i.h.s16 %v5719_v46 }
 0xb3b   : > { %v5765_v59 = vunpack.i.h.s16 %v5726_v63  ;;  %5815 = vst [vmem:[#allocation1 + $0x2] ss:$9 sm:$0xff] %v11355_v10  ;;  %v5702_v14 = vsel %vm5691_vm7, %v5683_v21, %v5698_v45  ;;  %v5767_v56 = vunpack.i.h.s16 %v11355_v10  ;;  %v6601_v21 = vld [vmem:[%s11490_s7 + $0x40] sm:$0xff]  ;;  %v6600_v45 = vld [vmem:[%s11490_s7 + $0x38] sm:$0xff] }
 0xb3c   : > { %v5706_v30 = vpack.c.bf16 %v5702_v14, %v5702_v14  ;;  %v5763_v22 = vunpack.i.h.s16 %v5723_v7  ;;  %v6519_v24 = vpack.i.b16 %v5723_v7, %v5761_v57  ;;  %6089 = vmatpush.bf16.msrb.mxu3 %v6601_v21  ;;  %6068 = vmatpush.bf16.msrb.mxu2 %v6600_v45  ;;  %v6181_v45 = vlaneseq }
 0xb3d   : > { %v6518_v32 = vpack.i.b16 %v5765_v59, %v5723_v7  ;;  %v6523_v38 = vpack.i.b16 %v5767_v56, %v5726_v63  ;;  %v6524_v26 = vpack.i.b16 %v11355_v10, %v5765_v59 }
 0xb3e   : > { %v5714_v19 = vrot.slane %v5706_v30, 3  ;;  %v6520_v13 = vpack.i.b16 %v11355_v10, %v5763_v22  ;;  %v6599_v22 = vld [vmem:[%s11490_s7 + $0x30] sm:$0xff] }
 0xb3f   : > { %5812 = vst [vmem:[#allocation1 + $0x1] ss:$9 sm:$0xff] %v6518_v32 }
 0xb40   : > { %v5734_v61 = vsel %vm511_vm1, %v5706_v30, %v5714_v19  ;;  %v5737_v60 = vsel %vm515_vm2, %v5706_v30, %v5714_v19  ;;  %v11368_v17 = vsel %vm13153_vm8, %v5706_v30, %v5714_v19  ;;  %v5740_v48 = vsel %vm519_vm0, %v5706_v30, %v5714_v19  ;;  %6069 = vmatpush.bf16.msrb.mxu2 %v6599_v22 }
 0xb41   : > { %v11361_v18 = vrot.slane %v5734_v61, 1  ;;  %v11363_v23 = vrot.slane %v5737_v60, 2  ;;  %v11376_v25 = vpack.i.b16 %v11368_v17, %v5767_v56  ;;  %v11388_v42 = vrot.slane %v5740_v48, 3 }
 0xb43   : > { %v5772_v6 = vunpack.i.l.s16 %v11363_v23  ;;  %5818 = vst [vmem:[#allocation1 + $0x3] ss:$9 sm:$0xff] %v11361_v18  ;;  %v5771_v11 = vunpack.i.h.s16 %v11361_v18  ;;  %v11382_v3 = vunpack.i.h.s16 %v11363_v23  ;;  %v5774_v41 = vunpack.i.l.s16 %v11388_v42 }
 0xb44   : > { %v6525_v28 = vpack.i.b16 %v11361_v18, %v5767_v56  ;;  %v5775_v39 = vunpack.i.h.s16 %v11388_v42  ;;  %v6596_v56 = vld [vmem:[%s11490_s7 + $0x18] sm:$0xff] }
 0xb45   : > { %5821 = vst [vmem:[#allocation1 + $0x4] ss:$9 sm:$0xff] %v5772_v6  ;;  %v11379_v34 = vpack.i.b16 %v11363_v23, %v5771_v11  ;;  %v6527_v40 = vpack.i.b16 %v5771_v11, %v11368_v17  ;;  %v6529_v33 = vpack.i.b16 %v11388_v42, %v11382_v3  ;;  %v6598_v11 = vld [vmem:[%s11490_s7 + $0x28] sm:$0xff] }
 0xb46   : > { %v6531_v0 = vpack.i.b16 %v5775_v39, %v11363_v23  ;;  %6070 = vmatpush.bf16.msrb.mxu2 %v6598_v11 }
 0xb4c   : > { %v11373_v49 = vld [vmem:[#allocation1] sm:$0xff] }
 0xb4d   : > { %5829 = vst [vmem:[#allocation1] ss:$9 sm:$0xff] %v6519_v24  ;;  %v6595_v24 = vld [vmem:[%s11490_s7 + $0x10] sm:$0xff] }
 0xb4e   : > { %5832 = vst [vmem:[#allocation1 + $0x1] ss:$9 sm:$0xff] %v6520_v13  ;;  %v6594_v13 = vld [vmem:[%s11490_s7 + $0x8] sm:$0xff] }
 0xb4f   : > { %5835 = vst [vmem:[#allocation1 + $0x2] ss:$9 sm:$0xff] %v11376_v25 }
 0xb50   : > { %5838 = vst [vmem:[#allocation1 + $0x3] ss:$9 sm:$0xff] %v11379_v34 }
 0xb51   : > { %5841 = vst [vmem:[#allocation1 + $0x4] ss:$9 sm:$0xff] %v11382_v3 }
 0xb58   : > { %v5842_v1 = vld [vmem:[#allocation1] sm:$0xff] }
 0xb59   : > { %5844 = vrot.lane.b32.xlu0 %v5842_v1, %s6683_s28  ;;  %5852 = vst [vmem:[#allocation1] ss:$9 sm:$0xff] %v5723_v7 }
 0xb5a   : > { %5855 = vst [vmem:[#allocation1 + $0x1] ss:$9 sm:$0xff] %v6523_v38 }
 0xb5b   : > { %5858 = vst [vmem:[#allocation1 + $0x2] ss:$9 sm:$0xff] %v11368_v17 }
 0xb5c   : > { %5861 = vst [vmem:[#allocation1 + $0x3] ss:$9 sm:$0xff] %v11363_v23 }
 0xb5d   : > { %5864 = vst [vmem:[#allocation1 + $0x4] ss:$9 sm:$0xff] %v5774_v41 }
 0xb64   : > { %v5865_v31 = vld [vmem:[#allocation1] sm:$0xff] }
 0xb65   : > { %5867 = vrot.lane.b32.xlu1 %v5865_v31, %s6684_s29  ;;  %5874 = vst [vmem:[#allocation1] ss:$9 sm:$0xff] %v6524_v26  ;;  %v6602_v31 = vld [vmem:[%s11493_s10] sm:$0xff] }
 0xb66   : > { %v5685_v27 = vpop.f32.mrf.mxu1  ;;  %5877 = vst [vmem:[#allocation1 + $0x1] ss:$9 sm:$0xff] %v6525_v28 }
 0xb67   : > { %v5686_v36 = vadd.f32 %v11341_v5, %v5685_v27  ;;  %5879 = vst [vmem:[#allocation1 + $0x2] ss:$9 sm:$0xff] %v11379_v34 }
 0xb69   : > { %vm5692_vm12 = vcmp.gt.f32.partialorder %v5686_v36, 0.0  ;;  %v5699_v15 = vmul.f32 %v11346_v51, %v5686_v36 }
 0xb6b   : > { %v5703_v44 = vsel %vm5692_vm12, %v5686_v36, %v5699_v15 }
 0xb6c   : > { %v5707_v8 = vpack.c.bf16 %v5703_v44, %v5703_v44 }
 0xb6e   : > { %v5715_v53 = vrot.slane %v5707_v8, 3  ;;  %v5687_v12 = vpop.f32.mrf.mxu1 }
 0xb6f   : > { %v5688_v9 = vadd.f32 %v11341_v5, %v5687_v12 }
 0xb70   : > { %v5745_v4 = vsel %vm13154_vm13, %v5707_v8, %v5715_v53  ;;  %v5747_v47 = vsel %vm511_vm1, %v5707_v8, %v5715_v53  ;;  %v5753_v52 = vsel %vm519_vm0, %v5707_v8, %v5715_v53  ;;  %v5750_v46 = vsel %vm515_vm2, %v5707_v8, %v5715_v53  ;;  %vm13155_vm0 = vmmov %vm13152_vm3  ;;  %v6645_v53 = vld [vmem:[%s11491_s8] ss:$0 sm:$0xff] }
 0xb71   : > { %v11401_v20 = vunpack.i.h.s16 %v5745_v4  ;;  %v6526_v37 = vpack.i.b16 %v5745_v4, %v5775_v39  ;;  %vm5693_vm15 = vcmp.gt.f32.partialorder %v5688_v9, 0.0  ;;  %v5700_v50 = vmul.f32 %v11346_v51, %v5688_v9 }
 0xb72   : > { %v5749_v54 = vrot.slane %v5747_v47, 1  ;;  %v5769_v51 = vunpack.i.h.s16 %v11368_v17  ;;  %v5755_v43 = vrot.slane %v5753_v52, 3  ;;  %v5752_v63 = vrot.slane %v5750_v46, 2 }
 0xb73   : > { %5885 = vst [vmem:[#allocation1 + $0x4] ss:$9 sm:$0xff] %v11401_v20  ;;  %v5704_v16 = vsel %vm5693_vm15, %v5688_v9, %v5700_v50  ;;  %v6532_v59 = vpack.i.b16 %v5745_v4, %v11382_v3  ;;  %v6534_v60 = vpack.i.b16 %v11401_v20, %v11388_v42  ;;  %vm5986_vm1 = vcmask 130048  }
 0xb74   : > { %5882 = vst [vmem:[#allocation1 + $0x3] ss:$9 sm:$0xff] %v6526_v37  ;;  %v5778_v2 = vunpack.i.l.s16 %v5749_v54  ;;  %v6528_v62 = vpack.i.b16 %v11363_v23, %v5769_v51  ;;  %v6530_v35 = vpack.i.b16 %v5749_v54, %v11401_v20  ;;  %v5779_v58 = vunpack.i.h.s16 %v5749_v54  ;;  %v6646_v20 = vld [vmem:[%s11492_s9] ss:$0 sm:$0xff] }
 0xb75   : > { %v5781_v7 = vunpack.i.h.s16 %v5752_v63  ;;  %v5783_v30 = vunpack.i.h.s16 %v5755_v43  ;;  %v5708_v19 = vpack.c.bf16 %v5704_v16, %v5704_v16  ;;  %vm5989_vm2 = vcmask 261120  }
 0xb77   : > { %v6533_v32 = vpack.i.b16 %v5755_v43, %v5781_v7  ;;  %v5716_v61 = vrot.slane %v5708_v19, 3 }
 0xb7b   : > { %v5886_v5 = vld [vmem:[#allocation1] sm:$0xff] }
 0xb7c   : > { %5888 = vrot.lane.b32.xlu2 %v5886_v5, %s6685_s30  ;;  %5893 = vst [vmem:[#allocation1] ss:$9 sm:$0xff] %v11355_v10  ;;  %v5782_v10 = vunpack.i.l.s16 %v5755_v43  ;;  %s6584_s30 = sshll.u32 %s13157_s22, 4 }
 0xb7d   : > { %5896 = vst [vmem:[#allocation1 + $0x1] ss:$9 sm:$0xff] %v6527_v40  ;;  %s413_s15 = scalar_lea.vmem %s11495_s12, %s6584_s30 }
 0xb7e   : > { %5898 = vst [vmem:[#allocation1 + $0x2] ss:$9 sm:$0xff] %v11363_v23 }
 0xb7f   : > { %5901 = vst [vmem:[#allocation1 + $0x3] ss:$9 sm:$0xff] %v5745_v4 }
 0xb80   : > { %5904 = vst [vmem:[#allocation1 + $0x4] ss:$9 sm:$0xff] %v5778_v2 }
 0xb87   : > { %v5905_v29 = vld [vmem:[#allocation1] sm:$0xff] }
 0xb88   : > { %5907 = vrot.lane.b32.xlu0 %v5905_v29, %s6686_s13  ;;  %5913 = vst [vmem:[#allocation1] ss:$9 sm:$0xff] %v11376_v25  ;;  %v6593_v25 = vld [vmem:[%s11490_s7] sm:$0xff] }
 0xb89   : > { %5916 = vst [vmem:[#allocation1 + $0x1] ss:$9 sm:$0xff] %v6528_v62  ;;  %v6647_v62 = vld [vmem:[%s11494_s11] ss:$0 sm:$0xff] }
 0xb8a   : > { %5919 = vst [vmem:[#allocation1 + $0x2] ss:$9 sm:$0xff] %v6529_v33 }
 0xb8b   : > { %5922 = vst [vmem:[#allocation1 + $0x3] ss:$9 sm:$0xff] %v6530_v35 }
 0xb8c   : > { %5925 = vst [vmem:[#allocation1 + $0x4] ss:$9 sm:$0xff] %v5779_v58 }
 0xb93   : > { %v5926_v55 = vld [vmem:[#allocation1] sm:$0xff] }
 0xb94   : > { %5928 = vrot.lane.b32.xlu1 %v5926_v55, %s6681_s19  ;;  %5933 = vst [vmem:[#allocation1] ss:$9 sm:$0xff] %v11361_v18  ;;  %v5758_v18 = vsel %vm13155_vm0, %v5708_v19, %v5716_v61  ;;  %s6688_s19 = smov 112  }
 0xb95   : > { %5936 = vst [vmem:[#allocation1 + $0x1] ss:$9 sm:$0xff] %v6531_v0  ;;  %v5784_v57 = vunpack.i.l.s16 %v5758_v18 }
 0xb96   : > { %5938 = vst [vmem:[#allocation1 + $0x2] ss:$9 sm:$0xff] %v5745_v4 }
 0xb97   : > { %5941 = vst [vmem:[#allocation1 + $0x3] ss:$9 sm:$0xff] %v5752_v63 }
 0xb98   : > { %5944 = vst [vmem:[#allocation1 + $0x4] ss:$9 sm:$0xff] %v5782_v10 }
 0xb9f   : > { %v5945_v14 = vld [vmem:[#allocation1] sm:$0xff] }
 0xba0   : > { %5947 = vrot.lane.b32.xlu2 %v5945_v14, %s6687_s18  ;;  %5952 = vst [vmem:[#allocation1] ss:$9 sm:$0xff] %v11379_v34 }
 0xba1   : > { %5955 = vst [vmem:[#allocation1 + $0x1] ss:$9 sm:$0xff] %v6532_v59 }
 0xba2   : > { %5957 = vst [vmem:[#allocation1 + $0x2] ss:$9 sm:$0xff] %v6530_v35 }
 0xba3   : > { %5960 = vst [vmem:[#allocation1 + $0x3] ss:$9 sm:$0xff] %v6533_v32 }
 0xba4   : > { %5963 = vst [vmem:[#allocation1 + $0x4] ss:$9 sm:$0xff] %v5783_v30  ;;  %v6182_v30 = vand.u32 127, %v6181_v45 }
 0xba6   : > { %vm6183_vm8 = vcmp.lt.s32.totalorder %v6182_v30, 2 }
 0xbab   : > { %v5964_v6 = vld [vmem:[#allocation1] sm:$0xff] }
 0xbac   : > { %5966 = vrot.lane.b32.xlu0 %v5964_v6, %s6688_s19  ;;  %5972 = vst [vmem:[#allocation1] ss:$9 sm:$0xff] %v11363_v23  ;;  %v6597_v23 = vld [vmem:[%s11490_s7 + $0x20] sm:$0xff] }
 0xbad   : > { %5975 = vst [vmem:[#allocation1 + $0x1] ss:$9 sm:$0xff] %v6534_v60  ;;  %6071 = vmatpush.bf16.msrb.mxu2 %v6597_v23 }
 0xbae   : > { %5978 = vst [vmem:[#allocation1 + $0x2] ss:$9 sm:$0xff] %v5749_v54 }
 0xbaf   : > { %5981 = vst [vmem:[#allocation1 + $0x3] ss:$9 sm:$0xff] %v5755_v43 }
 0xbb0   : > { %5984 = vst [vmem:[#allocation1 + $0x4] ss:$9 sm:$0xff] %v5784_v57 }
 0xbb1   : > { %6072 = vmatpush.bf16.msrb.mxu2 %v6596_v56 }
 0xbb5   : > { %6073 = vmatpush.bf16.msrb.mxu2 %v6595_v24 }
 0xbb7   : > { %v5985_v17 = vld [vmem:[#allocation1] sm:$0xff] }
 0xbb8   : > { %6571 = vmatmul.msk.bf16.vlgmr.msrb.gmra.mxu3 %vm5986_vm1, %v5985_v17 }
 0xbb9   : > { %6074 = vmatpush.bf16.msrb.mxu2 %v6594_v13 }
 0xbbd   : > { %6075 = vmatpush.bf16.msrb.mxu2 %v6593_v25 }
 0xbcb   : > { %v5845_v34 = vpop.permute.xlu0 %5844 }
 0xbcc   : > { %v5988_v42 = vsel %vm5986_vm1, %v11373_v49, %v5845_v34  ;;  %v6603_v49 = vld [vmem:[%s11493_s10 + $0x8] sm:$0xff] }
 0xbcd   : > { %6135 = vmatpush.bf16.msra.mxu3 %v6603_v49 }
 0xbd1   : > { %6136 = vmatpush.bf16.msra.mxu3 %v6602_v31 }
 0xbd6   : > { %v5889_v48 = vpop.permute.xlu2 %5888 }
 0xbd7   : > { %v5868_v3 = vpop.permute.xlu1 %5867 }
 0xbd8   : > { %v5991_v38 = vsel %vm5989_vm2, %v5988_v42, %v5868_v3 }
 0xbd9   : > { %v5994_v27 = vsel %vm5992_vm4, %v5991_v38, %v5889_v48 }
 0xbfa   : > { %v5908_v1 = vpop.permute.xlu0 %5907  ;;  %v5948_v44 = vpop.permute.xlu2 %5947 }
 0xbfb   : > { %v5997_v36 = vsel %vm5995_vm5, %v5994_v27, %v5908_v1 }
 0xc06   : > { %v5929_v41 = vpop.permute.xlu1 %5928 }
 0xc07   : > { %v5999_v15 = vsel %vm5618_vm14, %v5997_v36, %v5929_v41 }
 0xc08   : > { %v6002_v8 = vsel %vm6000_vm9, %v5999_v15, %v5948_v44 }
 0xc1e   : > { %v5967_v26 = vpop.permute.xlu0 %5966 }
 0xc1f   : > { %v6005_v28 = vsel %vm6003_vm10, %v6002_v8, %v5967_v26 }
 0xc20   : > { %6076 = vmatmul.bf16.vlgmr.msrb.gmra.mxu2 %v6005_v28 }
 0xc3b   : > { %v6091_v12 = vpop.f32.mrf.mxu3 }
 0xc43   : > { %v6093_v16 = vpop.f32.mrf.mxu3 }
 0xca3   : > { %v6077_v9 = vpop.f32.mrf.mxu2 }
 0xca4   : > { %v6078_v4 = vadd.f32 %v6645_v53, %v6077_v9 }
 0xca6   : > { %v6092_v39 = vadd.f32 %v6091_v12, %v6078_v4 }
 0xca8   : > { %v6101_v47 = vmul.f32 %v6646_v20, %v6092_v39  ;;  %vm6096_vm11 = vcmp.gt.f32.partialorder %v6092_v39, 0.0 }
 0xcaa   : > { %v6103_v5 = vsel %vm6096_vm11, %v6092_v39, %v6101_v47 }
 0xcab   : > { %v6079_v37 = vpop.f32.mrf.mxu2 }
 0xcac   : > { %v6080_v50 = vadd.f32 %v6645_v53, %v6079_v37 }
 0xcae   : > { %v6094_v54 = vadd.f32 %v6093_v16, %v6080_v50 }
 0xcb0   : > { %vm6097_vm14 = vcmp.gt.f32.partialorder %v6094_v54, 0.0  ;;  %v6102_v40 = vmul.f32 %v6646_v20, %v6094_v54 }
 0xcb2   : > { %v6104_v2 = vsel %vm6097_vm14, %v6094_v54, %v6102_v40 }
 0xcb3   : > { %v6105_v51 = vpack.c.bf16 %v6104_v2, %v6103_v5 }
 0xcb5   : > { %6580 = vmatmul.msk.bf16.vlgmr.msra.gmra.mxu3 %vm5989_vm2, %v6105_v51 }
 0xd38   : > { %v6138_v29 = vpop.f32.mrf.mxu3 }
 0xd39   : > { %v6139_v33 = vadd.f32 %v6647_v62, %v6138_v29 }
 0xd3b   : > { %v6143_v35 = vsub.f32 0.0, %v6139_v33 }
 0xd3d   : > { %v6145_v58 = vmul.f32 1.442695, %v6143_v35 }
 0xd3f   : > { %6648 = vpow2.f32 %v6145_v58 }
 0xd40   : > { %v6140_v52 = vpop.f32.mrf.mxu3 }
 0xd41   : > { %v6141_v21 = vadd.f32 %v6647_v62, %v6140_v52 }
 0xd43   : > { %v6144_v46 = vsub.f32 0.0, %v6141_v21 }
 0xd45   : > { %v6649_v43 = vpop.eup %6648  ;;  %v6147_v0 = vmul.f32 1.442695, %v6144_v46 }
 0xd46   : > { %v6149_v55 = vadd.f32 1.0, %v6649_v43 }
 0xd47   : > { %6650 = vpow2.f32 %v6147_v0 }
 0xd48   : > { %6652 = vrcp.f32 %v6149_v55  ;;  %v6162_v32 = vand.u32 2147483648, %v6149_v55  ;;  %v6160_v61 = vand.u32 2147483647, %v6149_v55  ;;  %vm6156_vm3 = vweird.f32 %v6149_v55 }
 0xd4a   : > { %v6163_v6 = vor.u32 1.1754944e-38, %v6162_v32  ;;  %vm6161_vm12 = vcmp.eq.f32.partialorder %v6160_v61, 8.507059e+37 }
 0xd4d   : > { %v6651_v63 = vpop.eup %6650 }
 0xd4e   : > { %v6653_v10 = vpop.eup %6652  ;;  %v6150_v7 = vadd.f32 1.0, %v6651_v63 }
 0xd4f   : > { %v6152_v59 = vmul.f32 %v6653_v10, %v6149_v55  ;;  %vm6157_vm6 = vweird.f32 %v6653_v10 }
 0xd50   : > { %6654 = vrcp.f32 %v6150_v7  ;;  %vm6158_vm7 = vmor %vm6156_vm3, %vm6157_vm6  ;;  %v6177_v56 = vand.u32 2147483648, %v6150_v7  ;;  %v6175_v13 = vand.u32 2147483647, %v6150_v7  ;;  %vm6171_vm15 = vweird.f32 %v6150_v7 }
 0xd51   : > { %v6153_v14 = vsub.f32 1.0, %v6152_v59 }
 0xd52   : > { %v6178_v34 = vor.u32 1.1754944e-38, %v6177_v56  ;;  %vm6176_vm1 = vcmp.eq.f32.partialorder %v6175_v13, 8.507059e+37 }
 0xd53   : > { %v6154_v19 = vmul.f32 %v6653_v10, %v6153_v14 }
 0xd55   : > { %v6155_v60 = vadd.f32 %v6653_v10, %v6154_v19 }
 0xd56   : > { %v6655_v18 = vpop.eup %6654 }
 0xd57   : > { %v6159_v57 = vsel %vm6158_vm7, %v6653_v10, %v6155_v60  ;;  %v6167_v22 = vmul.f32 %v6655_v18, %v6150_v7  ;;  %vm6172_vm13 = vweird.f32 %v6655_v18 }
 0xd58   : > { %v6164_v17 = vsel %vm6161_vm12, %v6163_v6, %v6159_v57  ;;  %vm6173_vm0 = vmor %vm6171_vm15, %vm6172_vm13 }
 0xd59   : > { %v6184_v11 = vsel %vm6183_vm8, %v6164_v17, %v6139_v33  ;;  %v6168_v23 = vsub.f32 1.0, %v6167_v22 }
 0xd5a   : > { %6186 = vst [vmem:[%s413_s15] sm:$0xff] %v6184_v11 }
 0xd5b   : > { %v6169_v24 = vmul.f32 %v6655_v18, %v6168_v23 }
 0xd5d   : > { %v6170_v25 = vadd.f32 %v6655_v18, %v6169_v24 }
 0xd5f   : > { %v6174_v3 = vsel %vm6173_vm0, %v6655_v18, %v6170_v25 }
 0xd60   : > { %v6179_v48 = vsel %vm6176_vm1, %v6178_v34, %v6174_v3 }
 0xd61   : > { %v6185_v42 = vsel %vm6183_vm8, %v6179_v48, %v6141_v21 }
 0xd62   : > { %6187 = vst [vmem:[%s413_s15 + $0x8] sm:$0x1] %v6185_v42 }
 0xd63 PF: > { %s22_s21 = sadd.s32 1, %s6664_s21  }
 0xd64   : > { %p19_p4 = scmp.ge.s32.totalorder %s22_s21, 4  }
 0xd66   :  { %21 = sbr.rel (!%p19_p4) target bundleno = 1 (0x1), region = 218 }

</bundles_post_ra>
